<compile_context>
chip_gen: v7x
topology: tpu7x:2x2x1
jax: 0.10.0
libtpu: 0.0.40
codegen_flags: <defaults>
</compile_context>

<pallas_src>
import functools
import sys

import jax
import jax.numpy as jnp
from jax.experimental import pallas as pl
from jax.experimental.pallas import tpu as pltpu

IN_DIM, H1, H2, H3, H4, OUT = 4096, 1024, 128, 64, 12, 1
DROPOUT_P = 0.3


# ----------------------------------------------------------------------------
# Chip-gated weight format for layer 1 (the dominant HBM stream).
# ----------------------------------------------------------------------------
def detect_w1_format():
    """int8 on v5e/v6e (int MXU), fp8 on v7x (fp8 MXU, no int), else bf16."""
    try:
        kind = jax.devices()[0].device_kind.lower()
    except Exception:
        return "bf16"
    if "v7" in kind:
        return "fp8"
    if "v5" in kind or "v6" in kind:
        return "int8"
    return "bf16"


def _quant(v, scale, fmt):
    if fmt == "int8":
        return jnp.clip(jnp.round(v / scale), -127, 127).astype(jnp.int8)
    return (v / scale).astype(jnp.float8_e4m3fn)


def quantize_cols(w, fmt):
    """Per-output-column symmetric quantization of an [in, out] weight."""
    if fmt == "bf16":
        return w.astype(jnp.bfloat16), jnp.ones((1, w.shape[1]), jnp.float32)
    amax = jnp.maximum(jnp.max(jnp.abs(w), axis=0, keepdims=True), 1e-8)
    scale = amax / (127.0 if fmt == "int8" else 224.0)   # 224 < e4m3 max (448)
    return _quant(w, scale, fmt), scale


def quantize_rows(x, fmt):
    """Per-row symmetric quantization of the [batch, in] activations."""
    if fmt == "bf16":
        return x.astype(jnp.bfloat16), jnp.ones((x.shape[0], 1), jnp.float32)
    amax = jnp.maximum(jnp.max(jnp.abs(x), axis=1, keepdims=True), 1e-8)
    scale = amax / (127.0 if fmt == "int8" else 224.0)
    return _quant(x, scale, fmt), scale


# ----------------------------------------------------------------------------
# Kernel
# ----------------------------------------------------------------------------
def mlp_kernel(x_ref, sx_ref, w1_ref, sw_ref, b1_ref, w2_ref, b2_ref,
               w3_ref, b3_ref, w4_ref, b4_ref, w5_ref, b5_ref, mask_ref,
               out_ref, acc_ref):
    k = pl.program_id(0)

    @pl.when(k == 0)
    def _():
        acc_ref[...] = jnp.zeros_like(acc_ref)

    # Layer-1 partial product for this K tile.  Operand dtypes pick the MXU
    # path: int8 x int8 -> int32 (v5e/v6e), e4m3 x e4m3 -> f32 (v7x),
    # bf16 x bf16 -> f32 (fallback).
    acc_ref[...] += jnp.dot(x_ref[...], w1_ref[...],
                            preferred_element_type=acc_ref.dtype)

    @pl.when(k == pl.num_programs(0) - 1)
    def _():
        # Dequantize (per-row activation scale x per-column weight scale),
        # add bias, ReLU, then apply the dropout mask {0, 1/(1-p)}.
        h1 = acc_ref[...].astype(jnp.float32) * sx_ref[...] * sw_ref[...]
        h1 = jnp.maximum(h1 + b1_ref[...], 0.0)
        h1 = h1 * mask_ref[...]
        # Layer 2: bf16 weights, bf16-cast activations, f32 accumulation.
        h2 = jnp.maximum(
            jnp.dot(h1.astype(w2_ref.dtype), w2_ref[...],
                    preferred_element_type=jnp.float32) + b2_ref[...], 0.0)
        # Layers 3..4 (tiny, f32).
        h3 = jnp.maximum(
            jnp.dot(h2, w3_ref[...], preferred_element_type=jnp.float32)
            + b3_ref[...], 0.0)
        h4 = jnp.maximum(
            jnp.dot(h3, w4_ref[...], preferred_element_type=jnp.float32)
            + b4_ref[...], 0.0)
        # Layer 5 (no activation).
        out_ref[...] = (
            jnp.dot(h4, w5_ref[...], preferred_element_type=jnp.float32)
            + b5_ref[...])


@functools.partial(jax.jit, static_argnames=("tk",))
def mlp_forward(x_q, sx, params_q, mask, *, tk=2048):
    (w1, sw, b1, w2, b2, w3, b3, w4, b4, w5, b5) = params_q
    B, K = x_q.shape
    assert K % tk == 0
    grid = (K // tk,)
    acc_dtype = jnp.int32 if x_q.dtype == jnp.int8 else jnp.float32

    full = lambda shape: pl.BlockSpec(shape, lambda k: (0,) * len(shape))

    # Advisory cost estimate: dominated by streaming w1 from HBM.
    flops = 2 * B * (K * H1 + H1 * H2 + H2 * H3 + H3 * H4 + H4 * OUT)
    bytes_accessed = int(
        w1.size * w1.dtype.itemsize                       # dominant stream
        + x_q.size * x_q.dtype.itemsize
        + mask.size * mask.dtype.itemsize
        + sx.size * 4 + sw.size * 4
        + sum(p.size * p.dtype.itemsize
              for p in (b1, w2, b2, w3, b3, w4, b4, w5, b5))
        + B * OUT * 4)
    cost = pl.CostEstimate(flops=flops, transcendentals=0,
                           bytes_accessed=bytes_accessed)

    return pl.pallas_call(
        mlp_kernel,
        out_shape=jax.ShapeDtypeStruct((B, OUT), jnp.float32),
        grid_spec=pltpu.PrefetchScalarGridSpec(
            num_scalar_prefetch=0,
            grid=grid,
            in_specs=[
                pl.BlockSpec((B, tk), lambda k: (0, k)),     # x (quantized)
                full((B, 1)),                                # per-row x scale
                pl.BlockSpec((tk, H1), lambda k: (k, 0)),    # w1 (quantized)
                full((1, H1)),                               # per-col w1 scale
                full((1, H1)),                               # b1
                full((H1, H2)), full((1, H2)),               # w2 (bf16), b2
                full((H2, H3)), full((1, H3)),               # w3, b3
                full((H3, H4)), full((1, H4)),               # w4, b4
                full((H4, OUT)), full((1, OUT)),             # w5, b5
                full((B, H1)),                               # dropout mask
            ],
            out_specs=pl.BlockSpec((B, OUT), lambda k: (0, 0)),
            scratch_shapes=[pltpu.VMEM((B, H1), acc_dtype)],
        ),
        compiler_params=pltpu.CompilerParams(
            dimension_semantics=("arbitrary",),   # K is a reduction axis
            vmem_limit_bytes=32 << 20,            # <10 MiB actual; v7x-safe
        ),
        cost_estimate=cost,
    )(x_q, sx, w1, sw, b1, w2, b2, w3, b3, w4, b4, w5, b5, mask)


# ----------------------------------------------------------------------------
# Parameter init (PyTorch nn.Linear default) and references.
# ----------------------------------------------------------------------------
def init_linear(key, fan_in, fan_out):
    kw, kb = jax.random.split(key)
    bound = 1.0 / jnp.sqrt(float(fan_in))
    w = jax.random.uniform(kw, (fan_in, fan_out), jnp.float32, -bound, bound)
    b = jax.random.uniform(kb, (1, fan_out), jnp.float32, -bound, bound)
    return w, b


def init_params(key):
    dims = [(IN_DIM, H1), (H1, H2), (H2, H3), (H3, H4), (H4, OUT)]
    keys = jax.random.split(key, len(dims))
    params = []
    for k, (fi, fo) in zip(keys, dims):
        w, b = init_linear(k, fi, fo)
        params += [w, b]
    return tuple(params)


def jax_reference_mirror(x_q, sx, params_q, mask):
    """Mirrors the kernel's numerics exactly (same dtypes / dequant)."""
    (w1, sw, b1, w2, b2, w3, b3, w4, b4, w5, b5) = params_q
    acc_dtype = jnp.int32 if x_q.dtype == jnp.int8 else jnp.float32
    acc = jnp.dot(x_q, w1, preferred_element_type=acc_dtype)
    h = jnp.maximum(acc.astype(jnp.float32) * sx * sw + b1, 0.0) * mask
    h = jnp.maximum(
        jnp.dot(h.astype(w2.dtype), w2, preferred_element_type=jnp.float32)
        + b2, 0.0)
    h = jnp.maximum(jnp.dot(h, w3, preferred_element_type=jnp.float32) + b3, 0.0)
    h = jnp.maximum(jnp.dot(h, w4, preferred_element_type=jnp.float32) + b4, 0.0)
    return jnp.dot(h, w5, preferred_element_type=jnp.float32) + b5


def jax_reference_f32(x, params_f32, mask):
    """True full-precision forward (no weight/activation quantization)."""
    (w1, b1, w2, b2, w3, b3, w4, b4, w5, b5) = params_f32
    hi = jax.lax.Precision.HIGHEST
    h = jnp.maximum(jnp.dot(x, w1, precision=hi) + b1, 0.0) * mask
    h = jnp.maximum(jnp.dot(h, w2, precision=hi) + b2, 0.0)
    h = jnp.maximum(jnp.dot(h, w3, precision=hi) + b3, 0.0)
    h = jnp.maximum(jnp.dot(h, w4, precision=hi) + b4, 0.0)
    return jnp.dot(h, w5, precision=hi) + b5


# ----------------------------------------------------------------------------
# Driver
# ----------------------------------------------------------------------------
if __name__ == "__main__":
    root = jax.random.PRNGKey(0)
    k_param, k_x, k_drop = jax.random.split(root, 3)

    B = 8
    params_f32 = init_params(k_param)
    x = jax.random.normal(k_x, (B, IN_DIM), jnp.float32)

    # Dropout(0.3) in training mode, reproduced deterministically:
    # keep-prob 0.7, inverted scaling 1/0.7 baked into the mask.
    keep = jax.random.bernoulli(k_drop, 1.0 - DROPOUT_P, (B, H1))
    mask = keep.astype(jnp.float32) / (1.0 - DROPOUT_P)

    def run(fmt):
        (w1, b1, w2, b2, w3, b3, w4, b4, w5, b5) = params_f32
        w1_q, sw = quantize_cols(w1, fmt)
        x_q, sx = quantize_rows(x, fmt)
        params_q = (w1_q, sw, b1, w2.astype(jnp.bfloat16), b2,
                    w3, b3, w4, b4, w5, b5)
        out = mlp_forward(x_q, sx, params_q, mask)
        jax.block_until_ready(out)
        ref = jax_reference_mirror(x_q, sx, params_q, mask)
        return out, ref

    fmt = detect_w1_format()
    try:
        out, ref_mirror = run(fmt)
    except Exception as e:  # unexpected lowering gap: bf16 MXU path works everywhere
        print("note: %s path failed (%s); falling back to bf16"
              % (fmt, type(e).__name__), file=sys.stderr)
        fmt = "bf16"
        out, ref_mirror = run(fmt)

    assert out.shape == (B, OUT)

    # (1) Kernel vs. a reference mirroring the kernel's own numerics (tight).
    err_mirror = float(jnp.max(jnp.abs(out - ref_mirror)))
    assert jnp.allclose(out, ref_mirror, atol=5e-3, rtol=5e-3), (
        "[%s] kernel vs mirrored reference: max abs err %g" % (fmt, err_mirror))

    # (2) Kernel vs. the true f32 forward (loose, format-dependent): bounds are
    # ~10-50x the expected quantization error for each weight format.
    ref_f32 = jax_reference_f32(x, params_f32, mask)
    err_f32 = float(jnp.max(jnp.abs(out - ref_f32)))
    f32_tol = {"bf16": 0.02, "int8": 0.1, "fp8": 0.2}[fmt]
    assert err_f32 < f32_tol, (
        "[%s] kernel vs f32 reference: max abs err %g >= %g"
        % (fmt, err_f32, f32_tol))

    print("KERNEL_OK")
</pallas_src>

<mosaic_0001>
module attributes {stable_mosaic.version = 11 : i64} {
  func.func @mlp_kernel(%arg0: i32, %arg1: memref<8x2048xbf16, #tpu.memory_space<vmem>>, %arg2: memref<8x1xf32, #tpu.memory_space<vmem>>, %arg3: memref<2048x1024xbf16, #tpu.memory_space<vmem>>, %arg4: memref<1x1024xf32, #tpu.memory_space<vmem>>, %arg5: memref<1x1024xf32, #tpu.memory_space<vmem>>, %arg6: memref<1024x128xbf16, #tpu.memory_space<vmem>>, %arg7: memref<1x128xf32, #tpu.memory_space<vmem>>, %arg8: memref<128x64xf32, #tpu.memory_space<vmem>>, %arg9: memref<1x64xf32, #tpu.memory_space<vmem>>, %arg10: memref<64x12xf32, #tpu.memory_space<vmem>>, %arg11: memref<1x12xf32, #tpu.memory_space<vmem>>, %arg12: memref<12x1xf32, #tpu.memory_space<vmem>>, %arg13: memref<1x1xf32, #tpu.memory_space<vmem>>, %arg14: memref<8x1024xf32, #tpu.memory_space<vmem>>, %arg15: memref<8x1xf32, #tpu.memory_space<vmem>>, %arg16: memref<8x1024xf32, #tpu.memory_space<vmem>>) attributes {dimension_semantics = [#tpu.dimension_semantics<arbitrary>], iteration_bounds = array<i64: 2>, scalar_prefetch = 0 : i64, scratch_operands = 1 : i64, tpu.core_type = #tpu.core_type<tc>, window_params = [{transform_indices = @transform_0, window_bounds = array<i64: 8, 2048>}, {pipeline_mode = #tpu.pipeline_mode<synchronous>, transform_indices = @transform_1, window_bounds = array<i64: 8, 1>}, {transform_indices = @transform_2, window_bounds = array<i64: 2048, 1024>}, {pipeline_mode = #tpu.pipeline_mode<synchronous>, transform_indices = @transform_3, window_bounds = array<i64: 1, 1024>}, {pipeline_mode = #tpu.pipeline_mode<synchronous>, transform_indices = @transform_4, window_bounds = array<i64: 1, 1024>}, {pipeline_mode = #tpu.pipeline_mode<synchronous>, transform_indices = @transform_5, window_bounds = array<i64: 1024, 128>}, {pipeline_mode = #tpu.pipeline_mode<synchronous>, transform_indices = @transform_6, window_bounds = array<i64: 1, 128>}, {pipeline_mode = #tpu.pipeline_mode<synchronous>, transform_indices = @transform_7, window_bounds = array<i64: 128, 64>}, {pipeline_mode = #tpu.pipeline_mode<synchronous>, transform_indices = @transform_8, window_bounds = array<i64: 1, 64>}, {pipeline_mode = #tpu.pipeline_mode<synchronous>, transform_indices = @transform_9, window_bounds = array<i64: 64, 12>}, {pipeline_mode = #tpu.pipeline_mode<synchronous>, transform_indices = @transform_10, window_bounds = array<i64: 1, 12>}, {pipeline_mode = #tpu.pipeline_mode<synchronous>, transform_indices = @transform_11, window_bounds = array<i64: 12, 1>}, {pipeline_mode = #tpu.pipeline_mode<synchronous>, transform_indices = @transform_12, window_bounds = array<i64: 1, 1>}, {pipeline_mode = #tpu.pipeline_mode<synchronous>, transform_indices = @transform_13, window_bounds = array<i64: 8, 1024>}, {pipeline_mode = #tpu.pipeline_mode<synchronous>, transform_indices = @transform_14, window_bounds = array<i64: 8, 1>}]} {
    %c0_i32 = arith.constant 0 : i32
    %0 = arith.cmpi eq, %arg0, %c0_i32 : i32
    %1 = arith.extui %0 : i1 to i32
    %c0_i32_0 = arith.constant 0 : i32
    %2 = arith.cmpi ne, %1, %c0_i32_0 : i32
    scf.if %2 {
      %cst_9 = arith.constant 0.000000e+00 : f32
      %12 = vector.broadcast %cst_9 : f32 to vector<8x1024xf32>
      %c0_10 = arith.constant 0 : index
      %c0_11 = arith.constant 0 : index
      %13 = vector.load %arg16[%c0_10, %c0_11] : memref<8x1024xf32, #tpu.memory_space<vmem>>, vector<8x1024xf32>
      tpu.vector_store %arg16[%c0_10, %c0_11], %12 {strides = array<i32>} : memref<8x1024xf32, #tpu.memory_space<vmem>>, vector<8x1024xf32>,
    } else {
    }
    %c0 = arith.constant 0 : index
    %c0_1 = arith.constant 0 : index
    %3 = vector.load %arg16[%c0, %c0_1] : memref<8x1024xf32, #tpu.memory_space<vmem>>, vector<8x1024xf32>
    %c0_2 = arith.constant 0 : index
    %c0_3 = arith.constant 0 : index
    %4 = vector.load %arg1[%c0_2, %c0_3] : memref<8x2048xbf16, #tpu.memory_space<vmem>>, vector<8x2048xbf16>
    %c0_4 = arith.constant 0 : index
    %c0_5 = arith.constant 0 : index
    %5 = vector.load %arg3[%c0_4, %c0_5] : memref<2048x1024xbf16, #tpu.memory_space<vmem>>, vector<2048x1024xbf16>
    %cst = arith.constant dense<0.000000e+00> : vector<8x1024xf32>
    %6 = tpu.matmul %4, %5, %cst {dimension_numbers = #tpu.dot_dimension_numbers<[1], [0], [0], [1], [0, 0, 1, 1], [], []>} : vector<8x2048xbf16>, vector<2048x1024xbf16>, vector<8x1024xf32> -> vector<8x1024xf32>
    %7 = arith.addf %3, %6 : vector<8x1024xf32>
    %c0_6 = arith.constant 0 : index
    %c0_7 = arith.constant 0 : index
    %8 = vector.load %arg16[%c0_6, %c0_7] : memref<8x1024xf32, #tpu.memory_space<vmem>>, vector<8x1024xf32>
    tpu.vector_store %arg16[%c0_6, %c0_7], %7 {strides = array<i32>} : memref<8x1024xf32, #tpu.memory_space<vmem>>, vector<8x1024xf32>,
    %c1_i32 = arith.constant 1 : i32
    %9 = arith.cmpi eq, %arg0, %c1_i32 : i32
    %10 = arith.extui %9 : i1 to i32
    %c0_i32_8 = arith.constant 0 : i32
    %11 = arith.cmpi ne, %10, %c0_i32_8 : i32
    scf.if %11 {
      %c0_9 = arith.constant 0 : index
      %c0_10 = arith.constant 0 : index
      %12 = vector.load %arg16[%c0_9, %c0_10] : memref<8x1024xf32, #tpu.memory_space<vmem>>, vector<8x1024xf32>
      %c0_11 = arith.constant 0 : index
      %c0_12 = arith.constant 0 : index
      %13 = vector.load %arg2[%c0_11, %c0_12] : memref<8x1xf32, #tpu.memory_space<vmem>>, vector<8x1xf32>
      %14 = vector.broadcast %13 : vector<8x1xf32> to vector<8x1024xf32>
      %15 = arith.mulf %12, %14 : vector<8x1024xf32>
      %c0_13 = arith.constant 0 : index
      %c0_14 = arith.constant 0 : index
      %16 = vector.load %arg4[%c0_13, %c0_14] : memref<1x1024xf32, #tpu.memory_space<vmem>>, vector<1x1024xf32>
      %17 = vector.broadcast %16 : vector<1x1024xf32> to vector<8x1024xf32>
      %18 = arith.mulf %15, %17 : vector<8x1024xf32>
      %c0_15 = arith.constant 0 : index
      %c0_16 = arith.constant 0 : index
      %19 = vector.load %arg5[%c0_15, %c0_16] : memref<1x1024xf32, #tpu.memory_space<vmem>>, vector<1x1024xf32>
      %20 = vector.broadcast %19 : vector<1x1024xf32> to vector<8x1024xf32>
      %21 = arith.addf %18, %20 : vector<8x1024xf32>
      %cst_17 = arith.constant 0.000000e+00 : f32
      %22 = vector.broadcast %cst_17 : f32 to vector<8x1024xf32>
      %23 = arith.maximumf %21, %22 : vector<8x1024xf32>
      %c0_18 = arith.constant 0 : index
      %c0_19 = arith.constant 0 : index
      %24 = vector.load %arg14[%c0_18, %c0_19] : memref<8x1024xf32, #tpu.memory_space<vmem>>, vector<8x1024xf32>
      %25 = arith.mulf %23, %24 : vector<8x1024xf32>
      %26 = arith.truncf %25 : vector<8x1024xf32> to vector<8x1024xbf16>
      %c0_20 = arith.constant 0 : index
      %c0_21 = arith.constant 0 : index
      %27 = vector.load %arg6[%c0_20, %c0_21] : memref<1024x128xbf16, #tpu.memory_space<vmem>>, vector<1024x128xbf16>
      %cst_22 = arith.constant dense<0.000000e+00> : vector<8x128xf32>
      %28 = tpu.matmul %26, %27, %cst_22 {dimension_numbers = #tpu.dot_dimension_numbers<[1], [0], [0], [1], [0, 0, 1, 1], [], []>} : vector<8x1024xbf16>, vector<1024x128xbf16>, vector<8x128xf32> -> vector<8x128xf32>
      %c0_23 = arith.constant 0 : index
      %c0_24 = arith.constant 0 : index
      %29 = vector.load %arg7[%c0_23, %c0_24] : memref<1x128xf32, #tpu.memory_space<vmem>>, vector<1x128xf32>
      %30 = vector.broadcast %29 : vector<1x128xf32> to vector<8x128xf32>
      %31 = arith.addf %28, %30 : vector<8x128xf32>
      %cst_25 = arith.constant 0.000000e+00 : f32
      %32 = vector.broadcast %cst_25 : f32 to vector<8x128xf32>
      %33 = arith.maximumf %31, %32 : vector<8x128xf32>
      %c0_26 = arith.constant 0 : index
      %c0_27 = arith.constant 0 : index
      %34 = vector.load %arg8[%c0_26, %c0_27] : memref<128x64xf32, #tpu.memory_space<vmem>>, vector<128x64xf32>
      %cst_28 = arith.constant dense<0.000000e+00> : vector<8x64xf32>
      %35 = tpu.matmul %33, %34, %cst_28 {dimension_numbers = #tpu.dot_dimension_numbers<[1], [0], [0], [1], [0, 0, 1, 1], [], []>} : vector<8x128xf32>, vector<128x64xf32>, vector<8x64xf32> -> vector<8x64xf32>
      %c0_29 = arith.constant 0 : index
      %c0_30 = arith.constant 0 : index
      %36 = vector.load %arg9[%c0_29, %c0_30] : memref<1x64xf32, #tpu.memory_space<vmem>>, vector<1x64xf32>
      %37 = vector.broadcast %36 : vector<1x64xf32> to vector<8x64xf32>
      %38 = arith.addf %35, %37 : vector<8x64xf32>
      %cst_31 = arith.constant 0.000000e+00 : f32
      %39 = vector.broadcast %cst_31 : f32 to vector<8x64xf32>
      %40 = arith.maximumf %38, %39 : vector<8x64xf32>
      %c0_32 = arith.constant 0 : index
      %c0_33 = arith.constant 0 : index
      %41 = vector.load %arg10[%c0_32, %c0_33] : memref<64x12xf32, #tpu.memory_space<vmem>>, vector<64x12xf32>
      %cst_34 = arith.constant dense<0.000000e+00> : vector<8x12xf32>
      %42 = tpu.matmul %40, %41, %cst_34 {dimension_numbers = #tpu.dot_dimension_numbers<[1], [0], [0], [1], [0, 0, 1, 1], [], []>} : vector<8x64xf32>, vector<64x12xf32>, vector<8x12xf32> -> vector<8x12xf32>
      %c0_35 = arith.constant 0 : index
      %c0_36 = arith.constant 0 : index
      %43 = vector.load %arg11[%c0_35, %c0_36] : memref<1x12xf32, #tpu.memory_space<vmem>>, vector<1x12xf32>
      %44 = vector.broadcast %43 : vector<1x12xf32> to vector<8x12xf32>
      %45 = arith.addf %42, %44 : vector<8x12xf32>
      %cst_37 = arith.constant 0.000000e+00 : f32
      %46 = vector.broadcast %cst_37 : f32 to vector<8x12xf32>
      %47 = arith.maximumf %45, %46 : vector<8x12xf32>
      %c0_38 = arith.constant 0 : index
      %c0_39 = arith.constant 0 : index
      %48 = vector.load %arg12[%c0_38, %c0_39] : memref<12x1xf32, #tpu.memory_space<vmem>>, vector<12x1xf32>
      %cst_40 = arith.constant dense<0.000000e+00> : vector<8x1xf32>
      %49 = tpu.matmul %47, %48, %cst_40 {dimension_numbers = #tpu.dot_dimension_numbers<[1], [0], [0], [1], [0, 0, 1, 1], [], []>} : vector<8x12xf32>, vector<12x1xf32>, vector<8x1xf32> -> vector<8x1xf32>
      %c0_41 = arith.constant 0 : index
      %c0_42 = arith.constant 0 : index
      %50 = vector.load %arg13[%c0_41, %c0_42] : memref<1x1xf32, #tpu.memory_space<vmem>>, vector<1x1xf32>
      %51 = vector.broadcast %50 : vector<1x1xf32> to vector<8x1xf32>
      %52 = arith.addf %49, %51 : vector<8x1xf32>
      %c0_43 = arith.constant 0 : index
      %c0_44 = arith.constant 0 : index
      %53 = vector.load %arg15[%c0_43, %c0_44] : memref<8x1xf32, #tpu.memory_space<vmem>>, vector<8x1xf32>
      tpu.vector_store %arg15[%c0_43, %c0_44], %52 {strides = array<i32>} : memref<8x1xf32, #tpu.memory_space<vmem>>, vector<8x1xf32>,
    } else {
    }
    return
  }
  func.func @transform_0(%arg0: i32) -> (i32, i32) {
    %c0_i32 = arith.constant 0 : i32
    %c0_i32_0 = arith.constant 0 : i32
    return %c0_i32, %arg0 : i32, i32
  }
  func.func @transform_1(%arg0: i32) -> (i32, i32) {
    %c0_i32 = arith.constant 0 : i32
    %c0_i32_0 = arith.constant 0 : i32
    %c0_i32_1 = arith.constant 0 : i32
    return %c0_i32, %c0_i32_0 : i32, i32
  }
  func.func @transform_2(%arg0: i32) -> (i32, i32) {
    %c0_i32 = arith.constant 0 : i32
    %c0_i32_0 = arith.constant 0 : i32
    return %arg0, %c0_i32 : i32, i32
  }
  func.func @transform_3(%arg0: i32) -> (i32, i32) {
    %c0_i32 = arith.constant 0 : i32
    %c0_i32_0 = arith.constant 0 : i32
    %c0_i32_1 = arith.constant 0 : i32
    return %c0_i32, %c0_i32_0 : i32, i32
  }
  func.func @transform_4(%arg0: i32) -> (i32, i32) {
    %c0_i32 = arith.constant 0 : i32
    %c0_i32_0 = arith.constant 0 : i32
    %c0_i32_1 = arith.constant 0 : i32
    return %c0_i32, %c0_i32_0 : i32, i32
  }
  func.func @transform_5(%arg0: i32) -> (i32, i32) {
    %c0_i32 = arith.constant 0 : i32
    %c0_i32_0 = arith.constant 0 : i32
    %c0_i32_1 = arith.constant 0 : i32
    return %c0_i32, %c0_i32_0 : i32, i32
  }
  func.func @transform_6(%arg0: i32) -> (i32, i32) {
    %c0_i32 = arith.constant 0 : i32
    %c0_i32_0 = arith.constant 0 : i32
    %c0_i32_1 = arith.constant 0 : i32
    return %c0_i32, %c0_i32_0 : i32, i32
  }
  func.func @transform_7(%arg0: i32) -> (i32, i32) {
    %c0_i32 = arith.constant 0 : i32
    %c0_i32_0 = arith.constant 0 : i32
    %c0_i32_1 = arith.constant 0 : i32
    return %c0_i32, %c0_i32_0 : i32, i32
  }
  func.func @transform_8(%arg0: i32) -> (i32, i32) {
    %c0_i32 = arith.constant 0 : i32
    %c0_i32_0 = arith.constant 0 : i32
    %c0_i32_1 = arith.constant 0 : i32
    return %c0_i32, %c0_i32_0 : i32, i32
  }
  func.func @transform_9(%arg0: i32) -> (i32, i32) {
    %c0_i32 = arith.constant 0 : i32
    %c0_i32_0 = arith.constant 0 : i32
    %c0_i32_1 = arith.constant 0 : i32
    return %c0_i32, %c0_i32_0 : i32, i32
  }
  func.func @transform_10(%arg0: i32) -> (i32, i32) {
    %c0_i32 = arith.constant 0 : i32
    %c0_i32_0 = arith.constant 0 : i32
    %c0_i32_1 = arith.constant 0 : i32
    return %c0_i32, %c0_i32_0 : i32, i32
  }
  func.func @transform_11(%arg0: i32) -> (i32, i32) {
    %c0_i32 = arith.constant 0 : i32
    %c0_i32_0 = arith.constant 0 : i32
    %c0_i32_1 = arith.constant 0 : i32
    return %c0_i32, %c0_i32_0 : i32, i32
  }
  func.func @transform_12(%arg0: i32) -> (i32, i32) {
    %c0_i32 = arith.constant 0 : i32
    %c0_i32_0 = arith.constant 0 : i32
    %c0_i32_1 = arith.constant 0 : i32
    return %c0_i32, %c0_i32_0 : i32, i32
  }
  func.func @transform_13(%arg0: i32) -> (i32, i32) {
    %c0_i32 = arith.constant 0 : i32
    %c0_i32_0 = arith.constant 0 : i32
    %c0_i32_1 = arith.constant 0 : i32
    return %c0_i32, %c0_i32_0 : i32, i32
  }
  func.func @transform_14(%arg0: i32) -> (i32, i32) {
    %c0_i32 = arith.constant 0 : i32
    %c0_i32_0 = arith.constant 0 : i32
    %c0_i32_1 = arith.constant 0 : i32
    return %c0_i32, %c0_i32_0 : i32, i32
  }
}

</mosaic_0001>

<bundles_post_ra>
// kernel: mlp_forward.1
= control target key start
LH: loop header
LB: loop body
LE: loop exit
PB: predicated region body
PF: predicated region fallthrough
CT: control target
= control target key end

     0   :  { %s13096_s0 = inlined_call_operand.hbm [shape: bf16[8,4096], index: 0, kind: input, shape index: {}]   ;;  %s13097_s1 = inlined_call_operand.vmem [shape: f32[8,1], index: 1, kind: input, shape index: {}]   ;;  %s13098_s2 = inlined_call_operand.hbm [shape: bf16[4096,1024], index: 2, kind: input, shape index: {}]   ;;  %s13099_s3 = inlined_call_operand.hbm [shape: f32[1,1024], index: 3, kind: input, shape index: {}]   ;;  %s13100_s4 = inlined_call_operand.hbm [shape: f32[1,1024], index: 4, kind: input, shape index: {}]   ;;  %s13101_s5 = inlined_call_operand.hbm [shape: bf16[1024,128], index: 5, kind: input, shape index: {}]   ;;  %s13102_s6 = inlined_call_operand.hbm [shape: f32[1,128], index: 6, kind: input, shape index: {}]   ;;  %s13103_s7 = inlined_call_operand.vmem [shape: f32[128,64], index: 7, kind: input, shape index: {}]   ;;  %s13104_s8 = inlined_call_operand.hbm [shape: f32[1,64], index: 8, kind: input, shape index: {}]   ;;  %s13105_s9 = inlined_call_operand.vmem [shape: f32[64,12], index: 9, kind: input, shape index: {}]   ;;  %s13106_s10 = inlined_call_operand.hbm [shape: f32[1,12], index: 10, kind: input, shape index: {}]   ;;  %s13107_s11 = inlined_call_operand.vmem [shape: f32[12,1], index: 11, kind: input, shape index: {}]   ;;  %s13108_s12 = inlined_call_operand.<no memory space> [shape: f32[1,1], index: 12, kind: input, shape index: {}]   ;;  %s13109_s13 = inlined_call_operand.hbm [shape: f32[8,1024], index: 13, kind: input, shape index: {}]   ;;  %s13110_s14 = inlined_call_operand.vmem [shape: f32[8,1], index: 14, kind: output, shape index: {}]  }
   0x1   :  { %13116 = sst [smem:[#allocation24_spill]] %s13099_s3  ;;  %v19_v0 = vstv %s13108_s12 }
   0x2   :  { %13117 = sst [smem:[#allocation25_spill]] %s13100_s4  ;;  %20 = vst [vmem:[#allocation3] sm:$0x1] %v19_v0 }
   0x3   :  { %13118 = sst [smem:[#allocation26_spill]] %s13102_s6 }
   0x4   :  { %13119 = sst [smem:[#allocation27_spill]] %s13103_s7 }
   0x5   :  { %13120 = sst [smem:[#allocation28_spill]] %s13105_s9 }
   0x6   :  { %13121 = sst [smem:[#allocation29_spill]] %s13107_s11 }
   0x7   :  { %13122 = sst [smem:[#allocation30_spill]] %s13110_s14 }
   0x8   :  { %21 = vsyncpa [#allocation5], 0 }
   0x9   :  { %23 = vsyncpa [#allocation5 + $0x1], 0 }
   0xa   :  { %24 = vsyncpa [#allocation7], 0 }
   0xb   :  { %26 = vsyncpa [#allocation7 + $0x1], 0 }
   0xc   :  { %27 = vsyncpa [#allocation10], 0 }
   0xd   :  { %28 = vsyncpa [#allocation13], 0 }
   0xe   :  { %29 = vsyncpa [#allocation16], 0  ;;  %s11379_s15 = smov 0   ;;  %s11381_s16 = smov 0  }
   0xf   :  { %s11383_s17 = smov 0   ;;  %s11385_s18 = smov 0  }
  0x10 LB: > { %s11282_s12 = smov [#allocation8]   ;;  %s11400_s20 = sadd.s32 4294967295, %s11280_s18   ;;  %s11280_s18 = sphi %s11385_s18, %s13149_s18   ;;  %s11276_s17 = sphi %s11383_s17, %s13148_s17   ;;  %s11272_s16 = sphi %s11381_s16, %s13147_s16   ;;  %s11268_s15 = sphi %s11379_s15, %s13146_s15  }
  0x11   : > { %s381_s19 = sshll.u32 %s11282_s12, 4  ;;  %p9402_p0 = scmp.ge.s32.totalorder %s11280_s18, 1  ;;  %s11406_s19 = int_to_ptr.vmem [resolvable:$true] %s381_s19 }
  0x12   : > { %p13114_p1 = scmp.eq.s32.totalorder %s11400_s20, 0  ;;  %p365_p2 = scmp.lt.s32.totalorder %s11280_s18, 3 }
  0x13   : > { %s11283_s22 = smov [#allocation9]   ;;  %s11284_s24 = smov [#allocation12]  }
  0x14   : > { %p11408_p4 = pnand %p9402_p0, %p365_p2  ;;  %s392_s23 = sshll.u32 %s11283_s22, 4  ;;  %s11414_s23 = int_to_ptr.vmem [resolvable:$true] %s392_s23 }
  0x15   : > { %s416_s25 = sshll.u32 %s11284_s24, 4  ;;  %s11285_s27 = smov [#allocation15]   ;;  %s11422_s25 = int_to_ptr.vmem [resolvable:$true] %s416_s25 }
  0x16   : > { %s13123_s21 = scalar_select %p11408_p4, 1, 0 }
  0x17   : > { %p10796_p5 = pneg %p11408_p4  ;;  %s11424_s28 = sshll.u32 %s11285_s27, 4  ;;  %s445_s28 = int_to_ptr.vmem [resolvable:$true] %s11424_s28 }
  0x18   : > { %s13125_s3 = sld [smem:[#allocation24_spill]] }
  0x19   : > { %p11418_p6 = pnand %p10796_p5, %p13114_p1 }
  0x1b   : > { %p11434_p8 = pneg %p11418_p6 }
  0x1e   : > { %s10970_s12 = scalar_lea.hbm %s13125_s3, 128 }
  0x1f   : > { %p10971_p7 = scmp.ne.s32.totalorder %s13125_s3, %s10970_s12  ;;  %p10977_p11 = scmp.lt.u32.totalorder %s10970_s12, %s13125_s3 }
  0x21   : > { %p10973_p9 = pnand %p11434_p8, %p10971_p7 }
  0x23   : > { %p10974_p10 = pneg %p10973_p9 }
  0x25   : > { %p10979_p12 = pnand %p10977_p11, %p10974_p10 }
  0x27   : > { %10982 = shalt.err (!%p10979_p12)
}
  0x28   : > { %s10983_s14 = scalar_lea.vmem %s11406_s19, 128  ;;  %p10991_p5 = scmp.lt.s32.totalorder %s11406_s19, %s11406_s19 }
  0x29   : > { %p10984_p13 = scmp.ne.s32.totalorder %s11406_s19, %s10983_s14  ;;  %p10992_p3 = scmp.lt.s32.totalorder %s10983_s14, %s10983_s14 }
  0x2b   : > { %p10986_p0 = pnand %p10984_p13, %p11434_p8  ;;  %p10993_p7 = por %p10992_p3, %p10991_p5 }
  0x2d   : > { %p10987_p2 = pneg %p10986_p0 }
  0x2f   : > { %p10994_p9 = pnand %p10993_p7, %p10987_p2 }
  0x31   : > { %10997 = shalt.err (!%p10994_p9)
}
  0x32   : > { %10799 = dma.hbm_to_vmem [thread:$0]  (!%p11418_p6), %s13125_s3, 128, %s11406_s19, [#allocation7]  }
  0x33   : > { %s13127_s4 = sld [smem:[#allocation25_spill]] }
  0x39   : > { %s10998_s22 = scalar_lea.hbm %s13127_s4, 128 }
  0x3a   : > { %p10999_p10 = scmp.ne.s32.totalorder %s13127_s4, %s10998_s22  ;;  %p11005_p12 = scmp.lt.u32.totalorder %s10998_s22, %s13127_s4 }
  0x3c   : > { %p11001_p3 = pnand %p10999_p10, %p11434_p8 }
  0x3e   : > { %p11002_p11 = pneg %p11001_p3 }
  0x40   : > { %p11007_p13 = pnand %p11005_p12, %p11002_p11 }
  0x42   : > { %11010 = shalt.err (!%p11007_p13)
}
  0x43   : > { %s11011_s19 = scalar_lea.vmem %s11414_s23, 128  ;;  %p11019_p7 = scmp.lt.s32.totalorder %s11414_s23, %s11414_s23 }
  0x44   : > { %p11012_p0 = scmp.ne.s32.totalorder %s11414_s23, %s11011_s19  ;;  %p11020_p9 = scmp.lt.s32.totalorder %s11011_s19, %s11011_s19 }
  0x46   : > { %p11014_p2 = pnand %p11012_p0, %p11434_p8  ;;  %p11021_p10 = por %p11020_p9, %p11019_p7 }
  0x48   : > { %p11015_p5 = pneg %p11014_p2 }
  0x4a   : > { %p11022_p3 = pnand %p11021_p10, %p11015_p5 }
  0x4c   : > { %11025 = shalt.err (!%p11022_p3)
}
  0x4d   : > { %10802 = dma.hbm_to_vmem [thread:$0]  (!%p11418_p6), %s13127_s4, 128, %s11414_s23, [#allocation10]  }
  0x4e   : > { %s13128_s6 = sld [smem:[#allocation26_spill]] }
  0x54   : > { %s11026_s30 = scalar_lea.hbm %s13128_s6, 16 }
  0x55   : > { %p11027_p11 = scmp.ne.s32.totalorder %s13128_s6, %s11026_s30  ;;  %p11033_p0 = scmp.lt.u32.totalorder %s11026_s30, %s13128_s6 }
  0x57   : > { %p11029_p12 = pnand %p11027_p11, %p11434_p8 }
  0x59   : > { %p11030_p13 = pneg %p11029_p12 }
  0x5b   : > { %p11035_p2 = pnand %p11033_p0, %p11030_p13 }
  0x5d   : > { %11038 = shalt.err (!%p11035_p2)
}
  0x5e   : > { %s11039_s23 = scalar_lea.vmem %s11422_s25, 16  ;;  %s11046_s19 = scalar_lea.vmem %s11422_s25, 32 }
  0x5f   : > { %p11040_p5 = scmp.ne.s32.totalorder %s11422_s25, %s11039_s23  ;;  %p11047_p10 = scmp.lt.s32.totalorder %s11422_s25, %s11422_s25 }
  0x60   : > { %p11048_p3 = scmp.lt.s32.totalorder %s11046_s19, %s11039_s23 }
  0x61   : > { %p11042_p7 = pnand %p11040_p5, %p11434_p8 }
  0x62   : > { %p11049_p11 = por %p11048_p3, %p11047_p10 }
  0x63   : > { %p11043_p9 = pneg %p11042_p7 }
  0x65   : > { %p11050_p12 = pnand %p11049_p11, %p11043_p9 }
  0x67   : > { %11053 = shalt.err (!%p11050_p12)
}
  0x68   : > { %10808 = dma.hbm_to_vmem [thread:$0]  (!%p11418_p6), %s13128_s6, 16, %s11422_s25, [#allocation13]  }
  0x69   : > { %s11286_s11 = smov [#allocation11]   ;;  %s11054_s22 = scalar_lea.hbm %s13106_s10, 16 }
  0x6a   : > { %s402_s29 = sshll.u32 %s11286_s11, 4  ;;  %p11055_p13 = scmp.ne.s32.totalorder %s13106_s10, %s11054_s22  ;;  %s403_s29 = int_to_ptr.vmem [resolvable:$true] %s402_s29 }
  0x6b   : > { %p11061_p5 = scmp.lt.u32.totalorder %s11054_s22, %s13106_s10 }
  0x6c   : > { %p11057_p0 = pnand %p11055_p13, %p11434_p8 }
  0x6e   : > { %p11058_p2 = pneg %p11057_p0 }
  0x70   : > { %p11063_p7 = pnand %p11061_p5, %p11058_p2 }
  0x72   : > { %11066 = shalt.err (!%p11063_p7)
}
  0x73   : > { %s11067_s25 = scalar_lea.vmem %s445_s28, 16  ;;  %s11074_s7 = scalar_lea.vmem %s445_s28, 32 }
  0x74   : > { %p11068_p9 = scmp.ne.s32.totalorder %s445_s28, %s11067_s25  ;;  %p11075_p11 = scmp.lt.s32.totalorder %s445_s28, %s445_s28 }
  0x75   : > { %p11076_p12 = scmp.lt.s32.totalorder %s11074_s7, %s11067_s25 }
  0x76   : > { %p11070_p10 = pnand %p11068_p9, %p11434_p8 }
  0x77   : > { %p11077_p1 = por %p11076_p12, %p11075_p11 }
  0x78   : > { %p11071_p3 = pneg %p11070_p10 }
  0x7a   : > { %p11078_p4 = pnand %p11077_p1, %p11071_p3 }
  0x7c   : > { %11081 = shalt.err (!%p11078_p4)
}
  0x7d   : > { %10814 = dma.hbm_to_vmem [thread:$0]  (!%p11418_p6), %s13106_s10, 16, %s445_s28, [#allocation16]  }
  0x7e   : > { %s11082_s22 = scalar_lea.hbm %s13101_s5, 8192 }
  0x7f   : > { %p11083_p13 = scmp.ne.s32.totalorder %s13101_s5, %s11082_s22  ;;  %p11089_p4 = scmp.lt.u32.totalorder %s11082_s22, %s13101_s5 }
  0x81   : > { %p11085_p0 = pnand %p11083_p13, %p11434_p8 }
  0x83   : > { %p11086_p1 = pneg %p11085_p0 }
  0x85   : > { %p11091_p2 = pnand %p11089_p4, %p11086_p1 }
  0x87   : > { %11094 = shalt.err (!%p11091_p2)
}
  0x88   : > { %s11095_s25 = scalar_lea.vmem %s403_s29, 8192  ;;  %p11103_p10 = scmp.lt.s32.totalorder %s403_s29, %s403_s29 }
  0x89   : > { %p11096_p5 = scmp.ne.s32.totalorder %s403_s29, %s11095_s25  ;;  %p11104_p3 = scmp.lt.s32.totalorder %s11095_s25, %s11095_s25 }
  0x8b   : > { %p11098_p7 = pnand %p11096_p5, %p11434_p8  ;;  %p11105_p11 = por %p11104_p3, %p11103_p10 }
  0x8d   : > { %p11099_p9 = pneg %p11098_p7 }
  0x8f   : > { %p11106_p12 = pnand %p11105_p11, %p11099_p9 }
  0x91   : > { %11109 = shalt.err (!%p11106_p12)
}
  0x92   : > { %s11287_s28 = smov 64   ;;  %s11288_s7 = smov 4  }
  0x93   : > { %10805 = dma.hbm_to_vmem [thread:$0]  (!%p11418_p6), %s13101_s5, 8192, %s403_s29, [#allocation10], %s11287_s28, %s11287_s28, %s11288_s7  }
  0x94   : > { %s11289_s30 = smov [#allocation14]   ;;  %s11290_s22 = smov [#allocation17]  }
  0x95   : > { %s430_s12 = sshll.u32 %s11289_s30, 4  ;;  %s461_s27 = sshll.u32 %s11290_s22, 4  ;;  %s431_s12 = int_to_ptr.vmem [resolvable:$true] %s430_s12  ;;  %s462_s27 = int_to_ptr.vmem [resolvable:$true] %s461_s27 }
  0x96   : > { %s11110_s19 = scalar_lea.hbm %s13104_s8, 16 }
  0x97   : > { %p11111_p13 = scmp.ne.s32.totalorder %s13104_s8, %s11110_s19  ;;  %p11117_p4 = scmp.lt.u32.totalorder %s11110_s19, %s13104_s8 }
  0x99   : > { %p11113_p0 = pnand %p11111_p13, %p11434_p8 }
  0x9b   : > { %p11114_p1 = pneg %p11113_p0 }
  0x9d   : > { %p11119_p2 = pnand %p11117_p4, %p11114_p1 }
  0x9f   : > { %11122 = shalt.err (!%p11119_p2)
}
  0xa0   : > { %s11123_s29 = scalar_lea.vmem %s431_s12, 16  ;;  %s11130_s28 = scalar_lea.vmem %s431_s12, 32 }
  0xa1   : > { %p11124_p5 = scmp.ne.s32.totalorder %s431_s12, %s11123_s29  ;;  %p11131_p10 = scmp.lt.s32.totalorder %s431_s12, %s431_s12 }
  0xa2   : > { %p11132_p3 = scmp.lt.s32.totalorder %s11130_s28, %s11123_s29 }
  0xa3   : > { %p11126_p7 = pnand %p11124_p5, %p11434_p8 }
  0xa4   : > { %p11133_p11 = por %p11132_p3, %p11131_p10 }
  0xa5   : > { %p11127_p9 = pneg %p11126_p7 }
  0xa7   : > { %p11134_p12 = pnand %p11133_p11, %p11127_p9 }
  0xa9   : > { %11137 = shalt.err (!%p11134_p12)
}
  0xaa   : > { %10811 = dma.hbm_to_vmem [thread:$0]  (!%p11418_p6), %s13104_s8, 16, %s431_s12, [#allocation13]  }
  0xab   : > { %s11138_s9 = scalar_lea.hbm %s13109_s13, 1024 }
  0xac   : > { %p11139_p13 = scmp.ne.s32.totalorder %s13109_s13, %s11138_s9  ;;  %p11145_p4 = scmp.lt.u32.totalorder %s11138_s9, %s13109_s13 }
  0xae   : > { %p11141_p0 = pnand %p11139_p13, %p11434_p8 }
  0xb0   : > { %p11142_p1 = pneg %p11141_p0 }
  0xb2   : > { %p11147_p2 = pnand %p11145_p4, %p11142_p1 }
  0xb4   : > { %11150 = shalt.err (!%p11147_p2)
}
  0xb5   : > { %s11151_s23 = scalar_lea.vmem %s462_s27, 1024  ;;  %p11159_p10 = scmp.lt.s32.totalorder %s462_s27, %s462_s27 }
  0xb6   : > { %p11152_p5 = scmp.ne.s32.totalorder %s462_s27, %s11151_s23  ;;  %p11160_p3 = scmp.lt.s32.totalorder %s11151_s23, %s11151_s23 }
  0xb8   : > { %p11154_p7 = pnand %p11152_p5, %p11434_p8  ;;  %p11161_p11 = por %p11160_p3, %p11159_p10 }
  0xba   : > { %p11155_p9 = pneg %p11154_p7 }
  0xbc   : > { %p11162_p12 = pnand %p11161_p11, %p11155_p9 }
  0xbe   : > { %11165 = shalt.err (!%p11162_p12)
}
  0xbf   : > { %10817 = dma.hbm_to_vmem [thread:$0]  (!%p11418_p6), %s13109_s13, 1024, %s462_s27, [#allocation16]  }
  0xc0   : > { %s11576_s24 = sadd.s32 1, %s11280_s18   ;;  %s42_s25 = sadd.s32 1, %s11276_s17 }
  0xc1   : > { %s39_s26 = ssub.s32 %s11280_s18, %s11576_s24  ;;  %p49_p13 = scmp.ne.s32.totalorder %s11276_s17, %s11272_s16 }
  0xc2   : > { %p40_p8 = scmp.eq.s32.totalorder %s39_s26, 0  ;;  %p50_p0 = scmp.eq.s32.totalorder %s11280_s18, 0 }
  0xc3   : > { %p55_p1 = scmp.ne.s32.totalorder %s11272_s16, %s11268_s15  ;;  %p13129_p2 = scmp.eq.s32.totalorder %s11400_s20, 0 }
  0xc4   : > { %s11587_s29 = scalar_select %p40_p8, %s11276_s17, %s42_s25  }
  0xc5   : > { %p51_p4 = por %p50_p0, %p49_p13  ;;  %p11591_p5 = por %p13129_p2, %p55_p1 }
  0xc6   : > { %p10832_p7 = scmp.lt.s32.totalorder %s11280_s18, 2  ;;  %s11597_s27 = sand.u32 1, %s11276_s17  }
  0xc7   : > { %s9411_s3 = sshll.u32 %s11597_s27, 6  ;;  %s10543_s7 = sshll.u32 %s11280_s18, 10 }
  0xc8   : > { %s11604_s15 = scalar_lea.hbm %s13096_s0, %s10543_s7  ;;  %s476_s9 = scalar_lea.vmem [#allocation4], %s9411_s3 }
  0xc9   : > { %s484_s11 = sshll.u32 %s476_s9, 4  ;;  %p11608_p6 = pnand %p10832_p7, %p51_p4  ;;  %s11606_s11 = int_to_ptr.vmem [resolvable:$true] %s484_s11 }
  0xca   : > { %s9414_s22 = sshll.u32 %s11597_s27, 13  ;;  %s491_s14 = sand.u32 1, %s11280_s18  }
  0xcb   : > { %s473_s23 = scalar_lea.sflag [#allocation5], %s11597_s27  ;;  %s11166_s12 = scalar_lea.hbm %s11604_s15, 1024 }
  0xcc   : > { %p11167_p9 = scmp.ne.s32.totalorder %s11604_s15, %s11166_s12  ;;  %p11168_p10 = pneg %p11608_p6 }
  0xcd   : > { %s11171_s25 = scalar_lea.hbm %s13096_s0, 2048  ;;  %p11172_p12 = scmp.lt.u32.totalorder %s11604_s15, %s13096_s0 }
  0xce   : > { %p11169_p3 = pnand %p11168_p10, %p11167_p9  ;;  %p11173_p8 = scmp.lt.u32.totalorder %s11171_s25, %s11166_s12 }
  0xcf   : > { %p11175_p0 = scmp.lt.u32.totalorder %s11166_s12, %s11604_s15 }
  0xd0   : > { %p11170_p11 = pneg %p11169_p3  ;;  %p11174_p13 = por %p11173_p8, %p11172_p12 }
  0xd2   : > { %p11176_p1 = por %p11175_p0, %p11174_p13 }
  0xd4   : > { %p11177_p4 = pnand %p11176_p1, %p11170_p11 }
  0xd6   : > { %11180 = shalt.err (!%p11177_p4)
}
  0xd7   : > { %s11181_s4 = scalar_lea.vmem %s11606_s11, 1024  ;;  %s11291_s6 = smov [#allocation4]  }
  0xd8   : > { %p11182_p2 = scmp.ne.s32.totalorder %s11606_s11, %s11181_s4  ;;  %s11186_s9 = sshll.u32 %s11291_s6, 4  ;;  %s11187_s9 = int_to_ptr.vmem [resolvable:$false] %s11186_s9 }
  0xd9   : > { %s11188_s19 = scalar_lea.vmem %s11187_s9, 2048  ;;  %p11189_p3 = scmp.lt.s32.totalorder %s11606_s11, %s11187_s9 }
  0xda   : > { %p11184_p7 = pnand %p11182_p2, %p11168_p10  ;;  %p11190_p12 = scmp.lt.s32.totalorder %s11188_s19, %s11181_s4 }
  0xdc   : > { %p11185_p9 = pneg %p11184_p7  ;;  %p11191_p8 = por %p11190_p12, %p11189_p3 }
  0xde   : > { %p11192_p13 = pnand %p11191_p8, %p11185_p9 }
  0xe0   : > { %11195 = shalt.err (!%p11192_p13)
}
  0xe1   : > { %10821 = dma.hbm_to_vmem [thread:$0]  (!%p11608_p6), %s11604_s15, 1024, %s11606_s11, %s473_s23  }
  0xe2   : > { %s495_s12 = scalar_lea.vmem [#allocation6], %s9414_s22  ;;  %s10545_s25 = sshll.u32 %s11280_s18, 17 }
  0xe3   : > { %s503_s26 = sshll.u32 %s495_s12, 4  ;;  %s11648_s4 = scalar_lea.hbm %s13098_s2, %s10545_s25  ;;  %s11642_s26 = int_to_ptr.vmem [resolvable:$true] %s503_s26 }
  0xe4   : > { %s11652_s6 = scalar_lea.sflag [#allocation7], %s491_s14  ;;  %s11196_s9 = scalar_lea.hbm %s11648_s4, 131072 }
  0xe5   : > { %p11197_p11 = scmp.ne.s32.totalorder %s11648_s4, %s11196_s9  ;;  %s11201_s11 = scalar_lea.hbm %s13098_s2, 262144 }
  0xe6   : > { %p11202_p4 = scmp.lt.u32.totalorder %s11648_s4, %s13098_s2  ;;  %p11203_p2 = scmp.lt.u32.totalorder %s11201_s11, %s11196_s9 }
  0xe7   : > { %p11199_p0 = pnand %p11197_p11, %p11168_p10  ;;  %p11205_p9 = scmp.lt.u32.totalorder %s11196_s9, %s11648_s4 }
  0xe8   : > { %p11204_p7 = por %p11203_p2, %p11202_p4 }
  0xe9   : > { %p11200_p1 = pneg %p11199_p0 }
  0xea   : > { %p11206_p3 = por %p11205_p9, %p11204_p7 }
  0xec   : > { %p11207_p12 = pnand %p11206_p3, %p11200_p1 }
  0xee   : > { %11210 = shalt.err (!%p11207_p12)
}
  0xef   : > { %s11211_s18 = scalar_lea.vmem %s11642_s26, 131072  ;;  %s11292_s14 = smov [#allocation6]  }
  0xf0   : > { %p11212_p8 = scmp.ne.s32.totalorder %s11642_s26, %s11211_s18  ;;  %s11216_s19 = sshll.u32 %s11292_s14, 4  ;;  %s11217_s19 = int_to_ptr.vmem [resolvable:$false] %s11216_s19 }
  0xf1   : > { %s11218_s12 = scalar_lea.vmem %s11217_s19, 262144  ;;  %p11219_p0 = scmp.lt.s32.totalorder %s11642_s26, %s11217_s19 }
  0xf2   : > { %p11214_p13 = pnand %p11212_p8, %p11168_p10  ;;  %p11220_p4 = scmp.lt.s32.totalorder %s11218_s12, %s11211_s18 }
  0xf4   : > { %p11215_p11 = pneg %p11214_p13  ;;  %p11221_p2 = por %p11220_p4, %p11219_p0 }
  0xf6   : > { %p11222_p7 = pnand %p11221_p2, %p11215_p11 }
  0xf8   : > { %11225 = shalt.err (!%p11222_p7)
}
  0xf9   : > { %s11293_s25 = smov 512   ;;  %s11294_s3 = smov 32  }
  0xfa   : > { %10824 = dma.hbm_to_vmem [thread:$0]  (!%p11608_p6), %s11648_s4, 131072, %s11642_s26, %s11652_s6, %s11293_s25, %s11293_s25, %s11294_s3  }
  0xfb   : > { %p13132_p10 = scmp.ne.s32.totalorder %s13123_s21, 0 }
  0xfc   : > { %s517_s7 = sand.u32 (!%p13132_p10), 1, %s11272_s16  }
  0xfd   : > { %515 = sbr.rel (%p13132_p10) target bundleno = 2448 (0x990), region = 76  ;;  %s9419_s9 = sshll.u32 (!%p13132_p10), %s517_s7, 6 }
  0xfe   : > { %s518_s27 = scalar_lea.sflag (!%p13132_p10), [#allocation5], %s517_s7  ;;  %s11681_s15 = scalar_lea.vmem (!%p13132_p10), [#allocation4], %s9419_s9 }
 0x104   : > { %11243 = dma.done.wait (%p11591_p5), %s518_s27, 1024  }
 0x105   : > { %11245 = vsyncadd (%p11591_p5), %s518_s27, 4294966272  ;;  %s526_s11 = sand.u32 1, %s11400_s20   ;;  %s9420_s30 = sshll.u32 %s517_s7, 13 }
 0x106   : > { %s527_s26 = scalar_lea.sflag [#allocation7], %s526_s11  ;;  %s11688_s4 = scalar_lea.vmem [#allocation6], %s9420_s30 }
 0x107   : > { %11247 = dma.done.wait (%p11591_p5), %s527_s26, 131072  }
 0x108   : > { %11249 = vsyncadd (%p11591_p5), %s527_s26, 4294836224  ;;  %p13133_p6 = scmp.eq.s32.totalorder %s11400_s20, 0 }
 0x10a   : > { %11251 = dma.done.wait (%p13133_p6), [#allocation7], 128   ;;  %p13134_p1 = pmov %p13133_p6 }
 0x10c   : > { %11253 = vsyncadd (%p13134_p1), [#allocation7], 4294967168  ;;  %p13135_p9 = pmov %p13134_p1 }
 0x10d   : > { %p13136_p3 = pmov %p13134_p1 }
 0x10e   : > { %11255 = dma.done.wait (%p13135_p9), [#allocation10], 8320  }
 0x10f   : > { %11257 = vsyncadd (%p13136_p3), [#allocation10], 4294958976  ;;  %p13137_p12 = pmov %p13134_p1 }
 0x110   : > { %p13138_p8 = pmov %p13134_p1 }
 0x111   : > { %11259 = dma.done.wait (%p13137_p12), [#allocation13], 32  }
 0x112   : > { %11261 = vsyncadd (%p13138_p8), [#allocation13], 4294967264  ;;  %p13139_p5 = pmov %p13134_p1 }
 0x113   : > { %p13140_p13 = pmov %p13134_p1 }
 0x114   : > { %11263 = dma.done.wait (%p13139_p5), [#allocation16], 1040  }
 0x115   : > { %11265 = vsyncadd (%p13140_p13), [#allocation16], 4294966256  ;;  %p13141_p11 = scmp.ne.s32.totalorder %s11400_s20, 0 }
 0x116   : > { %v11295_v1 = vmov (!%p13141_p11), 0.0  }
 0x117   : > { %609 = sbr.rel (%p13141_p11) target bundleno = 286 (0x11e), region = 116  ;;  %610 = vst [vmem:[#allocation2] sm:$0xff] (!%p13141_p11), %v11295_v1  ;;  %611 = vst [vmem:[#allocation2 + $0x8] sm:$0xff] (!%p13141_p11), %v11295_v1 }
 0x118   : > { %612 = vst [vmem:[#allocation2 + $0x10] sm:$0xff] (!%p13141_p11), %v11295_v1  ;;  %613 = vst [vmem:[#allocation2 + $0x18] sm:$0xff] (!%p13141_p11), %v11295_v1 }
 0x119   : > { %614 = vst [vmem:[#allocation2 + $0x20] sm:$0xff] (!%p13141_p11), %v11295_v1  ;;  %615 = vst [vmem:[#allocation2 + $0x28] sm:$0xff] (!%p13141_p11), %v11295_v1 }
 0x11a   : > { %616 = vst [vmem:[#allocation2 + $0x30] sm:$0xff] (!%p13141_p11), %v11295_v1  ;;  %617 = vst [vmem:[#allocation2 + $0x38] sm:$0xff] (!%p13141_p11), %v11295_v1 }
 0x11e PF: > { %v634_v2 = vld [vmem:[%s11688_s4] sm:$0xff]  ;;  %v11744_v56 = vld [vmem:[%s11681_s15 + $0x8] sm:$0xff]  ;;  %p10469_p0 = scmp.ne.s32.totalorder %s11400_s20, 1 }
 0x11f   : > { %v638_v3 = vld [vmem:[%s11688_s4 + $0x20] sm:$0xff]  ;;  %v11754_v61 = vcombine.high %v11744_v56, %v11744_v56  ;;  %s13142_s22 = sld [smem:[#allocation27_spill]] (!%p10469_p0)  ;;  %vm11298_vm0 = vmmov (!%p10469_p0), 0   ;;  %s13143_s26 = sld [smem:[#allocation28_spill]] (!%p10469_p0)  ;;  %vm9109_vm1 = vcmask (!%p10469_p0), 523264   ;;  %vm9197_vm2 = vcmask (!%p10469_p0), 1043456  }
 0x120   : > { %v762_v4 = vld [vmem:[%s11688_s4 + $0x400] sm:$0xff]  ;;  %v9446_v5 = vcombine.high %v634_v2, %v638_v3  ;;  %v9445_v7 = vcombine.low %v634_v2, %v638_v3  ;;  %s13144_s11 = sld [smem:[#allocation29_spill]] (!%p10469_p0)  ;;  %vm11300_vm3 = vmmov (!%p10469_p0), 1   ;;  %vm9193_vm5 = vcmask (!%p10469_p0), 97280   ;;  %s13145_s20 = sld [smem:[#allocation30_spill]] (!%p10469_p0) }
 0x121   : > { %v766_v6 = vld [vmem:[%s11688_s4 + $0x420] sm:$0xff]  ;;  %6907 = vmatprep.mubr.bf16.mxu1 %v11754_v61  ;;  %vm10762_vm4 = vmpackc.low (!%p10469_p0), %vm9197_vm2, %vm11300_vm3  ;;  %vm9271_vm6 = vcmask (!%p10469_p0), 7168  }
 0x122   : > { %v642_v8 = vld [vmem:[%s11688_s4 + $0x40] sm:$0xff]  ;;  %v9574_v10 = vcombine.high %v762_v4, %v766_v6  ;;  %v9573_v11 = vcombine.low %v762_v4, %v766_v6  ;;  %6834 = vmatprep.subr.bf16.mxu0 %v9446_v5 }
 0x123   : > { %v646_v9 = vld [vmem:[%s11688_s4 + $0x60] sm:$0xff]  ;;  %6835 = vmatpush1.bf16.msra.mxu0 %v9445_v7 }
 0x124   : > { %v9454_v12 = vcombine.high %v642_v8, %v646_v9  ;;  %v770_v13 = vld [vmem:[%s11688_s4 + $0x440] sm:$0xff]  ;;  %6875 = vmatprep.subr.bf16.mxu1 %v9574_v10  ;;  %v9453_v20 = vcombine.low %v642_v8, %v646_v9 }
 0x125   : > { %v774_v14 = vld [vmem:[%s11688_s4 + $0x460] sm:$0xff]  ;;  %6876 = vmatpush1.bf16.msra.mxu1 %v9573_v11 }
 0x126   : > { %v650_v15 = vld [vmem:[%s11688_s4 + $0x80] sm:$0xff]  ;;  %v9582_v16 = vcombine.high %v770_v13, %v774_v14  ;;  %6836 = vmatprep.subr.bf16.mxu0 %v9454_v12  ;;  %v9581_v21 = vcombine.low %v770_v13, %v774_v14 }
 0x127   : > { %v654_v17 = vld [vmem:[%s11688_s4 + $0xa0] sm:$0xff]  ;;  %6837 = vmatpush1.bf16.msra.mxu0 %v9453_v20 }
 0x128   : > { %v778_v18 = vld [vmem:[%s11688_s4 + $0x480] sm:$0xff]  ;;  %v9462_v22 = vcombine.high %v650_v15, %v654_v17  ;;  %6877 = vmatprep.subr.bf16.mxu1 %v9582_v16  ;;  %v9461_v28 = vcombine.low %v650_v15, %v654_v17 }
 0x129   : > { %v782_v19 = vld [vmem:[%s11688_s4 + $0x4a0] sm:$0xff]  ;;  %6878 = vmatpush1.bf16.msra.mxu1 %v9581_v21 }
 0x12a   : > { %v9590_v23 = vcombine.high %v778_v18, %v782_v19  ;;  %v658_v24 = vld [vmem:[%s11688_s4 + $0xc0] sm:$0xff]  ;;  %6838 = vmatprep.subr.bf16.mxu0 %v9462_v22  ;;  %v9589_v29 = vcombine.low %v778_v18, %v782_v19 }
 0x12b   : > { %v662_v25 = vld [vmem:[%s11688_s4 + $0xe0] sm:$0xff]  ;;  %6839 = vmatpush1.bf16.msra.mxu0 %v9461_v28 }
 0x12c   : > { %v786_v26 = vld [vmem:[%s11688_s4 + $0x4c0] sm:$0xff]  ;;  %v9470_v30 = vcombine.high %v658_v24, %v662_v25  ;;  %6879 = vmatprep.subr.bf16.mxu1 %v9590_v23  ;;  %v9469_v36 = vcombine.low %v658_v24, %v662_v25 }
 0x12d   : > { %v790_v27 = vld [vmem:[%s11688_s4 + $0x4e0] sm:$0xff]  ;;  %6880 = vmatpush1.bf16.msra.mxu1 %v9589_v29 }
 0x12e   : > { %v9598_v31 = vcombine.high %v786_v26, %v790_v27  ;;  %v666_v32 = vld [vmem:[%s11688_s4 + $0x100] sm:$0xff]  ;;  %6840 = vmatprep.subr.bf16.mxu0 %v9470_v30  ;;  %v9597_v37 = vcombine.low %v786_v26, %v790_v27 }
 0x12f   : > { %v670_v33 = vld [vmem:[%s11688_s4 + $0x120] sm:$0xff]  ;;  %6841 = vmatpush1.bf16.msra.mxu0 %v9469_v36 }
 0x130   : > { %v794_v34 = vld [vmem:[%s11688_s4 + $0x500] sm:$0xff]  ;;  %v9478_v38 = vcombine.high %v666_v32, %v670_v33  ;;  %6881 = vmatprep.subr.bf16.mxu1 %v9598_v31  ;;  %v9477_v44 = vcombine.low %v666_v32, %v670_v33 }
 0x131   : > { %v798_v35 = vld [vmem:[%s11688_s4 + $0x520] sm:$0xff]  ;;  %6882 = vmatpush1.bf16.msra.mxu1 %v9597_v37 }
 0x132   : > { %v9606_v39 = vcombine.high %v794_v34, %v798_v35  ;;  %v674_v40 = vld [vmem:[%s11688_s4 + $0x140] sm:$0xff]  ;;  %6842 = vmatprep.subr.bf16.mxu0 %v9478_v38  ;;  %v9605_v45 = vcombine.low %v794_v34, %v798_v35 }
 0x133   : > { %v678_v41 = vld [vmem:[%s11688_s4 + $0x160] sm:$0xff]  ;;  %6843 = vmatpush1.bf16.msra.mxu0 %v9477_v44 }
 0x134   : > { %v802_v42 = vld [vmem:[%s11688_s4 + $0x540] sm:$0xff]  ;;  %v9486_v46 = vcombine.high %v674_v40, %v678_v41  ;;  %6883 = vmatprep.subr.bf16.mxu1 %v9606_v39  ;;  %v9485_v52 = vcombine.low %v674_v40, %v678_v41 }
 0x135   : > { %v806_v43 = vld [vmem:[%s11688_s4 + $0x560] sm:$0xff]  ;;  %6884 = vmatpush1.bf16.msra.mxu1 %v9605_v45 }
 0x136   : > { %v9614_v47 = vcombine.high %v802_v42, %v806_v43  ;;  %v682_v48 = vld [vmem:[%s11688_s4 + $0x180] sm:$0xff]  ;;  %6844 = vmatprep.subr.bf16.mxu0 %v9486_v46  ;;  %v9613_v53 = vcombine.low %v802_v42, %v806_v43 }
 0x137   : > { %v686_v49 = vld [vmem:[%s11688_s4 + $0x1a0] sm:$0xff]  ;;  %6845 = vmatpush1.bf16.msra.mxu0 %v9485_v52 }
 0x138   : > { %v810_v50 = vld [vmem:[%s11688_s4 + $0x580] sm:$0xff]  ;;  %v9494_v54 = vcombine.high %v682_v48, %v686_v49  ;;  %6885 = vmatprep.subr.bf16.mxu1 %v9614_v47  ;;  %v9493_v0 = vcombine.low %v682_v48, %v686_v49 }
 0x139   : > { %v814_v51 = vld [vmem:[%s11688_s4 + $0x5a0] sm:$0xff]  ;;  %6886 = vmatpush1.bf16.msra.mxu1 %v9613_v53 }
 0x13a   : > { %v11741_v55 = vld [vmem:[%s11681_s15] sm:$0xff]  ;;  %v9622_v57 = vcombine.high %v810_v50, %v814_v51  ;;  %6846 = vmatprep.subr.bf16.mxu0 %v9494_v54  ;;  %v9621_v1 = vcombine.low %v810_v50, %v814_v51 }
 0x13b   : > { %v690_v58 = vld [vmem:[%s11688_s4 + $0x1c0] sm:$0xff]  ;;  %v11750_v60 = vcombine.high %v11741_v55, %v11741_v55  ;;  %6847 = vmatpush1.bf16.msra.mxu0 %v9493_v0 }
 0x13c   : > { %v694_v59 = vld [vmem:[%s11688_s4 + $0x1e0] sm:$0xff]  ;;  %6887 = vmatprep.subr.bf16.mxu1 %v9622_v57 }
 0x13d   : > { %v818_v62 = vld [vmem:[%s11688_s4 + $0x5c0] sm:$0xff]  ;;  %6866 = vmatprep.mubr.bf16.mxu0 %v11750_v60  ;;  %v9502_v2 = vcombine.high %v690_v58, %v694_v59  ;;  %v9501_v8 = vcombine.low %v690_v58, %v694_v59  ;;  %6888 = vmatpush1.bf16.msra.mxu1 %v9621_v1 }
 0x13e   : > { %v822_v63 = vld [vmem:[%s11688_s4 + $0x5e0] sm:$0xff] }
 0x13f   : > { %v9630_v3 = vcombine.high %v818_v62, %v822_v63  ;;  %v698_v4 = vld [vmem:[%s11688_s4 + $0x200] sm:$0xff]  ;;  %6848 = vmatprep.subr.bf16.mxu0 %v9502_v2  ;;  %v9629_v9 = vcombine.low %v818_v62, %v822_v63 }
 0x140   : > { %v702_v5 = vld [vmem:[%s11688_s4 + $0x220] sm:$0xff]  ;;  %6849 = vmatpush1.bf16.msra.mxu0 %v9501_v8 }
 0x141   : > { %v826_v6 = vld [vmem:[%s11688_s4 + $0x600] sm:$0xff]  ;;  %v9510_v10 = vcombine.high %v698_v4, %v702_v5  ;;  %6889 = vmatprep.subr.bf16.mxu1 %v9630_v3  ;;  %v9509_v16 = vcombine.low %v698_v4, %v702_v5 }
 0x142   : > { %v830_v7 = vld [vmem:[%s11688_s4 + $0x620] sm:$0xff]  ;;  %6890 = vmatpush1.bf16.msra.mxu1 %v9629_v9 }
 0x143   : > { %v9638_v11 = vcombine.high %v826_v6, %v830_v7  ;;  %v706_v12 = vld [vmem:[%s11688_s4 + $0x240] sm:$0xff]  ;;  %6850 = vmatprep.subr.bf16.mxu0 %v9510_v10  ;;  %v9637_v17 = vcombine.low %v826_v6, %v830_v7 }
 0x144   : > { %v710_v13 = vld [vmem:[%s11688_s4 + $0x260] sm:$0xff]  ;;  %6851 = vmatpush1.bf16.msra.mxu0 %v9509_v16 }
 0x145   : > { %v834_v14 = vld [vmem:[%s11688_s4 + $0x640] sm:$0xff]  ;;  %v9518_v18 = vcombine.high %v706_v12, %v710_v13  ;;  %6891 = vmatprep.subr.bf16.mxu1 %v9638_v11  ;;  %v9517_v24 = vcombine.low %v706_v12, %v710_v13 }
 0x146   : > { %v838_v15 = vld [vmem:[%s11688_s4 + $0x660] sm:$0xff]  ;;  %6892 = vmatpush1.bf16.msra.mxu1 %v9637_v17 }
 0x147   : > { %v9646_v19 = vcombine.high %v834_v14, %v838_v15  ;;  %v714_v20 = vld [vmem:[%s11688_s4 + $0x280] sm:$0xff]  ;;  %6852 = vmatprep.subr.bf16.mxu0 %v9518_v18  ;;  %v9645_v25 = vcombine.low %v834_v14, %v838_v15  ;;  %v11800_v18 = vcombine.low %v11741_v55, %v11741_v55 }
 0x148   : > { %v718_v21 = vld [vmem:[%s11688_s4 + $0x2a0] sm:$0xff]  ;;  %6853 = vmatpush1.bf16.msra.mxu0 %v9517_v24  ;;  %v11812_v24 = vld [vmem:[%s11681_s15 + $0x18] sm:$0xff] }
 0x149   : > { %v842_v22 = vld [vmem:[%s11688_s4 + $0x680] sm:$0xff]  ;;  %v9526_v26 = vcombine.high %v714_v20, %v718_v21  ;;  %6893 = vmatprep.subr.bf16.mxu1 %v9646_v19  ;;  %v9525_v32 = vcombine.low %v714_v20, %v718_v21  ;;  %v11805_v21 = vld [vmem:[%s11681_s15 + $0x10] sm:$0xff] }
 0x14a   : > { %v846_v23 = vld [vmem:[%s11688_s4 + $0x6a0] sm:$0xff]  ;;  %6894 = vmatpush1.bf16.msra.mxu1 %v9645_v25 }
 0x14b   : > { %v9654_v27 = vcombine.high %v842_v22, %v846_v23  ;;  %v722_v28 = vld [vmem:[%s11688_s4 + $0x2c0] sm:$0xff]  ;;  %6854 = vmatprep.subr.bf16.mxu0 %v9526_v26  ;;  %v9653_v33 = vcombine.low %v842_v22, %v846_v23  ;;  %v11809_v22 = vcombine.low %v11744_v56, %v11744_v56 }
 0x14c   : > { %v726_v29 = vld [vmem:[%s11688_s4 + $0x2e0] sm:$0xff]  ;;  %6855 = vmatpush1.bf16.msra.mxu0 %v9525_v32 }
 0x14d   : > { %v850_v30 = vld [vmem:[%s11688_s4 + $0x6c0] sm:$0xff]  ;;  %v9534_v34 = vcombine.high %v722_v28, %v726_v29  ;;  %6895 = vmatprep.subr.bf16.mxu1 %v9654_v27  ;;  %v9533_v40 = vcombine.low %v722_v28, %v726_v29  ;;  %v11818_v29 = vcombine.high %v11805_v21, %v11805_v21 }
 0x14e   : > { %v854_v31 = vld [vmem:[%s11688_s4 + $0x6e0] sm:$0xff]  ;;  %6896 = vmatpush1.bf16.msra.mxu1 %v9653_v33 }
 0x14f   : > { %v9662_v35 = vcombine.high %v850_v30, %v854_v31  ;;  %v730_v36 = vld [vmem:[%s11688_s4 + $0x300] sm:$0xff]  ;;  %6856 = vmatprep.subr.bf16.mxu0 %v9534_v34  ;;  %v9661_v41 = vcombine.low %v850_v30, %v854_v31  ;;  %v11825_v31 = vcombine.high %v11812_v24, %v11812_v24 }
 0x150   : > { %v734_v37 = vld [vmem:[%s11688_s4 + $0x320] sm:$0xff]  ;;  %6857 = vmatpush1.bf16.msra.mxu0 %v9533_v40 }
 0x151   : > { %v858_v38 = vld [vmem:[%s11688_s4 + $0x700] sm:$0xff]  ;;  %v9542_v42 = vcombine.high %v730_v36, %v734_v37  ;;  %6897 = vmatprep.subr.bf16.mxu1 %v9662_v35  ;;  %v9541_v48 = vcombine.low %v730_v36, %v734_v37 }
 0x152   : > { %v862_v39 = vld [vmem:[%s11688_s4 + $0x720] sm:$0xff]  ;;  %6898 = vmatpush1.bf16.msra.mxu1 %v9661_v41 }
 0x153   : > { %v9670_v43 = vcombine.high %v858_v38, %v862_v39  ;;  %v738_v44 = vld [vmem:[%s11688_s4 + $0x340] sm:$0xff]  ;;  %6858 = vmatprep.subr.bf16.mxu0 %v9542_v42  ;;  %v9669_v49 = vcombine.low %v858_v38, %v862_v39 }
 0x154   : > { %v742_v45 = vld [vmem:[%s11688_s4 + $0x360] sm:$0xff]  ;;  %6859 = vmatpush1.bf16.msra.mxu0 %v9541_v48 }
 0x155   : > { %v866_v46 = vld [vmem:[%s11688_s4 + $0x740] sm:$0xff]  ;;  %v9550_v50 = vcombine.high %v738_v44, %v742_v45  ;;  %6899 = vmatprep.subr.bf16.mxu1 %v9670_v43  ;;  %v9549_v58 = vcombine.low %v738_v44, %v742_v45 }
 0x156   : > { %v870_v47 = vld [vmem:[%s11688_s4 + $0x760] sm:$0xff]  ;;  %6900 = vmatpush1.bf16.msra.mxu1 %v9669_v49 }
 0x157   : > { %v9678_v51 = vcombine.high %v866_v46, %v870_v47  ;;  %v746_v52 = vld [vmem:[%s11688_s4 + $0x380] sm:$0xff]  ;;  %6860 = vmatprep.subr.bf16.mxu0 %v9550_v50  ;;  %v9677_v59 = vcombine.low %v866_v46, %v870_v47 }
 0x158   : > { %v750_v53 = vld [vmem:[%s11688_s4 + $0x3a0] sm:$0xff]  ;;  %6861 = vmatpush1.bf16.msra.mxu0 %v9549_v58 }
 0x159   : > { %v874_v54 = vld [vmem:[%s11688_s4 + $0x780] sm:$0xff]  ;;  %v9558_v62 = vcombine.high %v746_v52, %v750_v53  ;;  %6901 = vmatprep.subr.bf16.mxu1 %v9678_v51  ;;  %v9557_v4 = vcombine.low %v746_v52, %v750_v53 }
 0x15a   : > { %v878_v57 = vld [vmem:[%s11688_s4 + $0x7a0] sm:$0xff]  ;;  %6902 = vmatpush1.bf16.msra.mxu1 %v9677_v59 }
 0x15b   : > { %v9686_v63 = vcombine.high %v874_v54, %v878_v57  ;;  %v754_v0 = vld [vmem:[%s11688_s4 + $0x3c0] sm:$0xff]  ;;  %6862 = vmatprep.subr.bf16.mxu0 %v9558_v62  ;;  %v9685_v5 = vcombine.low %v874_v54, %v878_v57 }
 0x15c   : > { %v758_v1 = vld [vmem:[%s11688_s4 + $0x3e0] sm:$0xff]  ;;  %6863 = vmatpush1.bf16.msra.mxu0 %v9557_v4 }
 0x15d   : > { %v882_v2 = vld [vmem:[%s11688_s4 + $0x7c0] sm:$0xff]  ;;  %v9566_v6 = vcombine.high %v754_v0, %v758_v1  ;;  %6903 = vmatprep.subr.bf16.mxu1 %v9686_v63  ;;  %v9565_v12 = vcombine.low %v754_v0, %v758_v1 }
 0x15e   : > { %v886_v3 = vld [vmem:[%s11688_s4 + $0x7e0] sm:$0xff]  ;;  %6904 = vmatpush1.bf16.msra.mxu1 %v9685_v5 }
 0x15f   : > { %v9694_v7 = vcombine.high %v882_v2, %v886_v3  ;;  %v890_v8 = vld [vmem:[%s11688_s4 + $0x800] sm:$0xff]  ;;  %6864 = vmatprep.subr.bf16.mxu0 %v9566_v6  ;;  %v9693_v13 = vcombine.low %v882_v2, %v886_v3 }
 0x160   : > { %v894_v9 = vld [vmem:[%s11688_s4 + $0x820] sm:$0xff]  ;;  %6865 = vmatpush1.bf16.msra.mxu0 %v9565_v12 }
 0x161   : > { %v1018_v10 = vld [vmem:[%s11688_s4 + $0xc00] sm:$0xff]  ;;  %v9702_v14 = vcombine.high %v890_v8, %v894_v9  ;;  %6905 = vmatprep.subr.bf16.mxu1 %v9694_v7  ;;  %v9701_v23 = vcombine.low %v890_v8, %v894_v9 }
 0x162   : > { %v1022_v11 = vld [vmem:[%s11688_s4 + $0xc20] sm:$0xff]  ;;  %6906 = vmatpush1.bf16.msra.mxu1 %v9693_v13 }
 0x163   : > { %v9830_v15 = vcombine.high %v1018_v10, %v1022_v11  ;;  %v898_v16 = vld [vmem:[%s11688_s4 + $0x840] sm:$0xff]  ;;  %6916 = vmatprep.subr.bf16.mxu0 %v9702_v14  ;;  %v9829_v25 = vcombine.low %v1018_v10, %v1022_v11  ;;  %6867 = vmatmul.mubr.bf16.vlgmr.msra.gmra.mrb[0].mxu0 %v11800_v18 }
 0x164   : > { %v902_v17 = vld [vmem:[%s11688_s4 + $0x860] sm:$0xff]  ;;  %6917 = vmatpush1.bf16.msra.mxu0 %v9701_v23  ;;  %6948 = vmatprep.mubr.bf16.mxu0 %v11818_v29 }
 0x165   : > { %v1026_v19 = vld [vmem:[%s11688_s4 + $0xc40] sm:$0xff]  ;;  %v9710_v26 = vcombine.high %v898_v16, %v902_v17  ;;  %6957 = vmatprep.subr.bf16.mxu1 %v9830_v15  ;;  %6908 = vmatmul.mubr.bf16.vlgmr.msra.gmra.mrb[0].mxu1 %v11809_v22  ;;  %v9709_v32 = vcombine.low %v898_v16, %v902_v17 }
 0x166   : > { %v1030_v20 = vld [vmem:[%s11688_s4 + $0xc60] sm:$0xff]  ;;  %6958 = vmatpush1.bf16.msra.mxu1 %v9829_v25  ;;  %6989 = vmatprep.mubr.bf16.mxu1 %v11825_v31 }
 0x167   : > { %v9838_v55 = vcombine.high %v1026_v19, %v1030_v20  ;;  %v906_v27 = vld [vmem:[%s11688_s4 + $0x880] sm:$0xff]  ;;  %6918 = vmatprep.subr.bf16.mxu0 %v9710_v26  ;;  %v9837_v33 = vcombine.low %v1026_v19, %v1030_v20 }
 0x168   : > { %v910_v28 = vld [vmem:[%s11688_s4 + $0x8a0] sm:$0xff]  ;;  %6919 = vmatpush1.bf16.msra.mxu0 %v9709_v32 }
 0x169   : > { %v1034_v56 = vld [vmem:[%s11688_s4 + $0xc80] sm:$0xff]  ;;  %v9718_v34 = vcombine.high %v906_v27, %v910_v28  ;;  %6959 = vmatprep.subr.bf16.mxu1 %v9838_v55  ;;  %v9717_v40 = vcombine.low %v906_v27, %v910_v28 }
 0x16a   : > { %v1038_v30 = vld [vmem:[%s11688_s4 + $0xca0] sm:$0xff]  ;;  %6960 = vmatpush1.bf16.msra.mxu1 %v9837_v33 }
 0x16b   : > { %v9846_v35 = vcombine.high %v1034_v56, %v1038_v30  ;;  %v914_v36 = vld [vmem:[%s11688_s4 + $0x8c0] sm:$0xff]  ;;  %6920 = vmatprep.subr.bf16.mxu0 %v9718_v34  ;;  %v9845_v41 = vcombine.low %v1034_v56, %v1038_v30 }
 0x16c   : > { %v918_v37 = vld [vmem:[%s11688_s4 + $0x8e0] sm:$0xff]  ;;  %6921 = vmatpush1.bf16.msra.mxu0 %v9717_v40 }
 0x16d   : > { %v1042_v38 = vld [vmem:[%s11688_s4 + $0xcc0] sm:$0xff]  ;;  %v9726_v42 = vcombine.high %v914_v36, %v918_v37  ;;  %6961 = vmatprep.subr.bf16.mxu1 %v9846_v35  ;;  %v9725_v48 = vcombine.low %v914_v36, %v918_v37 }
 0x16e   : > { %v1046_v39 = vld [vmem:[%s11688_s4 + $0xce0] sm:$0xff]  ;;  %6962 = vmatpush1.bf16.msra.mxu1 %v9845_v41 }
 0x16f   : > { %v9854_v43 = vcombine.high %v1042_v38, %v1046_v39  ;;  %v922_v44 = vld [vmem:[%s11688_s4 + $0x900] sm:$0xff]  ;;  %6922 = vmatprep.subr.bf16.mxu0 %v9726_v42  ;;  %v9853_v49 = vcombine.low %v1042_v38, %v1046_v39 }
 0x170   : > { %v926_v45 = vld [vmem:[%s11688_s4 + $0x920] sm:$0xff]  ;;  %6923 = vmatpush1.bf16.msra.mxu0 %v9725_v48 }
 0x171   : > { %v1050_v46 = vld [vmem:[%s11688_s4 + $0xd00] sm:$0xff]  ;;  %v9734_v50 = vcombine.high %v922_v44, %v926_v45  ;;  %6963 = vmatprep.subr.bf16.mxu1 %v9854_v43  ;;  %v9733_v58 = vcombine.low %v922_v44, %v926_v45 }
 0x172   : > { %v1054_v47 = vld [vmem:[%s11688_s4 + $0xd20] sm:$0xff]  ;;  %6964 = vmatpush1.bf16.msra.mxu1 %v9853_v49 }
 0x173   : > { %v9862_v51 = vcombine.high %v1050_v46, %v1054_v47  ;;  %v930_v52 = vld [vmem:[%s11688_s4 + $0x940] sm:$0xff]  ;;  %6924 = vmatprep.subr.bf16.mxu0 %v9734_v50  ;;  %v9861_v59 = vcombine.low %v1050_v46, %v1054_v47 }
 0x174   : > { %v934_v53 = vld [vmem:[%s11688_s4 + $0x960] sm:$0xff]  ;;  %6925 = vmatpush1.bf16.msra.mxu0 %v9733_v58 }
 0x175   : > { %v1058_v54 = vld [vmem:[%s11688_s4 + $0xd40] sm:$0xff]  ;;  %v9742_v62 = vcombine.high %v930_v52, %v934_v53  ;;  %6965 = vmatprep.subr.bf16.mxu1 %v9862_v51  ;;  %v9741_v4 = vcombine.low %v930_v52, %v934_v53 }
 0x176   : > { %v1062_v57 = vld [vmem:[%s11688_s4 + $0xd60] sm:$0xff]  ;;  %6966 = vmatpush1.bf16.msra.mxu1 %v9861_v59 }
 0x177   : > { %v9870_v63 = vcombine.high %v1058_v54, %v1062_v57  ;;  %v938_v0 = vld [vmem:[%s11688_s4 + $0x980] sm:$0xff]  ;;  %6926 = vmatprep.subr.bf16.mxu0 %v9742_v62  ;;  %v9869_v5 = vcombine.low %v1058_v54, %v1062_v57 }
 0x178   : > { %v942_v1 = vld [vmem:[%s11688_s4 + $0x9a0] sm:$0xff]  ;;  %6927 = vmatpush1.bf16.msra.mxu0 %v9741_v4 }
 0x179   : > { %v1066_v2 = vld [vmem:[%s11688_s4 + $0xd80] sm:$0xff]  ;;  %v9750_v6 = vcombine.high %v938_v0, %v942_v1  ;;  %6967 = vmatprep.subr.bf16.mxu1 %v9870_v63  ;;  %v9749_v12 = vcombine.low %v938_v0, %v942_v1 }
 0x17a   : > { %v1070_v3 = vld [vmem:[%s11688_s4 + $0xda0] sm:$0xff]  ;;  %6968 = vmatpush1.bf16.msra.mxu1 %v9869_v5 }
 0x17b   : > { %v9878_v7 = vcombine.high %v1066_v2, %v1070_v3  ;;  %v946_v8 = vld [vmem:[%s11688_s4 + $0x9c0] sm:$0xff]  ;;  %6928 = vmatprep.subr.bf16.mxu0 %v9750_v6  ;;  %v9877_v13 = vcombine.low %v1066_v2, %v1070_v3 }
 0x17c   : > { %v950_v9 = vld [vmem:[%s11688_s4 + $0x9e0] sm:$0xff]  ;;  %6929 = vmatpush1.bf16.msra.mxu0 %v9749_v12 }
 0x17d   : > { %v1074_v10 = vld [vmem:[%s11688_s4 + $0xdc0] sm:$0xff]  ;;  %v9758_v14 = vcombine.high %v946_v8, %v950_v9  ;;  %6969 = vmatprep.subr.bf16.mxu1 %v9878_v7  ;;  %v9757_v23 = vcombine.low %v946_v8, %v950_v9 }
 0x17e   : > { %v1078_v11 = vld [vmem:[%s11688_s4 + $0xde0] sm:$0xff]  ;;  %6970 = vmatpush1.bf16.msra.mxu1 %v9877_v13 }
 0x17f   : > { %v9886_v15 = vcombine.high %v1074_v10, %v1078_v11  ;;  %v954_v16 = vld [vmem:[%s11688_s4 + $0xa00] sm:$0xff]  ;;  %6930 = vmatprep.subr.bf16.mxu0 %v9758_v14  ;;  %v9885_v25 = vcombine.low %v1074_v10, %v1078_v11 }
 0x180   : > { %v958_v17 = vld [vmem:[%s11688_s4 + $0xa20] sm:$0xff]  ;;  %6931 = vmatpush1.bf16.msra.mxu0 %v9757_v23 }
 0x181   : > { %v1082_v19 = vld [vmem:[%s11688_s4 + $0xe00] sm:$0xff]  ;;  %v9766_v26 = vcombine.high %v954_v16, %v958_v17  ;;  %6971 = vmatprep.subr.bf16.mxu1 %v9886_v15  ;;  %v9765_v32 = vcombine.low %v954_v16, %v958_v17 }
 0x182   : > { %v1086_v20 = vld [vmem:[%s11688_s4 + $0xe20] sm:$0xff]  ;;  %6972 = vmatpush1.bf16.msra.mxu1 %v9885_v25 }
 0x183   : > { %v9894_v55 = vcombine.high %v1082_v19, %v1086_v20  ;;  %v962_v27 = vld [vmem:[%s11688_s4 + $0xa40] sm:$0xff]  ;;  %6932 = vmatprep.subr.bf16.mxu0 %v9766_v26  ;;  %v9893_v33 = vcombine.low %v1082_v19, %v1086_v20 }
 0x184   : > { %v966_v28 = vld [vmem:[%s11688_s4 + $0xa60] sm:$0xff]  ;;  %6933 = vmatpush1.bf16.msra.mxu0 %v9765_v32 }
 0x185   : > { %v1090_v56 = vld [vmem:[%s11688_s4 + $0xe40] sm:$0xff]  ;;  %v9774_v34 = vcombine.high %v962_v27, %v966_v28  ;;  %6973 = vmatprep.subr.bf16.mxu1 %v9894_v55  ;;  %v9773_v40 = vcombine.low %v962_v27, %v966_v28 }
 0x186   : > { %v1094_v30 = vld [vmem:[%s11688_s4 + $0xe60] sm:$0xff]  ;;  %6974 = vmatpush1.bf16.msra.mxu1 %v9893_v33 }
 0x187   : > { %v9902_v35 = vcombine.high %v1090_v56, %v1094_v30  ;;  %v970_v36 = vld [vmem:[%s11688_s4 + $0xa80] sm:$0xff]  ;;  %6934 = vmatprep.subr.bf16.mxu0 %v9774_v34  ;;  %v9901_v41 = vcombine.low %v1090_v56, %v1094_v30 }
 0x188   : > { %v974_v37 = vld [vmem:[%s11688_s4 + $0xaa0] sm:$0xff]  ;;  %6935 = vmatpush1.bf16.msra.mxu0 %v9773_v40 }
 0x189   : > { %v1098_v38 = vld [vmem:[%s11688_s4 + $0xe80] sm:$0xff]  ;;  %v9782_v42 = vcombine.high %v970_v36, %v974_v37  ;;  %6975 = vmatprep.subr.bf16.mxu1 %v9902_v35  ;;  %v9781_v48 = vcombine.low %v970_v36, %v974_v37 }
 0x18a   : > { %v1102_v39 = vld [vmem:[%s11688_s4 + $0xea0] sm:$0xff]  ;;  %6976 = vmatpush1.bf16.msra.mxu1 %v9901_v41 }
 0x18b   : > { %v9910_v43 = vcombine.high %v1098_v38, %v1102_v39  ;;  %v978_v44 = vld [vmem:[%s11688_s4 + $0xac0] sm:$0xff]  ;;  %6936 = vmatprep.subr.bf16.mxu0 %v9782_v42  ;;  %v9909_v49 = vcombine.low %v1098_v38, %v1102_v39  ;;  %v11890_v38 = vcombine.low %v11805_v21, %v11805_v21  ;;  %v11899_v42 = vcombine.low %v11812_v24, %v11812_v24 }
 0x18c   : > { %v982_v45 = vld [vmem:[%s11688_s4 + $0xae0] sm:$0xff]  ;;  %6937 = vmatpush1.bf16.msra.mxu0 %v9781_v48 }
 0x18d   : > { %v1106_v46 = vld [vmem:[%s11688_s4 + $0xec0] sm:$0xff]  ;;  %v9790_v50 = vcombine.high %v978_v44, %v982_v45  ;;  %6977 = vmatprep.subr.bf16.mxu1 %v9910_v43  ;;  %v9789_v58 = vcombine.low %v978_v44, %v982_v45  ;;  %v11902_v44 = vld [vmem:[%s11681_s15 + $0x28] sm:$0xff] }
 0x18e   : > { %v1110_v47 = vld [vmem:[%s11688_s4 + $0xee0] sm:$0xff]  ;;  %6978 = vmatpush1.bf16.msra.mxu1 %v9909_v49 }
 0x18f   : > { %v9918_v51 = vcombine.high %v1106_v46, %v1110_v47  ;;  %v986_v52 = vld [vmem:[%s11688_s4 + $0xb00] sm:$0xff]  ;;  %6938 = vmatprep.subr.bf16.mxu0 %v9790_v50  ;;  %v9917_v59 = vcombine.low %v1106_v46, %v1110_v47 }
 0x190   : > { %v990_v53 = vld [vmem:[%s11688_s4 + $0xb20] sm:$0xff]  ;;  %6939 = vmatpush1.bf16.msra.mxu0 %v9789_v58 }
 0x191   : > { %v1114_v54 = vld [vmem:[%s11688_s4 + $0xf00] sm:$0xff]  ;;  %v9798_v62 = vcombine.high %v986_v52, %v990_v53  ;;  %6979 = vmatprep.subr.bf16.mxu1 %v9918_v51  ;;  %v9797_v4 = vcombine.low %v986_v52, %v990_v53  ;;  %v11915_v51 = vcombine.high %v11902_v44, %v11902_v44 }
 0x192   : > { %v1118_v57 = vld [vmem:[%s11688_s4 + $0xf20] sm:$0xff]  ;;  %6980 = vmatpush1.bf16.msra.mxu1 %v9917_v59 }
 0x193   : > { %v9926_v63 = vcombine.high %v1114_v54, %v1118_v57  ;;  %v994_v0 = vld [vmem:[%s11688_s4 + $0xb40] sm:$0xff]  ;;  %6940 = vmatprep.subr.bf16.mxu0 %v9798_v62  ;;  %v9925_v5 = vcombine.low %v1114_v54, %v1118_v57 }
 0x194   : > { %v998_v1 = vld [vmem:[%s11688_s4 + $0xb60] sm:$0xff]  ;;  %6941 = vmatpush1.bf16.msra.mxu0 %v9797_v4 }
 0x195   : > { %v1122_v2 = vld [vmem:[%s11688_s4 + $0xf40] sm:$0xff]  ;;  %v9806_v6 = vcombine.high %v994_v0, %v998_v1  ;;  %6981 = vmatprep.subr.bf16.mxu1 %v9926_v63  ;;  %v9805_v12 = vcombine.low %v994_v0, %v998_v1 }
 0x196   : > { %v1126_v3 = vld [vmem:[%s11688_s4 + $0xf60] sm:$0xff]  ;;  %6982 = vmatpush1.bf16.msra.mxu1 %v9925_v5 }
 0x197   : > { %v9934_v7 = vcombine.high %v1122_v2, %v1126_v3  ;;  %v1002_v8 = vld [vmem:[%s11688_s4 + $0xb80] sm:$0xff]  ;;  %6942 = vmatprep.subr.bf16.mxu0 %v9806_v6  ;;  %v9933_v13 = vcombine.low %v1122_v2, %v1126_v3 }
 0x198   : > { %v1006_v9 = vld [vmem:[%s11688_s4 + $0xba0] sm:$0xff]  ;;  %6943 = vmatpush1.bf16.msra.mxu0 %v9805_v12 }
 0x199   : > { %v1130_v10 = vld [vmem:[%s11688_s4 + $0xf80] sm:$0xff]  ;;  %v9814_v14 = vcombine.high %v1002_v8, %v1006_v9  ;;  %6983 = vmatprep.subr.bf16.mxu1 %v9934_v7  ;;  %v9813_v23 = vcombine.low %v1002_v8, %v1006_v9 }
 0x19a   : > { %v1134_v11 = vld [vmem:[%s11688_s4 + $0xfa0] sm:$0xff]  ;;  %6984 = vmatpush1.bf16.msra.mxu1 %v9933_v13 }
 0x19b   : > { %v9942_v15 = vcombine.high %v1130_v10, %v1134_v11  ;;  %v1010_v16 = vld [vmem:[%s11688_s4 + $0xbc0] sm:$0xff]  ;;  %6944 = vmatprep.subr.bf16.mxu0 %v9814_v14  ;;  %v9941_v25 = vcombine.low %v1130_v10, %v1134_v11 }
 0x19c   : > { %v1014_v17 = vld [vmem:[%s11688_s4 + $0xbe0] sm:$0xff]  ;;  %6945 = vmatpush1.bf16.msra.mxu0 %v9813_v23 }
 0x19d   : > { %v1138_v19 = vld [vmem:[%s11688_s4 + $0xfc0] sm:$0xff]  ;;  %v9822_v26 = vcombine.high %v1010_v16, %v1014_v17  ;;  %6985 = vmatprep.subr.bf16.mxu1 %v9942_v15  ;;  %v9821_v32 = vcombine.low %v1010_v16, %v1014_v17 }
 0x19e   : > { %v1142_v20 = vld [vmem:[%s11688_s4 + $0xfe0] sm:$0xff]  ;;  %6986 = vmatpush1.bf16.msra.mxu1 %v9941_v25 }
 0x19f   : > { %v9950_v55 = vcombine.high %v1138_v19, %v1142_v20  ;;  %v1146_v27 = vld [vmem:[%s11688_s4 + $0x1000] sm:$0xff]  ;;  %6946 = vmatprep.subr.bf16.mxu0 %v9822_v26  ;;  %v9949_v33 = vcombine.low %v1138_v19, %v1142_v20 }
 0x1a0   : > { %v1150_v28 = vld [vmem:[%s11688_s4 + $0x1020] sm:$0xff]  ;;  %6947 = vmatpush1.bf16.msra.mxu0 %v9821_v32 }
 0x1a1   : > { %v1274_v56 = vld [vmem:[%s11688_s4 + $0x1400] sm:$0xff]  ;;  %v9958_v34 = vcombine.high %v1146_v27, %v1150_v28  ;;  %6987 = vmatprep.subr.bf16.mxu1 %v9950_v55  ;;  %v9957_v43 = vcombine.low %v1146_v27, %v1150_v28 }
 0x1a2   : > { %v1278_v30 = vld [vmem:[%s11688_s4 + $0x1420] sm:$0xff]  ;;  %6988 = vmatpush1.bf16.msra.mxu1 %v9949_v33 }
 0x1a3   : > { %v10086_v35 = vcombine.high %v1274_v56, %v1278_v30  ;;  %v1154_v36 = vld [vmem:[%s11688_s4 + $0x1040] sm:$0xff]  ;;  %6998 = vmatprep.subr.bf16.mxu0 %v9958_v34  ;;  %v10085_v45 = vcombine.low %v1274_v56, %v1278_v30  ;;  %6949 = vmatmul.mubr.bf16.vlgmr.msra.gmra.mrb[4].mxu0 %v11890_v38 }
 0x1a4   : > { %v1158_v37 = vld [vmem:[%s11688_s4 + $0x1060] sm:$0xff]  ;;  %6999 = vmatpush1.bf16.msra.mxu0 %v9957_v43 }
 0x1a5   : > { %v1282_v39 = vld [vmem:[%s11688_s4 + $0x1440] sm:$0xff]  ;;  %v9966_v46 = vcombine.high %v1154_v36, %v1158_v37  ;;  %7039 = vmatprep.subr.bf16.mxu1 %v10086_v35  ;;  %6990 = vmatmul.mubr.bf16.vlgmr.msra.gmra.mrb[4].mxu1 %v11899_v42  ;;  %v9965_v52 = vcombine.low %v1154_v36, %v1158_v37 }
 0x1a6   : > { %v1286_v40 = vld [vmem:[%s11688_s4 + $0x1460] sm:$0xff]  ;;  %7040 = vmatpush1.bf16.msra.mxu1 %v10085_v45  ;;  %7071 = vmatprep.mubr.bf16.mxu1 %v11915_v51 }
 0x1a7   : > { %v11895_v41 = vld [vmem:[%s11681_s15 + $0x20] sm:$0xff]  ;;  %v10094_v21 = vcombine.high %v1282_v39, %v1286_v40  ;;  %7000 = vmatprep.subr.bf16.mxu0 %v9966_v46  ;;  %v10093_v53 = vcombine.low %v1282_v39, %v1286_v40 }
 0x1a8   : > { %v1162_v47 = vld [vmem:[%s11688_s4 + $0x1080] sm:$0xff]  ;;  %v11908_v49 = vcombine.high %v11895_v41, %v11895_v41  ;;  %7001 = vmatpush1.bf16.msra.mxu0 %v9965_v52 }
 0x1a9   : > { %v1166_v48 = vld [vmem:[%s11688_s4 + $0x10a0] sm:$0xff]  ;;  %7041 = vmatprep.subr.bf16.mxu1 %v10094_v21 }
 0x1aa   : > { %v1290_v24 = vld [vmem:[%s11688_s4 + $0x1480] sm:$0xff]  ;;  %v9974_v54 = vcombine.high %v1162_v47, %v1166_v48  ;;  %7030 = vmatprep.mubr.bf16.mxu0 %v11908_v49  ;;  %v9973_v0 = vcombine.low %v1162_v47, %v1166_v48  ;;  %7042 = vmatpush1.bf16.msra.mxu1 %v10093_v53 }
 0x1ab   : > { %v1294_v50 = vld [vmem:[%s11688_s4 + $0x14a0] sm:$0xff] }
 0x1ac   : > { %v10102_v57 = vcombine.high %v1290_v24, %v1294_v50  ;;  %v1170_v58 = vld [vmem:[%s11688_s4 + $0x10c0] sm:$0xff]  ;;  %7002 = vmatprep.subr.bf16.mxu0 %v9974_v54  ;;  %v10101_v1 = vcombine.low %v1290_v24, %v1294_v50 }
 0x1ad   : > { %v1174_v59 = vld [vmem:[%s11688_s4 + $0x10e0] sm:$0xff]  ;;  %7003 = vmatpush1.bf16.msra.mxu0 %v9973_v0 }
 0x1ae   : > { %v1298_v62 = vld [vmem:[%s11688_s4 + $0x14c0] sm:$0xff]  ;;  %v9982_v2 = vcombine.high %v1170_v58, %v1174_v59  ;;  %7043 = vmatprep.subr.bf16.mxu1 %v10102_v57  ;;  %v9981_v8 = vcombine.low %v1170_v58, %v1174_v59 }
 0x1af   : > { %v1302_v63 = vld [vmem:[%s11688_s4 + $0x14e0] sm:$0xff]  ;;  %7044 = vmatpush1.bf16.msra.mxu1 %v10101_v1 }
 0x1b0   : > { %v10110_v3 = vcombine.high %v1298_v62, %v1302_v63  ;;  %v1178_v4 = vld [vmem:[%s11688_s4 + $0x1100] sm:$0xff]  ;;  %7004 = vmatprep.subr.bf16.mxu0 %v9982_v2  ;;  %v10109_v9 = vcombine.low %v1298_v62, %v1302_v63 }
 0x1b1   : > { %v1182_v5 = vld [vmem:[%s11688_s4 + $0x1120] sm:$0xff]  ;;  %7005 = vmatpush1.bf16.msra.mxu0 %v9981_v8 }
 0x1b2   : > { %v1306_v6 = vld [vmem:[%s11688_s4 + $0x1500] sm:$0xff]  ;;  %v9990_v10 = vcombine.high %v1178_v4, %v1182_v5  ;;  %7045 = vmatprep.subr.bf16.mxu1 %v10110_v3  ;;  %v9989_v16 = vcombine.low %v1178_v4, %v1182_v5 }
 0x1b3   : > { %v1310_v7 = vld [vmem:[%s11688_s4 + $0x1520] sm:$0xff]  ;;  %7046 = vmatpush1.bf16.msra.mxu1 %v10109_v9 }
 0x1b4   : > { %v10118_v11 = vcombine.high %v1306_v6, %v1310_v7  ;;  %v1186_v12 = vld [vmem:[%s11688_s4 + $0x1140] sm:$0xff]  ;;  %7006 = vmatprep.subr.bf16.mxu0 %v9990_v10  ;;  %v10117_v17 = vcombine.low %v1306_v6, %v1310_v7 }
 0x1b5   : > { %v1190_v13 = vld [vmem:[%s11688_s4 + $0x1160] sm:$0xff]  ;;  %7007 = vmatpush1.bf16.msra.mxu0 %v9989_v16 }
 0x1b6   : > { %v1314_v14 = vld [vmem:[%s11688_s4 + $0x1540] sm:$0xff]  ;;  %v9998_v19 = vcombine.high %v1186_v12, %v1190_v13  ;;  %7047 = vmatprep.subr.bf16.mxu1 %v10118_v11  ;;  %v9997_v27 = vcombine.low %v1186_v12, %v1190_v13 }
 0x1b7   : > { %v1318_v15 = vld [vmem:[%s11688_s4 + $0x1560] sm:$0xff]  ;;  %7048 = vmatpush1.bf16.msra.mxu1 %v10117_v17 }
 0x1b8   : > { %v10126_v20 = vcombine.high %v1314_v14, %v1318_v15  ;;  %v1194_v23 = vld [vmem:[%s11688_s4 + $0x1180] sm:$0xff]  ;;  %7008 = vmatprep.subr.bf16.mxu0 %v9998_v19  ;;  %v10125_v28 = vcombine.low %v1314_v14, %v1318_v15 }
 0x1b9   : > { %v1198_v25 = vld [vmem:[%s11688_s4 + $0x11a0] sm:$0xff]  ;;  %7009 = vmatpush1.bf16.msra.mxu0 %v9997_v27 }
 0x1ba   : > { %v1322_v26 = vld [vmem:[%s11688_s4 + $0x1580] sm:$0xff]  ;;  %v10006_v56 = vcombine.high %v1194_v23, %v1198_v25  ;;  %7049 = vmatprep.subr.bf16.mxu1 %v10126_v20  ;;  %v10005_v36 = vcombine.low %v1194_v23, %v1198_v25 }
 0x1bb   : > { %v1326_v55 = vld [vmem:[%s11688_s4 + $0x15a0] sm:$0xff]  ;;  %7050 = vmatpush1.bf16.msra.mxu1 %v10125_v28 }
 0x1bc   : > { %v10134_v30 = vcombine.high %v1322_v26, %v1326_v55  ;;  %v1202_v32 = vld [vmem:[%s11688_s4 + $0x11c0] sm:$0xff]  ;;  %7010 = vmatprep.subr.bf16.mxu0 %v10006_v56  ;;  %v10133_v37 = vcombine.low %v1322_v26, %v1326_v55 }
 0x1bd   : > { %v1206_v33 = vld [vmem:[%s11688_s4 + $0x11e0] sm:$0xff]  ;;  %7011 = vmatpush1.bf16.msra.mxu0 %v10005_v36 }
 0x1be   : > { %v1330_v34 = vld [vmem:[%s11688_s4 + $0x15c0] sm:$0xff]  ;;  %v10014_v39 = vcombine.high %v1202_v32, %v1206_v33  ;;  %7051 = vmatprep.subr.bf16.mxu1 %v10134_v30  ;;  %v10013_v47 = vcombine.low %v1202_v32, %v1206_v33 }
 0x1bf   : > { %v1334_v35 = vld [vmem:[%s11688_s4 + $0x15e0] sm:$0xff]  ;;  %7052 = vmatpush1.bf16.msra.mxu1 %v10133_v37 }
 0x1c0   : > { %v10142_v40 = vcombine.high %v1330_v34, %v1334_v35  ;;  %v1210_v43 = vld [vmem:[%s11688_s4 + $0x1200] sm:$0xff]  ;;  %7012 = vmatprep.subr.bf16.mxu0 %v10014_v39  ;;  %v10141_v48 = vcombine.low %v1330_v34, %v1334_v35 }
 0x1c1   : > { %v1214_v45 = vld [vmem:[%s11688_s4 + $0x1220] sm:$0xff]  ;;  %7013 = vmatpush1.bf16.msra.mxu0 %v10013_v47 }
 0x1c2   : > { %v1338_v46 = vld [vmem:[%s11688_s4 + $0x1600] sm:$0xff]  ;;  %v10022_v24 = vcombine.high %v1210_v43, %v1214_v45  ;;  %7053 = vmatprep.subr.bf16.mxu1 %v10142_v40  ;;  %v10021_v58 = vcombine.low %v1210_v43, %v1214_v45 }
 0x1c3   : > { %v1342_v21 = vld [vmem:[%s11688_s4 + $0x1620] sm:$0xff]  ;;  %7054 = vmatpush1.bf16.msra.mxu1 %v10141_v48 }
 0x1c4   : > { %v10150_v50 = vcombine.high %v1338_v46, %v1342_v21  ;;  %v1218_v52 = vld [vmem:[%s11688_s4 + $0x1240] sm:$0xff]  ;;  %7014 = vmatprep.subr.bf16.mxu0 %v10022_v24  ;;  %v10149_v59 = vcombine.low %v1338_v46, %v1342_v21 }
 0x1c5   : > { %v1222_v53 = vld [vmem:[%s11688_s4 + $0x1260] sm:$0xff]  ;;  %7015 = vmatpush1.bf16.msra.mxu0 %v10021_v58 }
 0x1c6   : > { %v1346_v54 = vld [vmem:[%s11688_s4 + $0x1640] sm:$0xff]  ;;  %v10030_v62 = vcombine.high %v1218_v52, %v1222_v53  ;;  %7055 = vmatprep.subr.bf16.mxu1 %v10150_v50  ;;  %v10029_v4 = vcombine.low %v1218_v52, %v1222_v53 }
 0x1c7   : > { %v1350_v57 = vld [vmem:[%s11688_s4 + $0x1660] sm:$0xff]  ;;  %7056 = vmatpush1.bf16.msra.mxu1 %v10149_v59 }
 0x1c8   : > { %v10158_v63 = vcombine.high %v1346_v54, %v1350_v57  ;;  %v1226_v0 = vld [vmem:[%s11688_s4 + $0x1280] sm:$0xff]  ;;  %7016 = vmatprep.subr.bf16.mxu0 %v10030_v62  ;;  %v10157_v5 = vcombine.low %v1346_v54, %v1350_v57 }
 0x1c9   : > { %v1230_v1 = vld [vmem:[%s11688_s4 + $0x12a0] sm:$0xff]  ;;  %7017 = vmatpush1.bf16.msra.mxu0 %v10029_v4 }
 0x1ca   : > { %v1354_v2 = vld [vmem:[%s11688_s4 + $0x1680] sm:$0xff]  ;;  %v10038_v6 = vcombine.high %v1226_v0, %v1230_v1  ;;  %7057 = vmatprep.subr.bf16.mxu1 %v10158_v63  ;;  %v10037_v12 = vcombine.low %v1226_v0, %v1230_v1 }
 0x1cb   : > { %v1358_v3 = vld [vmem:[%s11688_s4 + $0x16a0] sm:$0xff]  ;;  %7058 = vmatpush1.bf16.msra.mxu1 %v10157_v5 }
 0x1cc   : > { %v10166_v7 = vcombine.high %v1354_v2, %v1358_v3  ;;  %v1234_v8 = vld [vmem:[%s11688_s4 + $0x12c0] sm:$0xff]  ;;  %7018 = vmatprep.subr.bf16.mxu0 %v10038_v6  ;;  %v10165_v13 = vcombine.low %v1354_v2, %v1358_v3  ;;  %v11980_v6 = vcombine.low %v11895_v41, %v11895_v41 }
 0x1cd   : > { %v1238_v9 = vld [vmem:[%s11688_s4 + $0x12e0] sm:$0xff]  ;;  %7019 = vmatpush1.bf16.msra.mxu0 %v10037_v12  ;;  %v11992_v12 = vld [vmem:[%s11681_s15 + $0x38] sm:$0xff] }
 0x1ce   : > { %v1362_v10 = vld [vmem:[%s11688_s4 + $0x16c0] sm:$0xff]  ;;  %v10046_v14 = vcombine.high %v1234_v8, %v1238_v9  ;;  %7059 = vmatprep.subr.bf16.mxu1 %v10166_v7  ;;  %v10045_v23 = vcombine.low %v1234_v8, %v1238_v9  ;;  %v11985_v9 = vld [vmem:[%s11681_s15 + $0x30] sm:$0xff] }
 0x1cf   : > { %v1366_v11 = vld [vmem:[%s11688_s4 + $0x16e0] sm:$0xff]  ;;  %7060 = vmatpush1.bf16.msra.mxu1 %v10165_v13 }
 0x1d0   : > { %v10174_v15 = vcombine.high %v1362_v10, %v1366_v11  ;;  %v1242_v16 = vld [vmem:[%s11688_s4 + $0x1300] sm:$0xff]  ;;  %7020 = vmatprep.subr.bf16.mxu0 %v10046_v14  ;;  %v10173_v25 = vcombine.low %v1362_v10, %v1366_v11  ;;  %v11989_v10 = vcombine.low %v11902_v44, %v11902_v44 }
 0x1d1   : > { %v1246_v17 = vld [vmem:[%s11688_s4 + $0x1320] sm:$0xff]  ;;  %7021 = vmatpush1.bf16.msra.mxu0 %v10045_v23 }
 0x1d2   : > { %v1370_v19 = vld [vmem:[%s11688_s4 + $0x1700] sm:$0xff]  ;;  %v10054_v26 = vcombine.high %v1242_v16, %v1246_v17  ;;  %7061 = vmatprep.subr.bf16.mxu1 %v10174_v15  ;;  %v10053_v32 = vcombine.low %v1242_v16, %v1246_v17  ;;  %v11998_v17 = vcombine.high %v11985_v9, %v11985_v9 }
 0x1d3   : > { %v1374_v20 = vld [vmem:[%s11688_s4 + $0x1720] sm:$0xff]  ;;  %7062 = vmatpush1.bf16.msra.mxu1 %v10173_v25 }
 0x1d4   : > { %v10182_v55 = vcombine.high %v1370_v19, %v1374_v20  ;;  %v1250_v27 = vld [vmem:[%s11688_s4 + $0x1340] sm:$0xff]  ;;  %7022 = vmatprep.subr.bf16.mxu0 %v10054_v26  ;;  %v10181_v33 = vcombine.low %v1370_v19, %v1374_v20  ;;  %v12005_v20 = vcombine.high %v11992_v12, %v11992_v12 }
 0x1d5   : > { %v1254_v28 = vld [vmem:[%s11688_s4 + $0x1360] sm:$0xff]  ;;  %7023 = vmatpush1.bf16.msra.mxu0 %v10053_v32 }
 0x1d6   : > { %v1378_v56 = vld [vmem:[%s11688_s4 + $0x1740] sm:$0xff]  ;;  %v10062_v34 = vcombine.high %v1250_v27, %v1254_v28  ;;  %7063 = vmatprep.subr.bf16.mxu1 %v10182_v55  ;;  %v10061_v43 = vcombine.low %v1250_v27, %v1254_v28 }
 0x1d7   : > { %v1382_v30 = vld [vmem:[%s11688_s4 + $0x1760] sm:$0xff]  ;;  %7064 = vmatpush1.bf16.msra.mxu1 %v10181_v33 }
 0x1d8   : > { %v10190_v35 = vcombine.high %v1378_v56, %v1382_v30  ;;  %v1258_v36 = vld [vmem:[%s11688_s4 + $0x1380] sm:$0xff]  ;;  %7024 = vmatprep.subr.bf16.mxu0 %v10062_v34  ;;  %v10189_v45 = vcombine.low %v1378_v56, %v1382_v30 }
 0x1d9   : > { %v1262_v37 = vld [vmem:[%s11688_s4 + $0x13a0] sm:$0xff]  ;;  %7025 = vmatpush1.bf16.msra.mxu0 %v10061_v43 }
 0x1da   : > { %v1386_v39 = vld [vmem:[%s11688_s4 + $0x1780] sm:$0xff]  ;;  %v10070_v46 = vcombine.high %v1258_v36, %v1262_v37  ;;  %7065 = vmatprep.subr.bf16.mxu1 %v10190_v35  ;;  %v10069_v52 = vcombine.low %v1258_v36, %v1262_v37 }
 0x1db   : > { %v1390_v40 = vld [vmem:[%s11688_s4 + $0x17a0] sm:$0xff]  ;;  %7066 = vmatpush1.bf16.msra.mxu1 %v10189_v45 }
 0x1dc   : > { %v10198_v21 = vcombine.high %v1386_v39, %v1390_v40  ;;  %v1266_v47 = vld [vmem:[%s11688_s4 + $0x13c0] sm:$0xff]  ;;  %7026 = vmatprep.subr.bf16.mxu0 %v10070_v46  ;;  %v10197_v53 = vcombine.low %v1386_v39, %v1390_v40 }
 0x1dd   : > { %v1270_v48 = vld [vmem:[%s11688_s4 + $0x13e0] sm:$0xff]  ;;  %7027 = vmatpush1.bf16.msra.mxu0 %v10069_v52 }
 0x1de   : > { %v1394_v24 = vld [vmem:[%s11688_s4 + $0x17c0] sm:$0xff]  ;;  %v10078_v54 = vcombine.high %v1266_v47, %v1270_v48  ;;  %7067 = vmatprep.subr.bf16.mxu1 %v10198_v21  ;;  %v10077_v0 = vcombine.low %v1266_v47, %v1270_v48 }
 0x1df   : > { %v1398_v50 = vld [vmem:[%s11688_s4 + $0x17e0] sm:$0xff]  ;;  %7068 = vmatpush1.bf16.msra.mxu1 %v10197_v53 }
 0x1e0   : > { %v10206_v57 = vcombine.high %v1394_v24, %v1398_v50  ;;  %v1402_v58 = vld [vmem:[%s11688_s4 + $0x1800] sm:$0xff]  ;;  %7028 = vmatprep.subr.bf16.mxu0 %v10078_v54  ;;  %v10205_v1 = vcombine.low %v1394_v24, %v1398_v50 }
 0x1e1   : > { %v1406_v59 = vld [vmem:[%s11688_s4 + $0x1820] sm:$0xff]  ;;  %7029 = vmatpush1.bf16.msra.mxu0 %v10077_v0 }
 0x1e2   : > { %v1530_v62 = vld [vmem:[%s11688_s4 + $0x1c00] sm:$0xff]  ;;  %v10214_v2 = vcombine.high %v1402_v58, %v1406_v59  ;;  %7069 = vmatprep.subr.bf16.mxu1 %v10206_v57  ;;  %v10213_v11 = vcombine.low %v1402_v58, %v1406_v59 }
 0x1e3   : > { %v1534_v63 = vld [vmem:[%s11688_s4 + $0x1c20] sm:$0xff]  ;;  %7070 = vmatpush1.bf16.msra.mxu1 %v10205_v1 }
 0x1e4   : > { %v10342_v3 = vcombine.high %v1530_v62, %v1534_v63  ;;  %v1410_v4 = vld [vmem:[%s11688_s4 + $0x1840] sm:$0xff]  ;;  %7080 = vmatprep.subr.bf16.mxu0 %v10214_v2  ;;  %v10341_v13 = vcombine.low %v1530_v62, %v1534_v63  ;;  %7031 = vmatmul.mubr.bf16.vlgmr.msra.gmra.mrb[8].mxu0 %v11980_v6 }
 0x1e5   : > { %v1414_v5 = vld [vmem:[%s11688_s4 + $0x1860] sm:$0xff]  ;;  %7081 = vmatpush1.bf16.msra.mxu0 %v10213_v11  ;;  %7112 = vmatprep.mubr.bf16.mxu0 %v11998_v17 }
 0x1e6   : > { %v1538_v7 = vld [vmem:[%s11688_s4 + $0x1c40] sm:$0xff]  ;;  %v10222_v14 = vcombine.high %v1410_v4, %v1414_v5  ;;  %7121 = vmatprep.subr.bf16.mxu1 %v10342_v3  ;;  %7072 = vmatmul.mubr.bf16.vlgmr.msra.gmra.mrb[8].mxu1 %v11989_v10  ;;  %v10221_v23 = vcombine.low %v1410_v4, %v1414_v5 }
 0x1e7   : > { %v1542_v8 = vld [vmem:[%s11688_s4 + $0x1c60] sm:$0xff]  ;;  %7122 = vmatpush1.bf16.msra.mxu1 %v10341_v13  ;;  %7153 = vmatprep.mubr.bf16.mxu1 %v12005_v20 }
 0x1e8   : > { %v10350_v41 = vcombine.high %v1538_v7, %v1542_v8  ;;  %v1418_v15 = vld [vmem:[%s11688_s4 + $0x1880] sm:$0xff]  ;;  %7082 = vmatprep.subr.bf16.mxu0 %v10222_v14  ;;  %v10349_v25 = vcombine.low %v1538_v7, %v1542_v8 }
 0x1e9   : > { %v1422_v16 = vld [vmem:[%s11688_s4 + $0x18a0] sm:$0xff]  ;;  %7083 = vmatpush1.bf16.msra.mxu0 %v10221_v23 }
 0x1ea   : > { %v1546_v44 = vld [vmem:[%s11688_s4 + $0x1c80] sm:$0xff]  ;;  %v10230_v26 = vcombine.high %v1418_v15, %v1422_v16  ;;  %7123 = vmatprep.subr.bf16.mxu1 %v10350_v41  ;;  %v10229_v32 = vcombine.low %v1418_v15, %v1422_v16 }
 0x1eb   : > { %v1550_v19 = vld [vmem:[%s11688_s4 + $0x1ca0] sm:$0xff]  ;;  %7124 = vmatpush1.bf16.msra.mxu1 %v10349_v25 }
 0x1ec   : > { %v10358_v55 = vcombine.high %v1546_v44, %v1550_v19  ;;  %v1426_v27 = vld [vmem:[%s11688_s4 + $0x18c0] sm:$0xff]  ;;  %7084 = vmatprep.subr.bf16.mxu0 %v10230_v26  ;;  %v10357_v33 = vcombine.low %v1546_v44, %v1550_v19 }
 0x1ed   : > { %v1430_v28 = vld [vmem:[%s11688_s4 + $0x18e0] sm:$0xff]  ;;  %7085 = vmatpush1.bf16.msra.mxu0 %v10229_v32 }
 0x1ee   : > { %v1554_v56 = vld [vmem:[%s11688_s4 + $0x1cc0] sm:$0xff]  ;;  %v10238_v34 = vcombine.high %v1426_v27, %v1430_v28  ;;  %7125 = vmatprep.subr.bf16.mxu1 %v10358_v55  ;;  %v10237_v43 = vcombine.low %v1426_v27, %v1430_v28 }
 0x1ef   : > { %v1558_v30 = vld [vmem:[%s11688_s4 + $0x1ce0] sm:$0xff]  ;;  %7126 = vmatpush1.bf16.msra.mxu1 %v10357_v33 }
 0x1f0   : > { %v10366_v35 = vcombine.high %v1554_v56, %v1558_v30  ;;  %v1434_v36 = vld [vmem:[%s11688_s4 + $0x1900] sm:$0xff]  ;;  %7086 = vmatprep.subr.bf16.mxu0 %v10238_v34  ;;  %v10365_v45 = vcombine.low %v1554_v56, %v1558_v30 }
 0x1f1   : > { %v1438_v37 = vld [vmem:[%s11688_s4 + $0x1920] sm:$0xff]  ;;  %7087 = vmatpush1.bf16.msra.mxu0 %v10237_v43 }
 0x1f2   : > { %v1562_v39 = vld [vmem:[%s11688_s4 + $0x1d00] sm:$0xff]  ;;  %v10246_v46 = vcombine.high %v1434_v36, %v1438_v37  ;;  %7127 = vmatprep.subr.bf16.mxu1 %v10366_v35  ;;  %v10245_v52 = vcombine.low %v1434_v36, %v1438_v37 }
 0x1f3   : > { %v1566_v40 = vld [vmem:[%s11688_s4 + $0x1d20] sm:$0xff]  ;;  %7128 = vmatpush1.bf16.msra.mxu1 %v10365_v45 }
 0x1f4   : > { %v10374_v21 = vcombine.high %v1562_v39, %v1566_v40  ;;  %v1442_v47 = vld [vmem:[%s11688_s4 + $0x1940] sm:$0xff]  ;;  %7088 = vmatprep.subr.bf16.mxu0 %v10246_v46  ;;  %v10373_v53 = vcombine.low %v1562_v39, %v1566_v40 }
 0x1f5   : > { %v1446_v48 = vld [vmem:[%s11688_s4 + $0x1960] sm:$0xff]  ;;  %7089 = vmatpush1.bf16.msra.mxu0 %v10245_v52 }
 0x1f6   : > { %v1570_v24 = vld [vmem:[%s11688_s4 + $0x1d40] sm:$0xff]  ;;  %v10254_v54 = vcombine.high %v1442_v47, %v1446_v48  ;;  %7129 = vmatprep.subr.bf16.mxu1 %v10374_v21  ;;  %v10253_v0 = vcombine.low %v1442_v47, %v1446_v48 }
 0x1f7   : > { %v1574_v50 = vld [vmem:[%s11688_s4 + $0x1d60] sm:$0xff]  ;;  %7130 = vmatpush1.bf16.msra.mxu1 %v10373_v53 }
 0x1f8   : > { %v10382_v57 = vcombine.high %v1570_v24, %v1574_v50  ;;  %v1450_v58 = vld [vmem:[%s11688_s4 + $0x1980] sm:$0xff]  ;;  %7090 = vmatprep.subr.bf16.mxu0 %v10254_v54  ;;  %v10381_v1 = vcombine.low %v1570_v24, %v1574_v50 }
 0x1f9   : > { %v1454_v59 = vld [vmem:[%s11688_s4 + $0x19a0] sm:$0xff]  ;;  %7091 = vmatpush1.bf16.msra.mxu0 %v10253_v0 }
 0x1fa   : > { %v1578_v62 = vld [vmem:[%s11688_s4 + $0x1d80] sm:$0xff]  ;;  %v10262_v2 = vcombine.high %v1450_v58, %v1454_v59  ;;  %7131 = vmatprep.subr.bf16.mxu1 %v10382_v57  ;;  %v10261_v11 = vcombine.low %v1450_v58, %v1454_v59 }
 0x1fb   : > { %v1582_v63 = vld [vmem:[%s11688_s4 + $0x1da0] sm:$0xff]  ;;  %7132 = vmatpush1.bf16.msra.mxu1 %v10381_v1 }
 0x1fc   : > { %v10390_v3 = vcombine.high %v1578_v62, %v1582_v63  ;;  %v1458_v4 = vld [vmem:[%s11688_s4 + $0x19c0] sm:$0xff]  ;;  %7092 = vmatprep.subr.bf16.mxu0 %v10262_v2  ;;  %v10389_v13 = vcombine.low %v1578_v62, %v1582_v63 }
 0x1fd   : > { %v1462_v5 = vld [vmem:[%s11688_s4 + $0x19e0] sm:$0xff]  ;;  %7093 = vmatpush1.bf16.msra.mxu0 %v10261_v11 }
 0x1fe   : > { %v1586_v7 = vld [vmem:[%s11688_s4 + $0x1dc0] sm:$0xff]  ;;  %v10270_v14 = vcombine.high %v1458_v4, %v1462_v5  ;;  %7133 = vmatprep.subr.bf16.mxu1 %v10390_v3  ;;  %v10269_v23 = vcombine.low %v1458_v4, %v1462_v5 }
 0x1ff   : > { %v1590_v8 = vld [vmem:[%s11688_s4 + $0x1de0] sm:$0xff]  ;;  %7134 = vmatpush1.bf16.msra.mxu1 %v10389_v13 }
 0x200   : > { %v10398_v41 = vcombine.high %v1586_v7, %v1590_v8  ;;  %v1466_v15 = vld [vmem:[%s11688_s4 + $0x1a00] sm:$0xff]  ;;  %7094 = vmatprep.subr.bf16.mxu0 %v10270_v14  ;;  %v10397_v25 = vcombine.low %v1586_v7, %v1590_v8 }
 0x201   : > { %v1470_v16 = vld [vmem:[%s11688_s4 + $0x1a20] sm:$0xff]  ;;  %7095 = vmatpush1.bf16.msra.mxu0 %v10269_v23 }
 0x202   : > { %v1594_v44 = vld [vmem:[%s11688_s4 + $0x1e00] sm:$0xff]  ;;  %v10278_v26 = vcombine.high %v1466_v15, %v1470_v16  ;;  %7135 = vmatprep.subr.bf16.mxu1 %v10398_v41  ;;  %v10277_v32 = vcombine.low %v1466_v15, %v1470_v16 }
 0x203   : > { %v1598_v19 = vld [vmem:[%s11688_s4 + $0x1e20] sm:$0xff]  ;;  %7136 = vmatpush1.bf16.msra.mxu1 %v10397_v25 }
 0x204   : > { %v10406_v55 = vcombine.high %v1594_v44, %v1598_v19  ;;  %v1474_v27 = vld [vmem:[%s11688_s4 + $0x1a40] sm:$0xff]  ;;  %7096 = vmatprep.subr.bf16.mxu0 %v10278_v26  ;;  %v10405_v33 = vcombine.low %v1594_v44, %v1598_v19 }
 0x205   : > { %v1478_v28 = vld [vmem:[%s11688_s4 + $0x1a60] sm:$0xff]  ;;  %7097 = vmatpush1.bf16.msra.mxu0 %v10277_v32 }
 0x206   : > { %v1602_v56 = vld [vmem:[%s11688_s4 + $0x1e40] sm:$0xff]  ;;  %v10286_v34 = vcombine.high %v1474_v27, %v1478_v28  ;;  %7137 = vmatprep.subr.bf16.mxu1 %v10406_v55  ;;  %v10285_v43 = vcombine.low %v1474_v27, %v1478_v28 }
 0x207   : > { %v1606_v30 = vld [vmem:[%s11688_s4 + $0x1e60] sm:$0xff]  ;;  %7138 = vmatpush1.bf16.msra.mxu1 %v10405_v33 }
 0x208   : > { %v10414_v35 = vcombine.high %v1602_v56, %v1606_v30  ;;  %v1482_v36 = vld [vmem:[%s11688_s4 + $0x1a80] sm:$0xff]  ;;  %7098 = vmatprep.subr.bf16.mxu0 %v10286_v34  ;;  %v10413_v45 = vcombine.low %v1602_v56, %v1606_v30 }
 0x209   : > { %v1486_v37 = vld [vmem:[%s11688_s4 + $0x1aa0] sm:$0xff]  ;;  %7099 = vmatpush1.bf16.msra.mxu0 %v10285_v43 }
 0x20a   : > { %v1610_v39 = vld [vmem:[%s11688_s4 + $0x1e80] sm:$0xff]  ;;  %v10294_v46 = vcombine.high %v1482_v36, %v1486_v37  ;;  %7139 = vmatprep.subr.bf16.mxu1 %v10414_v35  ;;  %v10293_v52 = vcombine.low %v1482_v36, %v1486_v37  ;;  %v635_v36 = vld [vmem:[%s11688_s4 + $0x8] sm:$0xff] }
 0x20b   : > { %v1614_v40 = vld [vmem:[%s11688_s4 + $0x1ea0] sm:$0xff]  ;;  %7140 = vmatpush1.bf16.msra.mxu1 %v10413_v45  ;;  %v639_v37 = vld [vmem:[%s11688_s4 + $0x28] sm:$0xff] }
 0x20c   : > { %v10422_v21 = vcombine.high %v1610_v39, %v1614_v40  ;;  %v1490_v47 = vld [vmem:[%s11688_s4 + $0x1ac0] sm:$0xff]  ;;  %7100 = vmatprep.subr.bf16.mxu0 %v10294_v46  ;;  %v10421_v53 = vcombine.low %v1610_v39, %v1614_v40  ;;  %v763_v39 = vld [vmem:[%s11688_s4 + $0x408] sm:$0xff]  ;;  %v9448_v46 = vcombine.high %v635_v36, %v639_v37 }
 0x20d   : > { %v1494_v48 = vld [vmem:[%s11688_s4 + $0x1ae0] sm:$0xff]  ;;  %7101 = vmatpush1.bf16.msra.mxu0 %v10293_v52  ;;  %v767_v40 = vld [vmem:[%s11688_s4 + $0x428] sm:$0xff] }
 0x20e   : > { %v1618_v24 = vld [vmem:[%s11688_s4 + $0x1ec0] sm:$0xff]  ;;  %v10302_v54 = vcombine.high %v1490_v47, %v1494_v48  ;;  %7141 = vmatprep.subr.bf16.mxu1 %v10422_v21  ;;  %v10301_v0 = vcombine.low %v1490_v47, %v1494_v48  ;;  %v9576_v21 = vcombine.high %v763_v39, %v767_v40  ;;  %v643_v47 = vld [vmem:[%s11688_s4 + $0x48] sm:$0xff] }
 0x20f   : > { %v1622_v50 = vld [vmem:[%s11688_s4 + $0x1ee0] sm:$0xff]  ;;  %7142 = vmatpush1.bf16.msra.mxu1 %v10421_v53  ;;  %v647_v48 = vld [vmem:[%s11688_s4 + $0x68] sm:$0xff]  ;;  %v12076_v53 = vcombine.low %v11992_v12, %v11992_v12 }
 0x210   : > { %v10430_v57 = vcombine.high %v1618_v24, %v1622_v50  ;;  %v1498_v58 = vld [vmem:[%s11688_s4 + $0x1b00] sm:$0xff]  ;;  %7102 = vmatprep.subr.bf16.mxu0 %v10302_v54  ;;  %v10429_v1 = vcombine.low %v1618_v24, %v1622_v50  ;;  %v12070_v24 = vcombine.low %v11985_v9, %v11985_v9  ;;  %v771_v50 = vld [vmem:[%s11688_s4 + $0x448] sm:$0xff]  ;;  %v9447_v54 = vcombine.low %v635_v36, %v639_v37 }
 0x211   : > { %v1502_v59 = vld [vmem:[%s11688_s4 + $0x1b20] sm:$0xff]  ;;  %7103 = vmatpush1.bf16.msra.mxu0 %v10301_v0  ;;  %v775_v52 = vld [vmem:[%s11688_s4 + $0x468] sm:$0xff]  ;;  %v9455_v12 = vcombine.low %v643_v47, %v647_v48 }
 0x212   : > { %v1626_v62 = vld [vmem:[%s11688_s4 + $0x1f00] sm:$0xff]  ;;  %v10310_v2 = vcombine.high %v1498_v58, %v1502_v59  ;;  %7143 = vmatprep.subr.bf16.mxu1 %v10430_v57  ;;  %v10309_v11 = vcombine.low %v1498_v58, %v1502_v59  ;;  %v9575_v57 = vcombine.low %v763_v39, %v767_v40  ;;  %v9456_v58 = vcombine.high %v643_v47, %v647_v48  ;;  %v655_v9 = vld [vmem:[%s11688_s4 + $0xa8] sm:$0xff] }
 0x213   : > { %v1630_v63 = vld [vmem:[%s11688_s4 + $0x1f20] sm:$0xff]  ;;  %7144 = vmatpush1.bf16.msra.mxu1 %v10429_v1  ;;  %v9584_v59 = vcombine.high %v771_v50, %v775_v52  ;;  %v783_v0 = vld [vmem:[%s11688_s4 + $0x4a8] sm:$0xff]  ;;  %v9583_v1 = vcombine.low %v771_v50, %v775_v52 }
 0x214   : > { %v10438_v3 = vcombine.high %v1626_v62, %v1630_v63  ;;  %v1506_v4 = vld [vmem:[%s11688_s4 + $0x1b40] sm:$0xff]  ;;  %7104 = vmatprep.subr.bf16.mxu0 %v10310_v2  ;;  %v10437_v13 = vcombine.low %v1626_v62, %v1630_v63  ;;  %v651_v62 = vld [vmem:[%s11688_s4 + $0x88] sm:$0xff] }
 0x215   : > { %v1510_v5 = vld [vmem:[%s11688_s4 + $0x1b60] sm:$0xff]  ;;  %7105 = vmatpush1.bf16.msra.mxu0 %v10309_v11  ;;  %v779_v63 = vld [vmem:[%s11688_s4 + $0x488] sm:$0xff]  ;;  %v9464_v2 = vcombine.high %v651_v62, %v655_v9  ;;  %v9463_v11 = vcombine.low %v651_v62, %v655_v9 }
 0x216   : > { %v1634_v7 = vld [vmem:[%s11688_s4 + $0x1f40] sm:$0xff]  ;;  %v10318_v14 = vcombine.high %v1506_v4, %v1510_v5  ;;  %7145 = vmatprep.subr.bf16.mxu1 %v10438_v3  ;;  %v10317_v23 = vcombine.low %v1506_v4, %v1510_v5  ;;  %v9592_v3 = vcombine.high %v779_v63, %v783_v0  ;;  %v659_v4 = vld [vmem:[%s11688_s4 + $0xc8] sm:$0xff] }
 0x217   : > { %v1638_v8 = vld [vmem:[%s11688_s4 + $0x1f60] sm:$0xff]  ;;  %7146 = vmatpush1.bf16.msra.mxu1 %v10437_v13  ;;  %v663_v5 = vld [vmem:[%s11688_s4 + $0xe8] sm:$0xff]  ;;  %v9591_v13 = vcombine.low %v779_v63, %v783_v0 }
 0x218   : > { %v10446_v41 = vcombine.high %v1634_v7, %v1638_v8  ;;  %v1514_v15 = vld [vmem:[%s11688_s4 + $0x1b80] sm:$0xff]  ;;  %7106 = vmatprep.subr.bf16.mxu0 %v10318_v14  ;;  %v10445_v25 = vcombine.low %v1634_v7, %v1638_v8  ;;  %v787_v7 = vld [vmem:[%s11688_s4 + $0x4c8] sm:$0xff]  ;;  %v9472_v14 = vcombine.high %v659_v4, %v663_v5 }
 0x219   : > { %v1518_v16 = vld [vmem:[%s11688_s4 + $0x1ba0] sm:$0xff]  ;;  %7107 = vmatpush1.bf16.msra.mxu0 %v10317_v23  ;;  %v791_v8 = vld [vmem:[%s11688_s4 + $0x4e8] sm:$0xff]  ;;  %v9471_v23 = vcombine.low %v659_v4, %v663_v5 }
 0x21a   : > { %v1642_v44 = vld [vmem:[%s11688_s4 + $0x1f80] sm:$0xff]  ;;  %v10326_v26 = vcombine.high %v1514_v15, %v1518_v16  ;;  %7147 = vmatprep.subr.bf16.mxu1 %v10446_v41  ;;  %v10325_v32 = vcombine.low %v1514_v15, %v1518_v16  ;;  %v9600_v41 = vcombine.high %v787_v7, %v791_v8  ;;  %v667_v15 = vld [vmem:[%s11688_s4 + $0x108] sm:$0xff] }
 0x21b   : > { %v1646_v19 = vld [vmem:[%s11688_s4 + $0x1fa0] sm:$0xff]  ;;  %7148 = vmatpush1.bf16.msra.mxu1 %v10445_v25  ;;  %v671_v16 = vld [vmem:[%s11688_s4 + $0x128] sm:$0xff]  ;;  %v9599_v25 = vcombine.low %v787_v7, %v791_v8 }
 0x21c   : > { %v10454_v55 = vcombine.high %v1642_v44, %v1646_v19  ;;  %v1522_v27 = vld [vmem:[%s11688_s4 + $0x1bc0] sm:$0xff]  ;;  %7108 = vmatprep.subr.bf16.mxu0 %v10326_v26  ;;  %v10453_v33 = vcombine.low %v1642_v44, %v1646_v19  ;;  %v795_v44 = vld [vmem:[%s11688_s4 + $0x508] sm:$0xff]  ;;  %v9480_v26 = vcombine.high %v667_v15, %v671_v16 }
 0x21d   : > { %v1526_v28 = vld [vmem:[%s11688_s4 + $0x1be0] sm:$0xff]  ;;  %7109 = vmatpush1.bf16.msra.mxu0 %v10325_v32  ;;  %v799_v19 = vld [vmem:[%s11688_s4 + $0x528] sm:$0xff]  ;;  %v9479_v32 = vcombine.low %v667_v15, %v671_v16 }
 0x21e   : > { %v1650_v56 = vld [vmem:[%s11688_s4 + $0x1fc0] sm:$0xff]  ;;  %v10334_v34 = vcombine.high %v1522_v27, %v1526_v28  ;;  %7149 = vmatprep.subr.bf16.mxu1 %v10454_v55  ;;  %v10333_v43 = vcombine.low %v1522_v27, %v1526_v28  ;;  %v9608_v55 = vcombine.high %v795_v44, %v799_v19  ;;  %v675_v27 = vld [vmem:[%s11688_s4 + $0x148] sm:$0xff] }
 0x21f   : > { %v1654_v30 = vld [vmem:[%s11688_s4 + $0x1fe0] sm:$0xff]  ;;  %7150 = vmatpush1.bf16.msra.mxu1 %v10453_v33  ;;  %v679_v28 = vld [vmem:[%s11688_s4 + $0x168] sm:$0xff]  ;;  %v9607_v33 = vcombine.low %v795_v44, %v799_v19 }
 0x220   : > { %v10462_v35 = vcombine.high %v1650_v56, %v1654_v30  ;;  %7110 = vmatprep.subr.bf16.mxu0 %v10334_v34  ;;  %v10461_v45 = vcombine.low %v1650_v56, %v1654_v30  ;;  %v803_v56 = vld [vmem:[%s11688_s4 + $0x548] sm:$0xff]  ;;  %v9488_v34 = vcombine.high %v675_v27, %v679_v28 }
 0x221   : > { %7111 = vmatpush1.bf16.msra.mxu0 %v10333_v43  ;;  %v807_v30 = vld [vmem:[%s11688_s4 + $0x568] sm:$0xff]  ;;  %v9487_v43 = vcombine.low %v675_v27, %v679_v28 }
 0x222   : > { %7151 = vmatprep.subr.bf16.mxu1 %v10462_v35  ;;  %7162 = vmatprep.subr.bf16.mxu0 %v9448_v46  ;;  %v9616_v35 = vcombine.high %v803_v56, %v807_v30  ;;  %v683_v36 = vld [vmem:[%s11688_s4 + $0x188] sm:$0xff] }
 0x223   : > { %7152 = vmatpush1.bf16.msra.mxu1 %v10461_v45  ;;  %v687_v37 = vld [vmem:[%s11688_s4 + $0x1a8] sm:$0xff]  ;;  %v9615_v45 = vcombine.low %v803_v56, %v807_v30 }
 0x224   : > { %7203 = vmatprep.subr.bf16.mxu1 %v9576_v21  ;;  %7113 = vmatmul.mubr.bf16.vlgmr.msra.gmra.mrb[12].mxu0 %v12070_v24  ;;  %v811_v39 = vld [vmem:[%s11688_s4 + $0x588] sm:$0xff]  ;;  %v9496_v46 = vcombine.high %v683_v36, %v687_v37  ;;  %v9495_v63 = vcombine.low %v683_v36, %v687_v37 }
 0x225   : > { %7163 = vmatpush1.bf16.msra.mxu0 %v9447_v54  ;;  %7194 = vmatprep.mubr.bf16.mxu0 %v11750_v60  ;;  %v815_v40 = vld [vmem:[%s11688_s4 + $0x5a8] sm:$0xff] }
 0x226   : > { %7154 = vmatmul.mubr.bf16.vlgmr.msra.gmra.mrb[12].mxu1 %v12076_v53  ;;  %7164 = vmatprep.subr.bf16.mxu0 %v9456_v58  ;;  %v9624_v47 = vcombine.high %v811_v39, %v815_v40  ;;  %v691_v48 = vld [vmem:[%s11688_s4 + $0x1c8] sm:$0xff] }
 0x227   : > { %7204 = vmatpush1.bf16.msra.mxu1 %v9575_v57  ;;  %7235 = vmatprep.mubr.bf16.mxu1 %v11754_v61  ;;  %v695_v50 = vld [vmem:[%s11688_s4 + $0x1e8] sm:$0xff] }
 0x228   : > { %7205 = vmatprep.subr.bf16.mxu1 %v9584_v59  ;;  %v819_v57 = vld [vmem:[%s11688_s4 + $0x5c8] sm:$0xff] }
 0x229   : > { %7165 = vmatpush1.bf16.msra.mxu0 %v9455_v12  ;;  %v823_v58 = vld [vmem:[%s11688_s4 + $0x5e8] sm:$0xff] }
 0x22a   : > { %7166 = vmatprep.subr.bf16.mxu0 %v9464_v2  ;;  %v9623_v2 = vcombine.low %v811_v39, %v815_v40  ;;  %v9632_v5 = vcombine.high %v819_v57, %v823_v58  ;;  %v699_v7 = vld [vmem:[%s11688_s4 + $0x208] sm:$0xff] }
 0x22b   : > { %7206 = vmatpush1.bf16.msra.mxu1 %v9583_v1  ;;  %v703_v8 = vld [vmem:[%s11688_s4 + $0x228] sm:$0xff] }
 0x22c   : > { %7207 = vmatprep.subr.bf16.mxu1 %v9592_v3  ;;  %v9504_v3 = vcombine.high %v691_v48, %v695_v50  ;;  %v9512_v15 = vcombine.high %v699_v7, %v703_v8  ;;  %v707_v44 = vld [vmem:[%s11688_s4 + $0x248] sm:$0xff] }
 0x22d   : > { %7167 = vmatpush1.bf16.msra.mxu0 %v9463_v11  ;;  %v827_v11 = vld [vmem:[%s11688_s4 + $0x608] sm:$0xff] }
 0x22e   : > { %7168 = vmatprep.subr.bf16.mxu0 %v9472_v14  ;;  %v9503_v14 = vcombine.low %v691_v48, %v695_v50  ;;  %v711_v19 = vld [vmem:[%s11688_s4 + $0x268] sm:$0xff] }
 0x22f   : > { %7208 = vmatpush1.bf16.msra.mxu1 %v9591_v13  ;;  %v831_v13 = vld [vmem:[%s11688_s4 + $0x628] sm:$0xff]  ;;  %v9520_v27 = vcombine.high %v707_v44, %v711_v19 }
 0x230   : > { %7209 = vmatprep.subr.bf16.mxu1 %v9600_v41  ;;  %v9631_v41 = vcombine.low %v819_v57, %v823_v58  ;;  %v9640_v16 = vcombine.high %v827_v11, %v831_v13  ;;  %v715_v56 = vld [vmem:[%s11688_s4 + $0x288] sm:$0xff] }
 0x231   : > { %7169 = vmatpush1.bf16.msra.mxu0 %v9471_v23  ;;  %v835_v23 = vld [vmem:[%s11688_s4 + $0x648] sm:$0xff] }
 0x232   : > { %7170 = vmatprep.subr.bf16.mxu0 %v9480_v26  ;;  %v9511_v26 = vcombine.low %v699_v7, %v703_v8  ;;  %v719_v30 = vld [vmem:[%s11688_s4 + $0x2a8] sm:$0xff] }
 0x233   : > { %7210 = vmatpush1.bf16.msra.mxu1 %v9599_v25  ;;  %v839_v25 = vld [vmem:[%s11688_s4 + $0x668] sm:$0xff]  ;;  %v9528_v36 = vcombine.high %v715_v56, %v719_v30 }
 0x234   : > { %7211 = vmatprep.subr.bf16.mxu1 %v9608_v55  ;;  %v9639_v55 = vcombine.low %v827_v11, %v831_v13  ;;  %v9648_v28 = vcombine.high %v835_v23, %v839_v25  ;;  %v723_v39 = vld [vmem:[%s11688_s4 + $0x2c8] sm:$0xff] }
 0x235   : > { %7171 = vmatpush1.bf16.msra.mxu0 %v9479_v32  ;;  %v843_v32 = vld [vmem:[%s11688_s4 + $0x688] sm:$0xff] }
 0x236   : > { %7172 = vmatprep.subr.bf16.mxu0 %v9488_v34  ;;  %v6868_v21 = vpop.f32.mrb[0].mxu0  ;;  %v9519_v34 = vcombine.low %v707_v44, %v711_v19  ;;  %v727_v40 = vld [vmem:[%s11688_s4 + $0x2e8] sm:$0xff] }
 0x237   : > { %7212 = vmatpush1.bf16.msra.mxu1 %v9607_v33  ;;  %v6870_v54 = vpop.f32.mrb[1].mxu0  ;;  %v847_v33 = vld [vmem:[%s11688_s4 + $0x6a8] sm:$0xff]  ;;  %v9535_v58 = vcombine.low %v723_v39, %v727_v40 }
 0x238   : > { %7213 = vmatprep.subr.bf16.mxu1 %v9616_v35  ;;  %v6909_v52 = vpop.f32.mrb[0].mxu1  ;;  %v6872_v9 = vpop.f32.mrb[2].mxu0  ;;  %v9647_v35 = vcombine.low %v835_v23, %v839_v25  ;;  %v9656_v37 = vcombine.high %v843_v32, %v847_v33  ;;  %v731_v50 = vld [vmem:[%s11688_s4 + $0x308] sm:$0xff] }
 0x239   : > { %v12106_v59 = vadd.f32 %v6909_v52, %v6868_v21  ;;  %v6911_v62 = vpop.f32.mrb[1].mxu1  ;;  %7173 = vmatpush1.bf16.msra.mxu0 %v9487_v43  ;;  %v6873_v1 = vpop.f32.mrb[3].mxu0  ;;  %v851_v43 = vld [vmem:[%s11688_s4 + $0x6c8] sm:$0xff]  ;;  %v9655_v21 = vcombine.low %v843_v32, %v847_v33 }
 0x23a   : > { %v12108_v0 = vadd.f32 %v6911_v62, %v6870_v54  ;;  %v6913_v12 = vpop.f32.mrb[2].mxu1  ;;  %7174 = vmatprep.subr.bf16.mxu0 %v9496_v46  ;;  %v9527_v46 = vcombine.low %v715_v56, %v719_v30  ;;  %v735_v52 = vld [vmem:[%s11688_s4 + $0x328] sm:$0xff] }
 0x23b   : > { %7214 = vmatpush1.bf16.msra.mxu1 %v9615_v45  ;;  %v6914_v4 = vpop.f32.mrb[3].mxu1  ;;  %v855_v45 = vld [vmem:[%s11688_s4 + $0x6e8] sm:$0xff]  ;;  %v9544_v9 = vcombine.high %v731_v50, %v735_v52 }
 0x23c   : > { %7215 = vmatprep.subr.bf16.mxu1 %v9624_v47  ;;  %v9536_v47 = vcombine.high %v723_v39, %v727_v40  ;;  %v9664_v48 = vcombine.high %v851_v43, %v855_v45  ;;  %v859_v54 = vld [vmem:[%s11688_s4 + $0x708] sm:$0xff]  ;;  %v9663_v62 = vcombine.low %v851_v43, %v855_v45  ;;  %v9543_v4 = vcombine.low %v731_v50, %v735_v52 }
 0x23d   : > { %7175 = vmatpush1.bf16.msra.mxu0 %v9495_v63  ;;  %v863_v57 = vld [vmem:[%s11688_s4 + $0x728] sm:$0xff] }
 0x23e   : > { %7176 = vmatprep.subr.bf16.mxu0 %v9504_v3  ;;  %v9672_v63 = vcombine.high %v859_v54, %v863_v57  ;;  %v739_v12 = vld [vmem:[%s11688_s4 + $0x348] sm:$0xff] }
 0x23f   : > { %7216 = vmatpush1.bf16.msra.mxu1 %v9623_v2  ;;  %v743_v1 = vld [vmem:[%s11688_s4 + $0x368] sm:$0xff] }
 0x240   : > { %7217 = vmatprep.subr.bf16.mxu1 %v9632_v5  ;;  %v867_v2 = vld [vmem:[%s11688_s4 + $0x748] sm:$0xff]  ;;  %v9671_v5 = vcombine.low %v859_v54, %v863_v57  ;;  %v9552_v7 = vcombine.high %v739_v12, %v743_v1 }
 0x241   : > { %7177 = vmatpush1.bf16.msra.mxu0 %v9503_v14  ;;  %v871_v3 = vld [vmem:[%s11688_s4 + $0x768] sm:$0xff] }
 0x242   : > { %7178 = vmatprep.subr.bf16.mxu0 %v9512_v15  ;;  %v9680_v8 = vcombine.high %v867_v2, %v871_v3  ;;  %v747_v11 = vld [vmem:[%s11688_s4 + $0x388] sm:$0xff]  ;;  %v9551_v15 = vcombine.low %v739_v12, %v743_v1 }
 0x243   : > { %7218 = vmatpush1.bf16.msra.mxu1 %v9631_v41  ;;  %v751_v13 = vld [vmem:[%s11688_s4 + $0x3a8] sm:$0xff] }
 0x244   : > { %7219 = vmatprep.subr.bf16.mxu1 %v9640_v16  ;;  %v875_v14 = vld [vmem:[%s11688_s4 + $0x788] sm:$0xff]  ;;  %v9679_v16 = vcombine.low %v867_v2, %v871_v3  ;;  %v9560_v44 = vcombine.high %v747_v11, %v751_v13 }
 0x245   : > { %7179 = vmatpush1.bf16.msra.mxu0 %v9511_v26  ;;  %v879_v41 = vld [vmem:[%s11688_s4 + $0x7a8] sm:$0xff] }
 0x246   : > { %7180 = vmatprep.subr.bf16.mxu0 %v9520_v27  ;;  %v9688_v19 = vcombine.high %v875_v14, %v879_v41  ;;  %v755_v23 = vld [vmem:[%s11688_s4 + $0x3c8] sm:$0xff]  ;;  %v9559_v27 = vcombine.low %v747_v11, %v751_v13 }
 0x247   : > { %7220 = vmatpush1.bf16.msra.mxu1 %v9639_v55  ;;  %v759_v25 = vld [vmem:[%s11688_s4 + $0x3e8] sm:$0xff] }
 0x248   : > { %7221 = vmatprep.subr.bf16.mxu1 %v9648_v28  ;;  %v883_v26 = vld [vmem:[%s11688_s4 + $0x7c8] sm:$0xff]  ;;  %v9687_v28 = vcombine.low %v875_v14, %v879_v41  ;;  %v9568_v56 = vcombine.high %v755_v23, %v759_v25 }
 0x249   : > { %7181 = vmatpush1.bf16.msra.mxu0 %v9519_v34  ;;  %v887_v55 = vld [vmem:[%s11688_s4 + $0x7e8] sm:$0xff] }
 0x24a   : > { %7182 = vmatprep.subr.bf16.mxu0 %v9528_v36  ;;  %v9696_v30 = vcombine.high %v883_v26, %v887_v55  ;;  %v891_v32 = vld [vmem:[%s11688_s4 + $0x808] sm:$0xff]  ;;  %v9567_v36 = vcombine.low %v755_v23, %v759_v25 }
 0x24b   : > { %7222 = vmatpush1.bf16.msra.mxu1 %v9647_v35  ;;  %v895_v33 = vld [vmem:[%s11688_s4 + $0x828] sm:$0xff] }
 0x24c   : > { %7223 = vmatprep.subr.bf16.mxu1 %v9656_v37  ;;  %v1019_v34 = vld [vmem:[%s11688_s4 + $0xc08] sm:$0xff]  ;;  %v9695_v37 = vcombine.low %v883_v26, %v887_v55  ;;  %v9704_v39 = vcombine.high %v891_v32, %v895_v33 }
 0x24d   : > { %7183 = vmatpush1.bf16.msra.mxu0 %v9527_v46  ;;  %v1023_v35 = vld [vmem:[%s11688_s4 + $0xc28] sm:$0xff] }
 0x24e   : > { %7184 = vmatprep.subr.bf16.mxu0 %v9536_v47  ;;  %v9832_v40 = vcombine.high %v1019_v34, %v1023_v35  ;;  %v899_v43 = vld [vmem:[%s11688_s4 + $0x848] sm:$0xff]  ;;  %v9703_v47 = vcombine.low %v891_v32, %v895_v33 }
 0x24f   : > { %7224 = vmatpush1.bf16.msra.mxu1 %v9655_v21  ;;  %v903_v45 = vld [vmem:[%s11688_s4 + $0x868] sm:$0xff] }
 0x250   : > { %7225 = vmatprep.subr.bf16.mxu1 %v9664_v48  ;;  %v1027_v46 = vld [vmem:[%s11688_s4 + $0xc48] sm:$0xff]  ;;  %v9831_v48 = vcombine.low %v1019_v34, %v1023_v35  ;;  %v9712_v50 = vcombine.high %v899_v43, %v903_v45 }
 0x251   : > { %7185 = vmatpush1.bf16.msra.mxu0 %v9535_v58  ;;  %v1031_v21 = vld [vmem:[%s11688_s4 + $0xc68] sm:$0xff] }
 0x252   : > { %7186 = vmatprep.subr.bf16.mxu0 %v9544_v9  ;;  %v9840_v52 = vcombine.high %v1027_v46, %v1031_v21  ;;  %v907_v54 = vld [vmem:[%s11688_s4 + $0x888] sm:$0xff]  ;;  %v9711_v9 = vcombine.low %v899_v43, %v903_v45 }
 0x253   : > { %7226 = vmatpush1.bf16.msra.mxu1 %v9663_v62  ;;  %v911_v57 = vld [vmem:[%s11688_s4 + $0x8a8] sm:$0xff] }
 0x254   : > { %7227 = vmatprep.subr.bf16.mxu1 %v9672_v63  ;;  %v1035_v58 = vld [vmem:[%s11688_s4 + $0xc88] sm:$0xff]  ;;  %v9839_v63 = vcombine.low %v1027_v46, %v1031_v21  ;;  %v9720_v12 = vcombine.high %v907_v54, %v911_v57 }
 0x255   : > { %7187 = vmatpush1.bf16.msra.mxu0 %v9543_v4  ;;  %v1039_v62 = vld [vmem:[%s11688_s4 + $0xca8] sm:$0xff] }
 0x256   : > { %7188 = vmatprep.subr.bf16.mxu0 %v9552_v7  ;;  %v9848_v1 = vcombine.high %v1035_v58, %v1039_v62  ;;  %v915_v2 = vld [vmem:[%s11688_s4 + $0x8c8] sm:$0xff]  ;;  %v9719_v7 = vcombine.low %v907_v54, %v911_v57 }
 0x257   : > { %7228 = vmatpush1.bf16.msra.mxu1 %v9671_v5  ;;  %v919_v3 = vld [vmem:[%s11688_s4 + $0x8e8] sm:$0xff] }
 0x258   : > { %7229 = vmatprep.subr.bf16.mxu1 %v9680_v8  ;;  %v1043_v4 = vld [vmem:[%s11688_s4 + $0xcc8] sm:$0xff]  ;;  %v9847_v8 = vcombine.low %v1035_v58, %v1039_v62  ;;  %v9728_v11 = vcombine.high %v915_v2, %v919_v3 }
 0x259   : > { %7189 = vmatpush1.bf16.msra.mxu0 %v9551_v15  ;;  %v1047_v5 = vld [vmem:[%s11688_s4 + $0xce8] sm:$0xff] }
 0x25a   : > { %7190 = vmatprep.subr.bf16.mxu0 %v9560_v44  ;;  %v9856_v13 = vcombine.high %v1043_v4, %v1047_v5  ;;  %v923_v14 = vld [vmem:[%s11688_s4 + $0x908] sm:$0xff]  ;;  %v9727_v44 = vcombine.low %v915_v2, %v919_v3 }
 0x25b   : > { %7230 = vmatpush1.bf16.msra.mxu1 %v9679_v16  ;;  %v927_v41 = vld [vmem:[%s11688_s4 + $0x928] sm:$0xff] }
 0x25c   : > { %7231 = vmatprep.subr.bf16.mxu1 %v9688_v19  ;;  %v1051_v15 = vld [vmem:[%s11688_s4 + $0xd08] sm:$0xff]  ;;  %v9855_v19 = vcombine.low %v1043_v4, %v1047_v5  ;;  %v9736_v23 = vcombine.high %v923_v14, %v927_v41 }
 0x25d   : > { %7191 = vmatpush1.bf16.msra.mxu0 %v9559_v27  ;;  %v1055_v16 = vld [vmem:[%s11688_s4 + $0xd28] sm:$0xff] }
 0x25e   : > { %7192 = vmatprep.subr.bf16.mxu0 %v9568_v56  ;;  %v9864_v25 = vcombine.high %v1051_v15, %v1055_v16  ;;  %v931_v26 = vld [vmem:[%s11688_s4 + $0x948] sm:$0xff]  ;;  %v9735_v56 = vcombine.low %v923_v14, %v927_v41 }
 0x25f   : > { %7232 = vmatpush1.bf16.msra.mxu1 %v9687_v28  ;;  %v935_v55 = vld [vmem:[%s11688_s4 + $0x968] sm:$0xff] }
 0x260   : > { %7233 = vmatprep.subr.bf16.mxu1 %v9696_v30  ;;  %v1059_v27 = vld [vmem:[%s11688_s4 + $0xd48] sm:$0xff]  ;;  %v9863_v30 = vcombine.low %v1051_v15, %v1055_v16  ;;  %v9744_v32 = vcombine.high %v931_v26, %v935_v55 }
 0x261   : > { %7193 = vmatpush1.bf16.msra.mxu0 %v9567_v36  ;;  %v1063_v28 = vld [vmem:[%s11688_s4 + $0xd68] sm:$0xff] }
 0x262   : > { %7244 = vmatprep.subr.bf16.mxu0 %v9704_v39  ;;  %v9872_v33 = vcombine.high %v1059_v27, %v1063_v28  ;;  %v939_v34 = vld [vmem:[%s11688_s4 + $0x988] sm:$0xff]  ;;  %v9743_v39 = vcombine.low %v931_v26, %v935_v55 }
 0x263   : > { %7234 = vmatpush1.bf16.msra.mxu1 %v9695_v37  ;;  %v943_v35 = vld [vmem:[%s11688_s4 + $0x9a8] sm:$0xff] }
 0x264   : > { %7285 = vmatprep.subr.bf16.mxu1 %v9832_v40  ;;  %7195 = vmatmul.mubr.bf16.vlgmr.msra.gmra.mrb[16].mxu0 %v11800_v18  ;;  %v1067_v36 = vld [vmem:[%s11688_s4 + $0xd88] sm:$0xff]  ;;  %v9871_v40 = vcombine.low %v1059_v27, %v1063_v28  ;;  %v9752_v43 = vcombine.high %v939_v34, %v943_v35 }
 0x265   : > { %7245 = vmatpush1.bf16.msra.mxu0 %v9703_v47  ;;  %7276 = vmatprep.mubr.bf16.mxu0 %v11818_v29  ;;  %v1071_v37 = vld [vmem:[%s11688_s4 + $0xda8] sm:$0xff] }
 0x266   : > { %7236 = vmatmul.mubr.bf16.vlgmr.msra.gmra.mrb[16].mxu1 %v11809_v22  ;;  %7246 = vmatprep.subr.bf16.mxu0 %v9712_v50  ;;  %v9880_v46 = vcombine.high %v1067_v36, %v1071_v37  ;;  %v947_v21 = vld [vmem:[%s11688_s4 + $0x9c8] sm:$0xff] }
 0x267   : > { %7286 = vmatpush1.bf16.msra.mxu1 %v9831_v48  ;;  %7317 = vmatprep.mubr.bf16.mxu1 %v11825_v31  ;;  %v951_v47 = vld [vmem:[%s11688_s4 + $0x9e8] sm:$0xff] }
 0x268   : > { %7287 = vmatprep.subr.bf16.mxu1 %v9840_v52  ;;  %v1075_v54 = vld [vmem:[%s11688_s4 + $0xdc8] sm:$0xff]  ;;  %v9760_v3 = vcombine.high %v947_v21, %v951_v47  ;;  %v9759_v14 = vcombine.low %v947_v21, %v951_v47 }
 0x269   : > { %7247 = vmatpush1.bf16.msra.mxu0 %v9711_v9  ;;  %v1079_v57 = vld [vmem:[%s11688_s4 + $0xde8] sm:$0xff] }
 0x26a   : > { %7248 = vmatprep.subr.bf16.mxu0 %v9720_v12  ;;  %v9888_v5 = vcombine.high %v1075_v54, %v1079_v57  ;;  %v9887_v41 = vcombine.low %v1075_v54, %v1079_v57  ;;  %v1115_v54 = vld [vmem:[%s11688_s4 + $0xf08] sm:$0xff] }
 0x26b   : > { %7288 = vmatpush1.bf16.msra.mxu1 %v9839_v63  ;;  %v9751_v63 = vcombine.low %v939_v34, %v943_v35  ;;  %v1119_v57 = vld [vmem:[%s11688_s4 + $0xf28] sm:$0xff] }
 0x26c   : > { %7289 = vmatprep.subr.bf16.mxu1 %v9848_v1 }
 0x26d   : > { %7249 = vmatpush1.bf16.msra.mxu0 %v9719_v7  ;;  %v955_v7 = vld [vmem:[%s11688_s4 + $0xa08] sm:$0xff] }
 0x26e   : > { %7250 = vmatprep.subr.bf16.mxu0 %v9728_v11  ;;  %v1083_v11 = vld [vmem:[%s11688_s4 + $0xe08] sm:$0xff] }
 0x26f   : > { %7290 = vmatpush1.bf16.msra.mxu1 %v9847_v8  ;;  %v959_v8 = vld [vmem:[%s11688_s4 + $0xa28] sm:$0xff] }
 0x270   : > { %7291 = vmatprep.subr.bf16.mxu1 %v9856_v13  ;;  %v1087_v13 = vld [vmem:[%s11688_s4 + $0xe28] sm:$0xff]  ;;  %v9768_v15 = vcombine.high %v955_v7, %v959_v8  ;;  %v9767_v26 = vcombine.low %v955_v7, %v959_v8 }
 0x271   : > { %7251 = vmatpush1.bf16.msra.mxu0 %v9727_v44  ;;  %v9896_v16 = vcombine.high %v1083_v11, %v1087_v13  ;;  %v963_v44 = vld [vmem:[%s11688_s4 + $0xa48] sm:$0xff]  ;;  %v9895_v55 = vcombine.low %v1083_v11, %v1087_v13 }
 0x272   : > { %7252 = vmatprep.subr.bf16.mxu0 %v9736_v23  ;;  %v1091_v23 = vld [vmem:[%s11688_s4 + $0xe48] sm:$0xff] }
 0x273   : > { %7292 = vmatpush1.bf16.msra.mxu1 %v9855_v19  ;;  %v967_v19 = vld [vmem:[%s11688_s4 + $0xa68] sm:$0xff] }
 0x274   : > { %7293 = vmatprep.subr.bf16.mxu1 %v9864_v25  ;;  %v1095_v25 = vld [vmem:[%s11688_s4 + $0xe68] sm:$0xff]  ;;  %v9776_v27 = vcombine.high %v963_v44, %v967_v19  ;;  %v9775_v34 = vcombine.low %v963_v44, %v967_v19 }
 0x275   : > { %7253 = vmatpush1.bf16.msra.mxu0 %v9735_v56  ;;  %v9904_v28 = vcombine.high %v1091_v23, %v1095_v25  ;;  %v971_v56 = vld [vmem:[%s11688_s4 + $0xa88] sm:$0xff]  ;;  %v9903_v35 = vcombine.low %v1091_v23, %v1095_v25 }
 0x276   : > { %7254 = vmatprep.subr.bf16.mxu0 %v9744_v32  ;;  %v6950_v45 = vpop.f32.mrb[4].mxu0  ;;  %v1099_v32 = vld [vmem:[%s11688_s4 + $0xe88] sm:$0xff] }
 0x277   : > { %7294 = vmatpush1.bf16.msra.mxu1 %v9863_v30  ;;  %v6951_v48 = vadd.f32 %v6950_v45, %v12106_v59  ;;  %v6952_v52 = vpop.f32.mrb[5].mxu0  ;;  %v9879_v59 = vcombine.low %v1067_v36, %v1071_v37  ;;  %v975_v30 = vld [vmem:[%s11688_s4 + $0xaa8] sm:$0xff] }
 0x278   : > { %7295 = vmatprep.subr.bf16.mxu1 %v9872_v33  ;;  %v6991_v50 = vpop.f32.mrb[4].mxu1  ;;  %v6953_v58 = vadd.f32 %v6952_v52, %v12108_v0  ;;  %v6954_v9 = vpop.f32.mrb[6].mxu0  ;;  %v1103_v33 = vld [vmem:[%s11688_s4 + $0xea8] sm:$0xff]  ;;  %v9784_v36 = vcombine.high %v971_v56, %v975_v30 }
 0x279   : > { %v6993_v62 = vpop.f32.mrb[5].mxu1  ;;  %7255 = vmatpush1.bf16.msra.mxu0 %v9743_v39  ;;  %v12180_v12 = vadd.f32 %v6991_v50, %v6951_v48  ;;  %v6955_v2 = vpop.f32.mrb[7].mxu0  ;;  %v9912_v37 = vcombine.high %v1099_v32, %v1103_v33  ;;  %v979_v39 = vld [vmem:[%s11688_s4 + $0xac8] sm:$0xff]  ;;  %v9911_v21 = vcombine.low %v1099_v32, %v1103_v33 }
 0x27a   : > { %v6995_v1 = vpop.f32.mrb[6].mxu1  ;;  %7256 = vmatprep.subr.bf16.mxu0 %v9752_v43  ;;  %v12182_v4 = vadd.f32 %v6993_v62, %v6953_v58  ;;  %v1107_v43 = vld [vmem:[%s11688_s4 + $0xec8] sm:$0xff] }
 0x27b   : > { %7296 = vmatpush1.bf16.msra.mxu1 %v9871_v40  ;;  %v6996_v0 = vpop.f32.mrb[7].mxu1  ;;  %v983_v40 = vld [vmem:[%s11688_s4 + $0xae8] sm:$0xff] }
 0x27c   : > { %7297 = vmatprep.subr.bf16.mxu1 %v9880_v46  ;;  %v1111_v45 = vld [vmem:[%s11688_s4 + $0xee8] sm:$0xff]  ;;  %v9783_v46 = vcombine.low %v971_v56, %v975_v30  ;;  %v9792_v47 = vcombine.high %v979_v39, %v983_v40  ;;  %v9791_v58 = vcombine.low %v979_v39, %v983_v40 }
 0x27d   : > { %7257 = vmatpush1.bf16.msra.mxu0 %v9751_v63  ;;  %v9920_v48 = vcombine.high %v1107_v43, %v1111_v45  ;;  %v987_v50 = vld [vmem:[%s11688_s4 + $0xb08] sm:$0xff]  ;;  %v9919_v62 = vcombine.low %v1107_v43, %v1111_v45  ;;  %v9928_v63 = vcombine.high %v1115_v54, %v1119_v57 }
 0x27e   : > { %7258 = vmatprep.subr.bf16.mxu0 %v9760_v3  ;;  %v991_v52 = vld [vmem:[%s11688_s4 + $0xb28] sm:$0xff] }
 0x27f   : > { %7298 = vmatpush1.bf16.msra.mxu1 %v9879_v59  ;;  %v9800_v9 = vcombine.high %v987_v50, %v991_v52  ;;  %v995_v1 = vld [vmem:[%s11688_s4 + $0xb48] sm:$0xff]  ;;  %v9799_v0 = vcombine.low %v987_v50, %v991_v52 }
 0x280   : > { %7299 = vmatprep.subr.bf16.mxu1 %v9888_v5  ;;  %v999_v2 = vld [vmem:[%s11688_s4 + $0xb68] sm:$0xff]  ;;  %v9927_v5 = vcombine.low %v1115_v54, %v1119_v57 }
 0x281   : > { %7259 = vmatpush1.bf16.msra.mxu0 %v9759_v14  ;;  %v1123_v59 = vld [vmem:[%s11688_s4 + $0xf48] sm:$0xff]  ;;  %v9808_v7 = vcombine.high %v995_v1, %v999_v2 }
 0x282   : > { %7260 = vmatprep.subr.bf16.mxu0 %v9768_v15  ;;  %v1127_v3 = vld [vmem:[%s11688_s4 + $0xf68] sm:$0xff]  ;;  %v9807_v15 = vcombine.low %v995_v1, %v999_v2 }
 0x283   : > { %7300 = vmatpush1.bf16.msra.mxu1 %v9887_v41  ;;  %v9936_v8 = vcombine.high %v1123_v59, %v1127_v3  ;;  %v1003_v11 = vld [vmem:[%s11688_s4 + $0xb88] sm:$0xff] }
 0x284   : > { %7301 = vmatprep.subr.bf16.mxu1 %v9896_v16  ;;  %v1007_v13 = vld [vmem:[%s11688_s4 + $0xba8] sm:$0xff]  ;;  %v9935_v16 = vcombine.low %v1123_v59, %v1127_v3 }
 0x285   : > { %7261 = vmatpush1.bf16.msra.mxu0 %v9767_v26  ;;  %v1131_v14 = vld [vmem:[%s11688_s4 + $0xf88] sm:$0xff]  ;;  %v9816_v44 = vcombine.high %v1003_v11, %v1007_v13 }
 0x286   : > { %7262 = vmatprep.subr.bf16.mxu0 %v9776_v27  ;;  %v1135_v41 = vld [vmem:[%s11688_s4 + $0xfa8] sm:$0xff]  ;;  %v9815_v27 = vcombine.low %v1003_v11, %v1007_v13 }
 0x287   : > { %7302 = vmatpush1.bf16.msra.mxu1 %v9895_v55  ;;  %v9944_v19 = vcombine.high %v1131_v14, %v1135_v41  ;;  %v1011_v23 = vld [vmem:[%s11688_s4 + $0xbc8] sm:$0xff] }
 0x288   : > { %7303 = vmatprep.subr.bf16.mxu1 %v9904_v28  ;;  %v1015_v25 = vld [vmem:[%s11688_s4 + $0xbe8] sm:$0xff]  ;;  %v9943_v28 = vcombine.low %v1131_v14, %v1135_v41 }
 0x289   : > { %7263 = vmatpush1.bf16.msra.mxu0 %v9775_v34  ;;  %v1139_v26 = vld [vmem:[%s11688_s4 + $0xfc8] sm:$0xff]  ;;  %v9824_v56 = vcombine.high %v1011_v23, %v1015_v25 }
 0x28a   : > { %7264 = vmatprep.subr.bf16.mxu0 %v9784_v36  ;;  %v1143_v55 = vld [vmem:[%s11688_s4 + $0xfe8] sm:$0xff]  ;;  %v9823_v36 = vcombine.low %v1011_v23, %v1015_v25 }
 0x28b   : > { %7304 = vmatpush1.bf16.msra.mxu1 %v9903_v35  ;;  %v9952_v30 = vcombine.high %v1139_v26, %v1143_v55  ;;  %v1147_v32 = vld [vmem:[%s11688_s4 + $0x1008] sm:$0xff] }
 0x28c   : > { %7305 = vmatprep.subr.bf16.mxu1 %v9912_v37  ;;  %v1151_v33 = vld [vmem:[%s11688_s4 + $0x1028] sm:$0xff]  ;;  %v9951_v37 = vcombine.low %v1139_v26, %v1143_v55 }
 0x28d   : > { %7265 = vmatpush1.bf16.msra.mxu0 %v9783_v46  ;;  %v1275_v34 = vld [vmem:[%s11688_s4 + $0x1408] sm:$0xff]  ;;  %v9960_v39 = vcombine.high %v1147_v32, %v1151_v33 }
 0x28e   : > { %7266 = vmatprep.subr.bf16.mxu0 %v9792_v47  ;;  %v1279_v35 = vld [vmem:[%s11688_s4 + $0x1428] sm:$0xff]  ;;  %v9959_v47 = vcombine.low %v1147_v32, %v1151_v33 }
 0x28f   : > { %7306 = vmatpush1.bf16.msra.mxu1 %v9911_v21  ;;  %v10088_v40 = vcombine.high %v1275_v34, %v1279_v35  ;;  %v1155_v43 = vld [vmem:[%s11688_s4 + $0x1048] sm:$0xff] }
 0x290   : > { %7307 = vmatprep.subr.bf16.mxu1 %v9920_v48  ;;  %v1159_v45 = vld [vmem:[%s11688_s4 + $0x1068] sm:$0xff]  ;;  %v10087_v48 = vcombine.low %v1275_v34, %v1279_v35 }
 0x291   : > { %7267 = vmatpush1.bf16.msra.mxu0 %v9791_v58  ;;  %v1283_v46 = vld [vmem:[%s11688_s4 + $0x1448] sm:$0xff]  ;;  %v9968_v50 = vcombine.high %v1155_v43, %v1159_v45 }
 0x292   : > { %7268 = vmatprep.subr.bf16.mxu0 %v9800_v9  ;;  %v1287_v21 = vld [vmem:[%s11688_s4 + $0x1468] sm:$0xff]  ;;  %v9967_v9 = vcombine.low %v1155_v43, %v1159_v45 }
 0x293   : > { %7308 = vmatpush1.bf16.msra.mxu1 %v9919_v62  ;;  %v10096_v52 = vcombine.high %v1283_v46, %v1287_v21  ;;  %v1163_v54 = vld [vmem:[%s11688_s4 + $0x1088] sm:$0xff] }
 0x294   : > { %7309 = vmatprep.subr.bf16.mxu1 %v9928_v63  ;;  %v1167_v57 = vld [vmem:[%s11688_s4 + $0x10a8] sm:$0xff]  ;;  %v10095_v63 = vcombine.low %v1283_v46, %v1287_v21 }
 0x295   : > { %7269 = vmatpush1.bf16.msra.mxu0 %v9799_v0  ;;  %v1291_v58 = vld [vmem:[%s11688_s4 + $0x1488] sm:$0xff]  ;;  %v9976_v1 = vcombine.high %v1163_v54, %v1167_v57 }
 0x296   : > { %7270 = vmatprep.subr.bf16.mxu0 %v9808_v7  ;;  %v1295_v62 = vld [vmem:[%s11688_s4 + $0x14a8] sm:$0xff]  ;;  %v9975_v7 = vcombine.low %v1163_v54, %v1167_v57 }
 0x297   : > { %7310 = vmatpush1.bf16.msra.mxu1 %v9927_v5  ;;  %v10104_v2 = vcombine.high %v1291_v58, %v1295_v62  ;;  %v1171_v59 = vld [vmem:[%s11688_s4 + $0x10c8] sm:$0xff] }
 0x298   : > { %7311 = vmatprep.subr.bf16.mxu1 %v9936_v8  ;;  %v1175_v3 = vld [vmem:[%s11688_s4 + $0x10e8] sm:$0xff]  ;;  %v10103_v8 = vcombine.low %v1291_v58, %v1295_v62 }
 0x299   : > { %7271 = vmatpush1.bf16.msra.mxu0 %v9807_v15  ;;  %v1299_v0 = vld [vmem:[%s11688_s4 + $0x14c8] sm:$0xff]  ;;  %v9984_v11 = vcombine.high %v1171_v59, %v1175_v3 }
 0x29a   : > { %7272 = vmatprep.subr.bf16.mxu0 %v9816_v44  ;;  %v1303_v5 = vld [vmem:[%s11688_s4 + $0x14e8] sm:$0xff]  ;;  %v9983_v44 = vcombine.low %v1171_v59, %v1175_v3 }
 0x29b   : > { %7312 = vmatpush1.bf16.msra.mxu1 %v9935_v16  ;;  %v10112_v13 = vcombine.high %v1299_v0, %v1303_v5  ;;  %v1179_v14 = vld [vmem:[%s11688_s4 + $0x1108] sm:$0xff] }
 0x29c   : > { %7313 = vmatprep.subr.bf16.mxu1 %v9944_v19  ;;  %v1183_v41 = vld [vmem:[%s11688_s4 + $0x1128] sm:$0xff]  ;;  %v10111_v19 = vcombine.low %v1299_v0, %v1303_v5 }
 0x29d   : > { %7273 = vmatpush1.bf16.msra.mxu0 %v9815_v27  ;;  %v1307_v15 = vld [vmem:[%s11688_s4 + $0x1508] sm:$0xff]  ;;  %v9992_v23 = vcombine.high %v1179_v14, %v1183_v41 }
 0x29e   : > { %7274 = vmatprep.subr.bf16.mxu0 %v9824_v56  ;;  %v1311_v16 = vld [vmem:[%s11688_s4 + $0x1528] sm:$0xff]  ;;  %v9991_v56 = vcombine.low %v1179_v14, %v1183_v41 }
 0x29f   : > { %7314 = vmatpush1.bf16.msra.mxu1 %v9943_v28  ;;  %v10120_v25 = vcombine.high %v1307_v15, %v1311_v16  ;;  %v1187_v26 = vld [vmem:[%s11688_s4 + $0x1148] sm:$0xff] }
 0x2a0   : > { %7315 = vmatprep.subr.bf16.mxu1 %v9952_v30  ;;  %v1191_v55 = vld [vmem:[%s11688_s4 + $0x1168] sm:$0xff]  ;;  %v10119_v30 = vcombine.low %v1307_v15, %v1311_v16 }
 0x2a1   : > { %7275 = vmatpush1.bf16.msra.mxu0 %v9823_v36  ;;  %v1315_v27 = vld [vmem:[%s11688_s4 + $0x1548] sm:$0xff]  ;;  %v10000_v32 = vcombine.high %v1187_v26, %v1191_v55 }
 0x2a2   : > { %7326 = vmatprep.subr.bf16.mxu0 %v9960_v39  ;;  %v1319_v28 = vld [vmem:[%s11688_s4 + $0x1568] sm:$0xff]  ;;  %v9999_v39 = vcombine.low %v1187_v26, %v1191_v55 }
 0x2a3   : > { %7316 = vmatpush1.bf16.msra.mxu1 %v9951_v37  ;;  %v10128_v33 = vcombine.high %v1315_v27, %v1319_v28  ;;  %v1195_v34 = vld [vmem:[%s11688_s4 + $0x1188] sm:$0xff] }
 0x2a4   : > { %7367 = vmatprep.subr.bf16.mxu1 %v10088_v40  ;;  %7277 = vmatmul.mubr.bf16.vlgmr.msra.gmra.mrb[20].mxu0 %v11890_v38  ;;  %v1199_v35 = vld [vmem:[%s11688_s4 + $0x11a8] sm:$0xff]  ;;  %v10127_v40 = vcombine.low %v1315_v27, %v1319_v28 }
 0x2a5   : > { %7327 = vmatpush1.bf16.msra.mxu0 %v9959_v47  ;;  %7358 = vmatprep.mubr.bf16.mxu0 %v11908_v49  ;;  %v1323_v36 = vld [vmem:[%s11688_s4 + $0x1588] sm:$0xff]  ;;  %v10008_v43 = vcombine.high %v1195_v34, %v1199_v35 }
 0x2a6   : > { %7318 = vmatmul.mubr.bf16.vlgmr.msra.gmra.mrb[20].mxu1 %v11899_v42  ;;  %7328 = vmatprep.subr.bf16.mxu0 %v9968_v50  ;;  %v1327_v37 = vld [vmem:[%s11688_s4 + $0x15a8] sm:$0xff] }
 0x2a7   : > { %7368 = vmatpush1.bf16.msra.mxu1 %v10087_v48  ;;  %7399 = vmatprep.mubr.bf16.mxu1 %v11915_v51  ;;  %v10136_v46 = vcombine.high %v1323_v36, %v1327_v37  ;;  %v1203_v21 = vld [vmem:[%s11688_s4 + $0x11c8] sm:$0xff] }
 0x2a8   : > { %7369 = vmatprep.subr.bf16.mxu1 %v10096_v52  ;;  %v1207_v47 = vld [vmem:[%s11688_s4 + $0x11e8] sm:$0xff] }
 0x2a9   : > { %7329 = vmatpush1.bf16.msra.mxu0 %v9967_v9  ;;  %v1331_v54 = vld [vmem:[%s11688_s4 + $0x15c8] sm:$0xff]  ;;  %v10016_v3 = vcombine.high %v1203_v21, %v1207_v47  ;;  %v10015_v14 = vcombine.low %v1203_v21, %v1207_v47 }
 0x2aa   : > { %7330 = vmatprep.subr.bf16.mxu0 %v9976_v1  ;;  %v1335_v57 = vld [vmem:[%s11688_s4 + $0x15e8] sm:$0xff] }
 0x2ab   : > { %7370 = vmatpush1.bf16.msra.mxu1 %v10095_v63  ;;  %v10007_v63 = vcombine.low %v1195_v34, %v1199_v35  ;;  %v10144_v5 = vcombine.high %v1331_v54, %v1335_v57  ;;  %v10143_v41 = vcombine.low %v1331_v54, %v1335_v57  ;;  %v1371_v54 = vld [vmem:[%s11688_s4 + $0x1708] sm:$0xff] }
 0x2ac   : > { %7371 = vmatprep.subr.bf16.mxu1 %v10104_v2  ;;  %v1375_v57 = vld [vmem:[%s11688_s4 + $0x1728] sm:$0xff] }
 0x2ad   : > { %7331 = vmatpush1.bf16.msra.mxu0 %v9975_v7  ;;  %v1211_v7 = vld [vmem:[%s11688_s4 + $0x1208] sm:$0xff] }
 0x2ae   : > { %7332 = vmatprep.subr.bf16.mxu0 %v9984_v11  ;;  %v1339_v11 = vld [vmem:[%s11688_s4 + $0x1608] sm:$0xff] }
 0x2af   : > { %7372 = vmatpush1.bf16.msra.mxu1 %v10103_v8  ;;  %v1215_v8 = vld [vmem:[%s11688_s4 + $0x1228] sm:$0xff] }
 0x2b0   : > { %7373 = vmatprep.subr.bf16.mxu1 %v10112_v13  ;;  %v1343_v13 = vld [vmem:[%s11688_s4 + $0x1628] sm:$0xff]  ;;  %v10024_v15 = vcombine.high %v1211_v7, %v1215_v8  ;;  %v10023_v26 = vcombine.low %v1211_v7, %v1215_v8 }
 0x2b1   : > { %7333 = vmatpush1.bf16.msra.mxu0 %v9983_v44  ;;  %v10152_v16 = vcombine.high %v1339_v11, %v1343_v13  ;;  %v1219_v44 = vld [vmem:[%s11688_s4 + $0x1248] sm:$0xff]  ;;  %v10151_v55 = vcombine.low %v1339_v11, %v1343_v13 }
 0x2b2   : > { %7334 = vmatprep.subr.bf16.mxu0 %v9992_v23  ;;  %v1347_v23 = vld [vmem:[%s11688_s4 + $0x1648] sm:$0xff] }
 0x2b3   : > { %7374 = vmatpush1.bf16.msra.mxu1 %v10111_v19  ;;  %v1223_v19 = vld [vmem:[%s11688_s4 + $0x1268] sm:$0xff] }
 0x2b4   : > { %7375 = vmatprep.subr.bf16.mxu1 %v10120_v25  ;;  %v1351_v25 = vld [vmem:[%s11688_s4 + $0x1668] sm:$0xff]  ;;  %v10032_v27 = vcombine.high %v1219_v44, %v1223_v19  ;;  %v10031_v34 = vcombine.low %v1219_v44, %v1223_v19 }
 0x2b5   : > { %7335 = vmatpush1.bf16.msra.mxu0 %v9991_v56  ;;  %v10160_v28 = vcombine.high %v1347_v23, %v1351_v25  ;;  %v1227_v56 = vld [vmem:[%s11688_s4 + $0x1288] sm:$0xff]  ;;  %v10159_v35 = vcombine.low %v1347_v23, %v1351_v25 }
 0x2b6   : > { %7336 = vmatprep.subr.bf16.mxu0 %v10000_v32  ;;  %v1355_v32 = vld [vmem:[%s11688_s4 + $0x1688] sm:$0xff] }
 0x2b7   : > { %7376 = vmatpush1.bf16.msra.mxu1 %v10119_v30  ;;  %v7032_v45 = vpop.f32.mrb[8].mxu0  ;;  %v1231_v30 = vld [vmem:[%s11688_s4 + $0x12a8] sm:$0xff] }
 0x2b8   : > { %7377 = vmatprep.subr.bf16.mxu1 %v10128_v33  ;;  %v7033_v48 = vadd.f32 %v7032_v45, %v12180_v12  ;;  %v7034_v52 = vpop.f32.mrb[9].mxu0  ;;  %v10135_v12 = vcombine.low %v1323_v36, %v1327_v37  ;;  %v1359_v33 = vld [vmem:[%s11688_s4 + $0x16a8] sm:$0xff]  ;;  %v10040_v36 = vcombine.high %v1227_v56, %v1231_v30 }
 0x2b9   : > { %v7073_v50 = vpop.f32.mrb[8].mxu1  ;;  %v7035_v58 = vadd.f32 %v7034_v52, %v12182_v4  ;;  %v7036_v9 = vpop.f32.mrb[10].mxu0  ;;  %7337 = vmatpush1.bf16.msra.mxu0 %v9999_v39  ;;  %v10168_v37 = vcombine.high %v1355_v32, %v1359_v33  ;;  %v1235_v39 = vld [vmem:[%s11688_s4 + $0x12c8] sm:$0xff]  ;;  %v10167_v21 = vcombine.low %v1355_v32, %v1359_v33 }
 0x2ba   : > { %v7075_v62 = vpop.f32.mrb[9].mxu1  ;;  %v12254_v1 = vadd.f32 %v7073_v50, %v7033_v48  ;;  %v7037_v59 = vpop.f32.mrb[11].mxu0  ;;  %7338 = vmatprep.subr.bf16.mxu0 %v10008_v43  ;;  %v1363_v43 = vld [vmem:[%s11688_s4 + $0x16c8] sm:$0xff] }
 0x2bb   : > { %v7077_v2 = vpop.f32.mrb[10].mxu1  ;;  %7378 = vmatpush1.bf16.msra.mxu1 %v10127_v40  ;;  %v12256_v0 = vadd.f32 %v7075_v62, %v7035_v58  ;;  %v1239_v40 = vld [vmem:[%s11688_s4 + $0x12e8] sm:$0xff] }
 0x2bc   : > { %v7078_v4 = vpop.f32.mrb[11].mxu1  ;;  %7379 = vmatprep.subr.bf16.mxu1 %v10136_v46  ;;  %v1367_v45 = vld [vmem:[%s11688_s4 + $0x16e8] sm:$0xff]  ;;  %v10039_v46 = vcombine.low %v1227_v56, %v1231_v30  ;;  %v10048_v47 = vcombine.high %v1235_v39, %v1239_v40  ;;  %v10047_v58 = vcombine.low %v1235_v39, %v1239_v40 }
 0x2bd   : > { %7339 = vmatpush1.bf16.msra.mxu0 %v10007_v63  ;;  %v10176_v48 = vcombine.high %v1363_v43, %v1367_v45  ;;  %v1243_v50 = vld [vmem:[%s11688_s4 + $0x1308] sm:$0xff]  ;;  %v10175_v62 = vcombine.low %v1363_v43, %v1367_v45  ;;  %v10184_v63 = vcombine.high %v1371_v54, %v1375_v57 }
 0x2be   : > { %7340 = vmatprep.subr.bf16.mxu0 %v10016_v3  ;;  %v1247_v52 = vld [vmem:[%s11688_s4 + $0x1328] sm:$0xff] }
 0x2bf   : > { %7380 = vmatpush1.bf16.msra.mxu1 %v10135_v12  ;;  %v10056_v9 = vcombine.high %v1243_v50, %v1247_v52  ;;  %v1251_v2 = vld [vmem:[%s11688_s4 + $0x1348] sm:$0xff]  ;;  %v10055_v4 = vcombine.low %v1243_v50, %v1247_v52 }
 0x2c0   : > { %7381 = vmatprep.subr.bf16.mxu1 %v10144_v5  ;;  %v1255_v59 = vld [vmem:[%s11688_s4 + $0x1368] sm:$0xff]  ;;  %v10183_v5 = vcombine.low %v1371_v54, %v1375_v57 }
 0x2c1   : > { %7341 = vmatpush1.bf16.msra.mxu0 %v10015_v14  ;;  %v1379_v12 = vld [vmem:[%s11688_s4 + $0x1748] sm:$0xff]  ;;  %v10064_v7 = vcombine.high %v1251_v2, %v1255_v59 }
 0x2c2   : > { %7342 = vmatprep.subr.bf16.mxu0 %v10024_v15  ;;  %v1383_v3 = vld [vmem:[%s11688_s4 + $0x1768] sm:$0xff]  ;;  %v10063_v15 = vcombine.low %v1251_v2, %v1255_v59 }
 0x2c3   : > { %7382 = vmatpush1.bf16.msra.mxu1 %v10143_v41  ;;  %v10192_v8 = vcombine.high %v1379_v12, %v1383_v3  ;;  %v1259_v11 = vld [vmem:[%s11688_s4 + $0x1388] sm:$0xff] }
 0x2c4   : > { %7383 = vmatprep.subr.bf16.mxu1 %v10152_v16  ;;  %v1263_v13 = vld [vmem:[%s11688_s4 + $0x13a8] sm:$0xff]  ;;  %v10191_v16 = vcombine.low %v1379_v12, %v1383_v3 }
 0x2c5   : > { %7343 = vmatpush1.bf16.msra.mxu0 %v10023_v26  ;;  %v1387_v14 = vld [vmem:[%s11688_s4 + $0x1788] sm:$0xff]  ;;  %v10072_v44 = vcombine.high %v1259_v11, %v1263_v13 }
 0x2c6   : > { %7344 = vmatprep.subr.bf16.mxu0 %v10032_v27  ;;  %v1391_v41 = vld [vmem:[%s11688_s4 + $0x17a8] sm:$0xff]  ;;  %v10071_v27 = vcombine.low %v1259_v11, %v1263_v13 }
 0x2c7   : > { %7384 = vmatpush1.bf16.msra.mxu1 %v10151_v55  ;;  %v10200_v19 = vcombine.high %v1387_v14, %v1391_v41  ;;  %v1267_v23 = vld [vmem:[%s11688_s4 + $0x13c8] sm:$0xff] }
 0x2c8   : > { %7385 = vmatprep.subr.bf16.mxu1 %v10160_v28  ;;  %v1271_v25 = vld [vmem:[%s11688_s4 + $0x13e8] sm:$0xff]  ;;  %v10199_v28 = vcombine.low %v1387_v14, %v1391_v41 }
 0x2c9   : > { %7345 = vmatpush1.bf16.msra.mxu0 %v10031_v34  ;;  %v1395_v26 = vld [vmem:[%s11688_s4 + $0x17c8] sm:$0xff]  ;;  %v10080_v56 = vcombine.high %v1267_v23, %v1271_v25 }
 0x2ca   : > { %7346 = vmatprep.subr.bf16.mxu0 %v10040_v36  ;;  %v1399_v55 = vld [vmem:[%s11688_s4 + $0x17e8] sm:$0xff]  ;;  %v10079_v36 = vcombine.low %v1267_v23, %v1271_v25 }
 0x2cb   : > { %7386 = vmatpush1.bf16.msra.mxu1 %v10159_v35  ;;  %v10208_v30 = vcombine.high %v1395_v26, %v1399_v55  ;;  %v1403_v32 = vld [vmem:[%s11688_s4 + $0x1808] sm:$0xff] }
 0x2cc   : > { %7387 = vmatprep.subr.bf16.mxu1 %v10168_v37  ;;  %v1407_v33 = vld [vmem:[%s11688_s4 + $0x1828] sm:$0xff]  ;;  %v10207_v37 = vcombine.low %v1395_v26, %v1399_v55 }
 0x2cd   : > { %7347 = vmatpush1.bf16.msra.mxu0 %v10039_v46  ;;  %v1531_v34 = vld [vmem:[%s11688_s4 + $0x1c08] sm:$0xff]  ;;  %v10216_v39 = vcombine.high %v1403_v32, %v1407_v33 }
 0x2ce   : > { %7348 = vmatprep.subr.bf16.mxu0 %v10048_v47  ;;  %v1535_v35 = vld [vmem:[%s11688_s4 + $0x1c28] sm:$0xff]  ;;  %v10215_v47 = vcombine.low %v1403_v32, %v1407_v33 }
 0x2cf   : > { %7388 = vmatpush1.bf16.msra.mxu1 %v10167_v21  ;;  %v10344_v40 = vcombine.high %v1531_v34, %v1535_v35  ;;  %v1411_v43 = vld [vmem:[%s11688_s4 + $0x1848] sm:$0xff] }
 0x2d0   : > { %7389 = vmatprep.subr.bf16.mxu1 %v10176_v48  ;;  %v1415_v45 = vld [vmem:[%s11688_s4 + $0x1868] sm:$0xff]  ;;  %v10343_v48 = vcombine.low %v1531_v34, %v1535_v35 }
 0x2d1   : > { %7349 = vmatpush1.bf16.msra.mxu0 %v10047_v58  ;;  %v1539_v46 = vld [vmem:[%s11688_s4 + $0x1c48] sm:$0xff]  ;;  %v10224_v50 = vcombine.high %v1411_v43, %v1415_v45 }
 0x2d2   : > { %7350 = vmatprep.subr.bf16.mxu0 %v10056_v9  ;;  %v1543_v21 = vld [vmem:[%s11688_s4 + $0x1c68] sm:$0xff]  ;;  %v10223_v9 = vcombine.low %v1411_v43, %v1415_v45 }
 0x2d3   : > { %7390 = vmatpush1.bf16.msra.mxu1 %v10175_v62  ;;  %v10352_v52 = vcombine.high %v1539_v46, %v1543_v21  ;;  %v1419_v54 = vld [vmem:[%s11688_s4 + $0x1888] sm:$0xff] }
 0x2d4   : > { %7391 = vmatprep.subr.bf16.mxu1 %v10184_v63  ;;  %v1423_v57 = vld [vmem:[%s11688_s4 + $0x18a8] sm:$0xff]  ;;  %v10351_v63 = vcombine.low %v1539_v46, %v1543_v21 }
 0x2d5   : > { %7351 = vmatpush1.bf16.msra.mxu0 %v10055_v4  ;;  %v1547_v58 = vld [vmem:[%s11688_s4 + $0x1c88] sm:$0xff]  ;;  %v10232_v2 = vcombine.high %v1419_v54, %v1423_v57 }
 0x2d6   : > { %7352 = vmatprep.subr.bf16.mxu0 %v10064_v7  ;;  %v1551_v62 = vld [vmem:[%s11688_s4 + $0x1ca8] sm:$0xff]  ;;  %v10231_v7 = vcombine.low %v1419_v54, %v1423_v57 }
 0x2d7   : > { %7392 = vmatpush1.bf16.msra.mxu1 %v10183_v5  ;;  %v10360_v59 = vcombine.high %v1547_v58, %v1551_v62  ;;  %v1427_v12 = vld [vmem:[%s11688_s4 + $0x18c8] sm:$0xff] }
 0x2d8   : > { %7393 = vmatprep.subr.bf16.mxu1 %v10192_v8  ;;  %v1431_v3 = vld [vmem:[%s11688_s4 + $0x18e8] sm:$0xff]  ;;  %v10359_v8 = vcombine.low %v1547_v58, %v1551_v62  ;;  %v618_v58 = vld [vmem:[#allocation2] sm:$0xff] }
 0x2d9   : > { %7353 = vmatpush1.bf16.msra.mxu0 %v10063_v15  ;;  %v1555_v4 = vld [vmem:[%s11688_s4 + $0x1cc8] sm:$0xff]  ;;  %v10240_v11 = vcombine.high %v1427_v12, %v1431_v3 }
 0x2da   : > { %7354 = vmatprep.subr.bf16.mxu0 %v10072_v44  ;;  %v1559_v5 = vld [vmem:[%s11688_s4 + $0x1ce8] sm:$0xff]  ;;  %v10239_v44 = vcombine.low %v1427_v12, %v1431_v3 }
 0x2db   : > { %7394 = vmatpush1.bf16.msra.mxu1 %v10191_v16  ;;  %v10368_v13 = vcombine.high %v1555_v4, %v1559_v5  ;;  %v1435_v14 = vld [vmem:[%s11688_s4 + $0x1908] sm:$0xff] }
 0x2dc   : > { %7395 = vmatprep.subr.bf16.mxu1 %v10200_v19  ;;  %v1439_v41 = vld [vmem:[%s11688_s4 + $0x1928] sm:$0xff]  ;;  %v10367_v19 = vcombine.low %v1555_v4, %v1559_v5 }
 0x2dd   : > { %7355 = vmatpush1.bf16.msra.mxu0 %v10071_v27  ;;  %v1563_v15 = vld [vmem:[%s11688_s4 + $0x1d08] sm:$0xff]  ;;  %v10248_v23 = vcombine.high %v1435_v14, %v1439_v41 }
 0x2de   : > { %7356 = vmatprep.subr.bf16.mxu0 %v10080_v56  ;;  %v1567_v16 = vld [vmem:[%s11688_s4 + $0x1d28] sm:$0xff]  ;;  %v10247_v56 = vcombine.low %v1435_v14, %v1439_v41 }
 0x2df   : > { %7396 = vmatpush1.bf16.msra.mxu1 %v10199_v28  ;;  %v10376_v25 = vcombine.high %v1563_v15, %v1567_v16  ;;  %v1443_v26 = vld [vmem:[%s11688_s4 + $0x1948] sm:$0xff] }
 0x2e0   : > { %7397 = vmatprep.subr.bf16.mxu1 %v10208_v30  ;;  %v1447_v55 = vld [vmem:[%s11688_s4 + $0x1968] sm:$0xff]  ;;  %v10375_v30 = vcombine.low %v1563_v15, %v1567_v16 }
 0x2e1   : > { %7357 = vmatpush1.bf16.msra.mxu0 %v10079_v36  ;;  %v1571_v27 = vld [vmem:[%s11688_s4 + $0x1d48] sm:$0xff]  ;;  %v10256_v32 = vcombine.high %v1443_v26, %v1447_v55 }
 0x2e2   : > { %7408 = vmatprep.subr.bf16.mxu0 %v10216_v39  ;;  %v1575_v28 = vld [vmem:[%s11688_s4 + $0x1d68] sm:$0xff]  ;;  %v10255_v39 = vcombine.low %v1443_v26, %v1447_v55 }
 0x2e3   : > { %7398 = vmatpush1.bf16.msra.mxu1 %v10207_v37  ;;  %v10384_v33 = vcombine.high %v1571_v27, %v1575_v28  ;;  %v1451_v34 = vld [vmem:[%s11688_s4 + $0x1988] sm:$0xff] }
 0x2e4   : > { %7449 = vmatprep.subr.bf16.mxu1 %v10344_v40  ;;  %7359 = vmatmul.mubr.bf16.vlgmr.msra.gmra.mrb[24].mxu0 %v11980_v6  ;;  %v1455_v35 = vld [vmem:[%s11688_s4 + $0x19a8] sm:$0xff]  ;;  %v10383_v40 = vcombine.low %v1571_v27, %v1575_v28 }
 0x2e5   : > { %7409 = vmatpush1.bf16.msra.mxu0 %v10215_v47  ;;  %7440 = vmatprep.mubr.bf16.mxu0 %v11998_v17  ;;  %v1579_v36 = vld [vmem:[%s11688_s4 + $0x1d88] sm:$0xff]  ;;  %v10264_v43 = vcombine.high %v1451_v34, %v1455_v35 }
 0x2e6   : > { %7400 = vmatmul.mubr.bf16.vlgmr.msra.gmra.mrb[24].mxu1 %v11989_v10  ;;  %7410 = vmatprep.subr.bf16.mxu0 %v10224_v50  ;;  %v1583_v37 = vld [vmem:[%s11688_s4 + $0x1da8] sm:$0xff] }
 0x2e7   : > { %7450 = vmatpush1.bf16.msra.mxu1 %v10343_v48  ;;  %7481 = vmatprep.mubr.bf16.mxu1 %v12005_v20  ;;  %v10392_v46 = vcombine.high %v1579_v36, %v1583_v37  ;;  %v1459_v21 = vld [vmem:[%s11688_s4 + $0x19c8] sm:$0xff]  ;;  %v10391_v4 = vcombine.low %v1579_v36, %v1583_v37 }
 0x2e8   : > { %7451 = vmatprep.subr.bf16.mxu1 %v10352_v52  ;;  %v1463_v47 = vld [vmem:[%s11688_s4 + $0x19e8] sm:$0xff] }
 0x2e9   : > { %7411 = vmatpush1.bf16.msra.mxu0 %v10223_v9  ;;  %v1587_v54 = vld [vmem:[%s11688_s4 + $0x1dc8] sm:$0xff]  ;;  %v10272_v5 = vcombine.high %v1459_v21, %v1463_v47 }
 0x2ea   : > { %7412 = vmatprep.subr.bf16.mxu0 %v10232_v2  ;;  %v1591_v57 = vld [vmem:[%s11688_s4 + $0x1de8] sm:$0xff]  ;;  %v10263_v2 = vcombine.low %v1451_v34, %v1455_v35 }
 0x2eb   : > { %7452 = vmatpush1.bf16.msra.mxu1 %v10351_v63  ;;  %v619_v12 = vld [vmem:[#allocation2 + $0x8] sm:$0xff] }
 0x2ec   : > { %7453 = vmatprep.subr.bf16.mxu1 %v10360_v59  ;;  %v1595_v41 = vld [vmem:[%s11688_s4 + $0x1e08] sm:$0xff] }
 0x2ed   : > { %7413 = vmatpush1.bf16.msra.mxu0 %v10231_v7  ;;  %v1599_v15 = vld [vmem:[%s11688_s4 + $0x1e28] sm:$0xff] }
 0x2ee   : > { %7414 = vmatprep.subr.bf16.mxu0 %v10240_v11  ;;  %v1467_v11 = vld [vmem:[%s11688_s4 + $0x1a08] sm:$0xff] }
 0x2ef   : > { %7454 = vmatpush1.bf16.msra.mxu1 %v10359_v8  ;;  %v1475_v26 = vld [vmem:[%s11688_s4 + $0x1a48] sm:$0xff] }
 0x2f0   : > { %7455 = vmatprep.subr.bf16.mxu1 %v10368_v13  ;;  %v1471_v13 = vld [vmem:[%s11688_s4 + $0x1a28] sm:$0xff] }
 0x2f1   : > { %7415 = vmatpush1.bf16.msra.mxu0 %v10239_v44  ;;  %v10271_v44 = vcombine.low %v1459_v21, %v1463_v47  ;;  %v1479_v55 = vld [vmem:[%s11688_s4 + $0x1a68] sm:$0xff] }
 0x2f2   : > { %7416 = vmatprep.subr.bf16.mxu0 %v10248_v23  ;;  %v10280_v23 = vcombine.high %v1467_v11, %v1471_v13  ;;  %v1603_v27 = vld [vmem:[%s11688_s4 + $0x1e48] sm:$0xff] }
 0x2f3   : > { %7456 = vmatpush1.bf16.msra.mxu1 %v10367_v19  ;;  %v10399_v19 = vcombine.low %v1587_v54, %v1591_v57  ;;  %v1607_v28 = vld [vmem:[%s11688_s4 + $0x1e68] sm:$0xff] }
 0x2f4   : > { %7457 = vmatprep.subr.bf16.mxu1 %v10376_v25  ;;  %v10408_v25 = vcombine.high %v1595_v41, %v1599_v15  ;;  %v1483_v34 = vld [vmem:[%s11688_s4 + $0x1a88] sm:$0xff] }
 0x2f5   : > { %7417 = vmatpush1.bf16.msra.mxu0 %v10247_v56  ;;  %v10279_v56 = vcombine.low %v1467_v11, %v1471_v13  ;;  %v1487_v35 = vld [vmem:[%s11688_s4 + $0x1aa8] sm:$0xff] }
 0x2f6   : > { %7418 = vmatprep.subr.bf16.mxu0 %v10256_v32  ;;  %v10288_v32 = vcombine.high %v1475_v26, %v1479_v55  ;;  %v1611_v36 = vld [vmem:[%s11688_s4 + $0x1e88] sm:$0xff] }
 0x2f7   : > { %7458 = vmatpush1.bf16.msra.mxu1 %v10375_v30  ;;  %v7114_v45 = vpop.f32.mrb[12].mxu0  ;;  %v10407_v30 = vcombine.low %v1595_v41, %v1599_v15  ;;  %v1615_v37 = vld [vmem:[%s11688_s4 + $0x1ea8] sm:$0xff] }
 0x2f8   : > { %7459 = vmatprep.subr.bf16.mxu1 %v10384_v33  ;;  %v7115_v48 = vadd.f32 %v7114_v45, %v12254_v1  ;;  %v7116_v52 = vpop.f32.mrb[13].mxu0  ;;  %v10416_v33 = vcombine.high %v1603_v27, %v1607_v28  ;;  %v10424_v45 = vcombine.high %v1611_v36, %v1615_v37  ;;  %v1495_v21 = vld [vmem:[%s11688_s4 + $0x1ae8] sm:$0xff] }
 0x2f9   : > { %v7155_v50 = vpop.f32.mrb[12].mxu1  ;;  %v7117_v62 = vadd.f32 %v7116_v52, %v12256_v0  ;;  %v7118_v63 = vpop.f32.mrb[14].mxu0  ;;  %7419 = vmatpush1.bf16.msra.mxu0 %v10255_v39  ;;  %v10400_v0 = vcombine.high %v1587_v54, %v1591_v57  ;;  %v10287_v39 = vcombine.low %v1475_v26, %v1479_v55  ;;  %v1619_v47 = vld [vmem:[%s11688_s4 + $0x1ec8] sm:$0xff]  ;;  %v10423_v52 = vcombine.low %v1611_v36, %v1615_v37  ;;  %v764_v36 = vld [vmem:[%s11688_s4 + $0x410] sm:$0xff] }
 0x2fa   : > { %v7157_v9 = vpop.f32.mrb[13].mxu1  ;;  %v7156_v59 = vadd.f32 %v7155_v50, %v7115_v48  ;;  %v7119_v1 = vpop.f32.mrb[15].mxu0  ;;  %7420 = vmatprep.subr.bf16.mxu0 %v10264_v43  ;;  %v10296_v43 = vcombine.high %v1483_v34, %v1487_v35  ;;  %v1623_v48 = vld [vmem:[%s11688_s4 + $0x1ee8] sm:$0xff]  ;;  %v10295_v50 = vcombine.low %v1483_v34, %v1487_v35  ;;  %v636_v34 = vld [vmem:[%s11688_s4 + $0x10] sm:$0xff] }
 0x2fb   : > { %v7159_v3 = vpop.f32.mrb[14].mxu1  ;;  %7460 = vmatpush1.bf16.msra.mxu1 %v10383_v40  ;;  %v7158_v7 = vadd.f32 %v7157_v9, %v7117_v62  ;;  %v10415_v40 = vcombine.low %v1603_v27, %v1607_v28  ;;  %v10432_v57 = vcombine.high %v1619_v47, %v1623_v48  ;;  %v1503_v62 = vld [vmem:[%s11688_s4 + $0x1b28] sm:$0xff]  ;;  %v640_v35 = vld [vmem:[%s11688_s4 + $0x30] sm:$0xff] }
 0x2fc   : > { %v7160_v8 = vpop.f32.mrb[15].mxu1  ;;  %7461 = vmatprep.subr.bf16.mxu1 %v10392_v46  ;;  %v8146_v14 = vadd.f32 %v7156_v59, %v618_v58  ;;  %v1491_v46 = vld [vmem:[%s11688_s4 + $0x1ac8] sm:$0xff]  ;;  %v10431_v59 = vcombine.low %v1619_v47, %v1623_v48  ;;  %v768_v37 = vld [vmem:[%s11688_s4 + $0x430] sm:$0xff] }
 0x2fd   : > { %v8147_v16 = vadd.f32 %v7158_v7, %v619_v12  ;;  %7421 = vmatpush1.bf16.msra.mxu0 %v10263_v2  ;;  %v10304_v54 = vcombine.high %v1491_v46, %v1495_v21  ;;  %v1499_v58 = vld [vmem:[%s11688_s4 + $0x1b08] sm:$0xff]  ;;  %v10303_v2 = vcombine.low %v1491_v46, %v1495_v21  ;;  %v644_v46 = vld [vmem:[%s11688_s4 + $0x50] sm:$0xff] }
 0x2fe   : > { %8154 = vst [vmem:[#allocation2] sm:$0xff] %v8146_v14  ;;  %7422 = vmatprep.subr.bf16.mxu0 %v10272_v5  ;;  %v1627_v9 = vld [vmem:[%s11688_s4 + $0x1f08] sm:$0xff]  ;;  %v10312_v12 = vcombine.high %v1499_v58, %v1503_v62  ;;  %v10311_v8 = vcombine.low %v1499_v58, %v1503_v62  ;;  %v648_v21 = vld [vmem:[%s11688_s4 + $0x70] sm:$0xff] }
 0x2ff   : > { %7462 = vmatpush1.bf16.msra.mxu1 %v10391_v4  ;;  %8155 = vst [vmem:[#allocation2 + $0x8] sm:$0xff] %v8147_v16  ;;  %v1631_v63 = vld [vmem:[%s11688_s4 + $0x1f28] sm:$0xff]  ;;  %v772_v47 = vld [vmem:[%s11688_s4 + $0x450] sm:$0xff] }
 0x300   : > { %7463 = vmatprep.subr.bf16.mxu1 %v10400_v0  ;;  %v10440_v3 = vcombine.high %v1627_v9, %v1631_v63  ;;  %v1507_v1 = vld [vmem:[%s11688_s4 + $0x1b48] sm:$0xff]  ;;  %v10439_v0 = vcombine.low %v1627_v9, %v1631_v63  ;;  %v776_v48 = vld [vmem:[%s11688_s4 + $0x470] sm:$0xff] }
 0x301   : > { %7423 = vmatpush1.bf16.msra.mxu0 %v10271_v44  ;;  %v1511_v4 = vld [vmem:[%s11688_s4 + $0x1b68] sm:$0xff]  ;;  %v652_v58 = vld [vmem:[%s11688_s4 + $0x90] sm:$0xff] }
 0x302   : > { %7424 = vmatprep.subr.bf16.mxu0 %v10280_v23  ;;  %v1635_v5 = vld [vmem:[%s11688_s4 + $0x1f48] sm:$0xff]  ;;  %v10320_v11 = vcombine.high %v1507_v1, %v1511_v4  ;;  %v10319_v44 = vcombine.low %v1507_v1, %v1511_v4  ;;  %v656_v62 = vld [vmem:[%s11688_s4 + $0xb0] sm:$0xff] }
 0x303   : > { %7464 = vmatpush1.bf16.msra.mxu1 %v10399_v19  ;;  %v1639_v7 = vld [vmem:[%s11688_s4 + $0x1f68] sm:$0xff]  ;;  %v780_v9 = vld [vmem:[%s11688_s4 + $0x490] sm:$0xff] }
 0x304   : > { %7465 = vmatprep.subr.bf16.mxu1 %v10408_v25  ;;  %v10448_v13 = vcombine.high %v1635_v5, %v1639_v7  ;;  %v1515_v14 = vld [vmem:[%s11688_s4 + $0x1b88] sm:$0xff]  ;;  %v10447_v19 = vcombine.low %v1635_v5, %v1639_v7  ;;  %v784_v63 = vld [vmem:[%s11688_s4 + $0x4b0] sm:$0xff] }
 0x305   : > { %7425 = vmatpush1.bf16.msra.mxu0 %v10279_v56  ;;  %v1519_v41 = vld [vmem:[%s11688_s4 + $0x1ba8] sm:$0xff]  ;;  %v660_v1 = vld [vmem:[%s11688_s4 + $0xd0] sm:$0xff] }
 0x306   : > { %7426 = vmatprep.subr.bf16.mxu0 %v10288_v32  ;;  %v1643_v15 = vld [vmem:[%s11688_s4 + $0x1f88] sm:$0xff]  ;;  %v10328_v23 = vcombine.high %v1515_v14, %v1519_v41  ;;  %v10327_v56 = vcombine.low %v1515_v14, %v1519_v41  ;;  %v664_v4 = vld [vmem:[%s11688_s4 + $0xf0] sm:$0xff] }
 0x307   : > { %7466 = vmatpush1.bf16.msra.mxu1 %v10407_v30  ;;  %v1647_v16 = vld [vmem:[%s11688_s4 + $0x1fa8] sm:$0xff]  ;;  %v788_v5 = vld [vmem:[%s11688_s4 + $0x4d0] sm:$0xff] }
 0x308   : > { %7467 = vmatprep.subr.bf16.mxu1 %v10416_v33  ;;  %v10456_v25 = vcombine.high %v1643_v15, %v1647_v16  ;;  %v1523_v26 = vld [vmem:[%s11688_s4 + $0x1bc8] sm:$0xff]  ;;  %v10455_v30 = vcombine.low %v1643_v15, %v1647_v16  ;;  %v792_v7 = vld [vmem:[%s11688_s4 + $0x4f0] sm:$0xff] }
 0x309   : > { %7427 = vmatpush1.bf16.msra.mxu0 %v10287_v39  ;;  %v1527_v55 = vld [vmem:[%s11688_s4 + $0x1be8] sm:$0xff]  ;;  %v668_v14 = vld [vmem:[%s11688_s4 + $0x110] sm:$0xff] }
 0x30a   : > { %7428 = vmatprep.subr.bf16.mxu0 %v10296_v43  ;;  %v1651_v27 = vld [vmem:[%s11688_s4 + $0x1fc8] sm:$0xff]  ;;  %v10336_v32 = vcombine.high %v1523_v26, %v1527_v55  ;;  %v10335_v39 = vcombine.low %v1523_v26, %v1527_v55  ;;  %v9450_v43 = vcombine.high %v636_v34, %v640_v35  ;;  %v672_v41 = vld [vmem:[%s11688_s4 + $0x130] sm:$0xff] }
 0x30b   : > { %7468 = vmatpush1.bf16.msra.mxu1 %v10415_v40  ;;  %v1655_v28 = vld [vmem:[%s11688_s4 + $0x1fe8] sm:$0xff]  ;;  %v796_v15 = vld [vmem:[%s11688_s4 + $0x510] sm:$0xff] }
 0x30c   : > { %7469 = vmatprep.subr.bf16.mxu1 %v10424_v45  ;;  %v10464_v33 = vcombine.high %v1651_v27, %v1655_v28  ;;  %v10463_v40 = vcombine.low %v1651_v27, %v1655_v28  ;;  %v9578_v45 = vcombine.high %v764_v36, %v768_v37  ;;  %v800_v16 = vld [vmem:[%s11688_s4 + $0x530] sm:$0xff] }
 0x30d   : > { %7429 = vmatpush1.bf16.msra.mxu0 %v10295_v50  ;;  %v9449_v50 = vcombine.low %v636_v34, %v640_v35  ;;  %v676_v26 = vld [vmem:[%s11688_s4 + $0x150] sm:$0xff] }
 0x30e   : > { %7430 = vmatprep.subr.bf16.mxu0 %v10304_v54  ;;  %v9458_v54 = vcombine.high %v644_v46, %v648_v21  ;;  %v680_v55 = vld [vmem:[%s11688_s4 + $0x170] sm:$0xff] }
 0x30f   : > { %7470 = vmatpush1.bf16.msra.mxu1 %v10423_v52  ;;  %v9577_v52 = vcombine.low %v764_v36, %v768_v37  ;;  %v804_v27 = vld [vmem:[%s11688_s4 + $0x550] sm:$0xff] }
 0x310   : > { %7471 = vmatprep.subr.bf16.mxu1 %v10432_v57  ;;  %v9586_v57 = vcombine.high %v772_v47, %v776_v48  ;;  %v808_v28 = vld [vmem:[%s11688_s4 + $0x570] sm:$0xff] }
 0x311   : > { %7431 = vmatpush1.bf16.msra.mxu0 %v10303_v2  ;;  %v9457_v2 = vcombine.low %v644_v46, %v648_v21  ;;  %v684_v34 = vld [vmem:[%s11688_s4 + $0x190] sm:$0xff] }
 0x312   : > { %7432 = vmatprep.subr.bf16.mxu0 %v10312_v12  ;;  %v9466_v12 = vcombine.high %v652_v58, %v656_v62  ;;  %v688_v35 = vld [vmem:[%s11688_s4 + $0x1b0] sm:$0xff] }
 0x313   : > { %7472 = vmatpush1.bf16.msra.mxu1 %v10431_v59  ;;  %v9585_v59 = vcombine.low %v772_v47, %v776_v48  ;;  %v812_v36 = vld [vmem:[%s11688_s4 + $0x590] sm:$0xff] }
 0x314   : > { %7473 = vmatprep.subr.bf16.mxu1 %v10440_v3  ;;  %v9594_v3 = vcombine.high %v780_v9, %v784_v63  ;;  %v816_v37 = vld [vmem:[%s11688_s4 + $0x5b0] sm:$0xff] }
 0x315   : > { %7433 = vmatpush1.bf16.msra.mxu0 %v10311_v8  ;;  %v9465_v8 = vcombine.low %v652_v58, %v656_v62  ;;  %v9626_v46 = vcombine.high %v812_v36, %v816_v37  ;;  %v692_v21 = vld [vmem:[%s11688_s4 + $0x1d0] sm:$0xff] }
 0x316   : > { %7434 = vmatprep.subr.bf16.mxu0 %v10320_v11  ;;  %v9474_v11 = vcombine.high %v660_v1, %v664_v4  ;;  %v696_v47 = vld [vmem:[%s11688_s4 + $0x1f0] sm:$0xff] }
 0x317   : > { %7474 = vmatpush1.bf16.msra.mxu1 %v10439_v0  ;;  %v9593_v0 = vcombine.low %v780_v9, %v784_v63  ;;  %v9497_v9 = vcombine.low %v684_v34, %v688_v35 }
 0x318   : > { %7475 = vmatprep.subr.bf16.mxu1 %v10448_v13  ;;  %v9602_v13 = vcombine.high %v788_v5, %v792_v7 }
 0x319   : > { %7435 = vmatpush1.bf16.msra.mxu0 %v10319_v44  ;;  %v9473_v44 = vcombine.low %v660_v1, %v664_v4 }
 0x31a   : > { %7436 = vmatprep.subr.bf16.mxu0 %v10328_v23  ;;  %v9482_v23 = vcombine.high %v668_v14, %v672_v41 }
 0x31b   : > { %7476 = vmatpush1.bf16.msra.mxu1 %v10447_v19  ;;  %v9601_v19 = vcombine.low %v788_v5, %v792_v7  ;;  %v700_v5 = vld [vmem:[%s11688_s4 + $0x210] sm:$0xff] }
 0x31c   : > { %7477 = vmatprep.subr.bf16.mxu1 %v10456_v25  ;;  %v9610_v25 = vcombine.high %v796_v15, %v800_v16  ;;  %v704_v7 = vld [vmem:[%s11688_s4 + $0x230] sm:$0xff] }
 0x31d   : > { %7437 = vmatpush1.bf16.msra.mxu0 %v10327_v56  ;;  %v9481_v56 = vcombine.low %v668_v14, %v672_v41  ;;  %v9514_v14 = vcombine.high %v700_v5, %v704_v7 }
 0x31e   : > { %7438 = vmatprep.subr.bf16.mxu0 %v10336_v32  ;;  %v9490_v32 = vcombine.high %v676_v26, %v680_v55 }
 0x31f   : > { %7478 = vmatpush1.bf16.msra.mxu1 %v10455_v30  ;;  %v9609_v30 = vcombine.low %v796_v15, %v800_v16  ;;  %v708_v15 = vld [vmem:[%s11688_s4 + $0x250] sm:$0xff] }
 0x320   : > { %7479 = vmatprep.subr.bf16.mxu1 %v10464_v33  ;;  %v9618_v33 = vcombine.high %v804_v27, %v808_v28  ;;  %v712_v16 = vld [vmem:[%s11688_s4 + $0x270] sm:$0xff] }
 0x321   : > { %7439 = vmatpush1.bf16.msra.mxu0 %v10335_v39  ;;  %v9489_v39 = vcombine.low %v676_v26, %v680_v55  ;;  %v9522_v26 = vcombine.high %v708_v15, %v712_v16 }
 0x322   : > { %7490 = vmatprep.subr.bf16.mxu0 %v9450_v43  ;;  %v9498_v43 = vcombine.high %v684_v34, %v688_v35 }
 0x323   : > { %7480 = vmatpush1.bf16.msra.mxu1 %v10463_v40  ;;  %v9617_v40 = vcombine.low %v804_v27, %v808_v28  ;;  %v716_v27 = vld [vmem:[%s11688_s4 + $0x290] sm:$0xff] }
 0x324   : > { %7531 = vmatprep.subr.bf16.mxu1 %v9578_v45  ;;  %7441 = vmatmul.mubr.bf16.vlgmr.msra.gmra.mrb[28].mxu0 %v12070_v24  ;;  %v720_v28 = vld [vmem:[%s11688_s4 + $0x2b0] sm:$0xff] }
 0x325   : > { %7491 = vmatpush1.bf16.msra.mxu0 %v9449_v50  ;;  %7522 = vmatprep.mubr.bf16.mxu0 %v11750_v60  ;;  %v9530_v34 = vcombine.high %v716_v27, %v720_v28 }
 0x326   : > { %7482 = vmatmul.mubr.bf16.vlgmr.msra.gmra.mrb[28].mxu1 %v12076_v53  ;;  %7492 = vmatprep.subr.bf16.mxu0 %v9458_v54  ;;  %v824_v54 = vld [vmem:[%s11688_s4 + $0x5f0] sm:$0xff] }
 0x327   : > { %7532 = vmatpush1.bf16.msra.mxu1 %v9577_v52  ;;  %7563 = vmatprep.mubr.bf16.mxu1 %v11754_v61  ;;  %v820_v52 = vld [vmem:[%s11688_s4 + $0x5d0] sm:$0xff] }
 0x328   : > { %7533 = vmatprep.subr.bf16.mxu1 %v9586_v57  ;;  %v9634_v4 = vcombine.high %v820_v52, %v824_v54 }
 0x329   : > { %7493 = vmatpush1.bf16.msra.mxu0 %v9457_v2 }
 0x32a   : > { %7494 = vmatprep.subr.bf16.mxu0 %v9466_v12  ;;  %v9625_v12 = vcombine.low %v812_v36, %v816_v37  ;;  %v724_v36 = vld [vmem:[%s11688_s4 + $0x2d0] sm:$0xff] }
 0x32b   : > { %7534 = vmatpush1.bf16.msra.mxu1 %v9585_v59  ;;  %v728_v37 = vld [vmem:[%s11688_s4 + $0x2f0] sm:$0xff] }
 0x32c   : > { %7535 = vmatprep.subr.bf16.mxu1 %v9594_v3  ;;  %v9506_v3 = vcombine.high %v692_v21, %v696_v47 }
 0x32d   : > { %7495 = vmatpush1.bf16.msra.mxu0 %v9465_v8  ;;  %v828_v8 = vld [vmem:[%s11688_s4 + $0x610] sm:$0xff] }
 0x32e   : > { %7496 = vmatprep.subr.bf16.mxu0 %v9474_v11  ;;  %v9505_v11 = vcombine.low %v692_v21, %v696_v47  ;;  %v732_v47 = vld [vmem:[%s11688_s4 + $0x310] sm:$0xff] }
 0x32f   : > { %7536 = vmatpush1.bf16.msra.mxu1 %v9593_v0  ;;  %v832_v0 = vld [vmem:[%s11688_s4 + $0x630] sm:$0xff] }
 0x330   : > { %7537 = vmatprep.subr.bf16.mxu1 %v9602_v13  ;;  %v9633_v13 = vcombine.low %v820_v52, %v824_v54  ;;  %v9642_v41 = vcombine.high %v828_v8, %v832_v0  ;;  %v864_v52 = vld [vmem:[%s11688_s4 + $0x730] sm:$0xff]  ;;  %v9537_v54 = vcombine.low %v724_v36, %v728_v37 }
 0x331   : > { %7497 = vmatpush1.bf16.msra.mxu0 %v9473_v44  ;;  %v836_v44 = vld [vmem:[%s11688_s4 + $0x650] sm:$0xff] }
 0x332   : > { %7498 = vmatprep.subr.bf16.mxu0 %v9482_v23  ;;  %v9513_v23 = vcombine.low %v700_v5, %v704_v7 }
 0x333   : > { %7538 = vmatpush1.bf16.msra.mxu1 %v9601_v19  ;;  %v840_v19 = vld [vmem:[%s11688_s4 + $0x670] sm:$0xff] }
 0x334   : > { %7539 = vmatprep.subr.bf16.mxu1 %v9610_v25  ;;  %v9641_v25 = vcombine.low %v828_v8, %v832_v0  ;;  %v9650_v55 = vcombine.high %v836_v44, %v840_v19  ;;  %v748_v8 = vld [vmem:[%s11688_s4 + $0x390] sm:$0xff] }
 0x335   : > { %7499 = vmatpush1.bf16.msra.mxu0 %v9481_v56  ;;  %v844_v56 = vld [vmem:[%s11688_s4 + $0x690] sm:$0xff] }
 0x336   : > { %7500 = vmatprep.subr.bf16.mxu0 %v9490_v32  ;;  %v9521_v32 = vcombine.low %v708_v15, %v712_v16  ;;  %v752_v0 = vld [vmem:[%s11688_s4 + $0x3b0] sm:$0xff] }
 0x337   : > { %7540 = vmatpush1.bf16.msra.mxu1 %v9609_v30  ;;  %v7196_v45 = vpop.f32.mrb[16].mxu0  ;;  %v848_v30 = vld [vmem:[%s11688_s4 + $0x6b0] sm:$0xff]  ;;  %v9562_v15 = vcombine.high %v748_v8, %v752_v0 }
 0x338   : > { %7541 = vmatprep.subr.bf16.mxu1 %v9618_v33  ;;  %v7198_v50 = vpop.f32.mrb[17].mxu0  ;;  %v9649_v33 = vcombine.low %v836_v44, %v840_v19  ;;  %v9658_v35 = vcombine.high %v844_v56, %v848_v30  ;;  %v756_v44 = vld [vmem:[%s11688_s4 + $0x3d0] sm:$0xff] }
 0x339   : > { %v7237_v48 = vpop.f32.mrb[16].mxu1  ;;  %v7200_v62 = vpop.f32.mrb[18].mxu0  ;;  %7501 = vmatpush1.bf16.msra.mxu0 %v9489_v39  ;;  %v852_v39 = vld [vmem:[%s11688_s4 + $0x6d0] sm:$0xff] }
 0x33a   : > { %v12396_v57 = vadd.f32 %v7237_v48, %v7196_v45  ;;  %v7239_v58 = vpop.f32.mrb[17].mxu1  ;;  %v7201_v59 = vpop.f32.mrb[19].mxu0  ;;  %7502 = vmatprep.subr.bf16.mxu0 %v9498_v43  ;;  %v9529_v43 = vcombine.low %v716_v27, %v720_v28  ;;  %v9657_v45 = vcombine.low %v844_v56, %v848_v30  ;;  %v736_v48 = vld [vmem:[%s11688_s4 + $0x330] sm:$0xff] }
 0x33b   : > { %v12398_v63 = vadd.f32 %v7239_v58, %v7198_v50  ;;  %v7241_v2 = vpop.f32.mrb[18].mxu1  ;;  %7542 = vmatpush1.bf16.msra.mxu1 %v9617_v40  ;;  %v856_v40 = vld [vmem:[%s11688_s4 + $0x6f0] sm:$0xff]  ;;  %v9546_v62 = vcombine.high %v732_v47, %v736_v48 }
 0x33c   : > { %v7242_v1 = vpop.f32.mrb[19].mxu1  ;;  %7543 = vmatprep.subr.bf16.mxu1 %v9626_v46  ;;  %v9538_v46 = vcombine.high %v724_v36, %v728_v37  ;;  %v9666_v21 = vcombine.high %v852_v39, %v856_v40  ;;  %v860_v50 = vld [vmem:[%s11688_s4 + $0x710] sm:$0xff]  ;;  %v9665_v58 = vcombine.low %v852_v39, %v856_v40 }
 0x33d   : > { %7503 = vmatpush1.bf16.msra.mxu0 %v9497_v9  ;;  %v9674_v9 = vcombine.high %v860_v50, %v864_v52  ;;  %v740_v2 = vld [vmem:[%s11688_s4 + $0x350] sm:$0xff]  ;;  %v9545_v1 = vcombine.low %v732_v47, %v736_v48 }
 0x33e   : > { %7504 = vmatprep.subr.bf16.mxu0 %v9506_v3  ;;  %v744_v59 = vld [vmem:[%s11688_s4 + $0x370] sm:$0xff] }
 0x33f   : > { %7544 = vmatpush1.bf16.msra.mxu1 %v9625_v12  ;;  %v868_v12 = vld [vmem:[%s11688_s4 + $0x750] sm:$0xff]  ;;  %v9554_v5 = vcombine.high %v740_v2, %v744_v59 }
 0x340   : > { %7545 = vmatprep.subr.bf16.mxu1 %v9634_v4  ;;  %v872_v3 = vld [vmem:[%s11688_s4 + $0x770] sm:$0xff]  ;;  %v9673_v4 = vcombine.low %v860_v50, %v864_v52 }
 0x341   : > { %7505 = vmatpush1.bf16.msra.mxu0 %v9505_v11  ;;  %v9682_v7 = vcombine.high %v868_v12, %v872_v3  ;;  %v876_v11 = vld [vmem:[%s11688_s4 + $0x790] sm:$0xff] }
 0x342   : > { %7506 = vmatprep.subr.bf16.mxu0 %v9514_v14  ;;  %v9553_v14 = vcombine.low %v740_v2, %v744_v59  ;;  %v760_v19 = vld [vmem:[%s11688_s4 + $0x3f0] sm:$0xff] }
 0x343   : > { %7546 = vmatpush1.bf16.msra.mxu1 %v9633_v13  ;;  %v880_v13 = vld [vmem:[%s11688_s4 + $0x7b0] sm:$0xff]  ;;  %v9570_v27 = vcombine.high %v756_v44, %v760_v19 }
 0x344   : > { %7547 = vmatprep.subr.bf16.mxu1 %v9642_v41  ;;  %v9681_v41 = vcombine.low %v868_v12, %v872_v3  ;;  %v9690_v16 = vcombine.high %v876_v11, %v880_v13  ;;  %v892_v56 = vld [vmem:[%s11688_s4 + $0x810] sm:$0xff] }
 0x345   : > { %7507 = vmatpush1.bf16.msra.mxu0 %v9513_v23  ;;  %v884_v23 = vld [vmem:[%s11688_s4 + $0x7d0] sm:$0xff] }
 0x346   : > { %7508 = vmatprep.subr.bf16.mxu0 %v9522_v26  ;;  %v9561_v26 = vcombine.low %v748_v8, %v752_v0  ;;  %v896_v30 = vld [vmem:[%s11688_s4 + $0x830] sm:$0xff] }
 0x347   : > { %7548 = vmatpush1.bf16.msra.mxu1 %v9641_v25  ;;  %v888_v25 = vld [vmem:[%s11688_s4 + $0x7f0] sm:$0xff]  ;;  %v9706_v36 = vcombine.high %v892_v56, %v896_v30 }
 0x348   : > { %7549 = vmatprep.subr.bf16.mxu1 %v9650_v55  ;;  %v9689_v55 = vcombine.low %v876_v11, %v880_v13  ;;  %v9698_v28 = vcombine.high %v884_v23, %v888_v25  ;;  %v900_v39 = vld [vmem:[%s11688_s4 + $0x850] sm:$0xff] }
 0x349   : > { %7509 = vmatpush1.bf16.msra.mxu0 %v9521_v32  ;;  %v1020_v32 = vld [vmem:[%s11688_s4 + $0xc10] sm:$0xff] }
 0x34a   : > { %7510 = vmatprep.subr.bf16.mxu0 %v9530_v34  ;;  %v9569_v34 = vcombine.low %v756_v44, %v760_v19  ;;  %v904_v40 = vld [vmem:[%s11688_s4 + $0x870] sm:$0xff] }
 0x34b   : > { %7550 = vmatpush1.bf16.msra.mxu1 %v9649_v33  ;;  %v1024_v33 = vld [vmem:[%s11688_s4 + $0xc30] sm:$0xff]  ;;  %v9714_v47 = vcombine.high %v900_v39, %v904_v40 }
 0x34c   : > { %7551 = vmatprep.subr.bf16.mxu1 %v9658_v35  ;;  %v9697_v35 = vcombine.low %v884_v23, %v888_v25  ;;  %v9834_v37 = vcombine.high %v1020_v32, %v1024_v33  ;;  %v908_v50 = vld [vmem:[%s11688_s4 + $0x890] sm:$0xff] }
 0x34d   : > { %7511 = vmatpush1.bf16.msra.mxu0 %v9529_v43  ;;  %v1028_v43 = vld [vmem:[%s11688_s4 + $0xc50] sm:$0xff] }
 0x34e   : > { %7512 = vmatprep.subr.bf16.mxu0 %v9538_v46  ;;  %v9705_v46 = vcombine.low %v892_v56, %v896_v30  ;;  %v912_v52 = vld [vmem:[%s11688_s4 + $0x8b0] sm:$0xff] }
 0x34f   : > { %7552 = vmatpush1.bf16.msra.mxu1 %v9657_v45  ;;  %v1032_v45 = vld [vmem:[%s11688_s4 + $0xc70] sm:$0xff]  ;;  %v9722_v2 = vcombine.high %v908_v50, %v912_v52 }
 0x350   : > { %7553 = vmatprep.subr.bf16.mxu1 %v9666_v21  ;;  %v9833_v21 = vcombine.low %v1020_v32, %v1024_v33  ;;  %v9842_v48 = vcombine.high %v1028_v43, %v1032_v45  ;;  %v916_v12 = vld [vmem:[%s11688_s4 + $0x8d0] sm:$0xff] }
 0x351   : > { %7513 = vmatpush1.bf16.msra.mxu0 %v9537_v54  ;;  %v1036_v54 = vld [vmem:[%s11688_s4 + $0xc90] sm:$0xff] }
 0x352   : > { %7514 = vmatprep.subr.bf16.mxu0 %v9546_v62  ;;  %v9713_v62 = vcombine.low %v900_v39, %v904_v40  ;;  %v920_v3 = vld [vmem:[%s11688_s4 + $0x8f0] sm:$0xff] }
 0x353   : > { %7554 = vmatpush1.bf16.msra.mxu1 %v9665_v58  ;;  %v1040_v58 = vld [vmem:[%s11688_s4 + $0xcb0] sm:$0xff]  ;;  %v9730_v8 = vcombine.high %v916_v12, %v920_v3 }
 0x354   : > { %7555 = vmatprep.subr.bf16.mxu1 %v9674_v9  ;;  %v9841_v9 = vcombine.low %v1028_v43, %v1032_v45  ;;  %v9850_v59 = vcombine.high %v1036_v54, %v1040_v58  ;;  %v924_v11 = vld [vmem:[%s11688_s4 + $0x910] sm:$0xff] }
 0x355   : > { %7515 = vmatpush1.bf16.msra.mxu0 %v9545_v1  ;;  %v1044_v1 = vld [vmem:[%s11688_s4 + $0xcd0] sm:$0xff] }
 0x356   : > { %7516 = vmatprep.subr.bf16.mxu0 %v9554_v5  ;;  %v9721_v5 = vcombine.low %v908_v50, %v912_v52  ;;  %v928_v13 = vld [vmem:[%s11688_s4 + $0x930] sm:$0xff] }
 0x357   : > { %7556 = vmatpush1.bf16.msra.mxu1 %v9673_v4  ;;  %v1048_v4 = vld [vmem:[%s11688_s4 + $0xcf0] sm:$0xff]  ;;  %v9738_v44 = vcombine.high %v924_v11, %v928_v13 }
 0x358   : > { %7557 = vmatprep.subr.bf16.mxu1 %v9682_v7  ;;  %v9849_v7 = vcombine.low %v1036_v54, %v1040_v58  ;;  %v9858_v0 = vcombine.high %v1044_v1, %v1048_v4  ;;  %v932_v23 = vld [vmem:[%s11688_s4 + $0x950] sm:$0xff] }
 0x359   : > { %7517 = vmatpush1.bf16.msra.mxu0 %v9553_v14  ;;  %v1052_v14 = vld [vmem:[%s11688_s4 + $0xd10] sm:$0xff] }
 0x35a   : > { %7518 = vmatprep.subr.bf16.mxu0 %v9562_v15  ;;  %v9729_v15 = vcombine.low %v916_v12, %v920_v3  ;;  %v936_v25 = vld [vmem:[%s11688_s4 + $0x970] sm:$0xff] }
 0x35b   : > { %7558 = vmatpush1.bf16.msra.mxu1 %v9681_v41  ;;  %v1056_v41 = vld [vmem:[%s11688_s4 + $0xd30] sm:$0xff]  ;;  %v9746_v56 = vcombine.high %v932_v23, %v936_v25 }
 0x35c   : > { %7559 = vmatprep.subr.bf16.mxu1 %v9690_v16  ;;  %v9857_v16 = vcombine.low %v1044_v1, %v1048_v4  ;;  %v9866_v19 = vcombine.high %v1052_v14, %v1056_v41  ;;  %v940_v32 = vld [vmem:[%s11688_s4 + $0x990] sm:$0xff] }
 0x35d   : > { %7519 = vmatpush1.bf16.msra.mxu0 %v9561_v26  ;;  %v1060_v26 = vld [vmem:[%s11688_s4 + $0xd50] sm:$0xff] }
 0x35e   : > { %7520 = vmatprep.subr.bf16.mxu0 %v9570_v27  ;;  %v9737_v27 = vcombine.low %v924_v11, %v928_v13  ;;  %v944_v33 = vld [vmem:[%s11688_s4 + $0x9b0] sm:$0xff] }
 0x35f   : > { %7560 = vmatpush1.bf16.msra.mxu1 %v9689_v55  ;;  %v1064_v55 = vld [vmem:[%s11688_s4 + $0xd70] sm:$0xff]  ;;  %v9754_v39 = vcombine.high %v940_v32, %v944_v33 }
 0x360   : > { %7561 = vmatprep.subr.bf16.mxu1 %v9698_v28  ;;  %v9865_v28 = vcombine.low %v1052_v14, %v1056_v41  ;;  %v9874_v30 = vcombine.high %v1060_v26, %v1064_v55  ;;  %v948_v45 = vld [vmem:[%s11688_s4 + $0x9d0] sm:$0xff] }
 0x361   : > { %7521 = vmatpush1.bf16.msra.mxu0 %v9569_v34  ;;  %v1068_v34 = vld [vmem:[%s11688_s4 + $0xd90] sm:$0xff] }
 0x362   : > { %7572 = vmatprep.subr.bf16.mxu0 %v9706_v36  ;;  %v9745_v36 = vcombine.low %v932_v23, %v936_v25  ;;  %v1076_v50 = vld [vmem:[%s11688_s4 + $0xdd0] sm:$0xff] }
 0x363   : > { %7562 = vmatpush1.bf16.msra.mxu1 %v9697_v35  ;;  %v1072_v35 = vld [vmem:[%s11688_s4 + $0xdb0] sm:$0xff] }
 0x364   : > { %7613 = vmatprep.subr.bf16.mxu1 %v9834_v37  ;;  %7523 = vmatmul.mubr.bf16.vlgmr.msra.gmra.mrb[32].mxu0 %v11800_v18  ;;  %v9873_v37 = vcombine.low %v1060_v26, %v1064_v55  ;;  %v9882_v43 = vcombine.high %v1068_v34, %v1072_v35  ;;  %v1080_v52 = vld [vmem:[%s11688_s4 + $0xdf0] sm:$0xff] }
 0x365   : > { %7573 = vmatpush1.bf16.msra.mxu0 %v9705_v46  ;;  %7604 = vmatprep.mubr.bf16.mxu0 %v11818_v29  ;;  %v952_v46 = vld [vmem:[%s11688_s4 + $0x9f0] sm:$0xff]  ;;  %v9890_v4 = vcombine.high %v1076_v50, %v1080_v52  ;;  %v9889_v13 = vcombine.low %v1076_v50, %v1080_v52 }
 0x366   : > { %7564 = vmatmul.mubr.bf16.vlgmr.msra.gmra.mrb[32].mxu1 %v11809_v22  ;;  %7574 = vmatprep.subr.bf16.mxu0 %v9714_v47  ;;  %v9762_v3 = vcombine.high %v948_v45, %v952_v46  ;;  %v9761_v11 = vcombine.low %v948_v45, %v952_v46  ;;  %v1116_v50 = vld [vmem:[%s11688_s4 + $0xf10] sm:$0xff] }
 0x367   : > { %7614 = vmatpush1.bf16.msra.mxu1 %v9833_v21  ;;  %7645 = vmatprep.mubr.bf16.mxu1 %v11825_v31  ;;  %v1120_v52 = vld [vmem:[%s11688_s4 + $0xf30] sm:$0xff] }
 0x368   : > { %7615 = vmatprep.subr.bf16.mxu1 %v9842_v48 }
 0x369   : > { %7575 = vmatpush1.bf16.msra.mxu0 %v9713_v62 }
 0x36a   : > { %7576 = vmatprep.subr.bf16.mxu0 %v9722_v2 }
 0x36b   : > { %7616 = vmatpush1.bf16.msra.mxu1 %v9841_v9  ;;  %v9753_v9 = vcombine.low %v940_v32, %v944_v33 }
 0x36c   : > { %7617 = vmatprep.subr.bf16.mxu1 %v9850_v59 }
 0x36d   : > { %7577 = vmatpush1.bf16.msra.mxu0 %v9721_v5  ;;  %v956_v5 = vld [vmem:[%s11688_s4 + $0xa10] sm:$0xff] }
 0x36e   : > { %7578 = vmatprep.subr.bf16.mxu0 %v9730_v8  ;;  %v1084_v8 = vld [vmem:[%s11688_s4 + $0xe10] sm:$0xff] }
 0x36f   : > { %7618 = vmatpush1.bf16.msra.mxu1 %v9849_v7  ;;  %v960_v7 = vld [vmem:[%s11688_s4 + $0xa30] sm:$0xff] }
 0x370   : > { %7619 = vmatprep.subr.bf16.mxu1 %v9858_v0  ;;  %v1088_v0 = vld [vmem:[%s11688_s4 + $0xe30] sm:$0xff]  ;;  %v9770_v14 = vcombine.high %v956_v5, %v960_v7  ;;  %v9769_v23 = vcombine.low %v956_v5, %v960_v7 }
 0x371   : > { %7579 = vmatpush1.bf16.msra.mxu0 %v9729_v15  ;;  %v9898_v41 = vcombine.high %v1084_v8, %v1088_v0  ;;  %v964_v15 = vld [vmem:[%s11688_s4 + $0xa50] sm:$0xff]  ;;  %v9897_v25 = vcombine.low %v1084_v8, %v1088_v0 }
 0x372   : > { %7580 = vmatprep.subr.bf16.mxu0 %v9738_v44  ;;  %v1092_v44 = vld [vmem:[%s11688_s4 + $0xe50] sm:$0xff] }
 0x373   : > { %7620 = vmatpush1.bf16.msra.mxu1 %v9857_v16  ;;  %v968_v16 = vld [vmem:[%s11688_s4 + $0xa70] sm:$0xff] }
 0x374   : > { %7621 = vmatprep.subr.bf16.mxu1 %v9866_v19  ;;  %v1096_v19 = vld [vmem:[%s11688_s4 + $0xe70] sm:$0xff]  ;;  %v9778_v26 = vcombine.high %v964_v15, %v968_v16  ;;  %v9777_v32 = vcombine.low %v964_v15, %v968_v16 }
 0x375   : > { %7581 = vmatpush1.bf16.msra.mxu0 %v9737_v27  ;;  %v9906_v55 = vcombine.high %v1092_v44, %v1096_v19  ;;  %v972_v27 = vld [vmem:[%s11688_s4 + $0xa90] sm:$0xff]  ;;  %v9905_v33 = vcombine.low %v1092_v44, %v1096_v19 }
 0x376   : > { %7582 = vmatprep.subr.bf16.mxu0 %v9746_v56  ;;  %v1100_v56 = vld [vmem:[%s11688_s4 + $0xe90] sm:$0xff] }
 0x377   : > { %7622 = vmatpush1.bf16.msra.mxu1 %v9865_v28  ;;  %v7278_v40 = vpop.f32.mrb[20].mxu0  ;;  %v976_v28 = vld [vmem:[%s11688_s4 + $0xab0] sm:$0xff] }
 0x378   : > { %7623 = vmatprep.subr.bf16.mxu1 %v9874_v30  ;;  %v7279_v21 = vadd.f32 %v7278_v40, %v12396_v57  ;;  %v7280_v48 = vpop.f32.mrb[21].mxu0  ;;  %v9881_v57 = vcombine.low %v1068_v34, %v1072_v35  ;;  %v1104_v30 = vld [vmem:[%s11688_s4 + $0xeb0] sm:$0xff]  ;;  %v9786_v34 = vcombine.high %v972_v27, %v976_v28 }
 0x379   : > { %v7319_v47 = vpop.f32.mrb[20].mxu1  ;;  %v7281_v54 = vadd.f32 %v7280_v48, %v12398_v63  ;;  %v7282_v62 = vpop.f32.mrb[22].mxu0  ;;  %7583 = vmatpush1.bf16.msra.mxu0 %v9745_v36  ;;  %v9914_v35 = vcombine.high %v1100_v56, %v1104_v30  ;;  %v980_v36 = vld [vmem:[%s11688_s4 + $0xad0] sm:$0xff]  ;;  %v9913_v45 = vcombine.low %v1100_v56, %v1104_v30 }
 0x37a   : > { %v7321_v58 = vpop.f32.mrb[21].mxu1  ;;  %v12470_v2 = vadd.f32 %v7319_v47, %v7279_v21  ;;  %v7283_v12 = vpop.f32.mrb[23].mxu0  ;;  %7584 = vmatprep.subr.bf16.mxu0 %v9754_v39  ;;  %v1108_v39 = vld [vmem:[%s11688_s4 + $0xed0] sm:$0xff] }
 0x37b   : > { %v7323_v59 = vpop.f32.mrb[22].mxu1  ;;  %7624 = vmatpush1.bf16.msra.mxu1 %v9873_v37  ;;  %v12472_v1 = vadd.f32 %v7321_v58, %v7281_v54  ;;  %v984_v37 = vld [vmem:[%s11688_s4 + $0xaf0] sm:$0xff] }
 0x37c   : > { %v7324_v63 = vpop.f32.mrb[23].mxu1  ;;  %7625 = vmatprep.subr.bf16.mxu1 %v9882_v43  ;;  %v1112_v40 = vld [vmem:[%s11688_s4 + $0xef0] sm:$0xff]  ;;  %v9785_v43 = vcombine.low %v972_v27, %v976_v28  ;;  %v9794_v46 = vcombine.high %v980_v36, %v984_v37  ;;  %v9793_v54 = vcombine.low %v980_v36, %v984_v37 }
 0x37d   : > { %7585 = vmatpush1.bf16.msra.mxu0 %v9753_v9  ;;  %v9922_v21 = vcombine.high %v1108_v39, %v1112_v40  ;;  %v988_v47 = vld [vmem:[%s11688_s4 + $0xb10] sm:$0xff]  ;;  %v9921_v58 = vcombine.low %v1108_v39, %v1112_v40  ;;  %v9930_v9 = vcombine.high %v1116_v50, %v1120_v52 }
 0x37e   : > { %7586 = vmatprep.subr.bf16.mxu0 %v9762_v3  ;;  %v992_v48 = vld [vmem:[%s11688_s4 + $0xb30] sm:$0xff] }
 0x37f   : > { %7626 = vmatpush1.bf16.msra.mxu1 %v9881_v57  ;;  %v9802_v62 = vcombine.high %v988_v47, %v992_v48  ;;  %v996_v59 = vld [vmem:[%s11688_s4 + $0xb50] sm:$0xff]  ;;  %v9801_v63 = vcombine.low %v988_v47, %v992_v48 }
 0x380   : > { %7627 = vmatprep.subr.bf16.mxu1 %v9890_v4  ;;  %v1000_v12 = vld [vmem:[%s11688_s4 + $0xb70] sm:$0xff]  ;;  %v9929_v4 = vcombine.low %v1116_v50, %v1120_v52 }
 0x381   : > { %7587 = vmatpush1.bf16.msra.mxu0 %v9761_v11  ;;  %v1124_v57 = vld [vmem:[%s11688_s4 + $0xf50] sm:$0xff]  ;;  %v9810_v5 = vcombine.high %v996_v59, %v1000_v12 }
 0x382   : > { %7588 = vmatprep.subr.bf16.mxu0 %v9770_v14  ;;  %v1128_v3 = vld [vmem:[%s11688_s4 + $0xf70] sm:$0xff]  ;;  %v9809_v14 = vcombine.low %v996_v59, %v1000_v12 }
 0x383   : > { %7628 = vmatpush1.bf16.msra.mxu1 %v9889_v13  ;;  %v9938_v7 = vcombine.high %v1124_v57, %v1128_v3  ;;  %v1004_v8 = vld [vmem:[%s11688_s4 + $0xb90] sm:$0xff] }
 0x384   : > { %7629 = vmatprep.subr.bf16.mxu1 %v9898_v41  ;;  %v1008_v0 = vld [vmem:[%s11688_s4 + $0xbb0] sm:$0xff]  ;;  %v9937_v41 = vcombine.low %v1124_v57, %v1128_v3 }
 0x385   : > { %7589 = vmatpush1.bf16.msra.mxu0 %v9769_v23  ;;  %v1132_v11 = vld [vmem:[%s11688_s4 + $0xf90] sm:$0xff]  ;;  %v9818_v15 = vcombine.high %v1004_v8, %v1008_v0 }
 0x386   : > { %7590 = vmatprep.subr.bf16.mxu0 %v9778_v26  ;;  %v1136_v13 = vld [vmem:[%s11688_s4 + $0xfb0] sm:$0xff]  ;;  %v9817_v26 = vcombine.low %v1004_v8, %v1008_v0 }
 0x387   : > { %7630 = vmatpush1.bf16.msra.mxu1 %v9897_v25  ;;  %v9946_v16 = vcombine.high %v1132_v11, %v1136_v13  ;;  %v1012_v44 = vld [vmem:[%s11688_s4 + $0xbd0] sm:$0xff] }
 0x388   : > { %7631 = vmatprep.subr.bf16.mxu1 %v9906_v55  ;;  %v1016_v19 = vld [vmem:[%s11688_s4 + $0xbf0] sm:$0xff]  ;;  %v9945_v55 = vcombine.low %v1132_v11, %v1136_v13 }
 0x389   : > { %7591 = vmatpush1.bf16.msra.mxu0 %v9777_v32  ;;  %v1140_v23 = vld [vmem:[%s11688_s4 + $0xfd0] sm:$0xff]  ;;  %v9826_v27 = vcombine.high %v1012_v44, %v1016_v19 }
 0x38a   : > { %7592 = vmatprep.subr.bf16.mxu0 %v9786_v34  ;;  %v1144_v25 = vld [vmem:[%s11688_s4 + $0xff0] sm:$0xff]  ;;  %v9825_v34 = vcombine.low %v1012_v44, %v1016_v19 }
 0x38b   : > { %7632 = vmatpush1.bf16.msra.mxu1 %v9905_v33  ;;  %v9954_v28 = vcombine.high %v1140_v23, %v1144_v25  ;;  %v1148_v56 = vld [vmem:[%s11688_s4 + $0x1010] sm:$0xff] }
 0x38c   : > { %7633 = vmatprep.subr.bf16.mxu1 %v9914_v35  ;;  %v1152_v30 = vld [vmem:[%s11688_s4 + $0x1030] sm:$0xff]  ;;  %v9953_v35 = vcombine.low %v1140_v23, %v1144_v25 }
 0x38d   : > { %7593 = vmatpush1.bf16.msra.mxu0 %v9785_v43  ;;  %v1276_v32 = vld [vmem:[%s11688_s4 + $0x1410] sm:$0xff]  ;;  %v9962_v36 = vcombine.high %v1148_v56, %v1152_v30 }
 0x38e   : > { %7594 = vmatprep.subr.bf16.mxu0 %v9794_v46  ;;  %v1280_v33 = vld [vmem:[%s11688_s4 + $0x1430] sm:$0xff]  ;;  %v9961_v46 = vcombine.low %v1148_v56, %v1152_v30 }
 0x38f   : > { %7634 = vmatpush1.bf16.msra.mxu1 %v9913_v45  ;;  %v10090_v37 = vcombine.high %v1276_v32, %v1280_v33  ;;  %v1156_v39 = vld [vmem:[%s11688_s4 + $0x1050] sm:$0xff] }
 0x390   : > { %7635 = vmatprep.subr.bf16.mxu1 %v9922_v21  ;;  %v1160_v40 = vld [vmem:[%s11688_s4 + $0x1070] sm:$0xff]  ;;  %v10089_v21 = vcombine.low %v1276_v32, %v1280_v33 }
 0x391   : > { %7595 = vmatpush1.bf16.msra.mxu0 %v9793_v54  ;;  %v1284_v43 = vld [vmem:[%s11688_s4 + $0x1450] sm:$0xff]  ;;  %v9970_v47 = vcombine.high %v1156_v39, %v1160_v40 }
 0x392   : > { %7596 = vmatprep.subr.bf16.mxu0 %v9802_v62  ;;  %v1288_v45 = vld [vmem:[%s11688_s4 + $0x1470] sm:$0xff]  ;;  %v9969_v62 = vcombine.low %v1156_v39, %v1160_v40 }
 0x393   : > { %7636 = vmatpush1.bf16.msra.mxu1 %v9921_v58  ;;  %v10098_v48 = vcombine.high %v1284_v43, %v1288_v45  ;;  %v1164_v50 = vld [vmem:[%s11688_s4 + $0x1090] sm:$0xff] }
 0x394   : > { %7637 = vmatprep.subr.bf16.mxu1 %v9930_v9  ;;  %v1168_v52 = vld [vmem:[%s11688_s4 + $0x10b0] sm:$0xff]  ;;  %v10097_v9 = vcombine.low %v1284_v43, %v1288_v45 }
 0x395   : > { %7597 = vmatpush1.bf16.msra.mxu0 %v9801_v63  ;;  %v1292_v54 = vld [vmem:[%s11688_s4 + $0x1490] sm:$0xff]  ;;  %v9978_v59 = vcombine.high %v1164_v50, %v1168_v52 }
 0x396   : > { %7598 = vmatprep.subr.bf16.mxu0 %v9810_v5  ;;  %v1296_v58 = vld [vmem:[%s11688_s4 + $0x14b0] sm:$0xff]  ;;  %v9977_v5 = vcombine.low %v1164_v50, %v1168_v52 }
 0x397   : > { %7638 = vmatpush1.bf16.msra.mxu1 %v9929_v4  ;;  %v10106_v12 = vcombine.high %v1292_v54, %v1296_v58  ;;  %v1172_v57 = vld [vmem:[%s11688_s4 + $0x10d0] sm:$0xff] }
 0x398   : > { %7639 = vmatprep.subr.bf16.mxu1 %v9938_v7  ;;  %v1176_v3 = vld [vmem:[%s11688_s4 + $0x10f0] sm:$0xff]  ;;  %v10105_v7 = vcombine.low %v1292_v54, %v1296_v58 }
 0x399   : > { %7599 = vmatpush1.bf16.msra.mxu0 %v9809_v14  ;;  %v1300_v63 = vld [vmem:[%s11688_s4 + $0x14d0] sm:$0xff]  ;;  %v9986_v8 = vcombine.high %v1172_v57, %v1176_v3 }
 0x39a   : > { %7600 = vmatprep.subr.bf16.mxu0 %v9818_v15  ;;  %v1304_v4 = vld [vmem:[%s11688_s4 + $0x14f0] sm:$0xff]  ;;  %v9985_v15 = vcombine.low %v1172_v57, %v1176_v3 }
 0x39b   : > { %7640 = vmatpush1.bf16.msra.mxu1 %v9937_v41  ;;  %v10114_v0 = vcombine.high %v1300_v63, %v1304_v4  ;;  %v1180_v11 = vld [vmem:[%s11688_s4 + $0x1110] sm:$0xff] }
 0x39c   : > { %7641 = vmatprep.subr.bf16.mxu1 %v9946_v16  ;;  %v1184_v13 = vld [vmem:[%s11688_s4 + $0x1130] sm:$0xff]  ;;  %v10113_v16 = vcombine.low %v1300_v63, %v1304_v4 }
 0x39d   : > { %7601 = vmatpush1.bf16.msra.mxu0 %v9817_v26  ;;  %v1308_v14 = vld [vmem:[%s11688_s4 + $0x1510] sm:$0xff]  ;;  %v9994_v44 = vcombine.high %v1180_v11, %v1184_v13 }
 0x39e   : > { %7602 = vmatprep.subr.bf16.mxu0 %v9826_v27  ;;  %v1312_v41 = vld [vmem:[%s11688_s4 + $0x1530] sm:$0xff]  ;;  %v9993_v27 = vcombine.low %v1180_v11, %v1184_v13 }
 0x39f   : > { %7642 = vmatpush1.bf16.msra.mxu1 %v9945_v55  ;;  %v10122_v19 = vcombine.high %v1308_v14, %v1312_v41  ;;  %v1188_v23 = vld [vmem:[%s11688_s4 + $0x1150] sm:$0xff] }
 0x3a0   : > { %7643 = vmatprep.subr.bf16.mxu1 %v9954_v28  ;;  %v1192_v25 = vld [vmem:[%s11688_s4 + $0x1170] sm:$0xff]  ;;  %v10121_v28 = vcombine.low %v1308_v14, %v1312_v41 }
 0x3a1   : > { %7603 = vmatpush1.bf16.msra.mxu0 %v9825_v34  ;;  %v1316_v26 = vld [vmem:[%s11688_s4 + $0x1550] sm:$0xff]  ;;  %v10002_v56 = vcombine.high %v1188_v23, %v1192_v25 }
 0x3a2   : > { %7654 = vmatprep.subr.bf16.mxu0 %v9962_v36  ;;  %v1320_v55 = vld [vmem:[%s11688_s4 + $0x1570] sm:$0xff]  ;;  %v10001_v36 = vcombine.low %v1188_v23, %v1192_v25 }
 0x3a3   : > { %7644 = vmatpush1.bf16.msra.mxu1 %v9953_v35  ;;  %v10130_v30 = vcombine.high %v1316_v26, %v1320_v55  ;;  %v1196_v32 = vld [vmem:[%s11688_s4 + $0x1190] sm:$0xff] }
 0x3a4   : > { %7695 = vmatprep.subr.bf16.mxu1 %v10090_v37  ;;  %7605 = vmatmul.mubr.bf16.vlgmr.msra.gmra.mrb[36].mxu0 %v11890_v38  ;;  %v1200_v33 = vld [vmem:[%s11688_s4 + $0x11b0] sm:$0xff]  ;;  %v10129_v37 = vcombine.low %v1316_v26, %v1320_v55 }
 0x3a5   : > { %7655 = vmatpush1.bf16.msra.mxu0 %v9961_v46  ;;  %7686 = vmatprep.mubr.bf16.mxu0 %v11908_v49  ;;  %v1324_v34 = vld [vmem:[%s11688_s4 + $0x1590] sm:$0xff]  ;;  %v10010_v39 = vcombine.high %v1196_v32, %v1200_v33 }
 0x3a6   : > { %7646 = vmatmul.mubr.bf16.vlgmr.msra.gmra.mrb[36].mxu1 %v11899_v42  ;;  %7656 = vmatprep.subr.bf16.mxu0 %v9970_v47  ;;  %v1328_v35 = vld [vmem:[%s11688_s4 + $0x15b0] sm:$0xff] }
 0x3a7   : > { %7696 = vmatpush1.bf16.msra.mxu1 %v10089_v21  ;;  %7727 = vmatprep.mubr.bf16.mxu1 %v11915_v51  ;;  %v10138_v43 = vcombine.high %v1324_v34, %v1328_v35  ;;  %v1204_v45 = vld [vmem:[%s11688_s4 + $0x11d0] sm:$0xff] }
 0x3a8   : > { %7697 = vmatprep.subr.bf16.mxu1 %v10098_v48  ;;  %v1208_v46 = vld [vmem:[%s11688_s4 + $0x11f0] sm:$0xff] }
 0x3a9   : > { %7657 = vmatpush1.bf16.msra.mxu0 %v9969_v62  ;;  %v1332_v50 = vld [vmem:[%s11688_s4 + $0x15d0] sm:$0xff]  ;;  %v10018_v3 = vcombine.high %v1204_v45, %v1208_v46  ;;  %v10017_v11 = vcombine.low %v1204_v45, %v1208_v46 }
 0x3aa   : > { %7658 = vmatprep.subr.bf16.mxu0 %v9978_v59  ;;  %v1336_v52 = vld [vmem:[%s11688_s4 + $0x15f0] sm:$0xff] }
 0x3ab   : > { %7698 = vmatpush1.bf16.msra.mxu1 %v10097_v9  ;;  %v10009_v9 = vcombine.low %v1196_v32, %v1200_v33  ;;  %v10146_v4 = vcombine.high %v1332_v50, %v1336_v52  ;;  %v10145_v13 = vcombine.low %v1332_v50, %v1336_v52  ;;  %v1372_v50 = vld [vmem:[%s11688_s4 + $0x1710] sm:$0xff] }
 0x3ac   : > { %7699 = vmatprep.subr.bf16.mxu1 %v10106_v12  ;;  %v1376_v52 = vld [vmem:[%s11688_s4 + $0x1730] sm:$0xff] }
 0x3ad   : > { %7659 = vmatpush1.bf16.msra.mxu0 %v9977_v5  ;;  %v1212_v5 = vld [vmem:[%s11688_s4 + $0x1210] sm:$0xff] }
 0x3ae   : > { %7660 = vmatprep.subr.bf16.mxu0 %v9986_v8  ;;  %v1340_v8 = vld [vmem:[%s11688_s4 + $0x1610] sm:$0xff] }
 0x3af   : > { %7700 = vmatpush1.bf16.msra.mxu1 %v10105_v7  ;;  %v1216_v7 = vld [vmem:[%s11688_s4 + $0x1230] sm:$0xff] }
 0x3b0   : > { %7701 = vmatprep.subr.bf16.mxu1 %v10114_v0  ;;  %v1344_v0 = vld [vmem:[%s11688_s4 + $0x1630] sm:$0xff]  ;;  %v10026_v14 = vcombine.high %v1212_v5, %v1216_v7  ;;  %v10025_v23 = vcombine.low %v1212_v5, %v1216_v7 }
 0x3b1   : > { %7661 = vmatpush1.bf16.msra.mxu0 %v9985_v15  ;;  %v10154_v41 = vcombine.high %v1340_v8, %v1344_v0  ;;  %v1220_v15 = vld [vmem:[%s11688_s4 + $0x1250] sm:$0xff]  ;;  %v10153_v25 = vcombine.low %v1340_v8, %v1344_v0 }
 0x3b2   : > { %7662 = vmatprep.subr.bf16.mxu0 %v9994_v44  ;;  %v1348_v44 = vld [vmem:[%s11688_s4 + $0x1650] sm:$0xff] }
 0x3b3   : > { %7702 = vmatpush1.bf16.msra.mxu1 %v10113_v16  ;;  %v1224_v16 = vld [vmem:[%s11688_s4 + $0x1270] sm:$0xff] }
 0x3b4   : > { %7703 = vmatprep.subr.bf16.mxu1 %v10122_v19  ;;  %v1352_v19 = vld [vmem:[%s11688_s4 + $0x1670] sm:$0xff]  ;;  %v10034_v26 = vcombine.high %v1220_v15, %v1224_v16  ;;  %v10033_v32 = vcombine.low %v1220_v15, %v1224_v16 }
 0x3b5   : > { %7663 = vmatpush1.bf16.msra.mxu0 %v9993_v27  ;;  %v10162_v55 = vcombine.high %v1348_v44, %v1352_v19  ;;  %v1228_v27 = vld [vmem:[%s11688_s4 + $0x1290] sm:$0xff]  ;;  %v10161_v33 = vcombine.low %v1348_v44, %v1352_v19 }
 0x3b6   : > { %7664 = vmatprep.subr.bf16.mxu0 %v10002_v56  ;;  %v1356_v56 = vld [vmem:[%s11688_s4 + $0x1690] sm:$0xff] }
 0x3b7   : > { %7704 = vmatpush1.bf16.msra.mxu1 %v10121_v28  ;;  %v7360_v40 = vpop.f32.mrb[24].mxu0  ;;  %v1232_v28 = vld [vmem:[%s11688_s4 + $0x12b0] sm:$0xff] }
 0x3b8   : > { %7705 = vmatprep.subr.bf16.mxu1 %v10130_v30  ;;  %v7361_v21 = vadd.f32 %v7360_v40, %v12470_v2  ;;  %v7362_v48 = vpop.f32.mrb[25].mxu0  ;;  %v10137_v2 = vcombine.low %v1324_v34, %v1328_v35  ;;  %v1360_v30 = vld [vmem:[%s11688_s4 + $0x16b0] sm:$0xff]  ;;  %v10042_v34 = vcombine.high %v1228_v27, %v1232_v28 }
 0x3b9   : > { %v7401_v47 = vpop.f32.mrb[24].mxu1  ;;  %v7363_v54 = vadd.f32 %v7362_v48, %v12472_v1  ;;  %v7364_v62 = vpop.f32.mrb[26].mxu0  ;;  %7665 = vmatpush1.bf16.msra.mxu0 %v10001_v36  ;;  %v10170_v35 = vcombine.high %v1356_v56, %v1360_v30  ;;  %v1236_v36 = vld [vmem:[%s11688_s4 + $0x12d0] sm:$0xff]  ;;  %v10169_v45 = vcombine.low %v1356_v56, %v1360_v30 }
 0x3ba   : > { %v7403_v58 = vpop.f32.mrb[25].mxu1  ;;  %v12544_v59 = vadd.f32 %v7401_v47, %v7361_v21  ;;  %v7365_v57 = vpop.f32.mrb[27].mxu0  ;;  %7666 = vmatprep.subr.bf16.mxu0 %v10010_v39  ;;  %v1364_v39 = vld [vmem:[%s11688_s4 + $0x16d0] sm:$0xff] }
 0x3bb   : > { %v7405_v12 = vpop.f32.mrb[26].mxu1  ;;  %7706 = vmatpush1.bf16.msra.mxu1 %v10129_v37  ;;  %v12546_v63 = vadd.f32 %v7403_v58, %v7363_v54  ;;  %v1240_v37 = vld [vmem:[%s11688_s4 + $0x12f0] sm:$0xff] }
 0x3bc   : > { %v7406_v1 = vpop.f32.mrb[27].mxu1  ;;  %7707 = vmatprep.subr.bf16.mxu1 %v10138_v43  ;;  %v1368_v40 = vld [vmem:[%s11688_s4 + $0x16f0] sm:$0xff]  ;;  %v10041_v43 = vcombine.low %v1228_v27, %v1232_v28  ;;  %v10050_v46 = vcombine.high %v1236_v36, %v1240_v37  ;;  %v10049_v54 = vcombine.low %v1236_v36, %v1240_v37 }
 0x3bd   : > { %7667 = vmatpush1.bf16.msra.mxu0 %v10009_v9  ;;  %v10178_v21 = vcombine.high %v1364_v39, %v1368_v40  ;;  %v1244_v47 = vld [vmem:[%s11688_s4 + $0x1310] sm:$0xff]  ;;  %v10177_v58 = vcombine.low %v1364_v39, %v1368_v40  ;;  %v10186_v9 = vcombine.high %v1372_v50, %v1376_v52 }
 0x3be   : > { %7668 = vmatprep.subr.bf16.mxu0 %v10018_v3  ;;  %v1248_v48 = vld [vmem:[%s11688_s4 + $0x1330] sm:$0xff] }
 0x3bf   : > { %7708 = vmatpush1.bf16.msra.mxu1 %v10137_v2  ;;  %v10058_v62 = vcombine.high %v1244_v47, %v1248_v48  ;;  %v1252_v12 = vld [vmem:[%s11688_s4 + $0x1350] sm:$0xff]  ;;  %v10057_v1 = vcombine.low %v1244_v47, %v1248_v48 }
 0x3c0   : > { %7709 = vmatprep.subr.bf16.mxu1 %v10146_v4  ;;  %v1256_v57 = vld [vmem:[%s11688_s4 + $0x1370] sm:$0xff]  ;;  %v10185_v4 = vcombine.low %v1372_v50, %v1376_v52 }
 0x3c1   : > { %7669 = vmatpush1.bf16.msra.mxu0 %v10017_v11  ;;  %v1380_v2 = vld [vmem:[%s11688_s4 + $0x1750] sm:$0xff]  ;;  %v10066_v5 = vcombine.high %v1252_v12, %v1256_v57 }
 0x3c2   : > { %7670 = vmatprep.subr.bf16.mxu0 %v10026_v14  ;;  %v1384_v3 = vld [vmem:[%s11688_s4 + $0x1770] sm:$0xff]  ;;  %v10065_v14 = vcombine.low %v1252_v12, %v1256_v57 }
 0x3c3   : > { %7710 = vmatpush1.bf16.msra.mxu1 %v10145_v13  ;;  %v10194_v7 = vcombine.high %v1380_v2, %v1384_v3  ;;  %v1260_v8 = vld [vmem:[%s11688_s4 + $0x1390] sm:$0xff] }
 0x3c4   : > { %7711 = vmatprep.subr.bf16.mxu1 %v10154_v41  ;;  %v1264_v0 = vld [vmem:[%s11688_s4 + $0x13b0] sm:$0xff]  ;;  %v10193_v41 = vcombine.low %v1380_v2, %v1384_v3 }
 0x3c5   : > { %7671 = vmatpush1.bf16.msra.mxu0 %v10025_v23  ;;  %v1388_v11 = vld [vmem:[%s11688_s4 + $0x1790] sm:$0xff]  ;;  %v10074_v15 = vcombine.high %v1260_v8, %v1264_v0 }
 0x3c6   : > { %7672 = vmatprep.subr.bf16.mxu0 %v10034_v26  ;;  %v1392_v13 = vld [vmem:[%s11688_s4 + $0x17b0] sm:$0xff]  ;;  %v10073_v26 = vcombine.low %v1260_v8, %v1264_v0 }
 0x3c7   : > { %7712 = vmatpush1.bf16.msra.mxu1 %v10153_v25  ;;  %v10202_v16 = vcombine.high %v1388_v11, %v1392_v13  ;;  %v1268_v44 = vld [vmem:[%s11688_s4 + $0x13d0] sm:$0xff] }
 0x3c8   : > { %7713 = vmatprep.subr.bf16.mxu1 %v10162_v55  ;;  %v1272_v19 = vld [vmem:[%s11688_s4 + $0x13f0] sm:$0xff]  ;;  %v10201_v55 = vcombine.low %v1388_v11, %v1392_v13 }
 0x3c9   : > { %7673 = vmatpush1.bf16.msra.mxu0 %v10033_v32  ;;  %v1396_v23 = vld [vmem:[%s11688_s4 + $0x17d0] sm:$0xff]  ;;  %v10082_v27 = vcombine.high %v1268_v44, %v1272_v19 }
 0x3ca   : > { %7674 = vmatprep.subr.bf16.mxu0 %v10042_v34  ;;  %v1400_v25 = vld [vmem:[%s11688_s4 + $0x17f0] sm:$0xff]  ;;  %v10081_v34 = vcombine.low %v1268_v44, %v1272_v19 }
 0x3cb   : > { %7714 = vmatpush1.bf16.msra.mxu1 %v10161_v33  ;;  %v10210_v28 = vcombine.high %v1396_v23, %v1400_v25  ;;  %v1404_v56 = vld [vmem:[%s11688_s4 + $0x1810] sm:$0xff] }
 0x3cc   : > { %7715 = vmatprep.subr.bf16.mxu1 %v10170_v35  ;;  %v1408_v30 = vld [vmem:[%s11688_s4 + $0x1830] sm:$0xff]  ;;  %v10209_v35 = vcombine.low %v1396_v23, %v1400_v25 }
 0x3cd   : > { %7675 = vmatpush1.bf16.msra.mxu0 %v10041_v43  ;;  %v1532_v32 = vld [vmem:[%s11688_s4 + $0x1c10] sm:$0xff]  ;;  %v10218_v36 = vcombine.high %v1404_v56, %v1408_v30 }
 0x3ce   : > { %7676 = vmatprep.subr.bf16.mxu0 %v10050_v46  ;;  %v1536_v33 = vld [vmem:[%s11688_s4 + $0x1c30] sm:$0xff]  ;;  %v10217_v46 = vcombine.low %v1404_v56, %v1408_v30 }
 0x3cf   : > { %7716 = vmatpush1.bf16.msra.mxu1 %v10169_v45  ;;  %v10346_v37 = vcombine.high %v1532_v32, %v1536_v33  ;;  %v1412_v39 = vld [vmem:[%s11688_s4 + $0x1850] sm:$0xff] }
 0x3d0   : > { %7717 = vmatprep.subr.bf16.mxu1 %v10178_v21  ;;  %v1416_v40 = vld [vmem:[%s11688_s4 + $0x1870] sm:$0xff]  ;;  %v10345_v21 = vcombine.low %v1532_v32, %v1536_v33 }
 0x3d1   : > { %7677 = vmatpush1.bf16.msra.mxu0 %v10049_v54  ;;  %v1540_v43 = vld [vmem:[%s11688_s4 + $0x1c50] sm:$0xff]  ;;  %v10226_v47 = vcombine.high %v1412_v39, %v1416_v40 }
 0x3d2   : > { %7678 = vmatprep.subr.bf16.mxu0 %v10058_v62  ;;  %v1544_v45 = vld [vmem:[%s11688_s4 + $0x1c70] sm:$0xff]  ;;  %v10225_v62 = vcombine.low %v1412_v39, %v1416_v40 }
 0x3d3   : > { %7718 = vmatpush1.bf16.msra.mxu1 %v10177_v58  ;;  %v10354_v48 = vcombine.high %v1540_v43, %v1544_v45  ;;  %v1420_v50 = vld [vmem:[%s11688_s4 + $0x1890] sm:$0xff] }
 0x3d4   : > { %7719 = vmatprep.subr.bf16.mxu1 %v10186_v9  ;;  %v1424_v52 = vld [vmem:[%s11688_s4 + $0x18b0] sm:$0xff]  ;;  %v10353_v9 = vcombine.low %v1540_v43, %v1544_v45 }
 0x3d5   : > { %7679 = vmatpush1.bf16.msra.mxu0 %v10057_v1  ;;  %v1548_v54 = vld [vmem:[%s11688_s4 + $0x1c90] sm:$0xff]  ;;  %v10234_v12 = vcombine.high %v1420_v50, %v1424_v52 }
 0x3d6   : > { %7680 = vmatprep.subr.bf16.mxu0 %v10066_v5  ;;  %v1552_v58 = vld [vmem:[%s11688_s4 + $0x1cb0] sm:$0xff]  ;;  %v10233_v5 = vcombine.low %v1420_v50, %v1424_v52 }
 0x3d7   : > { %7720 = vmatpush1.bf16.msra.mxu1 %v10185_v4  ;;  %v10362_v57 = vcombine.high %v1548_v54, %v1552_v58  ;;  %v1428_v2 = vld [vmem:[%s11688_s4 + $0x18d0] sm:$0xff] }
 0x3d8   : > { %7721 = vmatprep.subr.bf16.mxu1 %v10194_v7  ;;  %v1432_v3 = vld [vmem:[%s11688_s4 + $0x18f0] sm:$0xff]  ;;  %v10361_v7 = vcombine.low %v1548_v54, %v1552_v58 }
 0x3d9   : > { %7681 = vmatpush1.bf16.msra.mxu0 %v10065_v14  ;;  %v1556_v1 = vld [vmem:[%s11688_s4 + $0x1cd0] sm:$0xff]  ;;  %v10242_v8 = vcombine.high %v1428_v2, %v1432_v3 }
 0x3da   : > { %7682 = vmatprep.subr.bf16.mxu0 %v10074_v15  ;;  %v1560_v4 = vld [vmem:[%s11688_s4 + $0x1cf0] sm:$0xff]  ;;  %v10241_v15 = vcombine.low %v1428_v2, %v1432_v3 }
 0x3db   : > { %7722 = vmatpush1.bf16.msra.mxu1 %v10193_v41  ;;  %v10370_v0 = vcombine.high %v1556_v1, %v1560_v4  ;;  %v1436_v11 = vld [vmem:[%s11688_s4 + $0x1910] sm:$0xff] }
 0x3dc   : > { %7723 = vmatprep.subr.bf16.mxu1 %v10202_v16  ;;  %v1440_v13 = vld [vmem:[%s11688_s4 + $0x1930] sm:$0xff]  ;;  %v10369_v16 = vcombine.low %v1556_v1, %v1560_v4 }
 0x3dd   : > { %7683 = vmatpush1.bf16.msra.mxu0 %v10073_v26  ;;  %v1564_v14 = vld [vmem:[%s11688_s4 + $0x1d10] sm:$0xff]  ;;  %v10250_v44 = vcombine.high %v1436_v11, %v1440_v13 }
 0x3de   : > { %7684 = vmatprep.subr.bf16.mxu0 %v10082_v27  ;;  %v1568_v41 = vld [vmem:[%s11688_s4 + $0x1d30] sm:$0xff]  ;;  %v10249_v27 = vcombine.low %v1436_v11, %v1440_v13 }
 0x3df   : > { %7724 = vmatpush1.bf16.msra.mxu1 %v10201_v55  ;;  %v10378_v19 = vcombine.high %v1564_v14, %v1568_v41  ;;  %v1444_v23 = vld [vmem:[%s11688_s4 + $0x1950] sm:$0xff] }
 0x3e0   : > { %7725 = vmatprep.subr.bf16.mxu1 %v10210_v28  ;;  %v1448_v25 = vld [vmem:[%s11688_s4 + $0x1970] sm:$0xff]  ;;  %v10377_v28 = vcombine.low %v1564_v14, %v1568_v41 }
 0x3e1   : > { %7685 = vmatpush1.bf16.msra.mxu0 %v10081_v34  ;;  %v1572_v26 = vld [vmem:[%s11688_s4 + $0x1d50] sm:$0xff]  ;;  %v10258_v56 = vcombine.high %v1444_v23, %v1448_v25 }
 0x3e2   : > { %7736 = vmatprep.subr.bf16.mxu0 %v10218_v36  ;;  %v1576_v55 = vld [vmem:[%s11688_s4 + $0x1d70] sm:$0xff]  ;;  %v10257_v36 = vcombine.low %v1444_v23, %v1448_v25 }
 0x3e3   : > { %7726 = vmatpush1.bf16.msra.mxu1 %v10209_v35  ;;  %v10386_v30 = vcombine.high %v1572_v26, %v1576_v55  ;;  %v1452_v32 = vld [vmem:[%s11688_s4 + $0x1990] sm:$0xff] }
 0x3e4   : > { %7777 = vmatprep.subr.bf16.mxu1 %v10346_v37  ;;  %7687 = vmatmul.mubr.bf16.vlgmr.msra.gmra.mrb[40].mxu0 %v11980_v6  ;;  %v1456_v33 = vld [vmem:[%s11688_s4 + $0x19b0] sm:$0xff]  ;;  %v10385_v37 = vcombine.low %v1572_v26, %v1576_v55 }
 0x3e5   : > { %7737 = vmatpush1.bf16.msra.mxu0 %v10217_v46  ;;  %7768 = vmatprep.mubr.bf16.mxu0 %v11998_v17  ;;  %v1580_v34 = vld [vmem:[%s11688_s4 + $0x1d90] sm:$0xff]  ;;  %v10266_v39 = vcombine.high %v1452_v32, %v1456_v33 }
 0x3e6   : > { %7728 = vmatmul.mubr.bf16.vlgmr.msra.gmra.mrb[40].mxu1 %v11989_v10  ;;  %7738 = vmatprep.subr.bf16.mxu0 %v10226_v47  ;;  %v1584_v35 = vld [vmem:[%s11688_s4 + $0x1db0] sm:$0xff] }
 0x3e7   : > { %7778 = vmatpush1.bf16.msra.mxu1 %v10345_v21  ;;  %7809 = vmatprep.mubr.bf16.mxu1 %v12005_v20  ;;  %v10394_v43 = vcombine.high %v1580_v34, %v1584_v35  ;;  %v1460_v45 = vld [vmem:[%s11688_s4 + $0x19d0] sm:$0xff]  ;;  %v10393_v1 = vcombine.low %v1580_v34, %v1584_v35 }
 0x3e8   : > { %7779 = vmatprep.subr.bf16.mxu1 %v10354_v48  ;;  %v1464_v46 = vld [vmem:[%s11688_s4 + $0x19f0] sm:$0xff] }
 0x3e9   : > { %7739 = vmatpush1.bf16.msra.mxu0 %v10225_v62  ;;  %v1588_v50 = vld [vmem:[%s11688_s4 + $0x1dd0] sm:$0xff]  ;;  %v10274_v4 = vcombine.high %v1460_v45, %v1464_v46 }
 0x3ea   : > { %7740 = vmatprep.subr.bf16.mxu0 %v10234_v12  ;;  %v1592_v52 = vld [vmem:[%s11688_s4 + $0x1df0] sm:$0xff]  ;;  %v10265_v12 = vcombine.low %v1452_v32, %v1456_v33 }
 0x3eb   : > { %7780 = vmatpush1.bf16.msra.mxu1 %v10353_v9  ;;  %v620_v54 = vld [vmem:[#allocation2 + $0x10] sm:$0xff]  ;;  %v621_v2 = vld [vmem:[#allocation2 + $0x18] sm:$0xff] }
 0x3ec   : > { %7781 = vmatprep.subr.bf16.mxu1 %v10362_v57  ;;  %v1596_v13 = vld [vmem:[%s11688_s4 + $0x1e10] sm:$0xff] }
 0x3ed   : > { %7741 = vmatpush1.bf16.msra.mxu0 %v10233_v5  ;;  %v1600_v14 = vld [vmem:[%s11688_s4 + $0x1e30] sm:$0xff] }
 0x3ee   : > { %7742 = vmatprep.subr.bf16.mxu0 %v10242_v8  ;;  %v1468_v8 = vld [vmem:[%s11688_s4 + $0x1a10] sm:$0xff] }
 0x3ef   : > { %7782 = vmatpush1.bf16.msra.mxu1 %v10361_v7  ;;  %v1476_v23 = vld [vmem:[%s11688_s4 + $0x1a50] sm:$0xff] }
 0x3f0   : > { %7783 = vmatprep.subr.bf16.mxu1 %v10370_v0  ;;  %v1472_v0 = vld [vmem:[%s11688_s4 + $0x1a30] sm:$0xff] }
 0x3f1   : > { %7743 = vmatpush1.bf16.msra.mxu0 %v10241_v15  ;;  %v10273_v15 = vcombine.low %v1460_v45, %v1464_v46  ;;  %v1480_v25 = vld [vmem:[%s11688_s4 + $0x1a70] sm:$0xff] }
 0x3f2   : > { %7744 = vmatprep.subr.bf16.mxu0 %v10250_v44  ;;  %v10282_v44 = vcombine.high %v1468_v8, %v1472_v0  ;;  %v1604_v26 = vld [vmem:[%s11688_s4 + $0x1e50] sm:$0xff] }
 0x3f3   : > { %7784 = vmatpush1.bf16.msra.mxu1 %v10369_v16  ;;  %v10401_v16 = vcombine.low %v1588_v50, %v1592_v52  ;;  %v1608_v55 = vld [vmem:[%s11688_s4 + $0x1e70] sm:$0xff] }
 0x3f4   : > { %7785 = vmatprep.subr.bf16.mxu1 %v10378_v19  ;;  %v10410_v19 = vcombine.high %v1596_v13, %v1600_v14  ;;  %v1484_v32 = vld [vmem:[%s11688_s4 + $0x1a90] sm:$0xff] }
 0x3f5   : > { %7745 = vmatpush1.bf16.msra.mxu0 %v10249_v27  ;;  %v10281_v27 = vcombine.low %v1468_v8, %v1472_v0  ;;  %v1488_v33 = vld [vmem:[%s11688_s4 + $0x1ab0] sm:$0xff] }
 0x3f6   : > { %7746 = vmatprep.subr.bf16.mxu0 %v10258_v56  ;;  %v10290_v56 = vcombine.high %v1476_v23, %v1480_v25  ;;  %v1612_v34 = vld [vmem:[%s11688_s4 + $0x1e90] sm:$0xff] }
 0x3f7   : > { %7786 = vmatpush1.bf16.msra.mxu1 %v10377_v28  ;;  %v7442_v40 = vpop.f32.mrb[28].mxu0  ;;  %v10409_v28 = vcombine.low %v1596_v13, %v1600_v14  ;;  %v1616_v35 = vld [vmem:[%s11688_s4 + $0x1eb0] sm:$0xff] }
 0x3f8   : > { %7787 = vmatprep.subr.bf16.mxu1 %v10386_v30  ;;  %v7443_v21 = vadd.f32 %v7442_v40, %v12544_v59  ;;  %v7444_v48 = vpop.f32.mrb[29].mxu0  ;;  %v10418_v30 = vcombine.high %v1604_v26, %v1608_v55  ;;  %v10426_v40 = vcombine.high %v1612_v34, %v1616_v35  ;;  %v1496_v45 = vld [vmem:[%s11688_s4 + $0x1af0] sm:$0xff] }
 0x3f9   : > { %v7483_v47 = vpop.f32.mrb[28].mxu1  ;;  %v7445_v58 = vadd.f32 %v7444_v48, %v12546_v63  ;;  %v7446_v9 = vpop.f32.mrb[30].mxu0  ;;  %7747 = vmatpush1.bf16.msra.mxu0 %v10257_v36  ;;  %v10402_v63 = vcombine.high %v1588_v50, %v1592_v52  ;;  %v10289_v36 = vcombine.low %v1476_v23, %v1480_v25  ;;  %v1620_v46 = vld [vmem:[%s11688_s4 + $0x1ed0] sm:$0xff]  ;;  %v10425_v48 = vcombine.low %v1612_v34, %v1616_v35  ;;  %v765_v34 = vld [vmem:[%s11688_s4 + $0x418] sm:$0xff] }
 0x3fa   : > { %v7485_v62 = vpop.f32.mrb[29].mxu1  ;;  %v7484_v57 = vadd.f32 %v7483_v47, %v7443_v21  ;;  %v7447_v59 = vpop.f32.mrb[31].mxu0  ;;  %7748 = vmatprep.subr.bf16.mxu0 %v10266_v39  ;;  %v10298_v39 = vcombine.high %v1484_v32, %v1488_v33  ;;  %v1624_v21 = vld [vmem:[%s11688_s4 + $0x1ef0] sm:$0xff]  ;;  %v10297_v47 = vcombine.low %v1484_v32, %v1488_v33  ;;  %v637_v32 = vld [vmem:[%s11688_s4 + $0x18] sm:$0xff] }
 0x3fb   : > { %v7487_v3 = vpop.f32.mrb[30].mxu1  ;;  %7788 = vmatpush1.bf16.msra.mxu1 %v10385_v37  ;;  %v7486_v5 = vadd.f32 %v7485_v62, %v7445_v58  ;;  %v10417_v37 = vcombine.low %v1604_v26, %v1608_v55  ;;  %v10434_v52 = vcombine.high %v1620_v46, %v1624_v21  ;;  %v1504_v58 = vld [vmem:[%s11688_s4 + $0x1b30] sm:$0xff]  ;;  %v641_v33 = vld [vmem:[%s11688_s4 + $0x38] sm:$0xff] }
 0x3fc   : > { %v7488_v7 = vpop.f32.mrb[31].mxu1  ;;  %7789 = vmatprep.subr.bf16.mxu1 %v10394_v43  ;;  %v8148_v11 = vadd.f32 %v7484_v57, %v620_v54  ;;  %v1492_v43 = vld [vmem:[%s11688_s4 + $0x1ad0] sm:$0xff]  ;;  %v10433_v57 = vcombine.low %v1620_v46, %v1624_v21  ;;  %v769_v35 = vld [vmem:[%s11688_s4 + $0x438] sm:$0xff] }
 0x3fd   : > { %v8149_v41 = vadd.f32 %v7486_v5, %v621_v2  ;;  %7749 = vmatpush1.bf16.msra.mxu0 %v10265_v12  ;;  %v10306_v50 = vcombine.high %v1492_v43, %v1496_v45  ;;  %v1500_v54 = vld [vmem:[%s11688_s4 + $0x1b10] sm:$0xff]  ;;  %v10305_v12 = vcombine.low %v1492_v43, %v1496_v45  ;;  %v645_v43 = vld [vmem:[%s11688_s4 + $0x58] sm:$0xff] }
 0x3fe   : > { %8156 = vst [vmem:[#allocation2 + $0x10] sm:$0xff] %v8148_v11  ;;  %7750 = vmatprep.subr.bf16.mxu0 %v10274_v4  ;;  %v1628_v62 = vld [vmem:[%s11688_s4 + $0x1f10] sm:$0xff]  ;;  %v10314_v2 = vcombine.high %v1500_v54, %v1504_v58  ;;  %v10313_v7 = vcombine.low %v1500_v54, %v1504_v58  ;;  %v649_v45 = vld [vmem:[%s11688_s4 + $0x78] sm:$0xff] }
 0x3ff   : > { %7790 = vmatpush1.bf16.msra.mxu1 %v10393_v1  ;;  %8157 = vst [vmem:[#allocation2 + $0x18] sm:$0xff] %v8149_v41  ;;  %v1632_v9 = vld [vmem:[%s11688_s4 + $0x1f30] sm:$0xff]  ;;  %v773_v46 = vld [vmem:[%s11688_s4 + $0x458] sm:$0xff] }
 0x400   : > { %7791 = vmatprep.subr.bf16.mxu1 %v10402_v63  ;;  %v10442_v3 = vcombine.high %v1628_v62, %v1632_v9  ;;  %v1508_v59 = vld [vmem:[%s11688_s4 + $0x1b50] sm:$0xff]  ;;  %v10441_v63 = vcombine.low %v1628_v62, %v1632_v9  ;;  %v777_v21 = vld [vmem:[%s11688_s4 + $0x478] sm:$0xff] }
 0x401   : > { %7751 = vmatpush1.bf16.msra.mxu0 %v10273_v15  ;;  %v1512_v1 = vld [vmem:[%s11688_s4 + $0x1b70] sm:$0xff]  ;;  %v653_v54 = vld [vmem:[%s11688_s4 + $0x98] sm:$0xff] }
 0x402   : > { %7752 = vmatprep.subr.bf16.mxu0 %v10282_v44  ;;  %v1636_v4 = vld [vmem:[%s11688_s4 + $0x1f50] sm:$0xff]  ;;  %v10322_v8 = vcombine.high %v1508_v59, %v1512_v1  ;;  %v10321_v15 = vcombine.low %v1508_v59, %v1512_v1  ;;  %v657_v58 = vld [vmem:[%s11688_s4 + $0xb8] sm:$0xff] }
 0x403   : > { %7792 = vmatpush1.bf16.msra.mxu1 %v10401_v16  ;;  %v1640_v5 = vld [vmem:[%s11688_s4 + $0x1f70] sm:$0xff]  ;;  %v781_v62 = vld [vmem:[%s11688_s4 + $0x498] sm:$0xff] }
 0x404   : > { %7793 = vmatprep.subr.bf16.mxu1 %v10410_v19  ;;  %v10450_v0 = vcombine.high %v1636_v4, %v1640_v5  ;;  %v1516_v11 = vld [vmem:[%s11688_s4 + $0x1b90] sm:$0xff]  ;;  %v10449_v16 = vcombine.low %v1636_v4, %v1640_v5  ;;  %v785_v9 = vld [vmem:[%s11688_s4 + $0x4b8] sm:$0xff] }
 0x405   : > { %7753 = vmatpush1.bf16.msra.mxu0 %v10281_v27  ;;  %v1520_v13 = vld [vmem:[%s11688_s4 + $0x1bb0] sm:$0xff]  ;;  %v661_v59 = vld [vmem:[%s11688_s4 + $0xd8] sm:$0xff] }
 0x406   : > { %7754 = vmatprep.subr.bf16.mxu0 %v10290_v56  ;;  %v1644_v14 = vld [vmem:[%s11688_s4 + $0x1f90] sm:$0xff]  ;;  %v10330_v44 = vcombine.high %v1516_v11, %v1520_v13  ;;  %v10329_v27 = vcombine.low %v1516_v11, %v1520_v13  ;;  %v665_v1 = vld [vmem:[%s11688_s4 + $0xf8] sm:$0xff] }
 0x407   : > { %7794 = vmatpush1.bf16.msra.mxu1 %v10409_v28  ;;  %v1648_v41 = vld [vmem:[%s11688_s4 + $0x1fb0] sm:$0xff]  ;;  %v789_v4 = vld [vmem:[%s11688_s4 + $0x4d8] sm:$0xff] }
 0x408   : > { %7795 = vmatprep.subr.bf16.mxu1 %v10418_v30  ;;  %v10458_v19 = vcombine.high %v1644_v14, %v1648_v41  ;;  %v1524_v23 = vld [vmem:[%s11688_s4 + $0x1bd0] sm:$0xff]  ;;  %v10457_v28 = vcombine.low %v1644_v14, %v1648_v41  ;;  %v793_v5 = vld [vmem:[%s11688_s4 + $0x4f8] sm:$0xff]  ;;  %v9475_v41 = vcombine.low %v661_v59, %v665_v1 }
 0x409   : > { %7755 = vmatpush1.bf16.msra.mxu0 %v10289_v36  ;;  %v1528_v25 = vld [vmem:[%s11688_s4 + $0x1bf0] sm:$0xff]  ;;  %v669_v11 = vld [vmem:[%s11688_s4 + $0x118] sm:$0xff] }
 0x40a   : > { %7756 = vmatprep.subr.bf16.mxu0 %v10298_v39  ;;  %v1652_v26 = vld [vmem:[%s11688_s4 + $0x1fd0] sm:$0xff]  ;;  %v10338_v56 = vcombine.high %v1524_v23, %v1528_v25  ;;  %v10337_v36 = vcombine.low %v1524_v23, %v1528_v25  ;;  %v9452_v39 = vcombine.high %v637_v32, %v641_v33  ;;  %v673_v13 = vld [vmem:[%s11688_s4 + $0x138] sm:$0xff] }
 0x40b   : > { %7796 = vmatpush1.bf16.msra.mxu1 %v10417_v37  ;;  %v1656_v55 = vld [vmem:[%s11688_s4 + $0x1ff0] sm:$0xff]  ;;  %v797_v14 = vld [vmem:[%s11688_s4 + $0x518] sm:$0xff] }
 0x40c   : > { %7797 = vmatprep.subr.bf16.mxu1 %v10426_v40  ;;  %v10466_v30 = vcombine.high %v1652_v26, %v1656_v55  ;;  %v10465_v37 = vcombine.low %v1652_v26, %v1656_v55  ;;  %v9580_v40 = vcombine.high %v765_v34, %v769_v35  ;;  %v805_v23 = vld [vmem:[%s11688_s4 + $0x558] sm:$0xff]  ;;  %v9483_v26 = vcombine.low %v669_v11, %v673_v13 }
 0x40d   : > { %7757 = vmatpush1.bf16.msra.mxu0 %v10297_v47  ;;  %v9451_v47 = vcombine.low %v637_v32, %v641_v33  ;;  %v809_v25 = vld [vmem:[%s11688_s4 + $0x578] sm:$0xff] }
 0x40e   : > { %7758 = vmatprep.subr.bf16.mxu0 %v10306_v50  ;;  %v9460_v50 = vcombine.high %v645_v43, %v649_v45  ;;  %v813_v32 = vld [vmem:[%s11688_s4 + $0x598] sm:$0xff] }
 0x40f   : > { %7798 = vmatpush1.bf16.msra.mxu1 %v10425_v48  ;;  %v9579_v48 = vcombine.low %v765_v34, %v769_v35  ;;  %v817_v33 = vld [vmem:[%s11688_s4 + $0x5b8] sm:$0xff]  ;;  %v9619_v35 = vcombine.low %v805_v23, %v809_v25 }
 0x410   : > { %7799 = vmatprep.subr.bf16.mxu1 %v10434_v52  ;;  %v9588_v52 = vcombine.high %v773_v46, %v777_v21 }
 0x411   : > { %7759 = vmatpush1.bf16.msra.mxu0 %v10305_v12  ;;  %v9459_v12 = vcombine.low %v645_v43, %v649_v45  ;;  %v697_v43 = vld [vmem:[%s11688_s4 + $0x1f8] sm:$0xff] }
 0x412   : > { %7760 = vmatprep.subr.bf16.mxu0 %v10314_v2  ;;  %v9468_v2 = vcombine.high %v653_v54, %v657_v58 }
 0x413   : > { %7800 = vmatpush1.bf16.msra.mxu1 %v10433_v57  ;;  %v9587_v57 = vcombine.low %v773_v46, %v777_v21  ;;  %v821_v21 = vld [vmem:[%s11688_s4 + $0x5d8] sm:$0xff] }
 0x414   : > { %7801 = vmatprep.subr.bf16.mxu1 %v10442_v3  ;;  %v9596_v3 = vcombine.high %v781_v62, %v785_v9 }
 0x415   : > { %7761 = vmatpush1.bf16.msra.mxu0 %v10313_v7  ;;  %v9467_v7 = vcombine.low %v653_v54, %v657_v58 }
 0x416   : > { %7762 = vmatprep.subr.bf16.mxu0 %v10322_v8  ;;  %v9476_v8 = vcombine.high %v661_v59, %v665_v1  ;;  %v701_v59 = vld [vmem:[%s11688_s4 + $0x218] sm:$0xff] }
 0x417   : > { %7802 = vmatpush1.bf16.msra.mxu1 %v10441_v63  ;;  %v9595_v63 = vcombine.low %v781_v62, %v785_v9  ;;  %v705_v1 = vld [vmem:[%s11688_s4 + $0x238] sm:$0xff] }
 0x418   : > { %7803 = vmatprep.subr.bf16.mxu1 %v10450_v0  ;;  %v9604_v0 = vcombine.high %v789_v4, %v793_v5 }
 0x419   : > { %7763 = vmatpush1.bf16.msra.mxu0 %v10321_v15  ;;  %v9484_v15 = vcombine.high %v669_v11, %v673_v13  ;;  %v709_v11 = vld [vmem:[%s11688_s4 + $0x258] sm:$0xff] }
 0x41a   : > { %7764 = vmatprep.subr.bf16.mxu0 %v10330_v44  ;;  %v677_v44 = vld [vmem:[%s11688_s4 + $0x158] sm:$0xff] }
 0x41b   : > { %7804 = vmatpush1.bf16.msra.mxu1 %v10449_v16  ;;  %v713_v13 = vld [vmem:[%s11688_s4 + $0x278] sm:$0xff] }
 0x41c   : > { %7805 = vmatprep.subr.bf16.mxu1 %v10458_v19  ;;  %v681_v19 = vld [vmem:[%s11688_s4 + $0x178] sm:$0xff] }
 0x41d   : > { %7765 = vmatpush1.bf16.msra.mxu0 %v10329_v27  ;;  %v9492_v27 = vcombine.high %v677_v44, %v681_v19  ;;  %v9491_v34 = vcombine.low %v677_v44, %v681_v19  ;;  %v717_v44 = vld [vmem:[%s11688_s4 + $0x298] sm:$0xff] }
 0x41e   : > { %7766 = vmatprep.subr.bf16.mxu0 %v10338_v56  ;;  %v685_v56 = vld [vmem:[%s11688_s4 + $0x198] sm:$0xff] }
 0x41f   : > { %7806 = vmatpush1.bf16.msra.mxu1 %v10457_v28  ;;  %v9620_v28 = vcombine.high %v805_v23, %v809_v25  ;;  %v721_v19 = vld [vmem:[%s11688_s4 + $0x2b8] sm:$0xff] }
 0x420   : > { %7807 = vmatprep.subr.bf16.mxu1 %v10466_v30  ;;  %v689_v30 = vld [vmem:[%s11688_s4 + $0x1b8] sm:$0xff] }
 0x421   : > { %7767 = vmatpush1.bf16.msra.mxu0 %v10337_v36  ;;  %v9500_v36 = vcombine.high %v685_v56, %v689_v30  ;;  %v9499_v54 = vcombine.low %v685_v56, %v689_v30  ;;  %v845_v23 = vld [vmem:[%s11688_s4 + $0x698] sm:$0xff] }
 0x422   : > { %7818 = vmatprep.subr.bf16.mxu0 %v9452_v39  ;;  %v9628_v39 = vcombine.high %v813_v32, %v817_v33  ;;  %v849_v25 = vld [vmem:[%s11688_s4 + $0x6b8] sm:$0xff] }
 0x423   : > { %7808 = vmatpush1.bf16.msra.mxu1 %v10465_v37  ;;  %v725_v56 = vld [vmem:[%s11688_s4 + $0x2d8] sm:$0xff] }
 0x424   : > { %7859 = vmatprep.subr.bf16.mxu1 %v9580_v40  ;;  %7769 = vmatmul.mubr.bf16.vlgmr.msra.gmra.mrb[44].mxu0 %v12070_v24  ;;  %v693_v40 = vld [vmem:[%s11688_s4 + $0x1d8] sm:$0xff] }
 0x425   : > { %7819 = vmatpush1.bf16.msra.mxu0 %v9451_v47  ;;  %7850 = vmatprep.mubr.bf16.mxu0 %v11750_v60  ;;  %v801_v60 = vld [vmem:[%s11688_s4 + $0x538] sm:$0xff] }
 0x426   : > { %7810 = vmatmul.mubr.bf16.vlgmr.msra.gmra.mrb[44].mxu1 %v12076_v53  ;;  %7820 = vmatprep.subr.bf16.mxu0 %v9460_v50  ;;  %v9612_v16 = vcombine.high %v797_v14, %v801_v60  ;;  %v9611_v55 = vcombine.low %v797_v14, %v801_v60  ;;  %v825_v47 = vld [vmem:[%s11688_s4 + $0x5f8] sm:$0xff] }
 0x427   : > { %7860 = vmatpush1.bf16.msra.mxu1 %v9579_v48  ;;  %7891 = vmatprep.mubr.bf16.mxu1 %v11754_v61  ;;  %v9603_v61 = vcombine.low %v789_v4, %v793_v5  ;;  %v829_v4 = vld [vmem:[%s11688_s4 + $0x618] sm:$0xff] }
 0x428   : > { %7861 = vmatprep.subr.bf16.mxu1 %v9588_v52  ;;  %v833_v5 = vld [vmem:[%s11688_s4 + $0x638] sm:$0xff] }
 0x429   : > { %7821 = vmatpush1.bf16.msra.mxu0 %v9459_v12  ;;  %v9627_v12 = vcombine.low %v813_v32, %v817_v33  ;;  %v837_v14 = vld [vmem:[%s11688_s4 + $0x658] sm:$0xff] }
 0x42a   : > { %7822 = vmatprep.subr.bf16.mxu0 %v9468_v2  ;;  %v841_v60 = vld [vmem:[%s11688_s4 + $0x678] sm:$0xff] }
 0x42b   : > { %7862 = vmatpush1.bf16.msra.mxu1 %v9587_v57  ;;  %v9508_v57 = vcombine.high %v693_v40, %v697_v43  ;;  %v729_v30 = vld [vmem:[%s11688_s4 + $0x2f8] sm:$0xff] }
 0x42c   : > { %7863 = vmatprep.subr.bf16.mxu1 %v9596_v3  ;;  %v9636_v3 = vcombine.high %v821_v21, %v825_v47  ;;  %v853_v32 = vld [vmem:[%s11688_s4 + $0x6d8] sm:$0xff] }
 0x42d   : > { %7823 = vmatpush1.bf16.msra.mxu0 %v9467_v7  ;;  %v9507_v7 = vcombine.low %v693_v40, %v697_v43  ;;  %v857_v33 = vld [vmem:[%s11688_s4 + $0x6f8] sm:$0xff] }
 0x42e   : > { %7824 = vmatprep.subr.bf16.mxu0 %v9476_v8  ;;  %v9516_v8 = vcombine.high %v701_v59, %v705_v1  ;;  %v737_v40 = vld [vmem:[%s11688_s4 + $0x338] sm:$0xff] }
 0x42f   : > { %7864 = vmatpush1.bf16.msra.mxu1 %v9595_v63  ;;  %v9635_v63 = vcombine.low %v821_v21, %v825_v47  ;;  %v861_v43 = vld [vmem:[%s11688_s4 + $0x718] sm:$0xff]  ;;  %v9667_v21 = vcombine.low %v853_v32, %v857_v33 }
 0x430   : > { %7865 = vmatprep.subr.bf16.mxu1 %v9604_v0  ;;  %v9644_v0 = vcombine.high %v829_v4, %v833_v5 }
 0x431   : > { %7825 = vmatpush1.bf16.msra.mxu0 %v9475_v41  ;;  %v9515_v41 = vcombine.low %v701_v59, %v705_v1  ;;  %v749_v59 = vld [vmem:[%s11688_s4 + $0x398] sm:$0xff] }
 0x432   : > { %7826 = vmatprep.subr.bf16.mxu0 %v9484_v15  ;;  %v9524_v15 = vcombine.high %v709_v11, %v713_v13  ;;  %v753_v1 = vld [vmem:[%s11688_s4 + $0x3b8] sm:$0xff] }
 0x433   : > { %7866 = vmatpush1.bf16.msra.mxu1 %v9603_v61  ;;  %v9643_v61 = vcombine.low %v829_v4, %v833_v5  ;;  %v877_v4 = vld [vmem:[%s11688_s4 + $0x798] sm:$0xff] }
 0x434   : > { %7867 = vmatprep.subr.bf16.mxu1 %v9612_v16  ;;  %v9652_v16 = vcombine.high %v837_v14, %v841_v60  ;;  %v881_v5 = vld [vmem:[%s11688_s4 + $0x7b8] sm:$0xff] }
 0x435   : > { %7827 = vmatpush1.bf16.msra.mxu0 %v9483_v26  ;;  %v9523_v26 = vcombine.low %v709_v11, %v713_v13  ;;  %v757_v11 = vld [vmem:[%s11688_s4 + $0x3d8] sm:$0xff] }
 0x436   : > { %7828 = vmatprep.subr.bf16.mxu0 %v9492_v27  ;;  %v9532_v27 = vcombine.high %v717_v44, %v721_v19  ;;  %v761_v13 = vld [vmem:[%s11688_s4 + $0x3f8] sm:$0xff] }
 0x437   : > { %7868 = vmatpush1.bf16.msra.mxu1 %v9611_v55  ;;  %v7524_v37 = vpop.f32.mrb[32].mxu0  ;;  %v9651_v55 = vcombine.low %v837_v14, %v841_v60  ;;  %v885_v14 = vld [vmem:[%s11688_s4 + $0x7d8] sm:$0xff] }
 0x438   : > { %7869 = vmatprep.subr.bf16.mxu1 %v9620_v28  ;;  %v7526_v46 = vpop.f32.mrb[33].mxu0  ;;  %v9660_v28 = vcombine.high %v845_v23, %v849_v25  ;;  %v889_v60 = vld [vmem:[%s11688_s4 + $0x7f8] sm:$0xff] }
 0x439   : > { %v7565_v45 = vpop.f32.mrb[32].mxu1  ;;  %v7528_v52 = vpop.f32.mrb[34].mxu0  ;;  %7829 = vmatpush1.bf16.msra.mxu0 %v9491_v34  ;;  %v9531_v34 = vcombine.low %v717_v44, %v721_v19  ;;  %v893_v44 = vld [vmem:[%s11688_s4 + $0x818] sm:$0xff] }
 0x43a   : > { %v12686_v48 = vadd.f32 %v7565_v45, %v7524_v37  ;;  %v7567_v50 = vpop.f32.mrb[33].mxu1  ;;  %v7529_v9 = vpop.f32.mrb[35].mxu0  ;;  %7830 = vmatprep.subr.bf16.mxu0 %v9500_v36  ;;  %v9540_v36 = vcombine.high %v725_v56, %v729_v30  ;;  %v9668_v37 = vcombine.high %v853_v32, %v857_v33  ;;  %v865_v45 = vld [vmem:[%s11688_s4 + $0x738] sm:$0xff] }
 0x43b   : > { %v12688_v58 = vadd.f32 %v7567_v50, %v7526_v46  ;;  %v7569_v62 = vpop.f32.mrb[34].mxu1  ;;  %7870 = vmatpush1.bf16.msra.mxu1 %v9619_v35  ;;  %v9659_v35 = vcombine.low %v845_v23, %v849_v25  ;;  %v9539_v46 = vcombine.low %v725_v56, %v729_v30  ;;  %v9676_v50 = vcombine.high %v861_v43, %v865_v45  ;;  %v741_v52 = vld [vmem:[%s11688_s4 + $0x358] sm:$0xff] }
 0x43c   : > { %v7570_v2 = vpop.f32.mrb[35].mxu1  ;;  %7871 = vmatprep.subr.bf16.mxu1 %v9628_v39  ;;  %v733_v39 = vld [vmem:[%s11688_s4 + $0x318] sm:$0xff] }
 0x43d   : > { %7831 = vmatpush1.bf16.msra.mxu0 %v9499_v54  ;;  %v9548_v47 = vcombine.high %v733_v39, %v737_v40  ;;  %v745_v54 = vld [vmem:[%s11688_s4 + $0x378] sm:$0xff] }
 0x43e   : > { %7832 = vmatprep.subr.bf16.mxu0 %v9508_v57  ;;  %v869_v62 = vld [vmem:[%s11688_s4 + $0x758] sm:$0xff]  ;;  %v9675_v57 = vcombine.low %v861_v43, %v865_v45  ;;  %v9556_v2 = vcombine.high %v741_v52, %v745_v54 }
 0x43f   : > { %7872 = vmatpush1.bf16.msra.mxu1 %v9627_v12  ;;  %v873_v9 = vld [vmem:[%s11688_s4 + $0x778] sm:$0xff]  ;;  %v9547_v12 = vcombine.low %v733_v39, %v737_v40 }
 0x440   : > { %7873 = vmatprep.subr.bf16.mxu1 %v9636_v3  ;;  %v9684_v3 = vcombine.high %v869_v62, %v873_v9  ;;  %v897_v19 = vld [vmem:[%s11688_s4 + $0x838] sm:$0xff] }
 0x441   : > { %7833 = vmatpush1.bf16.msra.mxu0 %v9507_v7  ;;  %v9555_v7 = vcombine.low %v741_v52, %v745_v54  ;;  %v1021_v23 = vld [vmem:[%s11688_s4 + $0xc18] sm:$0xff] }
 0x442   : > { %7834 = vmatprep.subr.bf16.mxu0 %v9516_v8  ;;  %v9564_v8 = vcombine.high %v749_v59, %v753_v1  ;;  %v1025_v25 = vld [vmem:[%s11688_s4 + $0xc38] sm:$0xff] }
 0x443   : > { %7874 = vmatpush1.bf16.msra.mxu1 %v9635_v63  ;;  %v9683_v63 = vcombine.low %v869_v62, %v873_v9  ;;  %v901_v56 = vld [vmem:[%s11688_s4 + $0x858] sm:$0xff] }
 0x444   : > { %7875 = vmatprep.subr.bf16.mxu1 %v9644_v0  ;;  %v9692_v0 = vcombine.high %v877_v4, %v881_v5  ;;  %v905_v30 = vld [vmem:[%s11688_s4 + $0x878] sm:$0xff] }
 0x445   : > { %7835 = vmatpush1.bf16.msra.mxu0 %v9515_v41  ;;  %v9563_v41 = vcombine.low %v749_v59, %v753_v1  ;;  %v1029_v32 = vld [vmem:[%s11688_s4 + $0xc58] sm:$0xff] }
 0x446   : > { %7836 = vmatprep.subr.bf16.mxu0 %v9524_v15  ;;  %v9572_v15 = vcombine.high %v757_v11, %v761_v13  ;;  %v1033_v33 = vld [vmem:[%s11688_s4 + $0xc78] sm:$0xff] }
 0x447   : > { %7876 = vmatpush1.bf16.msra.mxu1 %v9643_v61  ;;  %v9691_v61 = vcombine.low %v877_v4, %v881_v5  ;;  %v909_v39 = vld [vmem:[%s11688_s4 + $0x898] sm:$0xff] }
 0x448   : > { %7877 = vmatprep.subr.bf16.mxu1 %v9652_v16  ;;  %v9700_v16 = vcombine.high %v885_v14, %v889_v60  ;;  %v913_v40 = vld [vmem:[%s11688_s4 + $0x8b8] sm:$0xff] }
 0x449   : > { %7837 = vmatpush1.bf16.msra.mxu0 %v9523_v26  ;;  %v9571_v26 = vcombine.low %v757_v11, %v761_v13  ;;  %v1037_v43 = vld [vmem:[%s11688_s4 + $0xc98] sm:$0xff] }
 0x44a   : > { %7838 = vmatprep.subr.bf16.mxu0 %v9532_v27  ;;  %v9708_v27 = vcombine.high %v893_v44, %v897_v19  ;;  %v1041_v45 = vld [vmem:[%s11688_s4 + $0xcb8] sm:$0xff] }
 0x44b   : > { %7878 = vmatpush1.bf16.msra.mxu1 %v9651_v55  ;;  %v9699_v55 = vcombine.low %v885_v14, %v889_v60  ;;  %v917_v52 = vld [vmem:[%s11688_s4 + $0x8d8] sm:$0xff]  ;;  %v9851_v9 = vcombine.low %v1037_v43, %v1041_v45 }
 0x44c   : > { %7879 = vmatprep.subr.bf16.mxu1 %v9660_v28  ;;  %v9836_v28 = vcombine.high %v1021_v23, %v1025_v25  ;;  %v921_v54 = vld [vmem:[%s11688_s4 + $0x8f8] sm:$0xff] }
 0x44d   : > { %7839 = vmatpush1.bf16.msra.mxu0 %v9531_v34  ;;  %v9707_v34 = vcombine.low %v893_v44, %v897_v19  ;;  %v1049_v62 = vld [vmem:[%s11688_s4 + $0xcf8] sm:$0xff]  ;;  %v9731_v1 = vcombine.low %v917_v52, %v921_v54 }
 0x44e   : > { %7840 = vmatprep.subr.bf16.mxu0 %v9540_v36  ;;  %v9716_v36 = vcombine.high %v901_v56, %v905_v30  ;;  %v1053_v59 = vld [vmem:[%s11688_s4 + $0xd18] sm:$0xff] }
 0x44f   : > { %7880 = vmatpush1.bf16.msra.mxu1 %v9659_v35  ;;  %v9835_v35 = vcombine.low %v1021_v23, %v1025_v25 }
 0x450   : > { %7881 = vmatprep.subr.bf16.mxu1 %v9668_v37  ;;  %v9844_v37 = vcombine.high %v1029_v32, %v1033_v33 }
 0x451   : > { %7841 = vmatpush1.bf16.msra.mxu0 %v9539_v46  ;;  %v9715_v46 = vcombine.low %v901_v56, %v905_v30 }
 0x452   : > { %7842 = vmatprep.subr.bf16.mxu0 %v9548_v47  ;;  %v9724_v47 = vcombine.high %v909_v39, %v913_v40 }
 0x453   : > { %7882 = vmatpush1.bf16.msra.mxu1 %v9667_v21  ;;  %v9843_v21 = vcombine.low %v1029_v32, %v1033_v33  ;;  %v1077_v32 = vld [vmem:[%s11688_s4 + $0xdd8] sm:$0xff] }
 0x454   : > { %7883 = vmatprep.subr.bf16.mxu1 %v9676_v50  ;;  %v9852_v50 = vcombine.high %v1037_v43, %v1041_v45  ;;  %v1081_v33 = vld [vmem:[%s11688_s4 + $0xdf8] sm:$0xff] }
 0x455   : > { %7843 = vmatpush1.bf16.msra.mxu0 %v9547_v12  ;;  %v9732_v12 = vcombine.high %v917_v52, %v921_v54  ;;  %v1085_v52 = vld [vmem:[%s11688_s4 + $0xe18] sm:$0xff] }
 0x456   : > { %7844 = vmatprep.subr.bf16.mxu0 %v9556_v2  ;;  %v925_v2 = vld [vmem:[%s11688_s4 + $0x918] sm:$0xff] }
 0x457   : > { %7884 = vmatpush1.bf16.msra.mxu1 %v9675_v57  ;;  %v1089_v54 = vld [vmem:[%s11688_s4 + $0xe38] sm:$0xff] }
 0x458   : > { %7885 = vmatprep.subr.bf16.mxu1 %v9684_v3  ;;  %v929_v3 = vld [vmem:[%s11688_s4 + $0x938] sm:$0xff] }
 0x459   : > { %7845 = vmatpush1.bf16.msra.mxu0 %v9555_v7  ;;  %v9740_v4 = vcombine.high %v925_v2, %v929_v3  ;;  %v933_v7 = vld [vmem:[%s11688_s4 + $0x958] sm:$0xff]  ;;  %v9739_v11 = vcombine.low %v925_v2, %v929_v3 }
 0x45a   : > { %7846 = vmatprep.subr.bf16.mxu0 %v9564_v8  ;;  %v1061_v8 = vld [vmem:[%s11688_s4 + $0xd58] sm:$0xff] }
 0x45b   : > { %7886 = vmatpush1.bf16.msra.mxu1 %v9683_v63  ;;  %v937_v63 = vld [vmem:[%s11688_s4 + $0x978] sm:$0xff] }
 0x45c   : > { %7887 = vmatprep.subr.bf16.mxu1 %v9692_v0  ;;  %v1065_v0 = vld [vmem:[%s11688_s4 + $0xd78] sm:$0xff]  ;;  %v9748_v14 = vcombine.high %v933_v7, %v937_v63  ;;  %v9747_v44 = vcombine.low %v933_v7, %v937_v63 }
 0x45d   : > { %7847 = vmatpush1.bf16.msra.mxu0 %v9563_v41  ;;  %v9876_v60 = vcombine.high %v1061_v8, %v1065_v0  ;;  %v941_v41 = vld [vmem:[%s11688_s4 + $0x998] sm:$0xff]  ;;  %v9875_v19 = vcombine.low %v1061_v8, %v1065_v0 }
 0x45e   : > { %7848 = vmatprep.subr.bf16.mxu0 %v9572_v15  ;;  %v1069_v15 = vld [vmem:[%s11688_s4 + $0xd98] sm:$0xff] }
 0x45f   : > { %7888 = vmatpush1.bf16.msra.mxu1 %v9691_v61  ;;  %v945_v61 = vld [vmem:[%s11688_s4 + $0x9b8] sm:$0xff] }
 0x460   : > { %7889 = vmatprep.subr.bf16.mxu1 %v9700_v16  ;;  %v1073_v16 = vld [vmem:[%s11688_s4 + $0xdb8] sm:$0xff]  ;;  %v9756_v23 = vcombine.high %v941_v41, %v945_v61 }
 0x461   : > { %7849 = vmatpush1.bf16.msra.mxu0 %v9571_v26  ;;  %v9884_v26 = vcombine.high %v1069_v15, %v1073_v16  ;;  %v1093_v2 = vld [vmem:[%s11688_s4 + $0xe58] sm:$0xff] }
 0x462   : > { %7900 = vmatprep.subr.bf16.mxu0 %v9708_v27  ;;  %v953_v27 = vld [vmem:[%s11688_s4 + $0x9f8] sm:$0xff] }
 0x463   : > { %7890 = vmatpush1.bf16.msra.mxu1 %v9699_v55  ;;  %v949_v55 = vld [vmem:[%s11688_s4 + $0x9d8] sm:$0xff] }
 0x464   : > { %7941 = vmatprep.subr.bf16.mxu1 %v9836_v28  ;;  %7851 = vmatmul.mubr.bf16.vlgmr.msra.gmra.mrb[48].mxu0 %v11800_v18  ;;  %v1045_v18 = vld [vmem:[%s11688_s4 + $0xcd8] sm:$0xff]  ;;  %v9764_v45 = vcombine.high %v949_v55, %v953_v27 }
 0x465   : > { %7901 = vmatpush1.bf16.msra.mxu0 %v9707_v34  ;;  %7932 = vmatprep.mubr.bf16.mxu0 %v11818_v29  ;;  %v9860_v57 = vcombine.high %v1045_v18, %v1049_v62  ;;  %v1057_v29 = vld [vmem:[%s11688_s4 + $0xd38] sm:$0xff] }
 0x466   : > { %7892 = vmatmul.mubr.bf16.vlgmr.msra.gmra.mrb[48].mxu1 %v11809_v22  ;;  %7902 = vmatprep.subr.bf16.mxu0 %v9716_v36  ;;  %v9723_v22 = vcombine.low %v909_v39, %v913_v40  ;;  %v9868_v5 = vcombine.high %v1053_v59, %v1057_v29  ;;  %v9867_v13 = vcombine.low %v1053_v59, %v1057_v29  ;;  %v1097_v3 = vld [vmem:[%s11688_s4 + $0xe78] sm:$0xff] }
 0x467   : > { %7942 = vmatpush1.bf16.msra.mxu1 %v9835_v35  ;;  %7973 = vmatprep.mubr.bf16.mxu1 %v11825_v31  ;;  %v9859_v31 = vcombine.low %v1045_v18, %v1049_v62  ;;  %v9763_v18 = vcombine.low %v949_v55, %v953_v27  ;;  %v9891_v62 = vcombine.low %v1077_v32, %v1081_v33  ;;  %v1101_v7 = vld [vmem:[%s11688_s4 + $0xe98] sm:$0xff] }
 0x468   : > { %7943 = vmatprep.subr.bf16.mxu1 %v9844_v37  ;;  %v9755_v37 = vcombine.low %v941_v41, %v945_v61  ;;  %v9899_v29 = vcombine.low %v1085_v52, %v1089_v54  ;;  %v1105_v63 = vld [vmem:[%s11688_s4 + $0xeb8] sm:$0xff]  ;;  %v9907_v0 = vcombine.low %v1093_v2, %v1097_v3 }
 0x469   : > { %7903 = vmatpush1.bf16.msra.mxu0 %v9715_v46  ;;  %v1109_v41 = vld [vmem:[%s11688_s4 + $0xed8] sm:$0xff] }
 0x46a   : > { %7904 = vmatprep.subr.bf16.mxu0 %v9724_v47  ;;  %v957_v47 = vld [vmem:[%s11688_s4 + $0xa18] sm:$0xff] }
 0x46b   : > { %7944 = vmatpush1.bf16.msra.mxu1 %v9843_v21  ;;  %v9892_v21 = vcombine.high %v1077_v32, %v1081_v33  ;;  %v1113_v61 = vld [vmem:[%s11688_s4 + $0xef8] sm:$0xff] }
 0x46c   : > { %7945 = vmatprep.subr.bf16.mxu1 %v9852_v50  ;;  %v961_v50 = vld [vmem:[%s11688_s4 + $0xa38] sm:$0xff] }
 0x46d   : > { %7905 = vmatpush1.bf16.msra.mxu0 %v9723_v22  ;;  %v9772_v22 = vcombine.high %v957_v47, %v961_v50  ;;  %v9771_v59 = vcombine.low %v957_v47, %v961_v50  ;;  %v1121_v55 = vld [vmem:[%s11688_s4 + $0xf38] sm:$0xff] }
 0x46e   : > { %7906 = vmatprep.subr.bf16.mxu0 %v9732_v12  ;;  %v965_v12 = vld [vmem:[%s11688_s4 + $0xa58] sm:$0xff] }
 0x46f   : > { %7946 = vmatpush1.bf16.msra.mxu1 %v9851_v9  ;;  %v9900_v9 = vcombine.high %v1085_v52, %v1089_v54  ;;  %v997_v32 = vld [vmem:[%s11688_s4 + $0xb58] sm:$0xff] }
 0x470   : > { %7947 = vmatprep.subr.bf16.mxu1 %v9860_v57  ;;  %v969_v57 = vld [vmem:[%s11688_s4 + $0xa78] sm:$0xff] }
 0x471   : > { %7907 = vmatpush1.bf16.msra.mxu0 %v9731_v1  ;;  %v9780_v1 = vcombine.high %v965_v12, %v969_v57  ;;  %v9779_v8 = vcombine.low %v965_v12, %v969_v57  ;;  %v1001_v33 = vld [vmem:[%s11688_s4 + $0xb78] sm:$0xff] }
 0x472   : > { %7908 = vmatprep.subr.bf16.mxu0 %v9740_v4  ;;  %v973_v4 = vld [vmem:[%s11688_s4 + $0xa98] sm:$0xff]  ;;  %v9811_v47 = vcombine.low %v997_v32, %v1001_v33 }
 0x473   : > { %7948 = vmatpush1.bf16.msra.mxu1 %v9859_v31  ;;  %v9908_v31 = vcombine.high %v1093_v2, %v1097_v3 }
 0x474   : > { %7949 = vmatprep.subr.bf16.mxu1 %v9868_v5  ;;  %v977_v5 = vld [vmem:[%s11688_s4 + $0xab8] sm:$0xff] }
 0x475   : > { %7909 = vmatpush1.bf16.msra.mxu0 %v9739_v11  ;;  %v9788_v11 = vcombine.high %v973_v4, %v977_v5 }
 0x476   : > { %7910 = vmatprep.subr.bf16.mxu0 %v9748_v14  ;;  %v981_v14 = vld [vmem:[%s11688_s4 + $0xad8] sm:$0xff] }
 0x477   : > { %7950 = vmatpush1.bf16.msra.mxu1 %v9867_v13  ;;  %v7606_v25 = vpop.f32.mrb[36].mxu0  ;;  %v9916_v13 = vcombine.high %v1101_v7, %v1105_v63 }
 0x478   : > { %7951 = vmatprep.subr.bf16.mxu1 %v9876_v60  ;;  %v7607_v28 = vadd.f32 %v7606_v25, %v12686_v48  ;;  %v7608_v30 = vpop.f32.mrb[37].mxu0  ;;  %v9883_v48 = vcombine.low %v1069_v15, %v1073_v16  ;;  %v985_v60 = vld [vmem:[%s11688_s4 + $0xaf8] sm:$0xff]  ;;  %v9787_v15 = vcombine.low %v973_v4, %v977_v5  ;;  %v9915_v16 = vcombine.low %v1101_v7, %v1105_v63 }
 0x479   : > { %v7647_v56 = vpop.f32.mrb[36].mxu1  ;;  %v7609_v34 = vadd.f32 %v7608_v30, %v12688_v58  ;;  %v7610_v36 = vpop.f32.mrb[38].mxu0  ;;  %7911 = vmatpush1.bf16.msra.mxu0 %v9747_v44  ;;  %v9796_v44 = vcombine.high %v981_v14, %v985_v60  ;;  %v993_v25 = vld [vmem:[%s11688_s4 + $0xb38] sm:$0xff]  ;;  %v9795_v27 = vcombine.low %v981_v14, %v985_v60 }
 0x47a   : > { %v7649_v35 = vpop.f32.mrb[37].mxu1  ;;  %v12760_v39 = vadd.f32 %v7647_v56, %v7607_v28  ;;  %v7611_v43 = vpop.f32.mrb[39].mxu0  ;;  %7912 = vmatprep.subr.bf16.mxu0 %v9756_v23  ;;  %v989_v23 = vld [vmem:[%s11688_s4 + $0xb18] sm:$0xff]  ;;  %v9923_v28 = vcombine.low %v1109_v41, %v1113_v61 }
 0x47b   : > { %v7651_v40 = vpop.f32.mrb[38].mxu1  ;;  %7952 = vmatpush1.bf16.msra.mxu1 %v9875_v19  ;;  %v12762_v46 = vadd.f32 %v7649_v35, %v7609_v34  ;;  %v9924_v19 = vcombine.high %v1109_v41, %v1113_v61  ;;  %v9804_v56 = vcombine.high %v989_v23, %v993_v25  ;;  %v1125_v34 = vld [vmem:[%s11688_s4 + $0xf58] sm:$0xff]  ;;  %v9803_v36 = vcombine.low %v989_v23, %v993_v25 }
 0x47c   : > { %v7652_v58 = vpop.f32.mrb[39].mxu1  ;;  %7953 = vmatprep.subr.bf16.mxu1 %v9884_v26  ;;  %v1117_v26 = vld [vmem:[%s11688_s4 + $0xf18] sm:$0xff]  ;;  %v9812_v40 = vcombine.high %v997_v32, %v1001_v33 }
 0x47d   : > { %7913 = vmatpush1.bf16.msra.mxu0 %v9755_v37  ;;  %v9932_v30 = vcombine.high %v1117_v26, %v1121_v55  ;;  %v1129_v35 = vld [vmem:[%s11688_s4 + $0xf78] sm:$0xff]  ;;  %v9931_v37 = vcombine.low %v1117_v26, %v1121_v55 }
 0x47e   : > { %7914 = vmatprep.subr.bf16.mxu0 %v9764_v45  ;;  %v9940_v43 = vcombine.high %v1125_v34, %v1129_v35  ;;  %v1009_v45 = vld [vmem:[%s11688_s4 + $0xbb8] sm:$0xff]  ;;  %v9939_v50 = vcombine.low %v1125_v34, %v1129_v35 }
 0x47f   : > { %7954 = vmatpush1.bf16.msra.mxu1 %v9883_v48  ;;  %v1005_v48 = vld [vmem:[%s11688_s4 + $0xb98] sm:$0xff] }
 0x480   : > { %7955 = vmatprep.subr.bf16.mxu1 %v9892_v21  ;;  %v1133_v58 = vld [vmem:[%s11688_s4 + $0xf98] sm:$0xff]  ;;  %v9820_v52 = vcombine.high %v1005_v48, %v1009_v45  ;;  %v9819_v12 = vcombine.low %v1005_v48, %v1009_v45 }
 0x481   : > { %7915 = vmatpush1.bf16.msra.mxu0 %v9763_v18  ;;  %v1137_v21 = vld [vmem:[%s11688_s4 + $0xfb8] sm:$0xff] }
 0x482   : > { %7916 = vmatprep.subr.bf16.mxu0 %v9772_v22  ;;  %v9948_v54 = vcombine.high %v1133_v58, %v1137_v21  ;;  %v1013_v18 = vld [vmem:[%s11688_s4 + $0xbd8] sm:$0xff]  ;;  %v9947_v57 = vcombine.low %v1133_v58, %v1137_v21 }
 0x483   : > { %7956 = vmatpush1.bf16.msra.mxu1 %v9891_v62  ;;  %v1017_v62 = vld [vmem:[%s11688_s4 + $0xbf8] sm:$0xff] }
 0x484   : > { %7957 = vmatprep.subr.bf16.mxu1 %v9900_v9  ;;  %v1141_v22 = vld [vmem:[%s11688_s4 + $0xfd8] sm:$0xff]  ;;  %v9828_v2 = vcombine.high %v1013_v18, %v1017_v62  ;;  %v9827_v4 = vcombine.low %v1013_v18, %v1017_v62 }
 0x485   : > { %7917 = vmatpush1.bf16.msra.mxu0 %v9771_v59  ;;  %v1145_v9 = vld [vmem:[%s11688_s4 + $0xff8] sm:$0xff] }
 0x486   : > { %7918 = vmatprep.subr.bf16.mxu0 %v9780_v1  ;;  %v9956_v3 = vcombine.high %v1141_v22, %v1145_v9  ;;  %v1149_v59 = vld [vmem:[%s11688_s4 + $0x1018] sm:$0xff]  ;;  %v9955_v5 = vcombine.low %v1141_v22, %v1145_v9 }
 0x487   : > { %7958 = vmatpush1.bf16.msra.mxu1 %v9899_v29  ;;  %v1153_v29 = vld [vmem:[%s11688_s4 + $0x1038] sm:$0xff] }
 0x488   : > { %7959 = vmatprep.subr.bf16.mxu1 %v9908_v31  ;;  %v1277_v1 = vld [vmem:[%s11688_s4 + $0x1418] sm:$0xff]  ;;  %v9964_v7 = vcombine.high %v1149_v59, %v1153_v29  ;;  %v9963_v14 = vcombine.low %v1149_v59, %v1153_v29 }
 0x489   : > { %7919 = vmatpush1.bf16.msra.mxu0 %v9779_v8  ;;  %v1281_v31 = vld [vmem:[%s11688_s4 + $0x1438] sm:$0xff] }
 0x48a   : > { %7920 = vmatprep.subr.bf16.mxu0 %v9788_v11  ;;  %v10092_v63 = vcombine.high %v1277_v1, %v1281_v31  ;;  %v1157_v8 = vld [vmem:[%s11688_s4 + $0x1058] sm:$0xff]  ;;  %v10091_v60 = vcombine.low %v1277_v1, %v1281_v31 }
 0x48b   : > { %7960 = vmatpush1.bf16.msra.mxu1 %v9907_v0  ;;  %v1161_v0 = vld [vmem:[%s11688_s4 + $0x1078] sm:$0xff] }
 0x48c   : > { %7961 = vmatprep.subr.bf16.mxu1 %v9916_v13  ;;  %v1285_v11 = vld [vmem:[%s11688_s4 + $0x1458] sm:$0xff]  ;;  %v9972_v41 = vcombine.high %v1157_v8, %v1161_v0  ;;  %v9971_v23 = vcombine.low %v1157_v8, %v1161_v0 }
 0x48d   : > { %7921 = vmatpush1.bf16.msra.mxu0 %v9787_v15  ;;  %v1289_v13 = vld [vmem:[%s11688_s4 + $0x1478] sm:$0xff] }
 0x48e   : > { %7922 = vmatprep.subr.bf16.mxu0 %v9796_v44  ;;  %v10100_v61 = vcombine.high %v1285_v11, %v1289_v13  ;;  %v1165_v15 = vld [vmem:[%s11688_s4 + $0x1098] sm:$0xff]  ;;  %v10099_v25 = vcombine.low %v1285_v11, %v1289_v13 }
 0x48f   : > { %7962 = vmatpush1.bf16.msra.mxu1 %v9915_v16  ;;  %v1169_v16 = vld [vmem:[%s11688_s4 + $0x10b8] sm:$0xff] }
 0x490   : > { %7963 = vmatprep.subr.bf16.mxu1 %v9924_v19  ;;  %v1293_v44 = vld [vmem:[%s11688_s4 + $0x1498] sm:$0xff]  ;;  %v9980_v26 = vcombine.high %v1165_v15, %v1169_v16 }
 0x491   : > { %7923 = vmatpush1.bf16.msra.mxu0 %v9795_v27  ;;  %v1297_v19 = vld [vmem:[%s11688_s4 + $0x14b8] sm:$0xff] }
 0x492   : > { %7924 = vmatprep.subr.bf16.mxu0 %v9804_v56  ;;  %v10108_v55 = vcombine.high %v1293_v44, %v1297_v19  ;;  %v1173_v27 = vld [vmem:[%s11688_s4 + $0x10d8] sm:$0xff] }
 0x493   : > { %7964 = vmatpush1.bf16.msra.mxu1 %v9923_v28  ;;  %v1177_v28 = vld [vmem:[%s11688_s4 + $0x10f8] sm:$0xff] }
 0x494   : > { %7965 = vmatprep.subr.bf16.mxu1 %v9932_v30  ;;  %v1305_v56 = vld [vmem:[%s11688_s4 + $0x14f8] sm:$0xff]  ;;  %v10107_v30 = vcombine.low %v1293_v44, %v1297_v19  ;;  %v9988_v32 = vcombine.high %v1173_v27, %v1177_v28 }
 0x495   : > { %7925 = vmatpush1.bf16.msra.mxu0 %v9803_v36  ;;  %v1181_v34 = vld [vmem:[%s11688_s4 + $0x1118] sm:$0xff] }
 0x496   : > { %7926 = vmatprep.subr.bf16.mxu0 %v9812_v40  ;;  %v1185_v35 = vld [vmem:[%s11688_s4 + $0x1138] sm:$0xff] }
 0x497   : > { %7966 = vmatpush1.bf16.msra.mxu1 %v9931_v37  ;;  %v1309_v36 = vld [vmem:[%s11688_s4 + $0x1518] sm:$0xff]  ;;  %v9987_v37 = vcombine.low %v1173_v27, %v1177_v28  ;;  %v9996_v40 = vcombine.high %v1181_v34, %v1185_v35 }
 0x498   : > { %7967 = vmatprep.subr.bf16.mxu1 %v9940_v43  ;;  %v1189_v48 = vld [vmem:[%s11688_s4 + $0x1158] sm:$0xff] }
 0x499   : > { %7927 = vmatpush1.bf16.msra.mxu0 %v9811_v47  ;;  %v1193_v45 = vld [vmem:[%s11688_s4 + $0x1178] sm:$0xff]  ;;  %v9995_v47 = vcombine.low %v1181_v34, %v1185_v35 }
 0x49a   : > { %7928 = vmatprep.subr.bf16.mxu0 %v9820_v52  ;;  %v1317_v58 = vld [vmem:[%s11688_s4 + $0x1558] sm:$0xff]  ;;  %v10004_v52 = vcombine.high %v1189_v48, %v1193_v45 }
 0x49b   : > { %7968 = vmatpush1.bf16.msra.mxu1 %v9939_v50  ;;  %v1321_v21 = vld [vmem:[%s11688_s4 + $0x1578] sm:$0xff] }
 0x49c   : > { %7969 = vmatprep.subr.bf16.mxu1 %v9948_v54  ;;  %v10132_v54 = vcombine.high %v1317_v58, %v1321_v21  ;;  %v1197_v18 = vld [vmem:[%s11688_s4 + $0x1198] sm:$0xff] }
 0x49d   : > { %7929 = vmatpush1.bf16.msra.mxu0 %v9819_v12  ;;  %v1201_v62 = vld [vmem:[%s11688_s4 + $0x11b8] sm:$0xff]  ;;  %v10003_v12 = vcombine.low %v1189_v48, %v1193_v45 }
 0x49e   : > { %7930 = vmatprep.subr.bf16.mxu0 %v9828_v2  ;;  %v1325_v22 = vld [vmem:[%s11688_s4 + $0x1598] sm:$0xff]  ;;  %v10012_v2 = vcombine.high %v1197_v18, %v1201_v62  ;;  %v10011_v13 = vcombine.low %v1197_v18, %v1201_v62 }
 0x49f   : > { %7970 = vmatpush1.bf16.msra.mxu1 %v9947_v57  ;;  %v1329_v9 = vld [vmem:[%s11688_s4 + $0x15b8] sm:$0xff]  ;;  %v10131_v57 = vcombine.low %v1317_v58, %v1321_v21 }
 0x4a0   : > { %7971 = vmatprep.subr.bf16.mxu1 %v9956_v3  ;;  %v10140_v59 = vcombine.high %v1325_v22, %v1329_v9  ;;  %v1205_v29 = vld [vmem:[%s11688_s4 + $0x11d8] sm:$0xff] }
 0x4a1   : > { %7931 = vmatpush1.bf16.msra.mxu0 %v9827_v4  ;;  %v1209_v1 = vld [vmem:[%s11688_s4 + $0x11f8] sm:$0xff] }
 0x4a2   : > { %7982 = vmatprep.subr.bf16.mxu0 %v9964_v7  ;;  %v1333_v7 = vld [vmem:[%s11688_s4 + $0x15d8] sm:$0xff] }
 0x4a3   : > { %7972 = vmatpush1.bf16.msra.mxu1 %v9955_v5  ;;  %v1213_v44 = vld [vmem:[%s11688_s4 + $0x1218] sm:$0xff] }
 0x4a4   : > { %8023 = vmatprep.subr.bf16.mxu1 %v10092_v63  ;;  %7933 = vmatmul.mubr.bf16.vlgmr.msra.gmra.mrb[52].mxu0 %v11890_v38  ;;  %v1301_v38 = vld [vmem:[%s11688_s4 + $0x14d8] sm:$0xff] }
 0x4a5   : > { %7983 = vmatpush1.bf16.msra.mxu0 %v9963_v14  ;;  %8014 = vmatprep.mubr.bf16.mxu0 %v11908_v49  ;;  %v10116_v33 = vcombine.high %v1301_v38, %v1305_v56  ;;  %v1313_v49 = vld [vmem:[%s11688_s4 + $0x1538] sm:$0xff] }
 0x4a6   : > { %7974 = vmatmul.mubr.bf16.vlgmr.msra.gmra.mrb[52].mxu1 %v11899_v42  ;;  %7984 = vmatprep.subr.bf16.mxu0 %v9972_v41  ;;  %v9979_v42 = vcombine.low %v1165_v15, %v1169_v16  ;;  %v10124_v43 = vcombine.high %v1309_v36, %v1313_v49  ;;  %v10123_v50 = vcombine.low %v1309_v36, %v1313_v49  ;;  %v1337_v63 = vld [vmem:[%s11688_s4 + $0x15f8] sm:$0xff] }
 0x4a7   : > { %8024 = vmatpush1.bf16.msra.mxu1 %v10091_v60  ;;  %8055 = vmatprep.mubr.bf16.mxu1 %v11915_v51  ;;  %v10115_v51 = vcombine.low %v1301_v38, %v1305_v56  ;;  %v10148_v16 = vcombine.high %v1333_v7, %v1337_v63  ;;  %v1217_v19 = vld [vmem:[%s11688_s4 + $0x1238] sm:$0xff] }
 0x4a8   : > { %8025 = vmatprep.subr.bf16.mxu1 %v10100_v61  ;;  %v10020_v61 = vcombine.high %v1205_v29, %v1209_v1  ;;  %v10028_v27 = vcombine.high %v1213_v44, %v1217_v19  ;;  %v1221_v38 = vld [vmem:[%s11688_s4 + $0x1258] sm:$0xff] }
 0x4a9   : > { %7985 = vmatpush1.bf16.msra.mxu0 %v9971_v23  ;;  %v1341_v23 = vld [vmem:[%s11688_s4 + $0x1618] sm:$0xff] }
 0x4aa   : > { %7986 = vmatprep.subr.bf16.mxu0 %v9980_v26  ;;  %v10019_v26 = vcombine.low %v1205_v29, %v1209_v1  ;;  %v1225_v56 = vld [vmem:[%s11688_s4 + $0x1278] sm:$0xff] }
 0x4ab   : > { %8026 = vmatpush1.bf16.msra.mxu1 %v10099_v25  ;;  %v1345_v25 = vld [vmem:[%s11688_s4 + $0x1638] sm:$0xff]  ;;  %v10036_v34 = vcombine.high %v1221_v38, %v1225_v56 }
 0x4ac   : > { %8027 = vmatprep.subr.bf16.mxu1 %v10108_v55  ;;  %v10147_v55 = vcombine.low %v1333_v7, %v1337_v63  ;;  %v10156_v28 = vcombine.high %v1341_v23, %v1345_v25  ;;  %v1229_v36 = vld [vmem:[%s11688_s4 + $0x1298] sm:$0xff] }
 0x4ad   : > { %7987 = vmatpush1.bf16.msra.mxu0 %v9979_v42  ;;  %v1349_v42 = vld [vmem:[%s11688_s4 + $0x1658] sm:$0xff] }
 0x4ae   : > { %7988 = vmatprep.subr.bf16.mxu0 %v9988_v32  ;;  %v10027_v32 = vcombine.low %v1213_v44, %v1217_v19  ;;  %v1233_v49 = vld [vmem:[%s11688_s4 + $0x12b8] sm:$0xff] }
 0x4af   : > { %8028 = vmatpush1.bf16.msra.mxu1 %v10107_v30  ;;  %v1353_v30 = vld [vmem:[%s11688_s4 + $0x1678] sm:$0xff]  ;;  %v10044_v48 = vcombine.high %v1229_v36, %v1233_v49 }
 0x4b0   : > { %8029 = vmatprep.subr.bf16.mxu1 %v10116_v33  ;;  %v10155_v33 = vcombine.low %v1341_v23, %v1345_v25  ;;  %v10164_v35 = vcombine.high %v1349_v42, %v1353_v30  ;;  %v1237_v58 = vld [vmem:[%s11688_s4 + $0x12d8] sm:$0xff] }
 0x4b1   : > { %7989 = vmatpush1.bf16.msra.mxu0 %v9987_v37  ;;  %v1357_v37 = vld [vmem:[%s11688_s4 + $0x1698] sm:$0xff] }
 0x4b2   : > { %7990 = vmatprep.subr.bf16.mxu0 %v9996_v40  ;;  %v10035_v40 = vcombine.low %v1221_v38, %v1225_v56  ;;  %v1241_v21 = vld [vmem:[%s11688_s4 + $0x12f8] sm:$0xff] }
 0x4b3   : > { %8030 = vmatpush1.bf16.msra.mxu1 %v10115_v51  ;;  %v1361_v51 = vld [vmem:[%s11688_s4 + $0x16b8] sm:$0xff]  ;;  %v10052_v18 = vcombine.high %v1237_v58, %v1241_v21 }
 0x4b4   : > { %8031 = vmatprep.subr.bf16.mxu1 %v10124_v43  ;;  %v10163_v43 = vcombine.low %v1349_v42, %v1353_v30  ;;  %v10172_v45 = vcombine.high %v1357_v37, %v1361_v51  ;;  %v1253_v1 = vld [vmem:[%s11688_s4 + $0x1358] sm:$0xff] }
 0x4b5   : > { %7991 = vmatpush1.bf16.msra.mxu0 %v9995_v47  ;;  %v1365_v47 = vld [vmem:[%s11688_s4 + $0x16d8] sm:$0xff] }
 0x4b6   : > { %7992 = vmatprep.subr.bf16.mxu0 %v10004_v52  ;;  %v10043_v52 = vcombine.low %v1229_v36, %v1233_v49  ;;  %v1269_v44 = vld [vmem:[%s11688_s4 + $0x13d8] sm:$0xff] }
 0x4b7   : > { %8032 = vmatpush1.bf16.msra.mxu1 %v10123_v50  ;;  %v7688_v3 = vpop.f32.mrb[40].mxu0  ;;  %v1369_v50 = vld [vmem:[%s11688_s4 + $0x16f8] sm:$0xff] }
 0x4b8   : > { %8033 = vmatprep.subr.bf16.mxu1 %v10132_v54  ;;  %v7689_v31 = vadd.f32 %v7688_v3, %v12760_v39  ;;  %v7690_v5 = vpop.f32.mrb[41].mxu0  ;;  %v10139_v39 = vcombine.low %v1325_v22, %v1329_v9  ;;  %v10171_v54 = vcombine.low %v1357_v37, %v1361_v51  ;;  %v10180_v62 = vcombine.high %v1365_v47, %v1369_v50  ;;  %v1245_v22 = vld [vmem:[%s11688_s4 + $0x1318] sm:$0xff] }
 0x4b9   : > { %v7729_v4 = vpop.f32.mrb[40].mxu1  ;;  %v7691_v8 = vadd.f32 %v7690_v5, %v12762_v46  ;;  %v7692_v11 = vpop.f32.mrb[42].mxu0  ;;  %7993 = vmatpush1.bf16.msra.mxu0 %v10003_v12  ;;  %v1249_v9 = vld [vmem:[%s11688_s4 + $0x1338] sm:$0xff]  ;;  %v10179_v3 = vcombine.low %v1365_v47, %v1369_v50 }
 0x4ba   : > { %v7731_v0 = vpop.f32.mrb[41].mxu1  ;;  %v12834_v14 = vadd.f32 %v7729_v4, %v7689_v31  ;;  %v7693_v41 = vpop.f32.mrb[43].mxu0  ;;  %7994 = vmatprep.subr.bf16.mxu0 %v10012_v2  ;;  %v1373_v12 = vld [vmem:[%s11688_s4 + $0x1718] sm:$0xff]  ;;  %v10051_v2 = vcombine.low %v1237_v58, %v1241_v21  ;;  %v10059_v7 = vcombine.low %v1245_v22, %v1249_v9 }
 0x4bb   : > { %v7733_v60 = vpop.f32.mrb[42].mxu1  ;;  %8034 = vmatpush1.bf16.msra.mxu1 %v10131_v57  ;;  %v12836_v15 = vadd.f32 %v7731_v0, %v7691_v8  ;;  %v1377_v57 = vld [vmem:[%s11688_s4 + $0x1738] sm:$0xff] }
 0x4bc   : > { %v7734_v46 = vpop.f32.mrb[43].mxu1  ;;  %8035 = vmatprep.subr.bf16.mxu1 %v10140_v59  ;;  %v10060_v59 = vcombine.high %v1245_v22, %v1249_v9  ;;  %v10188_v29 = vcombine.high %v1373_v12, %v1377_v57  ;;  %v1257_v31 = vld [vmem:[%s11688_s4 + $0x1378] sm:$0xff]  ;;  %v10187_v63 = vcombine.low %v1373_v12, %v1377_v57 }
 0x4bd   : > { %7995 = vmatpush1.bf16.msra.mxu0 %v10011_v13  ;;  %v1381_v4 = vld [vmem:[%s11688_s4 + $0x1758] sm:$0xff]  ;;  %v10068_v8 = vcombine.high %v1253_v1, %v1257_v31 }
 0x4be   : > { %7996 = vmatprep.subr.bf16.mxu0 %v10020_v61  ;;  %v1385_v5 = vld [vmem:[%s11688_s4 + $0x1778] sm:$0xff] }
 0x4bf   : > { %8036 = vmatpush1.bf16.msra.mxu1 %v10139_v39  ;;  %v10196_v0 = vcombine.high %v1381_v4, %v1385_v5  ;;  %v1261_v11 = vld [vmem:[%s11688_s4 + $0x1398] sm:$0xff]  ;;  %v10067_v39 = vcombine.low %v1253_v1, %v1257_v31  ;;  %v10195_v61 = vcombine.low %v1381_v4, %v1385_v5 }
 0x4c0   : > { %8037 = vmatprep.subr.bf16.mxu1 %v10148_v16  ;;  %v1265_v13 = vld [vmem:[%s11688_s4 + $0x13b8] sm:$0xff] }
 0x4c1   : > { %7997 = vmatpush1.bf16.msra.mxu0 %v10019_v26  ;;  %v1389_v60 = vld [vmem:[%s11688_s4 + $0x1798] sm:$0xff]  ;;  %v10076_v46 = vcombine.high %v1261_v11, %v1265_v13  ;;  %v10075_v26 = vcombine.low %v1261_v11, %v1265_v13 }
 0x4c2   : > { %7998 = vmatprep.subr.bf16.mxu0 %v10028_v27  ;;  %v1393_v41 = vld [vmem:[%s11688_s4 + $0x17b8] sm:$0xff] }
 0x4c3   : > { %8038 = vmatpush1.bf16.msra.mxu1 %v10147_v55  ;;  %v10204_v16 = vcombine.high %v1389_v60, %v1393_v41  ;;  %v1273_v19 = vld [vmem:[%s11688_s4 + $0x13f8] sm:$0xff]  ;;  %v10203_v55 = vcombine.low %v1389_v60, %v1393_v41 }
 0x4c4   : > { %8039 = vmatprep.subr.bf16.mxu1 %v10156_v28  ;;  %v1397_v23 = vld [vmem:[%s11688_s4 + $0x17d8] sm:$0xff]  ;;  %v10084_v27 = vcombine.high %v1269_v44, %v1273_v19 }
 0x4c5   : > { %7999 = vmatpush1.bf16.msra.mxu0 %v10027_v32  ;;  %v1401_v25 = vld [vmem:[%s11688_s4 + $0x17f8] sm:$0xff]  ;;  %v10083_v32 = vcombine.low %v1269_v44, %v1273_v19 }
 0x4c6   : > { %8000 = vmatprep.subr.bf16.mxu0 %v10036_v34  ;;  %v10212_v28 = vcombine.high %v1397_v23, %v1401_v25  ;;  %v1405_v38 = vld [vmem:[%s11688_s4 + $0x1818] sm:$0xff] }
 0x4c7   : > { %8040 = vmatpush1.bf16.msra.mxu1 %v10155_v33  ;;  %v1409_v56 = vld [vmem:[%s11688_s4 + $0x1838] sm:$0xff]  ;;  %v10211_v33 = vcombine.low %v1397_v23, %v1401_v25 }
 0x4c8   : > { %8041 = vmatprep.subr.bf16.mxu1 %v10164_v35  ;;  %v1533_v42 = vld [vmem:[%s11688_s4 + $0x1c18] sm:$0xff]  ;;  %v10220_v34 = vcombine.high %v1405_v38, %v1409_v56 }
 0x4c9   : > { %8001 = vmatpush1.bf16.msra.mxu0 %v10035_v40  ;;  %v1537_v30 = vld [vmem:[%s11688_s4 + $0x1c38] sm:$0xff]  ;;  %v10219_v40 = vcombine.low %v1405_v38, %v1409_v56 }
 0x4ca   : > { %8002 = vmatprep.subr.bf16.mxu0 %v10044_v48  ;;  %v10348_v35 = vcombine.high %v1533_v42, %v1537_v30  ;;  %v1413_v36 = vld [vmem:[%s11688_s4 + $0x1858] sm:$0xff] }
 0x4cb   : > { %8042 = vmatpush1.bf16.msra.mxu1 %v10163_v43  ;;  %v1417_v49 = vld [vmem:[%s11688_s4 + $0x1878] sm:$0xff]  ;;  %v10347_v43 = vcombine.low %v1533_v42, %v1537_v30 }
 0x4cc   : > { %8043 = vmatprep.subr.bf16.mxu1 %v10172_v45  ;;  %v1541_v37 = vld [vmem:[%s11688_s4 + $0x1c58] sm:$0xff]  ;;  %v10228_v48 = vcombine.high %v1413_v36, %v1417_v49 }
 0x4cd   : > { %8003 = vmatpush1.bf16.msra.mxu0 %v10043_v52  ;;  %v1545_v51 = vld [vmem:[%s11688_s4 + $0x1c78] sm:$0xff]  ;;  %v10227_v52 = vcombine.low %v1413_v36, %v1417_v49 }
 0x4ce   : > { %8004 = vmatprep.subr.bf16.mxu0 %v10052_v18  ;;  %v10356_v45 = vcombine.high %v1541_v37, %v1545_v51  ;;  %v1421_v58 = vld [vmem:[%s11688_s4 + $0x1898] sm:$0xff] }
 0x4cf   : > { %8044 = vmatpush1.bf16.msra.mxu1 %v10171_v54  ;;  %v1425_v21 = vld [vmem:[%s11688_s4 + $0x18b8] sm:$0xff]  ;;  %v10355_v54 = vcombine.low %v1541_v37, %v1545_v51  ;;  %v623_v37 = vld [vmem:[#allocation2 + $0x28] sm:$0xff] }
 0x4d0   : > { %8045 = vmatprep.subr.bf16.mxu1 %v10180_v62  ;;  %v1549_v47 = vld [vmem:[%s11688_s4 + $0x1c98] sm:$0xff]  ;;  %v10236_v18 = vcombine.high %v1421_v58, %v1425_v21 }
 0x4d1   : > { %8005 = vmatpush1.bf16.msra.mxu0 %v10051_v2  ;;  %v1553_v50 = vld [vmem:[%s11688_s4 + $0x1cb8] sm:$0xff] }
 0x4d2   : > { %8006 = vmatprep.subr.bf16.mxu0 %v10060_v59  ;;  %v10364_v62 = vcombine.high %v1549_v47, %v1553_v50  ;;  %v1429_v22 = vld [vmem:[%s11688_s4 + $0x18d8] sm:$0xff]  ;;  %v10363_v57 = vcombine.low %v1549_v47, %v1553_v50 }
 0x4d3   : > { %8046 = vmatpush1.bf16.msra.mxu1 %v10179_v3  ;;  %v1433_v9 = vld [vmem:[%s11688_s4 + $0x18f8] sm:$0xff] }
 0x4d4   : > { %8047 = vmatprep.subr.bf16.mxu1 %v10188_v29  ;;  %v1561_v12 = vld [vmem:[%s11688_s4 + $0x1cf8] sm:$0xff]  ;;  %v10244_v2 = vcombine.high %v1429_v22, %v1433_v9  ;;  %v10243_v31 = vcombine.low %v1429_v22, %v1433_v9 }
 0x4d5   : > { %8007 = vmatpush1.bf16.msra.mxu0 %v10059_v7  ;;  %v1437_v59 = vld [vmem:[%s11688_s4 + $0x1918] sm:$0xff] }
 0x4d6   : > { %8008 = vmatprep.subr.bf16.mxu0 %v10068_v8  ;;  %v1441_v29 = vld [vmem:[%s11688_s4 + $0x1938] sm:$0xff] }
 0x4d7   : > { %8048 = vmatpush1.bf16.msra.mxu1 %v10187_v63  ;;  %v1565_v1 = vld [vmem:[%s11688_s4 + $0x1d18] sm:$0xff]  ;;  %v10252_v4 = vcombine.high %v1437_v59, %v1441_v29  ;;  %v10251_v11 = vcombine.low %v1437_v59, %v1441_v29 }
 0x4d8   : > { %8049 = vmatprep.subr.bf16.mxu1 %v10196_v0  ;;  %v1445_v7 = vld [vmem:[%s11688_s4 + $0x1958] sm:$0xff] }
 0x4d9   : > { %8009 = vmatpush1.bf16.msra.mxu0 %v10067_v39  ;;  %v1449_v63 = vld [vmem:[%s11688_s4 + $0x1978] sm:$0xff] }
 0x4da   : > { %8010 = vmatprep.subr.bf16.mxu0 %v10076_v46  ;;  %v1573_v8 = vld [vmem:[%s11688_s4 + $0x1d58] sm:$0xff]  ;;  %v10260_v60 = vcombine.high %v1445_v7, %v1449_v63  ;;  %v10259_v44 = vcombine.low %v1445_v7, %v1449_v63 }
 0x4db   : > { %8050 = vmatpush1.bf16.msra.mxu1 %v10195_v61  ;;  %v1577_v0 = vld [vmem:[%s11688_s4 + $0x1d78] sm:$0xff] }
 0x4dc   : > { %8051 = vmatprep.subr.bf16.mxu1 %v10204_v16  ;;  %v10388_v41 = vcombine.high %v1573_v8, %v1577_v0  ;;  %v1453_v39 = vld [vmem:[%s11688_s4 + $0x1998] sm:$0xff]  ;;  %v10387_v19 = vcombine.low %v1573_v8, %v1577_v0 }
 0x4dd   : > { %8011 = vmatpush1.bf16.msra.mxu0 %v10075_v26  ;;  %v1457_v61 = vld [vmem:[%s11688_s4 + $0x19b8] sm:$0xff] }
 0x4de   : > { %8012 = vmatprep.subr.bf16.mxu0 %v10084_v27  ;;  %v1581_v46 = vld [vmem:[%s11688_s4 + $0x1d98] sm:$0xff]  ;;  %v10268_v23 = vcombine.high %v1453_v39, %v1457_v61  ;;  %v10267_v36 = vcombine.low %v1453_v39, %v1457_v61 }
 0x4df   : > { %8052 = vmatpush1.bf16.msra.mxu1 %v10203_v55  ;;  %v1585_v16 = vld [vmem:[%s11688_s4 + $0x1db8] sm:$0xff] }
 0x4e0   : > { %8053 = vmatprep.subr.bf16.mxu1 %v10212_v28  ;;  %v10396_v26 = vcombine.high %v1581_v46, %v1585_v16  ;;  %v1461_v55 = vld [vmem:[%s11688_s4 + $0x19d8] sm:$0xff] }
 0x4e1   : > { %8013 = vmatpush1.bf16.msra.mxu0 %v10083_v32  ;;  %v1465_v27 = vld [vmem:[%s11688_s4 + $0x19f8] sm:$0xff] }
 0x4e2   : > { %8064 = vmatprep.subr.bf16.mxu0 %v10220_v34  ;;  %v1589_v42 = vld [vmem:[%s11688_s4 + $0x1dd8] sm:$0xff] }
 0x4e3   : > { %8054 = vmatpush1.bf16.msra.mxu1 %v10211_v33  ;;  %v1593_v30 = vld [vmem:[%s11688_s4 + $0x1df8] sm:$0xff] }
 0x4e4   : > { %8105 = vmatprep.subr.bf16.mxu1 %v10348_v35  ;;  %8015 = vmatmul.mubr.bf16.vlgmr.msra.gmra.mrb[56].mxu0 %v11980_v6  ;;  %v1557_v6 = vld [vmem:[%s11688_s4 + $0x1cd8] sm:$0xff] }
 0x4e5   : > { %8065 = vmatpush1.bf16.msra.mxu0 %v10219_v40  ;;  %8096 = vmatprep.mubr.bf16.mxu0 %v11998_v17  ;;  %v10372_v3 = vcombine.high %v1557_v6, %v1561_v12  ;;  %v1569_v17 = vld [vmem:[%s11688_s4 + $0x1d38] sm:$0xff]  ;;  %v10395_v40 = vcombine.low %v1581_v46, %v1585_v16 }
 0x4e6   : > { %8056 = vmatmul.mubr.bf16.vlgmr.msra.gmra.mrb[56].mxu1 %v11989_v10  ;;  %8066 = vmatprep.subr.bf16.mxu0 %v10228_v48  ;;  %v10235_v10 = vcombine.low %v1421_v58, %v1425_v21  ;;  %v10380_v5 = vcombine.high %v1565_v1, %v1569_v17  ;;  %v10379_v13 = vcombine.low %v1565_v1, %v1569_v17  ;;  %v622_v32 = vld [vmem:[#allocation2 + $0x20] sm:$0xff] }
 0x4e7   : > { %8106 = vmatpush1.bf16.msra.mxu1 %v10347_v43  ;;  %8137 = vmatprep.mubr.bf16.mxu1 %v12005_v20  ;;  %v10371_v20 = vcombine.low %v1557_v6, %v1561_v12  ;;  %v10276_v43 = vcombine.high %v1461_v55, %v1465_v27  ;;  %v1469_v58 = vld [vmem:[%s11688_s4 + $0x1a18] sm:$0xff] }
 0x4e8   : > { %8107 = vmatprep.subr.bf16.mxu1 %v10356_v45  ;;  %v1473_v21 = vld [vmem:[%s11688_s4 + $0x1a38] sm:$0xff] }
 0x4e9   : > { %8067 = vmatpush1.bf16.msra.mxu0 %v10227_v52  ;;  %v1597_v50 = vld [vmem:[%s11688_s4 + $0x1e18] sm:$0xff]  ;;  %v10284_v22 = vcombine.high %v1469_v58, %v1473_v21 }
 0x4ea   : > { %8068 = vmatprep.subr.bf16.mxu0 %v10236_v18  ;;  %v1601_v52 = vld [vmem:[%s11688_s4 + $0x1e38] sm:$0xff]  ;;  %v10275_v18 = vcombine.low %v1461_v55, %v1465_v27 }
 0x4eb   : > { %8108 = vmatpush1.bf16.msra.mxu1 %v10355_v54  ;;  %v10412_v9 = vcombine.high %v1597_v50, %v1601_v52  ;;  %v1477_v6 = vld [vmem:[%s11688_s4 + $0x1a58] sm:$0xff] }
 0x4ec   : > { %8109 = vmatprep.subr.bf16.mxu1 %v10364_v62  ;;  %v10403_v62 = vcombine.low %v1589_v42, %v1593_v30  ;;  %v1481_v12 = vld [vmem:[%s11688_s4 + $0x1a78] sm:$0xff] }
 0x4ed   : > { %8069 = vmatpush1.bf16.msra.mxu0 %v10235_v10  ;;  %v1605_v10 = vld [vmem:[%s11688_s4 + $0x1e58] sm:$0xff]  ;;  %v10292_v59 = vcombine.high %v1477_v6, %v1481_v12 }
 0x4ee   : > { %8070 = vmatprep.subr.bf16.mxu0 %v10244_v2  ;;  %v10283_v2 = vcombine.low %v1469_v58, %v1473_v21  ;;  %v1485_v1 = vld [vmem:[%s11688_s4 + $0x1a98] sm:$0xff] }
 0x4ef   : > { %8110 = vmatpush1.bf16.msra.mxu1 %v10363_v57  ;;  %v1609_v57 = vld [vmem:[%s11688_s4 + $0x1e78] sm:$0xff] }
 0x4f0   : > { %8111 = vmatprep.subr.bf16.mxu1 %v10372_v3  ;;  %v10411_v3 = vcombine.low %v1597_v50, %v1601_v52  ;;  %v10420_v29 = vcombine.high %v1605_v10, %v1609_v57  ;;  %v1489_v17 = vld [vmem:[%s11688_s4 + $0x1ab8] sm:$0xff] }
 0x4f1   : > { %8071 = vmatpush1.bf16.msra.mxu0 %v10243_v31  ;;  %v1613_v31 = vld [vmem:[%s11688_s4 + $0x1e98] sm:$0xff]  ;;  %v10300_v7 = vcombine.high %v1485_v1, %v1489_v17 }
 0x4f2   : > { %8072 = vmatprep.subr.bf16.mxu0 %v10252_v4  ;;  %v10291_v4 = vcombine.low %v1477_v6, %v1481_v12  ;;  %v1493_v8 = vld [vmem:[%s11688_s4 + $0x1ad8] sm:$0xff] }
 0x4f3   : > { %8112 = vmatpush1.bf16.msra.mxu1 %v10371_v20  ;;  %v1617_v20 = vld [vmem:[%s11688_s4 + $0x1eb8] sm:$0xff] }
 0x4f4   : > { %8113 = vmatprep.subr.bf16.mxu1 %v10380_v5  ;;  %v10419_v5 = vcombine.low %v1605_v10, %v1609_v57  ;;  %v10428_v63 = vcombine.high %v1613_v31, %v1617_v20  ;;  %v1497_v0 = vld [vmem:[%s11688_s4 + $0x1af8] sm:$0xff] }
 0x4f5   : > { %8073 = vmatpush1.bf16.msra.mxu0 %v10251_v11  ;;  %v1621_v11 = vld [vmem:[%s11688_s4 + $0x1ed8] sm:$0xff]  ;;  %v10308_v39 = vcombine.high %v1493_v8, %v1497_v0 }
 0x4f6   : > { %8074 = vmatprep.subr.bf16.mxu0 %v10260_v60  ;;  %v10299_v60 = vcombine.low %v1485_v1, %v1489_v17  ;;  %v1501_v46 = vld [vmem:[%s11688_s4 + $0x1b18] sm:$0xff] }
 0x4f7   : > { %8114 = vmatpush1.bf16.msra.mxu1 %v10379_v13  ;;  %v7770_v25 = vpop.f32.mrb[44].mxu0  ;;  %v1625_v13 = vld [vmem:[%s11688_s4 + $0x1ef8] sm:$0xff] }
 0x4f8   : > { %8115 = vmatprep.subr.bf16.mxu1 %v10388_v41  ;;  %v7771_v28 = vadd.f32 %v7770_v25, %v12834_v14  ;;  %v7772_v56 = vpop.f32.mrb[45].mxu0  ;;  %v10427_v41 = vcombine.low %v1613_v31, %v1617_v20  ;;  %v10436_v61 = vcombine.high %v1621_v11, %v1625_v13  ;;  %v1505_v16 = vld [vmem:[%s11688_s4 + $0x1b38] sm:$0xff]  ;;  %v10435_v25 = vcombine.low %v1621_v11, %v1625_v13 }
 0x4f9   : > { %v7811_v38 = vpop.f32.mrb[44].mxu1  ;;  %v7773_v33 = vadd.f32 %v7772_v56, %v12836_v15  ;;  %v7774_v35 = vpop.f32.mrb[46].mxu0  ;;  %8075 = vmatpush1.bf16.msra.mxu0 %v10259_v44  ;;  %v10404_v15 = vcombine.high %v1589_v42, %v1593_v30  ;;  %v1629_v44 = vld [vmem:[%s11688_s4 + $0x1f18] sm:$0xff]  ;;  %v10315_v42 = vcombine.low %v1501_v46, %v1505_v16 }
 0x4fa   : > { %v7813_v34 = vpop.f32.mrb[45].mxu1  ;;  %v7812_v49 = vadd.f32 %v7811_v38, %v7771_v28  ;;  %v7775_v14 = vpop.f32.mrb[47].mxu0  ;;  %8076 = vmatprep.subr.bf16.mxu0 %v10268_v23  ;;  %v10307_v23 = vcombine.low %v1493_v8, %v1497_v0  ;;  %v1509_v27 = vld [vmem:[%s11688_s4 + $0x1b58] sm:$0xff] }
 0x4fb   : > { %v7815_v51 = vpop.f32.mrb[46].mxu1  ;;  %8116 = vmatpush1.bf16.msra.mxu1 %v10387_v19  ;;  %v7814_v48 = vadd.f32 %v7813_v34, %v7773_v33  ;;  %v1633_v19 = vld [vmem:[%s11688_s4 + $0x1f38] sm:$0xff] }
 0x4fc   : > { %v7816_v45 = vpop.f32.mrb[47].mxu1  ;;  %8117 = vmatprep.subr.bf16.mxu1 %v10396_v26  ;;  %v8150_v47 = vadd.f32 %v7812_v49, %v622_v32  ;;  %v10316_v26 = vcombine.high %v1501_v46, %v1505_v16  ;;  %v10444_v55 = vcombine.high %v1629_v44, %v1633_v19  ;;  %v1513_v28 = vld [vmem:[%s11688_s4 + $0x1b78] sm:$0xff]  ;;  %v10443_v30 = vcombine.low %v1629_v44, %v1633_v19 }
 0x4fd   : > { %v8151_v54 = vadd.f32 %v7814_v48, %v623_v37  ;;  %8077 = vmatpush1.bf16.msra.mxu0 %v10267_v36  ;;  %v1637_v38 = vld [vmem:[%s11688_s4 + $0x1f58] sm:$0xff]  ;;  %v10324_v32 = vcombine.high %v1509_v27, %v1513_v28  ;;  %v10323_v37 = vcombine.low %v1509_v27, %v1513_v28  ;;  %v624_v27 = vld [vmem:[#allocation2 + $0x30] sm:$0xff] }
 0x4fe   : > { %8158 = vst [vmem:[#allocation2 + $0x20] sm:$0xff] %v8150_v47  ;;  %8078 = vmatprep.subr.bf16.mxu0 %v10276_v43  ;;  %v1641_v56 = vld [vmem:[%s11688_s4 + $0x1f78] sm:$0xff] }
 0x4ff   : > { %8118 = vmatpush1.bf16.msra.mxu1 %v10395_v40  ;;  %8159 = vst [vmem:[#allocation2 + $0x28] sm:$0xff] %v8151_v54  ;;  %v10452_v33 = vcombine.high %v1637_v38, %v1641_v56  ;;  %v1517_v34 = vld [vmem:[%s11688_s4 + $0x1b98] sm:$0xff]  ;;  %v10451_v51 = vcombine.low %v1637_v38, %v1641_v56 }
 0x500   : > { %8119 = vmatprep.subr.bf16.mxu1 %v10404_v15  ;;  %v1521_v35 = vld [vmem:[%s11688_s4 + $0x1bb8] sm:$0xff] }
 0x501   : > { %8079 = vmatpush1.bf16.msra.mxu0 %v10275_v18  ;;  %v1645_v36 = vld [vmem:[%s11688_s4 + $0x1f98] sm:$0xff]  ;;  %v10332_v14 = vcombine.high %v1517_v34, %v1521_v35  ;;  %v10331_v58 = vcombine.low %v1517_v34, %v1521_v35 }
 0x502   : > { %8080 = vmatprep.subr.bf16.mxu0 %v10284_v22  ;;  %v1649_v49 = vld [vmem:[%s11688_s4 + $0x1fb8] sm:$0xff] }
 0x503   : > { %8120 = vmatpush1.bf16.msra.mxu1 %v10403_v62  ;;  %v10460_v40 = vcombine.high %v1645_v36, %v1649_v49  ;;  %v1525_v43 = vld [vmem:[%s11688_s4 + $0x1bd8] sm:$0xff]  ;;  %v10459_v21 = vcombine.low %v1645_v36, %v1649_v49 }
 0x504   : > { %8121 = vmatprep.subr.bf16.mxu1 %v10412_v9  ;;  %v1529_v48 = vld [vmem:[%s11688_s4 + $0x1bf8] sm:$0xff] }
 0x505   : > { %8081 = vmatpush1.bf16.msra.mxu0 %v10283_v2  ;;  %v1653_v45 = vld [vmem:[%s11688_s4 + $0x1fd8] sm:$0xff]  ;;  %v10340_v47 = vcombine.high %v1525_v43, %v1529_v48  ;;  %v10339_v52 = vcombine.low %v1525_v43, %v1529_v48  ;;  %v10908_v43 = vld [vmem:[#allocation11] sm:$0xff] (!%p10469_p0)  }
 0x506   : > { %8082 = vmatprep.subr.bf16.mxu0 %v10292_v59  ;;  %v1657_v15 = vld [vmem:[%s11688_s4 + $0x1ff8] sm:$0xff]  ;;  %v10909_v48 = vld [vmem:[#allocation11 + $0x80] sm:$0xff] (!%p10469_p0)  }
 0x507   : > { %8122 = vmatpush1.bf16.msra.mxu1 %v10411_v3  ;;  %v10468_v50 = vcombine.high %v1653_v45, %v1657_v15  ;;  %v10467_v54 = vcombine.low %v1653_v45, %v1657_v15  ;;  %v10910_v45 = vld [vmem:[#allocation11 + $0x48] sm:$0xff] (!%p10469_p0)  }
 0x508   : > { %8123 = vmatprep.subr.bf16.mxu1 %v10420_v29  ;;  %v10911_v15 = vld [vmem:[#allocation11 + $0xc8] sm:$0xff] (!%p10469_p0)  }
 0x509   : > { %8083 = vmatpush1.bf16.msra.mxu0 %v10291_v4 }
 0x50a   : > { %8084 = vmatprep.subr.bf16.mxu0 %v10300_v7 }
 0x50b   : > { %8124 = vmatpush1.bf16.msra.mxu1 %v10419_v5 }
 0x50c   : > { %8125 = vmatprep.subr.bf16.mxu1 %v10428_v63 }
 0x50d   : > { %8085 = vmatpush1.bf16.msra.mxu0 %v10299_v60 }
 0x50e   : > { %8086 = vmatprep.subr.bf16.mxu0 %v10308_v39 }
 0x50f   : > { %8126 = vmatpush1.bf16.msra.mxu1 %v10427_v41 }
 0x510   : > { %8127 = vmatprep.subr.bf16.mxu1 %v10436_v61 }
 0x511   : > { %8087 = vmatpush1.bf16.msra.mxu0 %v10307_v23 }
 0x512   : > { %8088 = vmatprep.subr.bf16.mxu0 %v10316_v26 }
 0x513   : > { %8128 = vmatpush1.bf16.msra.mxu1 %v10435_v25 }
 0x514   : > { %8129 = vmatprep.subr.bf16.mxu1 %v10444_v55 }
 0x515   : > { %8089 = vmatpush1.bf16.msra.mxu0 %v10315_v42 }
 0x516   : > { %8090 = vmatprep.subr.bf16.mxu0 %v10324_v32 }
 0x517   : > { %8130 = vmatpush1.bf16.msra.mxu1 %v10443_v30  ;;  %v625_v30 = vld [vmem:[#allocation2 + $0x38] sm:$0xff] }
 0x518   : > { %8131 = vmatprep.subr.bf16.mxu1 %v10452_v33 }
 0x519   : > { %8091 = vmatpush1.bf16.msra.mxu0 %v10323_v37  ;;  %v8174_v37 = vld [vmem:[%s13097_s1] sm:$0xff] (!%p10469_p0) }
 0x51a   : > { %8092 = vmatprep.subr.bf16.mxu0 %v10332_v14  ;;  %v10906_v14 = vld [vmem:[#allocation11 + $0x40] sm:$0xff] (!%p10469_p0)  }
 0x51b   : > { %8132 = vmatpush1.bf16.msra.mxu1 %v10451_v51  ;;  %v11296_v51 = vmov (!%p10469_p0), 0  }
 0x51c   : > { %8133 = vmatprep.subr.bf16.mxu1 %v10460_v40  ;;  %10905 = vset.pattern.permute.xlu0 (!%p10469_p0), %v11296_v51  ;;  %v10907_v40 = vld [vmem:[#allocation11 + $0xc0] sm:$0xff] (!%p10469_p0)  }
 0x51d   : > { %8093 = vmatpush1.bf16.msra.mxu0 %v10331_v58  ;;  %8177 = vperm.xlu0 (!%p10469_p0), %10905, %v8174_v37   ;;  %v10912_v58 = vld [vmem:[#allocation11 + $0x8] sm:$0xff] (!%p10469_p0)  }
 0x51e   : > { %8094 = vmatprep.subr.bf16.mxu0 %v10340_v47  ;;  %v10914_v47 = vld [vmem:[#allocation11 + $0x50] sm:$0xff] (!%p10469_p0)  }
 0x51f   : > { %8134 = vmatpush1.bf16.msra.mxu1 %v10459_v21  ;;  %v10913_v21 = vld [vmem:[#allocation11 + $0x88] sm:$0xff] (!%p10469_p0)  }
 0x520   : > { %8135 = vmatprep.subr.bf16.mxu1 %v10468_v50  ;;  %v10915_v50 = vld [vmem:[#allocation11 + $0xd0] sm:$0xff] (!%p10469_p0)  }
 0x521   : > { %8095 = vmatpush1.bf16.msra.mxu0 %v10339_v52  ;;  %v10916_v52 = vld [vmem:[#allocation11 + $0x10] sm:$0xff] (!%p10469_p0)  }
 0x522   : > { %10546 = vmatprep.subr.bf16.mxu0 (!%p10469_p0), %v10906_v14 }
 0x523   : > { %8136 = vmatpush1.bf16.msra.mxu1 %v10467_v54  ;;  %v10917_v54 = vld [vmem:[#allocation11 + $0x90] sm:$0xff] (!%p10469_p0)  }
 0x524   : > { %8097 = vmatmul.mubr.bf16.vlgmr.msra.gmra.mrb[60].mxu0 %v12070_v24  ;;  %10568 = vmatprep.subr.bf16.mxu1 (!%p10469_p0), %v10907_v40 }
 0x525   : > { %10547 = vmatpush3.bf16.msra.mxu0 (!%p10469_p0), %v10908_v43 }
 0x526   : > { %8138 = vmatmul.mubr.bf16.vlgmr.msra.gmra.mrb[60].mxu1 %v12076_v53  ;;  %10548 = vmatprep.subr.bf16.mxu0 (!%p10469_p0), %v10910_v45 }
 0x527   : > { %10569 = vmatpush3.bf16.msra.mxu1 (!%p10469_p0), %v10909_v48 }
 0x528   : > { %10570 = vmatprep.subr.bf16.mxu1 (!%p10469_p0), %v10911_v15 }
 0x529   : > { %10549 = vmatpush3.bf16.msra.mxu0 (!%p10469_p0), %v10912_v58 }
 0x52a   : > { %10550 = vmatprep.subr.bf16.mxu0 (!%p10469_p0), %v10914_v47 }
 0x52b   : > { %10571 = vmatpush3.bf16.msra.mxu1 (!%p10469_p0), %v10913_v21 }
 0x52c   : > { %10572 = vmatprep.subr.bf16.mxu1 (!%p10469_p0), %v10915_v50 }
 0x52d   : > { %10551 = vmatpush3.bf16.msra.mxu0 (!%p10469_p0), %v10916_v52 }
 0x52f   : > { %10573 = vmatpush3.bf16.msra.mxu1 (!%p10469_p0), %v10917_v54 }
 0x537   : > { %v7852_v18 = vpop.f32.mrb[48].mxu0 }
 0x538   : > { %v7854_v22 = vpop.f32.mrb[49].mxu0 }
 0x539   : > { %v7893_v62 = vpop.f32.mrb[48].mxu1  ;;  %v7856_v12 = vpop.f32.mrb[50].mxu0 }
 0x53a   : > { %v7894_v9 = vadd.f32 %v7893_v62, %v7852_v18  ;;  %v7895_v6 = vpop.f32.mrb[49].mxu1  ;;  %v7857_v2 = vpop.f32.mrb[51].mxu0  ;;  %v10918_v18 = vld [vmem:[#allocation11 + $0x58] sm:$0xff] (!%p10469_p0)   ;;  %v10923_v12 = vld [vmem:[#allocation11 + $0xe0] sm:$0xff] (!%p10469_p0)  }
 0x53b   : > { %v7896_v10 = vadd.f32 %v7895_v6, %v7854_v22  ;;  %v7897_v57 = vpop.f32.mrb[50].mxu1  ;;  %v10919_v62 = vld [vmem:[#allocation11 + $0xd8] sm:$0xff] (!%p10469_p0)   ;;  %10552 = vmatprep.subr.bf16.mxu0 (!%p10469_p0), %v10918_v18  ;;  %v10922_v6 = vld [vmem:[#allocation11 + $0x60] sm:$0xff] (!%p10469_p0)   ;;  %v10926_v2 = vld [vmem:[#allocation11 + $0x68] sm:$0xff] (!%p10469_p0)  }
 0x53c   : > { %v7898_v3 = vpop.f32.mrb[51].mxu1  ;;  %v10920_v22 = vld [vmem:[#allocation11 + $0x18] sm:$0xff] (!%p10469_p0)   ;;  %10574 = vmatprep.subr.bf16.mxu1 (!%p10469_p0), %v10919_v62  ;;  %v10925_v57 = vld [vmem:[#allocation11 + $0xa0] sm:$0xff] (!%p10469_p0)   ;;  %v8297_v18 = vld [vmem:[#allocation17 + $0x8] sm:$0xff] (!%p10469_p0) }
 0x53d   : > { %10553 = vmatpush3.bf16.msra.mxu0 (!%p10469_p0), %v10920_v22  ;;  %v10927_v3 = vld [vmem:[#allocation11 + $0xe8] sm:$0xff] (!%p10469_p0)  }
 0x53e   : > { %10554 = vmatprep.subr.bf16.mxu0 (!%p10469_p0), %v10922_v6  ;;  %v8299_v6 = vld [vmem:[#allocation17 + $0x18] sm:$0xff] (!%p10469_p0) }
 0x577   : > { %v7934_v59 = vpop.f32.mrb[52].mxu0 }
 0x578   : > { %v7935_v29 = vadd.f32 %v7934_v59, %v7894_v9  ;;  %v7936_v17 = vpop.f32.mrb[53].mxu0  ;;  %v10921_v9 = vld [vmem:[#allocation11 + $0x98] sm:$0xff] (!%p10469_p0)   ;;  %v10928_v59 = vld [vmem:[#allocation11 + $0x28] sm:$0xff] (!%p10469_p0)  }
 0x579   : > { %v7975_v1 = vpop.f32.mrb[52].mxu1  ;;  %v7937_v31 = vadd.f32 %v7936_v17, %v7896_v10  ;;  %v7938_v4 = vpop.f32.mrb[54].mxu0  ;;  %10575 = vmatpush3.bf16.msra.mxu1 (!%p10469_p0), %v10921_v9  ;;  %v10924_v10 = vld [vmem:[#allocation11 + $0x20] sm:$0xff] (!%p10469_p0)   ;;  %v10931_v17 = vld [vmem:[#allocation11 + $0xf0] sm:$0xff] (!%p10469_p0)  }
 0x57a   : > { %v7977_v20 = vpop.f32.mrb[53].mxu1  ;;  %v7976_v24 = vadd.f32 %v7975_v1, %v7935_v29  ;;  %v7939_v53 = vpop.f32.mrb[55].mxu0  ;;  %10576 = vmatprep.subr.bf16.mxu1 (!%p10469_p0), %v10923_v12  ;;  %10555 = vmatpush3.bf16.msra.mxu0 (!%p10469_p0), %v10924_v10  ;;  %v10929_v29 = vld [vmem:[#allocation11 + $0xa8] sm:$0xff] (!%p10469_p0)   ;;  %v10930_v1 = vld [vmem:[#allocation11 + $0x70] sm:$0xff] (!%p10469_p0)   ;;  %v10934_v4 = vld [vmem:[#allocation11 + $0x78] sm:$0xff] (!%p10469_p0)  }
 0x57b   : > { %v7979_v5 = vpop.f32.mrb[54].mxu1  ;;  %v7978_v7 = vadd.f32 %v7977_v20, %v7937_v31  ;;  %10556 = vmatprep.subr.bf16.mxu0 (!%p10469_p0), %v10926_v2  ;;  %v10932_v31 = vld [vmem:[#allocation11 + $0x30] sm:$0xff] (!%p10469_p0)   ;;  %v10937_v53 = vld [vmem:[#allocation11 + $0xb8] sm:$0xff] (!%p10469_p0)   ;;  %v8296_v12 = vld [vmem:[#allocation17] sm:$0xff] (!%p10469_p0) }
 0x57c   : > { %v7980_v63 = vpop.f32.mrb[55].mxu1  ;;  %v10933_v20 = vld [vmem:[#allocation11 + $0xb0] sm:$0xff] (!%p10469_p0)   ;;  %v10936_v5 = vld [vmem:[#allocation11 + $0x38] sm:$0xff] (!%p10469_p0)  }
 0x57d   : > { %10577 = vmatpush3.bf16.msra.mxu1 (!%p10469_p0), %v10925_v57  ;;  %v10939_v63 = vld [vmem:[#allocation11 + $0x1c0] sm:$0xff] (!%p10469_p0)   ;;  %v8298_v10 = vld [vmem:[#allocation17 + $0x10] sm:$0xff] (!%p10469_p0) }
 0x57e   : > { %10578 = vmatprep.subr.bf16.mxu1 (!%p10469_p0), %v10927_v3  ;;  %10557 = vmatpush3.bf16.msra.mxu0 (!%p10469_p0), %v10928_v59 }
 0x57f   : > { %10558 = vmatprep.subr.bf16.mxu0 (!%p10469_p0), %v10930_v1 }
 0x581   : > { %10579 = vmatpush3.bf16.msra.mxu1 (!%p10469_p0), %v10929_v29 }
 0x582   : > { %10580 = vmatprep.subr.bf16.mxu1 (!%p10469_p0), %v10931_v17  ;;  %10559 = vmatpush3.bf16.msra.mxu0 (!%p10469_p0), %v10932_v31  ;;  %v8301_v17 = vld [vmem:[#allocation17 + $0x28] sm:$0xff] (!%p10469_p0)  ;;  %v8303_v31 = vld [vmem:[#allocation17 + $0x38] sm:$0xff] (!%p10469_p0) }
 0x583   : > { %10560 = vmatprep.subr.bf16.mxu0 (!%p10469_p0), %v10934_v4 }
 0x585   : > { %10581 = vmatpush3.bf16.msra.mxu1 (!%p10469_p0), %v10933_v20 }
 0x586   : > { %10561 = vmatpush3.bf16.msra.mxu0 (!%p10469_p0), %v10936_v5 }
 0x5b7   : > { %v8016_v8 = vpop.f32.mrb[56].mxu0 }
 0x5b8   : > { %v8017_v0 = vadd.f32 %v8016_v8, %v7976_v24  ;;  %v8018_v13 = vpop.f32.mrb[57].mxu0  ;;  %v10935_v24 = vld [vmem:[#allocation11 + $0xf8] sm:$0xff] (!%p10469_p0)   ;;  %v8190_v8 = vlaneseq (!%p10469_p0) }
 0x5b9   : > { %v8057_v11 = vpop.f32.mrb[56].mxu1  ;;  %v8019_v60 = vadd.f32 %v8018_v13, %v7978_v7  ;;  %v8020_v39 = vpop.f32.mrb[58].mxu0  ;;  %10582 = vmatprep.subr.bf16.mxu1 (!%p10469_p0), %v10935_v24  ;;  %v10938_v7 = vld [vmem:[#allocation11 + $0x140] sm:$0xff] (!%p10469_p0)  }
 0x5ba   : > { %v8059_v41 = vpop.f32.mrb[57].mxu1  ;;  %v8058_v61 = vadd.f32 %v8057_v11, %v8017_v0  ;;  %v8021_v16 = vpop.f32.mrb[59].mxu0  ;;  %10583 = vmatpush3.bf16.msra.mxu1 (!%p10469_p0), %v10937_v53  ;;  %10590 = vmatprep.subr.bf16.mxu0 (!%p10469_p0), %v10938_v7  ;;  %v12946_v0 = vshrl.u32 (!%p10469_p0), %v8190_v8, 7 }
 0x5bb   : > { %v8061_v46 = vpop.f32.mrb[58].mxu1  ;;  %v8060_v44 = vadd.f32 %v8059_v41, %v8019_v60  ;;  %10612 = vmatprep.subr.bf16.mxu1 (!%p10469_p0), %v10939_v63  ;;  %v12950_v60 = vld [vmem:[#allocation8] sm:$0xff] (!%p10469_p0) }
 0x5bc   : > { %v8062_v19 = vpop.f32.mrb[59].mxu1  ;;  %v8196_v11 = vsub.s32 (!%p10469_p0), 1, %v12946_v0  ;;  %v8204_v13 = vsub.s32 (!%p10469_p0), 3, %v12946_v0  ;;  %v8192_v41 = vsub.s32 (!%p10469_p0), 0, %v12946_v0  ;;  %v8200_v39 = vsub.s32 (!%p10469_p0), 2, %v12946_v0 }
 0x5bd   : > { %v8212_v46 = vsub.s32 (!%p10469_p0), 5, %v12946_v0  ;;  %v8220_v16 = vsub.s32 (!%p10469_p0), 7, %v12946_v0 }
 0x5be   : > { %v8197_v19 = vrot.slane (!%p10469_p0), %v12950_v60, %v8196_v11 }
 0x5f7   : > { %v8098_v23 = vpop.f32.mrb[60].mxu0 }
 0x5f8   : > { %v8099_v25 = vadd.f32 %v8098_v23, %v8058_v61  ;;  %v8100_v55 = vpop.f32.mrb[61].mxu0  ;;  %v12954_v61 = vld [vmem:[#allocation9] sm:$0xff] (!%p10469_p0)  ;;  %v8169_v23 = vld [vmem:[#allocation2 + $0x18] sm:$0xff] (!%p10469_p0) }
 0x5f9   : > { %v8139_v26 = vpop.f32.mrb[60].mxu1  ;;  %v8101_v28 = vadd.f32 %v8100_v55, %v8060_v44  ;;  %v8102_v56 = vpop.f32.mrb[62].mxu0  ;;  %8165 = sbr.rel (%p10469_p0) target bundleno = 2448 (0x990), region = 120  ;;  %v8167_v44 = vld [vmem:[#allocation2 + $0x8] sm:$0xff] (!%p10469_p0)  ;;  %v8168_v55 = vld [vmem:[#allocation2 + $0x10] sm:$0xff] (!%p10469_p0)  ;;  %v8263_v43 = vrot.slane (!%p10469_p0), %v12954_v61, %v8212_v46  ;;  %v8271_v45 = vrot.slane (!%p10469_p0), %v12954_v61, %v8220_v16 }
 0x5fa   : > { %v8141_v38 = vpop.f32.mrb[61].mxu1  ;;  %v8140_v42 = vadd.f32 %v8139_v26, %v8099_v25  ;;  %v8103_v33 = vpop.f32.mrb[63].mxu0  ;;  %v8205_v25 = vrot.slane (!%p10469_p0), %v12950_v60, %v8204_v13  ;;  %v8166_v26 = vld [vmem:[#allocation2] sm:$0xff] (!%p10469_p0)  ;;  %v8201_v56 = vrot.slane (!%p10469_p0), %v12950_v60, %v8200_v39 }
 0x5fb   : > { %v8143_v32 = vpop.f32.mrb[62].mxu1  ;;  %v8142_v34 = vadd.f32 %v8141_v38, %v8101_v28  ;;  %v8255_v28 = vrot.slane (!%p10469_p0), %v12954_v61, %v8204_v13  ;;  %v8193_v38 = vrot.slane (!%p10469_p0), %v12950_v60, %v8192_v41  ;;  %v8243_v33 = vrot.slane (!%p10469_p0), %v12954_v61, %v8192_v41 }
 0x5fc   : > { %v8144_v35 = vpop.f32.mrb[63].mxu1  ;;  %v8152_v36 = vadd.f32 %v8140_v42, %v624_v27  ;;  %v8247_v27 = vrot.slane (!%p10469_p0), %v12954_v61, %v8196_v11  ;;  %v8171_v42 = vld [vmem:[#allocation2 + $0x28] sm:$0xff] (!%p10469_p0)  ;;  %v12964_v32 = vpop.permute.xlu0 (!%p10469_p0), %8177 }
 0x5fd   : > { %v8153_v49 = vadd.f32 %v8142_v34, %v625_v30  ;;  %v8251_v34 = vrot.slane (!%p10469_p0), %v12954_v61, %v8200_v39  ;;  %v8213_v35 = vrot.slane (!%p10469_p0), %v12950_v60, %v8212_v46  ;;  %v8183_v37 = vmul.f32 (!%p10469_p0), %v12964_v32, %v8169_v23  ;;  %v10940_v46 = vld [vmem:[#allocation11 + $0x100] sm:$0xff] (!%p10469_p0)  }
 0x5fe   : > { %8160 = vst [vmem:[#allocation2 + $0x30] sm:$0xff] %v8152_v36  ;;  %v8221_v36 = vrot.slane (!%p10469_p0), %v12950_v60, %v8220_v16  ;;  %v8180_v51 = vmul.f32 (!%p10469_p0), %v12964_v32, %v8166_v26  ;;  %v8182_v14 = vmul.f32 (!%p10469_p0), %v12964_v32, %v8168_v55  ;;  %v8185_v40 = vmul.f32 (!%p10469_p0), %v12964_v32, %v8171_v42  ;;  %v10941_v16 = vld [vmem:[#allocation11 + $0x180] sm:$0xff] (!%p10469_p0)   ;;  %v10944_v26 = vld [vmem:[#allocation11 + $0x108] sm:$0xff] (!%p10469_p0)  }
 0x5ff   : > { %8161 = vst [vmem:[#allocation2 + $0x38] sm:$0xff] %v8153_v49  ;;  %v8181_v49 = vmul.f32 (!%p10469_p0), %v12964_v32, %v8167_v44  ;;  %v8233_v58 = vmul.f32 (!%p10469_p0), %v8205_v25, %v8183_v37  ;;  %v10942_v44 = vld [vmem:[#allocation11 + $0x148] sm:$0xff] (!%p10469_p0)   ;;  %v8208_v42 = vsub.s32 (!%p10469_p0), 4, %v12946_v0  ;;  %v10953_v37 = vld [vmem:[#allocation11 + $0x198] sm:$0xff] (!%p10469_p0)  }
 0x600   : > { %v8230_v21 = vmul.f32 %v8193_v38, %v8180_v51  ;;  %v8232_v47 = vmul.f32 %v8201_v56, %v8182_v14  ;;  %v8235_v50 = vmul.f32 %v8213_v35, %v8185_v40  ;;  %v10945_v55 = vld [vmem:[#allocation11 + $0x188] sm:$0xff]   ;;  %v10948_v38 = vld [vmem:[#allocation11 + $0x110] sm:$0xff]   ;;  %v10954_v14 = vld [vmem:[#allocation11 + $0x160] sm:$0xff]  }
 0x601   : > { %v8231_v15 = vmul.f32 %v8197_v19, %v8181_v49  ;;  %v8283_v62 = vadd.f32 %v8255_v28, %v8233_v58  ;;  %v10943_v19 = vld [vmem:[#allocation11 + $0x1c8] sm:$0xff]   ;;  %v10947_v28 = vld [vmem:[#allocation11 + $0x1d0] sm:$0xff]   ;;  %v10952_v49 = vld [vmem:[#allocation11 + $0x118] sm:$0xff]   ;;  %v8209_v51 = vrot.slane %v12950_v60, %v8208_v42  ;;  %v8259_v58 = vrot.slane %v12954_v61, %v8208_v42 }
 0x602   : > { %v8280_v22 = vadd.f32 %v8243_v33, %v8230_v21  ;;  %v8282_v9 = vadd.f32 %v8251_v34, %v8232_v47  ;;  %v8285_v57 = vadd.f32 %v8263_v43, %v8235_v50  ;;  %v10949_v56 = vld [vmem:[#allocation11 + $0x190] sm:$0xff]   ;;  %v10951_v33 = vld [vmem:[#allocation11 + $0x1d8] sm:$0xff]   ;;  %v8216_v34 = vsub.s32 6, %v12946_v0  ;;  %v10955_v40 = vld [vmem:[#allocation11 + $0x1e0] sm:$0xff]  }
 0x603   : > { %v8281_v54 = vadd.f32 %v8247_v27, %v8231_v15  ;;  %v8291_v59 = vmax.f32 %v8283_v62, 0.0  ;;  %v10946_v27 = vld [vmem:[#allocation11 + $0x150] sm:$0xff]   ;;  %v10956_v0 = vld [vmem:[#allocation11 + $0x120] sm:$0xff]   ;;  %v10958_v21 = vld [vmem:[#allocation11 + $0x168] sm:$0xff]  }
 0x604   : > { %v8288_v29 = vmax.f32 %v8280_v22, 0.0  ;;  %v8290_v1 = vmax.f32 %v8282_v9, 0.0  ;;  %v8293_v20 = vmax.f32 %v8285_v57, 0.0  ;;  %v8170_v35 = vld [vmem:[#allocation2 + $0x20] sm:$0xff]  ;;  %v10957_v15 = vld [vmem:[#allocation11 + $0x1a0] sm:$0xff]   ;;  %v10967_v57 = vld [vmem:[#allocation11 + $0x1f8] sm:$0xff]  }
 0x605   : > { %v8289_v3 = vmax.f32 %v8281_v54, 0.0  ;;  %v8307_v5 = vmul.f32 %v8299_v6, %v8291_v59  ;;  %v8184_v43 = vmul.f32 %v12964_v32, %v8170_v35  ;;  %v10959_v47 = vld [vmem:[#allocation11 + $0x1e8] sm:$0xff]   ;;  %v8267_v54 = vrot.slane %v12954_v61, %v8216_v34  ;;  %v10963_v62 = vld [vmem:[#allocation11 + $0x1f0] sm:$0xff]   ;;  %v9014_v42 = vld [vmem:[%s13142_s22 + $0x70] sm:$0xff] }
 0x606   : > { %v8173_v30 = vld [vmem:[#allocation2 + $0x38] sm:$0xff]  ;;  %v8304_v53 = vmul.f32 %v8296_v12, %v8288_v29  ;;  %v8306_v7 = vmul.f32 %v8298_v10, %v8290_v1  ;;  %v8309_v63 = vmul.f32 %v8301_v17, %v8293_v20  ;;  %v10964_v6 = vld [vmem:[#allocation11 + $0x130] sm:$0xff]   ;;  %v10966_v10 = vld [vmem:[#allocation11 + $0x178] sm:$0xff]  }
 0x607   : > { %v8187_v48 = vmul.f32 %v12964_v32, %v8173_v30  ;;  %v8305_v24 = vmul.f32 %v8297_v18, %v8289_v3  ;;  %v8315_v13 = vpack.c.bf16 %v8307_v5, %v8307_v5  ;;  %v10950_v30 = vld [vmem:[#allocation11 + $0x158] sm:$0xff]   ;;  %v8234_v50 = vmul.f32 %v8209_v51, %v8184_v43  ;;  %v10960_v18 = vld [vmem:[#allocation11 + $0x128] sm:$0xff]   ;;  %v10965_v12 = vld [vmem:[#allocation11 + $0x1b0] sm:$0xff]  }
 0x608   : > { %v8312_v41 = vpack.c.bf16 %v8304_v53, %v8304_v53  ;;  %v8314_v39 = vpack.c.bf16 %v8306_v7, %v8306_v7  ;;  %v8317_v23 = vpack.c.bf16 %v8309_v63, %v8309_v63  ;;  %v8300_v3 = vld [vmem:[#allocation17 + $0x20] sm:$0xff]  ;;  %v8302_v59 = vld [vmem:[#allocation17 + $0x30] sm:$0xff]  ;;  %v11297_v7 = vmov 0.0|0.0  }
 0x609   : > { %v8237_v52 = vmul.f32 %v8221_v36, %v8187_v48  ;;  %v8313_v11 = vpack.c.bf16 %v8305_v24, %v8305_v24  ;;  %8911 = vmatprep.mubr.bf16.mxu1 %v8315_v13  ;;  %v8172_v36 = vld [vmem:[#allocation2 + $0x30] sm:$0xff]  ;;  %v8284_v22 = vadd.f32 %v8259_v58, %v8234_v50  ;;  %v9000_v24 = vld [vmem:[%s13142_s22] sm:$0xff]  ;;  %v9001_v5 = vld [vmem:[%s13142_s22 + $0x8] sm:$0xff] }
 0x60a   : > { %8912 = vmatmul.mubr.bf16.vlgmr.msra.gmra.mrb[0].mxu1 %v8314_v39  ;;  %v8186_v48 = vmul.f32 %v12964_v32, %v8172_v36  ;;  %v10961_v32 = vld [vmem:[#allocation11 + $0x1a8] sm:$0xff]   ;;  %v10968_v29 = vld [vmem:[#allocation11 + $0x138] sm:$0xff]   ;;  %v10725_v63 = vpack.c.bf16 %v9001_v5, %v9000_v24  ;;  %v10535_v24 = vld [vmem:[#allocation14] ss:$0 sm:$0xff] }
 0x60b   : > { %v8287_v2 = vadd.f32 %v8271_v45, %v8237_v52  ;;  %8871 = vmatprep.mubr.bf16.mxu0 %v8313_v11  ;;  %10613 = vmatpush3.bf16.msra.mxu1 %v10941_v16  ;;  %v8217_v45 = vrot.slane %v12950_v60, %v8216_v34  ;;  %v10962_v60 = vld [vmem:[#allocation11 + $0x170] sm:$0xff]   ;;  %v10969_v1 = vld [vmem:[#allocation11 + $0x1b8] sm:$0xff]   ;;  %v9007_v16 = vld [vmem:[%s13142_s22 + $0x38] sm:$0xff]  ;;  %v11299_v34 = vmov 0.0  }
 0x60c   : > { %8872 = vmatmul.mubr.bf16.vlgmr.msra.gmra.mrb[0].mxu0 %v8312_v41  ;;  %10614 = vmatprep.subr.bf16.mxu1 %v10943_v19  ;;  %v9002_v53 = vld [vmem:[%s13142_s22 + $0x10] sm:$0xff]  ;;  %v9004_v13 = vld [vmem:[%s13142_s22 + $0x20] sm:$0xff]  ;;  %v9005_v41 = vld [vmem:[%s13142_s22 + $0x28] sm:$0xff] }
 0x60d   : > { %v8295_v4 = vmax.f32 %v8287_v2, 0.0  ;;  %10591 = vmatpush3.bf16.msra.mxu0 %v10940_v46  ;;  %8951 = vmatprep.mubr.bf16.mxu0 %v8317_v23  ;;  %v8236_v52 = vmul.f32 %v8217_v45, %v8186_v48  ;;  %v8292_v2 = vmax.f32 %v8284_v22, 0.0  ;;  %v10731_v39 = vpack.c.bf16 %v9005_v41, %v9004_v13  ;;  %v9006_v46 = vld [vmem:[%s13142_s22 + $0x30] sm:$0xff]  ;;  %v9008_v19 = vld [vmem:[%s13142_s22 + $0x40] sm:$0xff]  ;;  %v9009_v23 = vld [vmem:[%s13142_s22 + $0x48] sm:$0xff] }
 0x60e   : > { %10592 = vmatprep.subr.bf16.mxu0 %v10942_v44  ;;  %v10734_v44 = vpack.c.bf16 %v9007_v16, %v9006_v46  ;;  %v9094_v35 = vld [vmem:[%s13143_s26] sm:$0xff]  ;;  %v9095_v36 = vld [vmem:[%s13143_s26 + $0x8] sm:$0xff]  ;;  %v9097_v51 = vld [vmem:[%s13143_s26 + $0x18] sm:$0xff] }
 0x60f   : > { %v8311_v8 = vmul.f32 %v8303_v31, %v8295_v4  ;;  %10615 = vmatpush3.bf16.msra.mxu1 %v10945_v55  ;;  %v8286_v9 = vadd.f32 %v8267_v54, %v8236_v52  ;;  %v8308_v17 = vmul.f32 %v8300_v3, %v8292_v2  ;;  %v9011_v55 = vld [vmem:[%s13142_s22 + $0x58] sm:$0xff]  ;;  %v9099_v43 = vld [vmem:[%s13143_s26 + $0x28] sm:$0xff] }
 0x610   : > { %10616 = vmatprep.subr.bf16.mxu1 %v10947_v28  ;;  %v9012_v28 = vld [vmem:[%s13142_s22 + $0x60] sm:$0xff]  ;;  %v9185_v13 = vld [vmem:[%s13144_s11 + $0x8] sm:$0xf] }
 0x611   : > { %v8319_v25 = vpack.c.bf16 %v8311_v8, %v8311_v8  ;;  %10593 = vmatpush3.bf16.msra.mxu0 %v10944_v26  ;;  %v8294_v61 = vmax.f32 %v8286_v9, 0.0  ;;  %v8316_v20 = vpack.c.bf16 %v8308_v17, %v8308_v17  ;;  %v9003_v8 = vld [vmem:[%s13142_s22 + $0x18] sm:$0xff]  ;;  %v9010_v26 = vld [vmem:[%s13142_s22 + $0x50] sm:$0xff] }
 0x612   : > { %10594 = vmatprep.subr.bf16.mxu0 %v10946_v27  ;;  %v10728_v11 = vpack.c.bf16 %v9003_v8, %v9002_v53  ;;  %v10740_v27 = vpack.c.bf16 %v9011_v55, %v9010_v26 }
 0x613   : > { %8991 = vmatprep.mubr.bf16.mxu1 %v8319_v25  ;;  %10617 = vmatpush3.bf16.msra.mxu1 %v10949_v56  ;;  %v8310_v31 = vmul.f32 %v8302_v59, %v8294_v61  ;;  %v10737_v25 = vpack.c.bf16 %v9009_v23, %v9008_v19  ;;  %v10538_v19 = vld [vmem:[#allocation3] ss:$0 sm:$0xff] }
 0x614   : > { %10618 = vmatprep.subr.bf16.mxu1 %v10951_v33 }
 0x615   : > { %10595 = vmatpush3.bf16.msra.mxu0 %v10948_v38  ;;  %v8318_v4 = vpack.c.bf16 %v8310_v31, %v8310_v31  ;;  %v9013_v38 = vld [vmem:[%s13142_s22 + $0x68] sm:$0xff]  ;;  %v9100_v31 = vld [vmem:[%s13143_s26 + $0x30] sm:$0xff] }
 0x616   : > { %10596 = vmatprep.subr.bf16.mxu0 %v10950_v30  ;;  %v10743_v56 = vpack.c.bf16 %v9013_v38, %v9012_v28  ;;  %v9015_v30 = vld [vmem:[%s13142_s22 + $0x78] sm:$0xff] }
 0x617   : > { %10619 = vmatpush3.bf16.msra.mxu1 %v10953_v37  ;;  %v10746_v33 = vpack.c.bf16 %v9015_v30, %v9014_v42  ;;  %v10749_v37 = vpack.c.bf16 %v9095_v36, %v9094_v35 }
 0x618   : > { %10620 = vmatprep.subr.bf16.mxu1 %v10955_v40  ;;  %v9098_v40 = vld [vmem:[%s13143_s26 + $0x20] sm:$0xff] }
 0x619   : > { %10597 = vmatpush3.bf16.msra.mxu0 %v10952_v49  ;;  %v9096_v49 = vld [vmem:[%s13143_s26 + $0x10] sm:$0xff]  ;;  %v10755_v48 = vpack.c.bf16 %v9099_v43, %v9098_v40 }
 0x61a   : > { %10598 = vmatprep.subr.bf16.mxu0 %v10954_v14  ;;  %v10752_v14 = vpack.c.bf16 %v9097_v51, %v9096_v49 }
 0x61b   : > { %10621 = vmatpush3.bf16.msra.mxu1 %v10957_v15  ;;  %v10470_v15 = vld [vmem:[#allocation12] ss:$0 sm:$0xff] }
 0x61c   : > { %10622 = vmatprep.subr.bf16.mxu1 %v10959_v47 }
 0x61d   : > { %10599 = vmatpush3.bf16.msra.mxu0 %v10956_v0 }
 0x61e   : > { %10600 = vmatprep.subr.bf16.mxu0 %v10958_v21 }
 0x61f   : > { %10623 = vmatpush3.bf16.msra.mxu1 %v10961_v32 }
 0x620   : > { %10624 = vmatprep.subr.bf16.mxu1 %v10963_v62 }
 0x621   : > { %10601 = vmatpush3.bf16.msra.mxu0 %v10960_v18 }
 0x622   : > { %10602 = vmatprep.subr.bf16.mxu0 %v10962_v60 }
 0x623   : > { %10625 = vmatpush3.bf16.msra.mxu1 %v10965_v12 }
 0x624   : > { %10626 = vmatprep.subr.bf16.mxu1 %v10967_v57 }
 0x625   : > { %10603 = vmatpush3.bf16.msra.mxu0 %v10964_v6 }
 0x626   : > { %10604 = vmatprep.subr.bf16.mxu0 %v10966_v10 }
 0x627   : > { %10627 = vmatpush3.bf16.msra.mxu1 %v10969_v1 }
 0x628   : > { %10748 = vmatprep.subr.bf16.mxu1 %v11297_v7 }
 0x629   : > { %10605 = vmatpush3.bf16.msra.mxu0 %v10968_v29 }
 0x62a   : > { %8992 = vmatmul.mubr.bf16.vlgmr.msra.gmra.mrb[4].mxu1 %v8318_v4  ;;  %10724 = vmatprep.subr.bf16.mxu0 %v11297_v7 }
 0x62b   : > { %10714 = vmatprep.mubr.msk.f32.mxu1 %vm11298_vm0, %v11299_v34  ;;  %10750 = vmatpush3.bf16.msra.mxu1 %v10749_v37 }
 0x62c   : > { %8952 = vmatmul.mubr.bf16.vlgmr.msra.gmra.mrb[4].mxu0 %v8316_v20  ;;  %10751 = vmatprep.subr.bf16.mxu1 %v11297_v7  ;;  %v9101_v20 = vld [vmem:[%s13143_s26 + $0x38] sm:$0xff] }
 0x62d   : > { %10726 = vmatpush3.bf16.msra.mxu0 %v10725_v63  ;;  %10695 = vmatprep.mubr.msk.f32.mxu0 %vm11298_vm0, %v11299_v34  ;;  %v10758_v4 = vpack.c.bf16 %v9101_v20, %v9100_v31 }
 0x62e   : > { %10727 = vmatprep.subr.bf16.mxu0 %v11297_v7 }
 0x62f   : > { %10753 = vmatpush3.bf16.msra.mxu1 %v10752_v14 }
 0x630   : > { %10754 = vmatprep.subr.bf16.mxu1 %v11297_v7 }
 0x631   : > { %10729 = vmatpush3.bf16.msra.mxu0 %v10728_v11  ;;  %v9184_v11 = vld [vmem:[%s13144_s11] sm:$0xff] }
 0x632   : > { %10730 = vmatprep.subr.bf16.mxu0 %v11297_v7  ;;  %v10761_v41 = vpack.c.bf16 %v9185_v13, %v9184_v11 }
 0x633   : > { %10756 = vmatpush3.bf16.msra.mxu1 %v10755_v48 }
 0x634   : > { %10757 = vmatprep.subr.bf16.mxu1 %v11297_v7 }
 0x635   : > { %10732 = vmatpush3.bf16.msra.mxu0 %v10731_v39 }
 0x636   : > { %10733 = vmatprep.subr.bf16.mxu0 %v11297_v7 }
 0x637   : > { %10759 = vmatpush3.bf16.msra.mxu1 %v10758_v4 }
 0x638   : > { %10760 = vmatprep.subr.bf16.mxu1 %v11297_v7 }
 0x639   : > { %10735 = vmatpush3.bf16.msra.mxu0 %v10734_v44 }
 0x63a   : > { %10736 = vmatprep.subr.bf16.mxu0 %v11297_v7 }
 0x63d   : > { %10738 = vmatpush3.bf16.msra.mxu0 %v10737_v25 }
 0x63e   : > { %10739 = vmatprep.subr.bf16.mxu0 %v11297_v7 }
 0x641   : > { %10741 = vmatpush3.bf16.msra.mxu0 %v10740_v27 }
 0x642   : > { %10742 = vmatprep.subr.bf16.mxu0 %v11297_v7 }
 0x645   : > { %10744 = vmatpush3.bf16.msra.mxu0 %v10743_v56 }
 0x646   : > { %10745 = vmatprep.subr.bf16.mxu0 %v11297_v7  ;;  %v10536_v7 = vld [vmem:[#allocation15] ss:$0 sm:$0xff] }
 0x649   : > { %10747 = vmatpush3.bf16.msra.mxu0 %v10746_v33 }
 0x6dd   : > { %v10584_v0 = vpop.f32.mrb[0].mxu1 }
 0x6de   : > { %v10585_v21 = vpop.f32.mrb[1].mxu1 }
 0x6df   : > { %v10562_v45 = vpop.f32.mrb[0].mxu0  ;;  %v10586_v50 = vadd.f32 %v10585_v21, %v10584_v0  ;;  %v10587_v54 = vpop.f32.mrb[2].mxu1 }
 0x6e0   : > { %v10563_v58 = vpop.f32.mrb[1].mxu0  ;;  %v10588_v32 = vpop.f32.mrb[3].mxu1 }
 0x6e1   : > { %v10564_v47 = vadd.f32 %v10563_v58, %v10562_v45  ;;  %v10565_v52 = vpop.f32.mrb[2].mxu0 }
 0x6e2   : > { %v10566_v18 = vpop.f32.mrb[3].mxu0 }
 0x6e3   : > { %v8874_v60 = vadd.f32 %v10564_v47, %v10470_v15 }
 0x6e5   : > { %v8914_v62 = vadd.f32 %v10586_v50, %v8874_v60 }
 0x6fd   : > { %v10628_v9 = vpop.f32.mrb[4].mxu1 }
 0x6fe   : > { %v10629_v12 = vpop.f32.mrb[5].mxu1 }
 0x6ff   : > { %v10606_v22 = vpop.f32.mrb[4].mxu0  ;;  %v10630_v57 = vadd.f32 %v10629_v12, %v10628_v9  ;;  %v10631_v61 = vpop.f32.mrb[6].mxu1 }
 0x700   : > { %v10607_v6 = vpop.f32.mrb[5].mxu0  ;;  %v10632_v59 = vpop.f32.mrb[7].mxu1 }
 0x701   : > { %v10608_v10 = vadd.f32 %v10607_v6, %v10606_v22  ;;  %v10609_v2 = vpop.f32.mrb[6].mxu0 }
 0x702   : > { %v10610_v3 = vpop.f32.mrb[7].mxu0 }
 0x703   : > { %v8954_v29 = vadd.f32 %v10608_v10, %v8914_v62 }
 0x705   : > { %v8994_v1 = vadd.f32 %v10630_v57, %v8954_v29 }
 0x707   : > { %v8999_v17 = vmax.f32 %v8994_v1, 0.0 }
 0x709   : > { %10696 = vmatmul.mubr.f32.vlgmr.msra.gmra.mrb[8].mxu0 %v8999_v17 }
 0x7dc   : > { %v9089_v5 = vpop.f32.mrb[8].mxu0 }
 0x7dd   : > { %v9090_v53 = vadd.f32 %v10535_v24, %v9089_v5  ;;  %v10697_v63 = vpop.f32.mrb[9].mxu0 }
 0x7df   : > { %v9093_v8 = vmax.f32 %v9090_v53, 0.0 }
 0x7e1   : > { %10715 = vmatmul.mubr.msk.f32.vlgmr.msra.gmra.mrb[8].mxu1 %vm9109_vm1, %v9093_v8 }
 0x7e2   : > { %10721 = vmatprep.mubr.msk.f32.mxu1 %vm11298_vm0, %v11299_v34  ;;  %10763 = vmatpush3.bf16.msk.msra.mxu1 %vm10762_vm4, %v10761_v41 }
 0x8b4   : > { %v9179_v39 = vpop.f32.mrb[8].mxu1 }
 0x8b5   : > { %v9180_v46 = vadd.f32 %v10536_v7, %v9179_v39  ;;  %v10716_v16 = vpop.f32.mrb[9].mxu1 }
 0x8b7   : > { %v9183_v44 = vmax.f32 %v9180_v46, 0.0 }
 0x8b9   : > { %10722 = vmatmul.mubr.msk.f32.vlgmr.msra.gmra.mrb[10].mxu1 %vm9193_vm5, %v9183_v44 }
 0x98c   : > { %v9267_v23 = vpop.f32.mrb[10].mxu1 }
 0x98d   : > { %v9268_v25 = vadd.f32 %v10538_v19, %v9267_v23  ;;  %v10723_v26 = vpop.f32.mrb[11].mxu1 }
 0x98f   : > { %9272 = vst.msk [vmem:[%s13145_s20] sm:$0xff] %vm9271_vm6, %v9268_v25 }
 0x990 PF: > { %p32_p4 = scmp.ge.s32.totalorder %s11576_s24, 4   ;;  %s13146_s15 = smov %s11272_s16 }
 0x991   : > { %s13147_s16 = smov %s11276_s17  ;;  %s13148_s17 = smov %s11587_s29 }
 0x992   : > { %s13149_s18 = smov %s11576_s24  ;;  %34 = sbr.rel (!%p32_p4) target bundleno = 16 (0x10), region = 161 }
 0x999   :  { %9284 = vsyncpa [#allocation5], 1 }
 0x99a   :  { %9286 = vsyncpa [#allocation5 + $0x1], 1 }
 0x99b   :  { %9287 = vsyncpa [#allocation7], 1 }
 0x99c   :  { %9289 = vsyncpa [#allocation7 + $0x1], 1 }
 0x99d   :  { %9290 = vsyncpa [#allocation10], 1 }
 0x99e   :  { %9291 = vsyncpa [#allocation13], 1 }
 0x99f   :  { %9292 = vsyncpa [#allocation16], 1 }

</bundles_post_ra>
